<compile_context>
chip_gen: v5e
topology: v5e:2x2
jax: 0.10.0
libtpu: 0.0.40
codegen_flags: <defaults>
</compile_context>

<pallas_src>
import math
import functools

import jax
import jax.numpy as jnp
from jax import lax
from jax.experimental import pallas as pl
from jax.experimental.pallas import tpu as pltpu


_EPS = 1e-5                       # nn.Transformer layer_norm_eps default
_VMEM_LIMIT = 32 * 1024 * 1024    # explicit scoped-VMEM limit (portable incl. v7x)


def _cp(semantics):
    return pltpu.CompilerParams(dimension_semantics=semantics,
                                vmem_limit_bytes=_VMEM_LIMIT)


def _rep_spec(shape):
    """Full-array block whose block index is constant across the (rank-1) grid."""
    zeros = (0,) * len(shape)
    return pl.BlockSpec(shape, lambda b: zeros)


# ----------------------- in-kernel helpers (operate on values) -----------------------

def _layer_norm_v(x, g, b, eps=_EPS):
    # x: (S, D) f32; g, b: (1, D) f32 -- statistics kept in f32.
    mean = jnp.mean(x, axis=-1, keepdims=True)
    var = jnp.mean(jnp.square(x - mean), axis=-1, keepdims=True)
    return (x - mean) * lax.rsqrt(var + eps) * g + b


def _matmul_v(x, w, b):
    # bf16 MXU matmul with f32 accumulation; bias add in f32.
    y = lax.dot_general(x.astype(w.dtype), w, (((1,), (0,)), ((), ())),
                        preferred_element_type=jnp.float32)
    return y + b


def _mha_proj_v(q, k, v, wo, bo, mask, num_heads):
    """Multi-head attention + output projection, fully in-register/VMEM.

    q, k, v: (S*, D) f32; wo: (D, D) bf16; bo: (1, D) f32; mask: (Sq, Sk) or None.
    The output projection is folded into the head loop as a sum of per-head
    (Sq, Dh) @ Wo[h*Dh:(h+1)*Dh, :] partial products (no concat / scratch).
    """
    Sq, D = q.shape
    Dh = D // num_heads
    scale = 1.0 / math.sqrt(Dh)
    acc = jnp.zeros((Sq, wo.shape[1]), jnp.float32)
    for h in range(num_heads):                       # static, unrolled
        sl = slice(h * Dh, (h + 1) * Dh)
        qh = (q[:, sl] * scale).astype(jnp.bfloat16)
        kh = k[:, sl].astype(jnp.bfloat16)
        vh = v[:, sl].astype(jnp.bfloat16)
        s = lax.dot_general(qh, kh, (((1,), (1,)), ((), ())),
                            preferred_element_type=jnp.float32)     # (Sq, Sk)
        if mask is not None:
            s = s + mask
        m = jnp.max(s, axis=-1, keepdims=True)
        p = jnp.exp(s - m)
        l = jnp.sum(p, axis=-1, keepdims=True)
        oh = lax.dot_general(p.astype(jnp.bfloat16), vh, (((1,), (0,)), ((), ())),
                             preferred_element_type=jnp.float32)    # (Sq, Dh)
        oh = oh * pl.reciprocal(l, approx=True)      # EUP reciprocal, post-matmul
        acc = acc + lax.dot_general(oh.astype(jnp.bfloat16), wo[sl, :],
                                    (((1,), (0,)), ((), ())),
                                    preferred_element_type=jnp.float32)
    return acc + bo


# --------------------------------- Pallas kernels ---------------------------------

def _embed_pe_kernel(emb_ref, pe_ref, o_ref, *, scale):
    # emb: (B, S, D); pe: (B, 1, D) broadcast over seq (faithful to reference).
    pe = jnp.broadcast_to(pe_ref[...], o_ref.shape)
    o_ref[...] = emb_ref[...] * scale + pe


def _encoder_layer_kernel(x_ref, wqkv_ref, bqkv_ref, wo_ref, bo_ref,
                          ln1_g_ref, ln1_b_ref, w1_ref, b1_ref,
                          w2_ref, b2_ref, ln2_g_ref, ln2_b_ref,
                          o_ref, *, num_heads):
    # One grid step == one batch element; everything below stays in VMEM.
    D = x_ref.shape[-1]
    x = x_ref[0]                                             # (S, D) f32
    qkv = _matmul_v(x, wqkv_ref[...], bqkv_ref[...])         # fused QKV (S, 3D)
    q, k, v = qkv[:, :D], qkv[:, D:2 * D], qkv[:, 2 * D:]
    attn = _mha_proj_v(q, k, v, wo_ref[...], bo_ref[...], None, num_heads)
    h1 = _layer_norm_v(x + attn, ln1_g_ref[...], ln1_b_ref[...])      # post-norm
    ff = jnp.maximum(_matmul_v(h1, w1_ref[...], b1_ref[...]), 0.0)    # relu FFN
    ff = _matmul_v(ff, w2_ref[...], b2_ref[...])
    o_ref[0] = _layer_norm_v(h1 + ff, ln2_g_ref[...], ln2_b_ref[...]).astype(o_ref.dtype)


def _decoder_layer_kernel(x_ref, mem_ref, mask_ref,
                          s_wqkv_ref, s_bqkv_ref, s_wo_ref, s_bo_ref,
                          ln1_g_ref, ln1_b_ref,
                          c_wq_ref, c_bq_ref, c_wkv_ref, c_bkv_ref,
                          c_wo_ref, c_bo_ref, ln2_g_ref, ln2_b_ref,
                          w1_ref, b1_ref, w2_ref, b2_ref,
                          ln3_g_ref, ln3_b_ref, o_ref, *, num_heads):
    D = x_ref.shape[-1]
    x = x_ref[0]                                             # (St, D)
    mem = mem_ref[0]                                         # (Ss, D)
    mask = mask_ref[...]                                     # (St, St) additive

    # masked self-attention (fused QKV)
    qkv = _matmul_v(x, s_wqkv_ref[...], s_bqkv_ref[...])
    q, k, v = qkv[:, :D], qkv[:, D:2 * D], qkv[:, 2 * D:]
    sa = _mha_proj_v(q, k, v, s_wo_ref[...], s_bo_ref[...], mask, num_heads)
    h1 = _layer_norm_v(x + sa, ln1_g_ref[...], ln1_b_ref[...])

    # cross-attention (Q from decoder, fused KV from encoder memory, no mask)
    cq = _matmul_v(h1, c_wq_ref[...], c_bq_ref[...])
    ckv = _matmul_v(mem, c_wkv_ref[...], c_bkv_ref[...])
    ck, cv = ckv[:, :D], ckv[:, D:]
    ca = _mha_proj_v(cq, ck, cv, c_wo_ref[...], c_bo_ref[...], None, num_heads)
    h2 = _layer_norm_v(h1 + ca, ln2_g_ref[...], ln2_b_ref[...])

    # FFN
    ff = jnp.maximum(_matmul_v(h2, w1_ref[...], b1_ref[...]), 0.0)
    ff = _matmul_v(ff, w2_ref[...], b2_ref[...])
    o_ref[0] = _layer_norm_v(h2 + ff, ln3_g_ref[...], ln3_b_ref[...]).astype(o_ref.dtype)


def _layer_norm_kernel(x_ref, g_ref, b_ref, o_ref):
    x = x_ref[...].astype(jnp.float32)
    o_ref[...] = _layer_norm_v(x, g_ref[...], b_ref[...]).astype(o_ref.dtype)


def _norm_linear_kernel(x_ref, g_ref, b_ref, w_ref, bo_ref, o_ref):
    # Final decoder LayerNorm fused with the output projection.
    x = _layer_norm_v(x_ref[...].astype(jnp.float32), g_ref[...], b_ref[...])
    o_ref[...] = _matmul_v(x, w_ref[...], bo_ref[...]).astype(o_ref.dtype)


# --------------------------------- wrappers ---------------------------------

def embed_pe(emb, pe_b, scale):
    B, S, D = emb.shape
    return pl.pallas_call(
        functools.partial(_embed_pe_kernel, scale=scale),
        grid=(1,),
        out_shape=jax.ShapeDtypeStruct((B, S, D), jnp.float32),
        in_specs=[_rep_spec((B, S, D)), _rep_spec((B, 1, D))],
        out_specs=_rep_spec((B, S, D)),
        compiler_params=_cp(("arbitrary",)),
    )(emb, pe_b)


def encoder_layer(x, p, num_heads):
    B, S, D = x.shape
    F = p["ff1_w"].shape[1]
    weights = (p["qkv_w"], p["qkv_b"], p["o_w"], p["o_b"],
               p["ln1_g"], p["ln1_b"], p["ff1_w"], p["ff1_b"],
               p["ff2_w"], p["ff2_b"], p["ln2_g"], p["ln2_b"])
    flops_per_b = (2 * S * D * 3 * D       # fused QKV projection
                   + 4 * S * S * D         # attention scores + p@v
                   + 2 * S * D * D         # output projection
                   + 4 * S * D * F)        # FFN
    bytes_accessed = int(2 * x.size * 4
                         + sum(int(w.size) * w.dtype.itemsize for w in weights))
    return pl.pallas_call(
        functools.partial(_encoder_layer_kernel, num_heads=num_heads),
        grid=(B,),
        out_shape=jax.ShapeDtypeStruct((B, S, D), jnp.float32),
        in_specs=[pl.BlockSpec((1, S, D), lambda b: (b, 0, 0))]
                 + [_rep_spec(w.shape) for w in weights],
        out_specs=pl.BlockSpec((1, S, D), lambda b: (b, 0, 0)),
        compiler_params=_cp(("parallel",)),
        cost_estimate=pl.CostEstimate(flops=int(B * flops_per_b),
                                      transcendentals=int(B * num_heads * S * S),
                                      bytes_accessed=bytes_accessed),
    )(x, *weights)


def decoder_layer(x, mem, tgt_mask, p, num_heads):
    B, St, D = x.shape
    Ss = mem.shape[1]
    F = p["ff1_w"].shape[1]
    weights = (p["s_qkv_w"], p["s_qkv_b"], p["s_o_w"], p["s_o_b"],
               p["ln1_g"], p["ln1_b"],
               p["c_q_w"], p["c_q_b"], p["c_kv_w"], p["c_kv_b"],
               p["c_o_w"], p["c_o_b"], p["ln2_g"], p["ln2_b"],
               p["ff1_w"], p["ff1_b"], p["ff2_w"], p["ff2_b"],
               p["ln3_g"], p["ln3_b"])
    flops_per_b = (2 * St * D * 3 * D + 4 * St * St * D + 2 * St * D * D    # self-attn
                   + 2 * St * D * D + 2 * Ss * D * 2 * D                    # cross proj
                   + 4 * St * Ss * D + 2 * St * D * D                       # cross attn
                   + 4 * St * D * F)                                        # FFN
    bytes_accessed = int(2 * x.size * 4 + mem.size * 4 + tgt_mask.size * 4
                         + sum(int(w.size) * w.dtype.itemsize for w in weights))
    return pl.pallas_call(
        functools.partial(_decoder_layer_kernel, num_heads=num_heads),
        grid=(B,),
        out_shape=jax.ShapeDtypeStruct((B, St, D), jnp.float32),
        in_specs=[pl.BlockSpec((1, St, D), lambda b: (b, 0, 0)),
                  pl.BlockSpec((1, Ss, D), lambda b: (b, 0, 0)),
                  _rep_spec(tgt_mask.shape)]
                 + [_rep_spec(w.shape) for w in weights],
        out_specs=pl.BlockSpec((1, St, D), lambda b: (b, 0, 0)),
        compiler_params=_cp(("parallel",)),
        cost_estimate=pl.CostEstimate(
            flops=int(B * flops_per_b),
            transcendentals=int(B * num_heads * (St * St + St * Ss)),
            bytes_accessed=bytes_accessed),
    )(x, mem, tgt_mask, *weights)


def layer_norm(x, g, b):
    M, D = x.shape
    return pl.pallas_call(
        _layer_norm_kernel,
        grid=(1,),
        out_shape=jax.ShapeDtypeStruct((M, D), x.dtype),
        in_specs=[_rep_spec((M, D)), _rep_spec((1, D)), _rep_spec((1, D))],
        out_specs=_rep_spec((M, D)),
        compiler_params=_cp(("arbitrary",)),
    )(x, g, b)


def norm_linear(x, g, b, w, bias):
    # Fused final LayerNorm + output projection, lane-padded to 128 for dense stores.
    M, D = x.shape
    N = w.shape[1]
    n_pad = max(128, ((N + 127) // 128) * 128)
    w_p = jnp.zeros((D, n_pad), w.dtype).at[:, :N].set(w)
    b_p = jnp.zeros((1, n_pad), bias.dtype).at[:, :N].set(bias)
    out = pl.pallas_call(
        _norm_linear_kernel,
        grid=(1,),
        out_shape=jax.ShapeDtypeStruct((M, n_pad), jnp.float32),
        in_specs=[_rep_spec((M, D)), _rep_spec((1, D)), _rep_spec((1, D)),
                  _rep_spec((D, n_pad)), _rep_spec((1, n_pad))],
        out_specs=_rep_spec((M, n_pad)),
        compiler_params=_cp(("arbitrary",)),
        cost_estimate=pl.CostEstimate(flops=int(2 * M * D * n_pad),
                                      transcendentals=0,
                                      bytes_accessed=int(M * D * 4 + D * n_pad * 2
                                                         + M * n_pad * 4)),
    )(x, g, b, w_p, b_p)
    return out[:, :N]


# --------------------------------- model glue ---------------------------------

def transformer_forward(params, src_tokens, tgt_tokens, tgt_mask, num_heads):
    B, Ss = src_tokens.shape
    _, St = tgt_tokens.shape
    D = params["embedding"].shape[1]
    emb_scale = math.sqrt(D)

    # TODO(synk): embedding gather (data-dependent lookup) kept in plain JAX.
    src_emb = jnp.take(params["embedding"], src_tokens, axis=0)   # (B, Ss, D)
    tgt_emb = jnp.take(params["embedding"], tgt_tokens, axis=0)   # (B, St, D)

    # Faithful to the reference: pe[:x.size(0)] is added BEFORE the permute,
    # i.e. indexed by the batch dim and broadcast over the sequence dim.
    pe_b = params["pe"][:B]                                       # (B, 1, D)
    src = embed_pe(src_emb, pe_b, emb_scale)                      # (B, Ss, D)
    tgt = embed_pe(tgt_emb, pe_b, emb_scale)                      # (B, St, D)

    # Encoder stack + final encoder norm (nn.Transformer attaches one).
    mem = src
    for p in params["encoder_layers"]:
        mem = encoder_layer(mem, p, num_heads)
    mem = layer_norm(mem.reshape(B * Ss, D),
                     params["enc_norm_g"], params["enc_norm_b"]).reshape(B, Ss, D)

    # Decoder stack + fused final norm / output projection.
    out = tgt
    for p in params["decoder_layers"]:
        out = decoder_layer(out, mem, tgt_mask, p, num_heads)
    logits = norm_linear(out.reshape(B * St, D),
                         params["dec_norm_g"], params["dec_norm_b"],
                         params["out_w"], params["out_b"])        # (B*St, num_tokens)

    num_tokens = params["out_w"].shape[1]
    logits = logits.reshape(B, St, num_tokens)
    # Present output like the reference module: (tgt_seq, batch, num_tokens).
    return jnp.transpose(logits, (1, 0, 2))


def get_tgt_mask(size):
    tril = jnp.tril(jnp.ones((size, size), jnp.float32)) == 1
    return jnp.where(tril, 0.0, float("-inf")).astype(jnp.float32)


# ------------------------------- parameter init -------------------------------

def _init_dense(key, in_dim, out_dim, scale=0.02):
    kw, kb = jax.random.split(key)
    w = (scale * jax.random.normal(kw, (in_dim, out_dim), jnp.float32)).astype(jnp.bfloat16)
    b = scale * jax.random.normal(kb, (1, out_dim), jnp.float32)
    return w, b


def _init_encoder_layer(key, d_model, d_ff):
    ks = jax.random.split(key, 4)
    qkv_w, qkv_b = _init_dense(ks[0], d_model, 3 * d_model)
    o_w, o_b = _init_dense(ks[1], d_model, d_model)
    ff1_w, ff1_b = _init_dense(ks[2], d_model, d_ff)
    ff2_w, ff2_b = _init_dense(ks[3], d_ff, d_model)
    ones = jnp.ones((1, d_model), jnp.float32)
    zeros = jnp.zeros((1, d_model), jnp.float32)
    return dict(qkv_w=qkv_w, qkv_b=qkv_b, o_w=o_w, o_b=o_b,
                ff1_w=ff1_w, ff1_b=ff1_b, ff2_w=ff2_w, ff2_b=ff2_b,
                ln1_g=ones, ln1_b=zeros, ln2_g=ones, ln2_b=zeros)


def _init_decoder_layer(key, d_model, d_ff):
    ks = jax.random.split(key, 7)
    s_qkv_w, s_qkv_b = _init_dense(ks[0], d_model, 3 * d_model)
    s_o_w, s_o_b = _init_dense(ks[1], d_model, d_model)
    c_q_w, c_q_b = _init_dense(ks[2], d_model, d_model)
    c_kv_w, c_kv_b = _init_dense(ks[3], d_model, 2 * d_model)
    c_o_w, c_o_b = _init_dense(ks[4], d_model, d_model)
    ff1_w, ff1_b = _init_dense(ks[5], d_model, d_ff)
    ff2_w, ff2_b = _init_dense(ks[6], d_ff, d_model)
    ones = jnp.ones((1, d_model), jnp.float32)
    zeros = jnp.zeros((1, d_model), jnp.float32)
    return dict(s_qkv_w=s_qkv_w, s_qkv_b=s_qkv_b, s_o_w=s_o_w, s_o_b=s_o_b,
                c_q_w=c_q_w, c_q_b=c_q_b, c_kv_w=c_kv_w, c_kv_b=c_kv_b,
                c_o_w=c_o_w, c_o_b=c_o_b,
                ff1_w=ff1_w, ff1_b=ff1_b, ff2_w=ff2_w, ff2_b=ff2_b,
                ln1_g=ones, ln1_b=zeros, ln2_g=ones, ln2_b=zeros,
                ln3_g=ones, ln3_b=zeros)


def make_positional_encoding(max_len, d_model):
    position = jnp.arange(max_len, dtype=jnp.float32)[:, None]
    div_term = jnp.exp(jnp.arange(0, d_model, 2, dtype=jnp.float32)
                       * (-math.log(10000.0) / d_model))
    pe = jnp.zeros((max_len, 1, d_model), jnp.float32)
    pe = pe.at[:, 0, 0::2].set(jnp.sin(position * div_term))
    pe = pe.at[:, 0, 1::2].set(jnp.cos(position * div_term))
    return pe


def init_params(key, num_tokens, d_model, num_encoder_layers, num_decoder_layers,
                d_ff=2048, max_len=5000):
    n_keys = 2 + num_encoder_layers + num_decoder_layers
    ks = jax.random.split(key, n_keys)
    ones = jnp.ones((1, d_model), jnp.float32)
    zeros = jnp.zeros((1, d_model), jnp.float32)
    out_w, out_b = _init_dense(ks[1], d_model, num_tokens)
    return {
        "embedding": 0.02 * jax.random.normal(ks[0], (num_tokens, d_model), jnp.float32),
        "pe": make_positional_encoding(max_len, d_model),
        "encoder_layers": [_init_encoder_layer(ks[2 + i], d_model, d_ff)
                           for i in range(num_encoder_layers)],
        "decoder_layers": [_init_decoder_layer(ks[2 + num_encoder_layers + i], d_model, d_ff)
                           for i in range(num_decoder_layers)],
        "enc_norm_g": ones, "enc_norm_b": zeros,
        "dec_norm_g": ones, "dec_norm_b": zeros,
        "out_w": out_w, "out_b": out_b,
    }


# ----------------------------------- main -----------------------------------

if __name__ == "__main__":
    num_tokens = 16
    d_model = 32
    num_heads = 4
    num_encoder_layers = 2
    num_decoder_layers = 2
    d_ff = 2048          # nn.Transformer default dim_feedforward
    batch = 2
    seq = 8

    root = jax.random.PRNGKey(0)
    k_params, k_src, k_tgt = jax.random.split(root, 3)

    params = init_params(k_params, num_tokens, d_model,
                         num_encoder_layers, num_decoder_layers, d_ff=d_ff)

    src = jax.random.randint(k_src, (batch, seq), 0, num_tokens, dtype=jnp.int32)
    tgt = jax.random.randint(k_tgt, (batch, seq), 0, num_tokens, dtype=jnp.int32)
    tgt_mask = get_tgt_mask(seq)

    fwd = jax.jit(functools.partial(transformer_forward, num_heads=num_heads))
    logits = fwd(params, src, tgt, tgt_mask)
    logits = jax.block_until_ready(logits)

    assert logits.shape == (seq, batch, num_tokens), logits.shape
    assert bool(jnp.all(jnp.isfinite(logits)))
    print("KERNEL_OK")
</pallas_src>

<mosaic_0001>
module attributes {stable_mosaic.version = 11 : i64} {
  func.func @_embed_pe_kernel(%arg0: i32, %arg1: memref<2x8x32xf32, #tpu.memory_space<vmem>>, %arg2: memref<2x1x32xf32, #tpu.memory_space<vmem>>, %arg3: memref<2x8x32xf32, #tpu.memory_space<vmem>>) attributes {dimension_semantics = [#tpu.dimension_semantics<arbitrary>], iteration_bounds = array<i64: 1>, scalar_prefetch = 0 : i64, scratch_operands = 0 : i64, tpu.core_type = #tpu.core_type<tc>, window_params = [{pipeline_mode = #tpu.pipeline_mode<synchronous>, transform_indices = @transform_0, window_bounds = array<i64: 2, 8, 32>}, {pipeline_mode = #tpu.pipeline_mode<synchronous>, transform_indices = @transform_1, window_bounds = array<i64: 2, 1, 32>}, {pipeline_mode = #tpu.pipeline_mode<synchronous>, transform_indices = @transform_2, window_bounds = array<i64: 2, 8, 32>}]} {
    %c0 = arith.constant 0 : index
    %c0_0 = arith.constant 0 : index
    %c0_1 = arith.constant 0 : index
    %0 = vector.load %arg2[%c0, %c0_0, %c0_1] : memref<2x1x32xf32, #tpu.memory_space<vmem>>, vector<2x1x32xf32>
    %1 = vector.shape_cast %0 : vector<2x1x32xf32> to vector<2x1x32xf32>
    %2 = vector.broadcast %1 : vector<2x1x32xf32> to vector<2x8x32xf32>
    %c0_2 = arith.constant 0 : index
    %c0_3 = arith.constant 0 : index
    %c0_4 = arith.constant 0 : index
    %3 = vector.load %arg1[%c0_2, %c0_3, %c0_4] : memref<2x8x32xf32, #tpu.memory_space<vmem>>, vector<2x8x32xf32>
    %cst = arith.constant 5.65685415 : f32
    %4 = vector.broadcast %cst : f32 to vector<2x8x32xf32>
    %5 = arith.mulf %3, %4 : vector<2x8x32xf32>
    %6 = arith.addf %5, %2 : vector<2x8x32xf32>
    %c0_5 = arith.constant 0 : index
    %c0_6 = arith.constant 0 : index
    %c0_7 = arith.constant 0 : index
    %7 = vector.load %arg3[%c0_5, %c0_6, %c0_7] : memref<2x8x32xf32, #tpu.memory_space<vmem>>, vector<2x8x32xf32>
    tpu.vector_store %arg3[%c0_5, %c0_6, %c0_7], %6 {strides = array<i32>} : memref<2x8x32xf32, #tpu.memory_space<vmem>>, vector<2x8x32xf32>,
    return
  }
  func.func @transform_0(%arg0: i32) -> (i32, i32, i32) {
    %c0_i32 = arith.constant 0 : i32
    %c0_i32_0 = arith.constant 0 : i32
    %c0_i32_1 = arith.constant 0 : i32
    %c0_i32_2 = arith.constant 0 : i32
    return %c0_i32, %c0_i32_0, %c0_i32_1 : i32, i32, i32
  }
  func.func @transform_1(%arg0: i32) -> (i32, i32, i32) {
    %c0_i32 = arith.constant 0 : i32
    %c0_i32_0 = arith.constant 0 : i32
    %c0_i32_1 = arith.constant 0 : i32
    %c0_i32_2 = arith.constant 0 : i32
    return %c0_i32, %c0_i32_0, %c0_i32_1 : i32, i32, i32
  }
  func.func @transform_2(%arg0: i32) -> (i32, i32, i32) {
    %c0_i32 = arith.constant 0 : i32
    %c0_i32_0 = arith.constant 0 : i32
    %c0_i32_1 = arith.constant 0 : i32
    %c0_i32_2 = arith.constant 0 : i32
    return %c0_i32, %c0_i32_0, %c0_i32_1 : i32, i32, i32
  }
}

module attributes {stable_mosaic.version = 11 : i64} {
  func.func @_layer_norm_kernel(%arg0: i32, %arg1: memref<16x32xf32, #tpu.memory_space<vmem>>, %arg2: memref<1x32xf32, #tpu.memory_space<vmem>>, %arg3: memref<1x32xf32, #tpu.memory_space<vmem>>, %arg4: memref<16x32xf32, #tpu.memory_space<vmem>>) attributes {dimension_semantics = [#tpu.dimension_semantics<arbitrary>], iteration_bounds = array<i64: 1>, scalar_prefetch = 0 : i64, scratch_operands = 0 : i64, tpu.core_type = #tpu.core_type<tc>, window_params = [{pipeline_mode = #tpu.pipeline_mode<synchronous>, transform_indices = @transform_0, window_bounds = array<i64: 16, 32>}, {pipeline_mode = #tpu.pipeline_mode<synchronous>, transform_indices = @transform_1, window_bounds = array<i64: 1, 32>}, {pipeline_mode = #tpu.pipeline_mode<synchronous>, transform_indices = @transform_2, window_bounds = array<i64: 1, 32>}, {pipeline_mode = #tpu.pipeline_mode<synchronous>, transform_indices = @transform_3, window_bounds = array<i64: 16, 32>}]} {
    %c0 = arith.constant 0 : index
    %c0_0 = arith.constant 0 : index
    %0 = vector.load %arg1[%c0, %c0_0] : memref<16x32xf32, #tpu.memory_space<vmem>>, vector<16x32xf32>
    %c0_1 = arith.constant 0 : index
    %c0_2 = arith.constant 0 : index
    %1 = vector.load %arg2[%c0_1, %c0_2] : memref<1x32xf32, #tpu.memory_space<vmem>>, vector<1x32xf32>
    %c0_3 = arith.constant 0 : index
    %c0_4 = arith.constant 0 : index
    %2 = vector.load %arg3[%c0_3, %c0_4] : memref<1x32xf32, #tpu.memory_space<vmem>>, vector<1x32xf32>
    %cst = arith.constant dense<0.000000e+00> : vector<16xf32>
    %3 = vector.multi_reduction <add>, %0, %cst [1] : vector<16x32xf32> to vector<16xf32>
    %4 = vector.shape_cast %3 : vector<16xf32> to vector<16x1xf32>
    %cst_5 = arith.constant 3.200000e+01 : f32
    %5 = vector.broadcast %cst_5 : f32 to vector<16x1xf32>
    %6 = arith.divf %4, %5 : vector<16x1xf32>
    %7 = vector.broadcast %6 : vector<16x1xf32> to vector<16x32xf32>
    %8 = arith.subf %0, %7 : vector<16x32xf32>
    %9 = arith.mulf %8, %8 : vector<16x32xf32>
    %cst_6 = arith.constant dense<0.000000e+00> : vector<16xf32>
    %10 = vector.multi_reduction <add>, %9, %cst_6 [1] : vector<16x32xf32> to vector<16xf32>
    %11 = vector.shape_cast %10 : vector<16xf32> to vector<16x1xf32>
    %cst_7 = arith.constant 3.200000e+01 : f32
    %12 = vector.broadcast %cst_7 : f32 to vector<16x1xf32>
    %13 = arith.divf %11, %12 : vector<16x1xf32>
    %14 = vector.broadcast %6 : vector<16x1xf32> to vector<16x32xf32>
    %15 = arith.subf %0, %14 : vector<16x32xf32>
    %cst_8 = arith.constant 9.99999974E-6 : f32
    %16 = vector.broadcast %cst_8 : f32 to vector<16x1xf32>
    %17 = arith.addf %13, %16 : vector<16x1xf32>
    %18 = math.rsqrt %17 : vector<16x1xf32>
    %19 = vector.broadcast %18 : vector<16x1xf32> to vector<16x32xf32>
    %20 = arith.mulf %15, %19 : vector<16x32xf32>
    %21 = vector.broadcast %1 : vector<1x32xf32> to vector<16x32xf32>
    %22 = arith.mulf %20, %21 : vector<16x32xf32>
    %23 = vector.broadcast %2 : vector<1x32xf32> to vector<16x32xf32>
    %24 = arith.addf %22, %23 : vector<16x32xf32>
    %c0_9 = arith.constant 0 : index
    %c0_10 = arith.constant 0 : index
    %25 = vector.load %arg4[%c0_9, %c0_10] : memref<16x32xf32, #tpu.memory_space<vmem>>, vector<16x32xf32>
    tpu.vector_store %arg4[%c0_9, %c0_10], %24 {strides = array<i32>} : memref<16x32xf32, #tpu.memory_space<vmem>>, vector<16x32xf32>,
    return
  }
  func.func @transform_0(%arg0: i32) -> (i32, i32) {
    %c0_i32 = arith.constant 0 : i32
    %c0_i32_0 = arith.constant 0 : i32
    %c0_i32_1 = arith.constant 0 : i32
    return %c0_i32, %c0_i32_0 : i32, i32
  }
  func.func @transform_1(%arg0: i32) -> (i32, i32) {
    %c0_i32 = arith.constant 0 : i32
    %c0_i32_0 = arith.constant 0 : i32
    %c0_i32_1 = arith.constant 0 : i32
    return %c0_i32, %c0_i32_0 : i32, i32
  }
  func.func @transform_2(%arg0: i32) -> (i32, i32) {
    %c0_i32 = arith.constant 0 : i32
    %c0_i32_0 = arith.constant 0 : i32
    %c0_i32_1 = arith.constant 0 : i32
    return %c0_i32, %c0_i32_0 : i32, i32
  }
  func.func @transform_3(%arg0: i32) -> (i32, i32) {
    %c0_i32 = arith.constant 0 : i32
    %c0_i32_0 = arith.constant 0 : i32
    %c0_i32_1 = arith.constant 0 : i32
    return %c0_i32, %c0_i32_0 : i32, i32
  }
}

module attributes {stable_mosaic.version = 11 : i64} {
  func.func @_encoder_layer_kernel(%arg0: i32, %arg1: memref<1x8x32xf32, #tpu.memory_space<vmem>>, %arg2: memref<32x96xbf16, #tpu.memory_space<vmem>>, %arg3: memref<1x96xf32, #tpu.memory_space<vmem>>, %arg4: memref<32x32xbf16, #tpu.memory_space<vmem>>, %arg5: memref<1x32xf32, #tpu.memory_space<vmem>>, %arg6: memref<1x32xf32, #tpu.memory_space<vmem>>, %arg7: memref<1x32xf32, #tpu.memory_space<vmem>>, %arg8: memref<32x2048xbf16, #tpu.memory_space<vmem>>, %arg9: memref<1x2048xf32, #tpu.memory_space<vmem>>, %arg10: memref<2048x32xbf16, #tpu.memory_space<vmem>>, %arg11: memref<1x32xf32, #tpu.memory_space<vmem>>, %arg12: memref<1x32xf32, #tpu.memory_space<vmem>>, %arg13: memref<1x32xf32, #tpu.memory_space<vmem>>, %arg14: memref<1x8x32xf32, #tpu.memory_space<vmem>>) attributes {dimension_semantics = [#tpu.dimension_semantics<parallel>], iteration_bounds = array<i64: 2>, scalar_prefetch = 0 : i64, scratch_operands = 0 : i64, tpu.core_type = #tpu.core_type<tc>, window_params = [{transform_indices = @transform_0, window_bounds = array<i64: 1, 8, 32>}, {pipeline_mode = #tpu.pipeline_mode<synchronous>, transform_indices = @transform_1, window_bounds = array<i64: 32, 96>}, {pipeline_mode = #tpu.pipeline_mode<synchronous>, transform_indices = @transform_2, window_bounds = array<i64: 1, 96>}, {pipeline_mode = #tpu.pipeline_mode<synchronous>, transform_indices = @transform_3, window_bounds = array<i64: 32, 32>}, {pipeline_mode = #tpu.pipeline_mode<synchronous>, transform_indices = @transform_4, window_bounds = array<i64: 1, 32>}, {pipeline_mode = #tpu.pipeline_mode<synchronous>, transform_indices = @transform_5, window_bounds = array<i64: 1, 32>}, {pipeline_mode = #tpu.pipeline_mode<synchronous>, transform_indices = @transform_6, window_bounds = array<i64: 1, 32>}, {pipeline_mode = #tpu.pipeline_mode<synchronous>, transform_indices = @transform_7, window_bounds = array<i64: 32, 2048>}, {pipeline_mode = #tpu.pipeline_mode<synchronous>, transform_indices = @transform_8, window_bounds = array<i64: 1, 2048>}, {pipeline_mode = #tpu.pipeline_mode<synchronous>, transform_indices = @transform_9, window_bounds = array<i64: 2048, 32>}, {pipeline_mode = #tpu.pipeline_mode<synchronous>, transform_indices = @transform_10, window_bounds = array<i64: 1, 32>}, {pipeline_mode = #tpu.pipeline_mode<synchronous>, transform_indices = @transform_11, window_bounds = array<i64: 1, 32>}, {pipeline_mode = #tpu.pipeline_mode<synchronous>, transform_indices = @transform_12, window_bounds = array<i64: 1, 32>}, {transform_indices = @transform_13, window_bounds = array<i64: 1, 8, 32>}]} {
    %c0 = arith.constant 0 : index
    %c0_0 = arith.constant 0 : index
    %c0_1 = arith.constant 0 : index
    %0 = vector.load %arg1[%c0, %c0_0, %c0_1] : memref<1x8x32xf32, #tpu.memory_space<vmem>>, vector<1x8x32xf32>
    %1 = vector.shape_cast %0 : vector<1x8x32xf32> to vector<8x32xf32>
    %c0_2 = arith.constant 0 : index
    %c0_3 = arith.constant 0 : index
    %2 = vector.load %arg2[%c0_2, %c0_3] : memref<32x96xbf16, #tpu.memory_space<vmem>>, vector<32x96xbf16>
    %c0_4 = arith.constant 0 : index
    %c0_5 = arith.constant 0 : index
    %3 = vector.load %arg3[%c0_4, %c0_5] : memref<1x96xf32, #tpu.memory_space<vmem>>, vector<1x96xf32>
    %4 = arith.truncf %1 : vector<8x32xf32> to vector<8x32xbf16>
    %cst = arith.constant dense<0.000000e+00> : vector<8x96xf32>
    %5 = tpu.matmul %4, %2, %cst {dimension_numbers = #tpu.dot_dimension_numbers<[1], [0], [0], [1], [0, 0, 1, 1], [], []>} : vector<8x32xbf16>, vector<32x96xbf16>, vector<8x96xf32> -> vector<8x96xf32>
    %6 = vector.broadcast %3 : vector<1x96xf32> to vector<8x96xf32>
    %7 = arith.addf %5, %6 : vector<8x96xf32>
    %8 = vector.extract_strided_slice %7 {offsets = [0, 0], sizes = [8, 32], strides = [1, 1]} : vector<8x96xf32> to vector<8x32xf32>
    %9 = vector.extract_strided_slice %7 {offsets = [0, 32], sizes = [8, 32], strides = [1, 1]} : vector<8x96xf32> to vector<8x32xf32>
    %10 = vector.extract_strided_slice %7 {offsets = [0, 64], sizes = [8, 32], strides = [1, 1]} : vector<8x96xf32> to vector<8x32xf32>
    %c0_6 = arith.constant 0 : index
    %c0_7 = arith.constant 0 : index
    %11 = vector.load %arg4[%c0_6, %c0_7] : memref<32x32xbf16, #tpu.memory_space<vmem>>, vector<32x32xbf16>
    %c0_8 = arith.constant 0 : index
    %c0_9 = arith.constant 0 : index
    %12 = vector.load %arg5[%c0_8, %c0_9] : memref<1x32xf32, #tpu.memory_space<vmem>>, vector<1x32xf32>
    %cst_10 = arith.constant 0.000000e+00 : f32
    %13 = vector.broadcast %cst_10 : f32 to vector<8x32xf32>
    %14 = vector.extract_strided_slice %8 {offsets = [0, 0], sizes = [8, 8], strides = [1, 1]} : vector<8x32xf32> to vector<8x8xf32>
    %cst_11 = arith.constant 0.353553385 : f32
    %15 = vector.broadcast %cst_11 : f32 to vector<8x8xf32>
    %16 = arith.mulf %14, %15 : vector<8x8xf32>
    %17 = arith.truncf %16 : vector<8x8xf32> to vector<8x8xbf16>
    %18 = vector.extract_strided_slice %9 {offsets = [0, 0], sizes = [8, 8], strides = [1, 1]} : vector<8x32xf32> to vector<8x8xf32>
    %19 = arith.truncf %18 : vector<8x8xf32> to vector<8x8xbf16>
    %20 = vector.extract_strided_slice %10 {offsets = [0, 0], sizes = [8, 8], strides = [1, 1]} : vector<8x32xf32> to vector<8x8xf32>
    %21 = arith.truncf %20 : vector<8x8xf32> to vector<8x8xbf16>
    %cst_12 = arith.constant dense<0.000000e+00> : vector<8x8xf32>
    %22 = tpu.matmul %17, %19, %cst_12 {dimension_numbers = #tpu.dot_dimension_numbers<[1], [1], [0], [0], [0, 0, 1, 0], [], []>} : vector<8x8xbf16>, vector<8x8xbf16>, vector<8x8xf32> -> vector<8x8xf32>
    %cst_13 = arith.constant dense<0xFF800000> : vector<8xf32>
    %23 = vector.multi_reduction <maximumf>, %22, %cst_13 [1] : vector<8x8xf32> to vector<8xf32>
    %24 = vector.shape_cast %23 : vector<8xf32> to vector<8x1xf32>
    %25 = vector.broadcast %24 : vector<8x1xf32> to vector<8x8xf32>
    %26 = arith.subf %22, %25 : vector<8x8xf32>
    %27 = math.exp %26 : vector<8x8xf32>
    %cst_14 = arith.constant dense<0.000000e+00> : vector<8xf32>
    %28 = vector.multi_reduction <add>, %27, %cst_14 [1] : vector<8x8xf32> to vector<8xf32>
    %29 = vector.shape_cast %28 : vector<8xf32> to vector<8x1xf32>
    %30 = arith.truncf %27 : vector<8x8xf32> to vector<8x8xbf16>
    %cst_15 = arith.constant dense<0.000000e+00> : vector<8x8xf32>
    %31 = tpu.matmul %30, %21, %cst_15 {dimension_numbers = #tpu.dot_dimension_numbers<[1], [0], [0], [1], [0, 0, 1, 1], [], []>} : vector<8x8xbf16>, vector<8x8xbf16>, vector<8x8xf32> -> vector<8x8xf32>
    %32 = tpu.reciprocal %29 {approx = true} : vector<8x1xf32> -> vector<8x1xf32>
    %33 = vector.broadcast %32 : vector<8x1xf32> to vector<8x8xf32>
    %34 = arith.mulf %31, %33 : vector<8x8xf32>
    %35 = arith.truncf %34 : vector<8x8xf32> to vector<8x8xbf16>
    %36 = vector.extract_strided_slice %11 {offsets = [0, 0], sizes = [8, 32], strides = [1, 1]} : vector<32x32xbf16> to vector<8x32xbf16>
    %cst_16 = arith.constant dense<0.000000e+00> : vector<8x32xf32>
    %37 = tpu.matmul %35, %36, %cst_16 {dimension_numbers = #tpu.dot_dimension_numbers<[1], [0], [0], [1], [0, 0, 1, 1], [], []>} : vector<8x8xbf16>, vector<8x32xbf16>, vector<8x32xf32> -> vector<8x32xf32>
    %38 = arith.addf %13, %37 : vector<8x32xf32>
    %39 = vector.extract_strided_slice %8 {offsets = [0, 8], sizes = [8, 8], strides = [1, 1]} : vector<8x32xf32> to vector<8x8xf32>
    %cst_17 = arith.constant 0.353553385 : f32
    %40 = vector.broadcast %cst_17 : f32 to vector<8x8xf32>
    %41 = arith.mulf %39, %40 : vector<8x8xf32>
    %42 = arith.truncf %41 : vector<8x8xf32> to vector<8x8xbf16>
    %43 = vector.extract_strided_slice %9 {offsets = [0, 8], sizes = [8, 8], strides = [1, 1]} : vector<8x32xf32> to vector<8x8xf32>
    %44 = arith.truncf %43 : vector<8x8xf32> to vector<8x8xbf16>
    %45 = vector.extract_strided_slice %10 {offsets = [0, 8], sizes = [8, 8], strides = [1, 1]} : vector<8x32xf32> to vector<8x8xf32>
    %46 = arith.truncf %45 : vector<8x8xf32> to vector<8x8xbf16>
    %cst_18 = arith.constant dense<0.000000e+00> : vector<8x8xf32>
    %47 = tpu.matmul %42, %44, %cst_18 {dimension_numbers = #tpu.dot_dimension_numbers<[1], [1], [0], [0], [0, 0, 1, 0], [], []>} : vector<8x8xbf16>, vector<8x8xbf16>, vector<8x8xf32> -> vector<8x8xf32>
    %cst_19 = arith.constant dense<0xFF800000> : vector<8xf32>
    %48 = vector.multi_reduction <maximumf>, %47, %cst_19 [1] : vector<8x8xf32> to vector<8xf32>
    %49 = vector.shape_cast %48 : vector<8xf32> to vector<8x1xf32>
    %50 = vector.broadcast %49 : vector<8x1xf32> to vector<8x8xf32>
    %51 = arith.subf %47, %50 : vector<8x8xf32>
    %52 = math.exp %51 : vector<8x8xf32>
    %cst_20 = arith.constant dense<0.000000e+00> : vector<8xf32>
    %53 = vector.multi_reduction <add>, %52, %cst_20 [1] : vector<8x8xf32> to vector<8xf32>
    %54 = vector.shape_cast %53 : vector<8xf32> to vector<8x1xf32>
    %55 = arith.truncf %52 : vector<8x8xf32> to vector<8x8xbf16>
    %cst_21 = arith.constant dense<0.000000e+00> : vector<8x8xf32>
    %56 = tpu.matmul %55, %46, %cst_21 {dimension_numbers = #tpu.dot_dimension_numbers<[1], [0], [0], [1], [0, 0, 1, 1], [], []>} : vector<8x8xbf16>, vector<8x8xbf16>, vector<8x8xf32> -> vector<8x8xf32>
    %57 = tpu.reciprocal %54 {approx = true} : vector<8x1xf32> -> vector<8x1xf32>
    %58 = vector.broadcast %57 : vector<8x1xf32> to vector<8x8xf32>
    %59 = arith.mulf %56, %58 : vector<8x8xf32>
    %60 = arith.truncf %59 : vector<8x8xf32> to vector<8x8xbf16>
    %61 = vector.extract_strided_slice %11 {offsets = [8, 0], sizes = [8, 32], strides = [1, 1]} : vector<32x32xbf16> to vector<8x32xbf16>
    %cst_22 = arith.constant dense<0.000000e+00> : vector<8x32xf32>
    %62 = tpu.matmul %60, %61, %cst_22 {dimension_numbers = #tpu.dot_dimension_numbers<[1], [0], [0], [1], [0, 0, 1, 1], [], []>} : vector<8x8xbf16>, vector<8x32xbf16>, vector<8x32xf32> -> vector<8x32xf32>
    %63 = arith.addf %38, %62 : vector<8x32xf32>
    %64 = vector.extract_strided_slice %8 {offsets = [0, 16], sizes = [8, 8], strides = [1, 1]} : vector<8x32xf32> to vector<8x8xf32>
    %cst_23 = arith.constant 0.353553385 : f32
    %65 = vector.broadcast %cst_23 : f32 to vector<8x8xf32>
    %66 = arith.mulf %64, %65 : vector<8x8xf32>
    %67 = arith.truncf %66 : vector<8x8xf32> to vector<8x8xbf16>
    %68 = vector.extract_strided_slice %9 {offsets = [0, 16], sizes = [8, 8], strides = [1, 1]} : vector<8x32xf32> to vector<8x8xf32>
    %69 = arith.truncf %68 : vector<8x8xf32> to vector<8x8xbf16>
    %70 = vector.extract_strided_slice %10 {offsets = [0, 16], sizes = [8, 8], strides = [1, 1]} : vector<8x32xf32> to vector<8x8xf32>
    %71 = arith.truncf %70 : vector<8x8xf32> to vector<8x8xbf16>
    %cst_24 = arith.constant dense<0.000000e+00> : vector<8x8xf32>
    %72 = tpu.matmul %67, %69, %cst_24 {dimension_numbers = #tpu.dot_dimension_numbers<[1], [1], [0], [0], [0, 0, 1, 0], [], []>} : vector<8x8xbf16>, vector<8x8xbf16>, vector<8x8xf32> -> vector<8x8xf32>
    %cst_25 = arith.constant dense<0xFF800000> : vector<8xf32>
    %73 = vector.multi_reduction <maximumf>, %72, %cst_25 [1] : vector<8x8xf32> to vector<8xf32>
    %74 = vector.shape_cast %73 : vector<8xf32> to vector<8x1xf32>
    %75 = vector.broadcast %74 : vector<8x1xf32> to vector<8x8xf32>
    %76 = arith.subf %72, %75 : vector<8x8xf32>
    %77 = math.exp %76 : vector<8x8xf32>
    %cst_26 = arith.constant dense<0.000000e+00> : vector<8xf32>
    %78 = vector.multi_reduction <add>, %77, %cst_26 [1] : vector<8x8xf32> to vector<8xf32>
    %79 = vector.shape_cast %78 : vector<8xf32> to vector<8x1xf32>
    %80 = arith.truncf %77 : vector<8x8xf32> to vector<8x8xbf16>
    %cst_27 = arith.constant dense<0.000000e+00> : vector<8x8xf32>
    %81 = tpu.matmul %80, %71, %cst_27 {dimension_numbers = #tpu.dot_dimension_numbers<[1], [0], [0], [1], [0, 0, 1, 1], [], []>} : vector<8x8xbf16>, vector<8x8xbf16>, vector<8x8xf32> -> vector<8x8xf32>
    %82 = tpu.reciprocal %79 {approx = true} : vector<8x1xf32> -> vector<8x1xf32>
    %83 = vector.broadcast %82 : vector<8x1xf32> to vector<8x8xf32>
    %84 = arith.mulf %81, %83 : vector<8x8xf32>
    %85 = arith.truncf %84 : vector<8x8xf32> to vector<8x8xbf16>
    %86 = vector.extract_strided_slice %11 {offsets = [16, 0], sizes = [8, 32], strides = [1, 1]} : vector<32x32xbf16> to vector<8x32xbf16>
    %cst_28 = arith.constant dense<0.000000e+00> : vector<8x32xf32>
    %87 = tpu.matmul %85, %86, %cst_28 {dimension_numbers = #tpu.dot_dimension_numbers<[1], [0], [0], [1], [0, 0, 1, 1], [], []>} : vector<8x8xbf16>, vector<8x32xbf16>, vector<8x32xf32> -> vector<8x32xf32>
    %88 = arith.addf %63, %87 : vector<8x32xf32>
    %89 = vector.extract_strided_slice %8 {offsets = [0, 24], sizes = [8, 8], strides = [1, 1]} : vector<8x32xf32> to vector<8x8xf32>
    %cst_29 = arith.constant 0.353553385 : f32
    %90 = vector.broadcast %cst_29 : f32 to vector<8x8xf32>
    %91 = arith.mulf %89, %90 : vector<8x8xf32>
    %92 = arith.truncf %91 : vector<8x8xf32> to vector<8x8xbf16>
    %93 = vector.extract_strided_slice %9 {offsets = [0, 24], sizes = [8, 8], strides = [1, 1]} : vector<8x32xf32> to vector<8x8xf32>
    %94 = arith.truncf %93 : vector<8x8xf32> to vector<8x8xbf16>
    %95 = vector.extract_strided_slice %10 {offsets = [0, 24], sizes = [8, 8], strides = [1, 1]} : vector<8x32xf32> to vector<8x8xf32>
    %96 = arith.truncf %95 : vector<8x8xf32> to vector<8x8xbf16>
    %cst_30 = arith.constant dense<0.000000e+00> : vector<8x8xf32>
    %97 = tpu.matmul %92, %94, %cst_30 {dimension_numbers = #tpu.dot_dimension_numbers<[1], [1], [0], [0], [0, 0, 1, 0], [], []>} : vector<8x8xbf16>, vector<8x8xbf16>, vector<8x8xf32> -> vector<8x8xf32>
    %cst_31 = arith.constant dense<0xFF800000> : vector<8xf32>
    %98 = vector.multi_reduction <maximumf>, %97, %cst_31 [1] : vector<8x8xf32> to vector<8xf32>
    %99 = vector.shape_cast %98 : vector<8xf32> to vector<8x1xf32>
    %100 = vector.broadcast %99 : vector<8x1xf32> to vector<8x8xf32>
    %101 = arith.subf %97, %100 : vector<8x8xf32>
    %102 = math.exp %101 : vector<8x8xf32>
    %cst_32 = arith.constant dense<0.000000e+00> : vector<8xf32>
    %103 = vector.multi_reduction <add>, %102, %cst_32 [1] : vector<8x8xf32> to vector<8xf32>
    %104 = vector.shape_cast %103 : vector<8xf32> to vector<8x1xf32>
    %105 = arith.truncf %102 : vector<8x8xf32> to vector<8x8xbf16>
    %cst_33 = arith.constant dense<0.000000e+00> : vector<8x8xf32>
    %106 = tpu.matmul %105, %96, %cst_33 {dimension_numbers = #tpu.dot_dimension_numbers<[1], [0], [0], [1], [0, 0, 1, 1], [], []>} : vector<8x8xbf16>, vector<8x8xbf16>, vector<8x8xf32> -> vector<8x8xf32>
    %107 = tpu.reciprocal %104 {approx = true} : vector<8x1xf32> -> vector<8x1xf32>
    %108 = vector.broadcast %107 : vector<8x1xf32> to vector<8x8xf32>
    %109 = arith.mulf %106, %108 : vector<8x8xf32>
    %110 = arith.truncf %109 : vector<8x8xf32> to vector<8x8xbf16>
    %111 = vector.extract_strided_slice %11 {offsets = [24, 0], sizes = [8, 32], strides = [1, 1]} : vector<32x32xbf16> to vector<8x32xbf16>
    %cst_34 = arith.constant dense<0.000000e+00> : vector<8x32xf32>
    %112 = tpu.matmul %110, %111, %cst_34 {dimension_numbers = #tpu.dot_dimension_numbers<[1], [0], [0], [1], [0, 0, 1, 1], [], []>} : vector<8x8xbf16>, vector<8x32xbf16>, vector<8x32xf32> -> vector<8x32xf32>
    %113 = arith.addf %88, %112 : vector<8x32xf32>
    %114 = vector.broadcast %12 : vector<1x32xf32> to vector<8x32xf32>
    %115 = arith.addf %113, %114 : vector<8x32xf32>
    %116 = arith.addf %1, %115 : vector<8x32xf32>
    %c0_35 = arith.constant 0 : index
    %c0_36 = arith.constant 0 : index
    %117 = vector.load %arg6[%c0_35, %c0_36] : memref<1x32xf32, #tpu.memory_space<vmem>>, vector<1x32xf32>
    %c0_37 = arith.constant 0 : index
    %c0_38 = arith.constant 0 : index
    %118 = vector.load %arg7[%c0_37, %c0_38] : memref<1x32xf32, #tpu.memory_space<vmem>>, vector<1x32xf32>
    %cst_39 = arith.constant dense<0.000000e+00> : vector<8xf32>
    %119 = vector.multi_reduction <add>, %116, %cst_39 [1] : vector<8x32xf32> to vector<8xf32>
    %120 = vector.shape_cast %119 : vector<8xf32> to vector<8x1xf32>
    %cst_40 = arith.constant 3.200000e+01 : f32
    %121 = vector.broadcast %cst_40 : f32 to vector<8x1xf32>
    %122 = arith.divf %120, %121 : vector<8x1xf32>
    %123 = vector.broadcast %122 : vector<8x1xf32> to vector<8x32xf32>
    %124 = arith.subf %116, %123 : vector<8x32xf32>
    %125 = arith.mulf %124, %124 : vector<8x32xf32>
    %cst_41 = arith.constant dense<0.000000e+00> : vector<8xf32>
    %126 = vector.multi_reduction <add>, %125, %cst_41 [1] : vector<8x32xf32> to vector<8xf32>
    %127 = vector.shape_cast %126 : vector<8xf32> to vector<8x1xf32>
    %cst_42 = arith.constant 3.200000e+01 : f32
    %128 = vector.broadcast %cst_42 : f32 to vector<8x1xf32>
    %129 = arith.divf %127, %128 : vector<8x1xf32>
    %130 = vector.broadcast %122 : vector<8x1xf32> to vector<8x32xf32>
    %131 = arith.subf %116, %130 : vector<8x32xf32>
    %cst_43 = arith.constant 9.99999974E-6 : f32
    %132 = vector.broadcast %cst_43 : f32 to vector<8x1xf32>
    %133 = arith.addf %129, %132 : vector<8x1xf32>
    %134 = math.rsqrt %133 : vector<8x1xf32>
    %135 = vector.broadcast %134 : vector<8x1xf32> to vector<8x32xf32>
    %136 = arith.mulf %131, %135 : vector<8x32xf32>
    %137 = vector.broadcast %117 : vector<1x32xf32> to vector<8x32xf32>
    %138 = arith.mulf %136, %137 : vector<8x32xf32>
    %139 = vector.broadcast %118 : vector<1x32xf32> to vector<8x32xf32>
    %140 = arith.addf %138, %139 : vector<8x32xf32>
    %c0_44 = arith.constant 0 : index
    %c0_45 = arith.constant 0 : index
    %141 = vector.load %arg8[%c0_44, %c0_45] : memref<32x2048xbf16, #tpu.memory_space<vmem>>, vector<32x2048xbf16>
    %c0_46 = arith.constant 0 : index
    %c0_47 = arith.constant 0 : index
    %142 = vector.load %arg9[%c0_46, %c0_47] : memref<1x2048xf32, #tpu.memory_space<vmem>>, vector<1x2048xf32>
    %143 = arith.truncf %140 : vector<8x32xf32> to vector<8x32xbf16>
    %cst_48 = arith.constant dense<0.000000e+00> : vector<8x2048xf32>
    %144 = tpu.matmul %143, %141, %cst_48 {dimension_numbers = #tpu.dot_dimension_numbers<[1], [0], [0], [1], [0, 0, 1, 1], [], []>} : vector<8x32xbf16>, vector<32x2048xbf16>, vector<8x2048xf32> -> vector<8x2048xf32>
    %145 = vector.broadcast %142 : vector<1x2048xf32> to vector<8x2048xf32>
    %146 = arith.addf %144, %145 : vector<8x2048xf32>
    %cst_49 = arith.constant 0.000000e+00 : f32
    %147 = vector.broadcast %cst_49 : f32 to vector<8x2048xf32>
    %148 = arith.maximumf %146, %147 : vector<8x2048xf32>
    %c0_50 = arith.constant 0 : index
    %c0_51 = arith.constant 0 : index
    %149 = vector.load %arg10[%c0_50, %c0_51] : memref<2048x32xbf16, #tpu.memory_space<vmem>>, vector<2048x32xbf16>
    %c0_52 = arith.constant 0 : index
    %c0_53 = arith.constant 0 : index
    %150 = vector.load %arg11[%c0_52, %c0_53] : memref<1x32xf32, #tpu.memory_space<vmem>>, vector<1x32xf32>
    %151 = arith.truncf %148 : vector<8x2048xf32> to vector<8x2048xbf16>
    %cst_54 = arith.constant dense<0.000000e+00> : vector<8x32xf32>
    %152 = tpu.matmul %151, %149, %cst_54 {dimension_numbers = #tpu.dot_dimension_numbers<[1], [0], [0], [1], [0, 0, 1, 1], [], []>} : vector<8x2048xbf16>, vector<2048x32xbf16>, vector<8x32xf32> -> vector<8x32xf32>
    %153 = vector.broadcast %150 : vector<1x32xf32> to vector<8x32xf32>
    %154 = arith.addf %152, %153 : vector<8x32xf32>
    %155 = arith.addf %140, %154 : vector<8x32xf32>
    %c0_55 = arith.constant 0 : index
    %c0_56 = arith.constant 0 : index
    %156 = vector.load %arg12[%c0_55, %c0_56] : memref<1x32xf32, #tpu.memory_space<vmem>>, vector<1x32xf32>
    %c0_57 = arith.constant 0 : index
    %c0_58 = arith.constant 0 : index
    %157 = vector.load %arg13[%c0_57, %c0_58] : memref<1x32xf32, #tpu.memory_space<vmem>>, vector<1x32xf32>
    %cst_59 = arith.constant dense<0.000000e+00> : vector<8xf32>
    %158 = vector.multi_reduction <add>, %155, %cst_59 [1] : vector<8x32xf32> to vector<8xf32>
    %159 = vector.shape_cast %158 : vector<8xf32> to vector<8x1xf32>
    %cst_60 = arith.constant 3.200000e+01 : f32
    %160 = vector.broadcast %cst_60 : f32 to vector<8x1xf32>
    %161 = arith.divf %159, %160 : vector<8x1xf32>
    %162 = vector.broadcast %161 : vector<8x1xf32> to vector<8x32xf32>
    %163 = arith.subf %155, %162 : vector<8x32xf32>
    %164 = arith.mulf %163, %163 : vector<8x32xf32>
    %cst_61 = arith.constant dense<0.000000e+00> : vector<8xf32>
    %165 = vector.multi_reduction <add>, %164, %cst_61 [1] : vector<8x32xf32> to vector<8xf32>
    %166 = vector.shape_cast %165 : vector<8xf32> to vector<8x1xf32>
    %cst_62 = arith.constant 3.200000e+01 : f32
    %167 = vector.broadcast %cst_62 : f32 to vector<8x1xf32>
    %168 = arith.divf %166, %167 : vector<8x1xf32>
    %169 = vector.broadcast %161 : vector<8x1xf32> to vector<8x32xf32>
    %170 = arith.subf %155, %169 : vector<8x32xf32>
    %cst_63 = arith.constant 9.99999974E-6 : f32
    %171 = vector.broadcast %cst_63 : f32 to vector<8x1xf32>
    %172 = arith.addf %168, %171 : vector<8x1xf32>
    %173 = math.rsqrt %172 : vector<8x1xf32>
    %174 = vector.broadcast %173 : vector<8x1xf32> to vector<8x32xf32>
    %175 = arith.mulf %170, %174 : vector<8x32xf32>
    %176 = vector.broadcast %156 : vector<1x32xf32> to vector<8x32xf32>
    %177 = arith.mulf %175, %176 : vector<8x32xf32>
    %178 = vector.broadcast %157 : vector<1x32xf32> to vector<8x32xf32>
    %179 = arith.addf %177, %178 : vector<8x32xf32>
    %c0_64 = arith.constant 0 : index
    %c0_65 = arith.constant 0 : index
    %c0_66 = arith.constant 0 : index
    %180 = vector.load %arg14[%c0_64, %c0_65, %c0_66] : memref<1x8x32xf32, #tpu.memory_space<vmem>>, vector<1x8x32xf32>
    %181 = vector.shape_cast %180 : vector<1x8x32xf32> to vector<8x32xf32>
    %182 = vector.shape_cast %179 : vector<8x32xf32> to vector<1x8x32xf32>
    tpu.vector_store %arg14[%c0_64, %c0_65, %c0_66], %182 {strides = array<i32>} : memref<1x8x32xf32, #tpu.memory_space<vmem>>, vector<1x8x32xf32>,
    return
  }
  func.func @transform_0(%arg0: i32) -> (i32, i32, i32) {
    %c0_i32 = arith.constant 0 : i32
    %c0_i32_0 = arith.constant 0 : i32
    %c0_i32_1 = arith.constant 0 : i32
    return %arg0, %c0_i32, %c0_i32_0 : i32, i32, i32
  }
  func.func @transform_1(%arg0: i32) -> (i32, i32) {
    %c0_i32 = arith.constant 0 : i32
    %c0_i32_0 = arith.constant 0 : i32
    %c0_i32_1 = arith.constant 0 : i32
    return %c0_i32, %c0_i32_0 : i32, i32
  }
  func.func @transform_2(%arg0: i32) -> (i32, i32) {
    %c0_i32 = arith.constant 0 : i32
    %c0_i32_0 = arith.constant 0 : i32
    %c0_i32_1 = arith.constant 0 : i32
    return %c0_i32, %c0_i32_0 : i32, i32
  }
  func.func @transform_3(%arg0: i32) -> (i32, i32) {
    %c0_i32 = arith.constant 0 : i32
    %c0_i32_0 = arith.constant 0 : i32
    %c0_i32_1 = arith.constant 0 : i32
    return %c0_i32, %c0_i32_0 : i32, i32
  }
  func.func @transform_4(%arg0: i32) -> (i32, i32) {
    %c0_i32 = arith.constant 0 : i32
    %c0_i32_0 = arith.constant 0 : i32
    %c0_i32_1 = arith.constant 0 : i32
    return %c0_i32, %c0_i32_0 : i32, i32
  }
  func.func @transform_5(%arg0: i32) -> (i32, i32) {
    %c0_i32 = arith.constant 0 : i32
    %c0_i32_0 = arith.constant 0 : i32
    %c0_i32_1 = arith.constant 0 : i32
    return %c0_i32, %c0_i32_0 : i32, i32
  }
  func.func @transform_6(%arg0: i32) -> (i32, i32) {
    %c0_i32 = arith.constant 0 : i32
    %c0_i32_0 = arith.constant 0 : i32
    %c0_i32_1 = arith.constant 0 : i32
    return %c0_i32, %c0_i32_0 : i32, i32
  }
  func.func @transform_7(%arg0: i32) -> (i32, i32) {
    %c0_i32 = arith.constant 0 : i32
    %c0_i32_0 = arith.constant 0 : i32
    %c0_i32_1 = arith.constant 0 : i32
    return %c0_i32, %c0_i32_0 : i32, i32
  }
  func.func @transform_8(%arg0: i32) -> (i32, i32) {
    %c0_i32 = arith.constant 0 : i32
    %c0_i32_0 = arith.constant 0 : i32
    %c0_i32_1 = arith.constant 0 : i32
    return %c0_i32, %c0_i32_0 : i32, i32
  }
  func.func @transform_9(%arg0: i32) -> (i32, i32) {
    %c0_i32 = arith.constant 0 : i32
    %c0_i32_0 = arith.constant 0 : i32
    %c0_i32_1 = arith.constant 0 : i32
    return %c0_i32, %c0_i32_0 : i32, i32
  }
  func.func @transform_10(%arg0: i32) -> (i32, i32) {
    %c0_i32 = arith.constant 0 : i32
    %c0_i32_0 = arith.constant 0 : i32
    %c0_i32_1 = arith.constant 0 : i32
    return %c0_i32, %c0_i32_0 : i32, i32
  }
  func.func @transform_11(%arg0: i32) -> (i32, i32) {
    %c0_i32 = arith.constant 0 : i32
    %c0_i32_0 = arith.constant 0 : i32
    %c0_i32_1 = arith.constant 0 : i32
    return %c0_i32, %c0_i32_0 : i32, i32
  }
  func.func @transform_12(%arg0: i32) -> (i32, i32) {
    %c0_i32 = arith.constant 0 : i32
    %c0_i32_0 = arith.constant 0 : i32
    %c0_i32_1 = arith.constant 0 : i32
    return %c0_i32, %c0_i32_0 : i32, i32
  }
  func.func @transform_13(%arg0: i32) -> (i32, i32, i32) {
    %c0_i32 = arith.constant 0 : i32
    %c0_i32_0 = arith.constant 0 : i32
    %c0_i32_1 = arith.constant 0 : i32
    return %arg0, %c0_i32, %c0_i32_0 : i32, i32, i32
  }
}

module attributes {stable_mosaic.version = 11 : i64} {
  func.func @_decoder_layer_kernel(%arg0: i32, %arg1: memref<1x8x32xf32, #tpu.memory_space<vmem>>, %arg2: memref<1x8x32xf32, #tpu.memory_space<vmem>>, %arg3: memref<8x8xf32, #tpu.memory_space<vmem>>, %arg4: memref<32x96xbf16, #tpu.memory_space<vmem>>, %arg5: memref<1x96xf32, #tpu.memory_space<vmem>>, %arg6: memref<32x32xbf16, #tpu.memory_space<vmem>>, %arg7: memref<1x32xf32, #tpu.memory_space<vmem>>, %arg8: memref<1x32xf32, #tpu.memory_space<vmem>>, %arg9: memref<1x32xf32, #tpu.memory_space<vmem>>, %arg10: memref<32x32xbf16, #tpu.memory_space<vmem>>, %arg11: memref<1x32xf32, #tpu.memory_space<vmem>>, %arg12: memref<32x64xbf16, #tpu.memory_space<vmem>>, %arg13: memref<1x64xf32, #tpu.memory_space<vmem>>, %arg14: memref<32x32xbf16, #tpu.memory_space<vmem>>, %arg15: memref<1x32xf32, #tpu.memory_space<vmem>>, %arg16: memref<1x32xf32, #tpu.memory_space<vmem>>, %arg17: memref<1x32xf32, #tpu.memory_space<vmem>>, %arg18: memref<32x2048xbf16, #tpu.memory_space<vmem>>, %arg19: memref<1x2048xf32, #tpu.memory_space<vmem>>, %arg20: memref<2048x32xbf16, #tpu.memory_space<vmem>>, %arg21: memref<1x32xf32, #tpu.memory_space<vmem>>, %arg22: memref<1x32xf32, #tpu.memory_space<vmem>>, %arg23: memref<1x32xf32, #tpu.memory_space<vmem>>, %arg24: memref<1x8x32xf32, #tpu.memory_space<vmem>>) attributes {dimension_semantics = [#tpu.dimension_semantics<parallel>], iteration_bounds = array<i64: 2>, scalar_prefetch = 0 : i64, scratch_operands = 0 : i64, tpu.core_type = #tpu.core_type<tc>, window_params = [{transform_indices = @transform_0, window_bounds = array<i64: 1, 8, 32>}, {transform_indices = @transform_1, window_bounds = array<i64: 1, 8, 32>}, {pipeline_mode = #tpu.pipeline_mode<synchronous>, transform_indices = @transform_2, window_bounds = array<i64: 8, 8>}, {pipeline_mode = #tpu.pipeline_mode<synchronous>, transform_indices = @transform_3, window_bounds = array<i64: 32, 96>}, {pipeline_mode = #tpu.pipeline_mode<synchronous>, transform_indices = @transform_4, window_bounds = array<i64: 1, 96>}, {pipeline_mode = #tpu.pipeline_mode<synchronous>, transform_indices = @transform_5, window_bounds = array<i64: 32, 32>}, {pipeline_mode = #tpu.pipeline_mode<synchronous>, transform_indices = @transform_6, window_bounds = array<i64: 1, 32>}, {pipeline_mode = #tpu.pipeline_mode<synchronous>, transform_indices = @transform_7, window_bounds = array<i64: 1, 32>}, {pipeline_mode = #tpu.pipeline_mode<synchronous>, transform_indices = @transform_8, window_bounds = array<i64: 1, 32>}, {pipeline_mode = #tpu.pipeline_mode<synchronous>, transform_indices = @transform_9, window_bounds = array<i64: 32, 32>}, {pipeline_mode = #tpu.pipeline_mode<synchronous>, transform_indices = @transform_10, window_bounds = array<i64: 1, 32>}, {pipeline_mode = #tpu.pipeline_mode<synchronous>, transform_indices = @transform_11, window_bounds = array<i64: 32, 64>}, {pipeline_mode = #tpu.pipeline_mode<synchronous>, transform_indices = @transform_12, window_bounds = array<i64: 1, 64>}, {pipeline_mode = #tpu.pipeline_mode<synchronous>, transform_indices = @transform_13, window_bounds = array<i64: 32, 32>}, {pipeline_mode = #tpu.pipeline_mode<synchronous>, transform_indices = @transform_14, window_bounds = array<i64: 1, 32>}, {pipeline_mode = #tpu.pipeline_mode<synchronous>, transform_indices = @transform_15, window_bounds = array<i64: 1, 32>}, {pipeline_mode = #tpu.pipeline_mode<synchronous>, transform_indices = @transform_16, window_bounds = array<i64: 1, 32>}, {pipeline_mode = #tpu.pipeline_mode<synchronous>, transform_indices = @transform_17, window_bounds = array<i64: 32, 2048>}, {pipeline_mode = #tpu.pipeline_mode<synchronous>, transform_indices = @transform_18, window_bounds = array<i64: 1, 2048>}, {pipeline_mode = #tpu.pipeline_mode<synchronous>, transform_indices = @transform_19, window_bounds = array<i64: 2048, 32>}, {pipeline_mode = #tpu.pipeline_mode<synchronous>, transform_indices = @transform_20, window_bounds = array<i64: 1, 32>}, {pipeline_mode = #tpu.pipeline_mode<synchronous>, transform_indices = @transform_21, window_bounds = array<i64: 1, 32>}, {pipeline_mode = #tpu.pipeline_mode<synchronous>, transform_indices = @transform_22, window_bounds = array<i64: 1, 32>}, {transform_indices = @transform_23, window_bounds = array<i64: 1, 8, 32>}]} {
    %c0 = arith.constant 0 : index
    %c0_0 = arith.constant 0 : index
    %c0_1 = arith.constant 0 : index
    %0 = vector.load %arg1[%c0, %c0_0, %c0_1] : memref<1x8x32xf32, #tpu.memory_space<vmem>>, vector<1x8x32xf32>
    %1 = vector.shape_cast %0 : vector<1x8x32xf32> to vector<8x32xf32>
    %c0_2 = arith.constant 0 : index
    %c0_3 = arith.constant 0 : index
    %c0_4 = arith.constant 0 : index
    %2 = vector.load %arg2[%c0_2, %c0_3, %c0_4] : memref<1x8x32xf32, #tpu.memory_space<vmem>>, vector<1x8x32xf32>
    %3 = vector.shape_cast %2 : vector<1x8x32xf32> to vector<8x32xf32>
    %c0_5 = arith.constant 0 : index
    %c0_6 = arith.constant 0 : index
    %4 = vector.load %arg3[%c0_5, %c0_6] : memref<8x8xf32, #tpu.memory_space<vmem>>, vector<8x8xf32>
    %c0_7 = arith.constant 0 : index
    %c0_8 = arith.constant 0 : index
    %5 = vector.load %arg4[%c0_7, %c0_8] : memref<32x96xbf16, #tpu.memory_space<vmem>>, vector<32x96xbf16>
    %c0_9 = arith.constant 0 : index
    %c0_10 = arith.constant 0 : index
    %6 = vector.load %arg5[%c0_9, %c0_10] : memref<1x96xf32, #tpu.memory_space<vmem>>, vector<1x96xf32>
    %7 = arith.truncf %1 : vector<8x32xf32> to vector<8x32xbf16>
    %cst = arith.constant dense<0.000000e+00> : vector<8x96xf32>
    %8 = tpu.matmul %7, %5, %cst {dimension_numbers = #tpu.dot_dimension_numbers<[1], [0], [0], [1], [0, 0, 1, 1], [], []>} : vector<8x32xbf16>, vector<32x96xbf16>, vector<8x96xf32> -> vector<8x96xf32>
    %9 = vector.broadcast %6 : vector<1x96xf32> to vector<8x96xf32>
    %10 = arith.addf %8, %9 : vector<8x96xf32>
    %11 = vector.extract_strided_slice %10 {offsets = [0, 0], sizes = [8, 32], strides = [1, 1]} : vector<8x96xf32> to vector<8x32xf32>
    %12 = vector.extract_strided_slice %10 {offsets = [0, 32], sizes = [8, 32], strides = [1, 1]} : vector<8x96xf32> to vector<8x32xf32>
    %13 = vector.extract_strided_slice %10 {offsets = [0, 64], sizes = [8, 32], strides = [1, 1]} : vector<8x96xf32> to vector<8x32xf32>
    %c0_11 = arith.constant 0 : index
    %c0_12 = arith.constant 0 : index
    %14 = vector.load %arg6[%c0_11, %c0_12] : memref<32x32xbf16, #tpu.memory_space<vmem>>, vector<32x32xbf16>
    %c0_13 = arith.constant 0 : index
    %c0_14 = arith.constant 0 : index
    %15 = vector.load %arg7[%c0_13, %c0_14] : memref<1x32xf32, #tpu.memory_space<vmem>>, vector<1x32xf32>
    %cst_15 = arith.constant 0.000000e+00 : f32
    %16 = vector.broadcast %cst_15 : f32 to vector<8x32xf32>
    %17 = vector.extract_strided_slice %11 {offsets = [0, 0], sizes = [8, 8], strides = [1, 1]} : vector<8x32xf32> to vector<8x8xf32>
    %cst_16 = arith.constant 0.353553385 : f32
    %18 = vector.broadcast %cst_16 : f32 to vector<8x8xf32>
    %19 = arith.mulf %17, %18 : vector<8x8xf32>
    %20 = arith.truncf %19 : vector<8x8xf32> to vector<8x8xbf16>
    %21 = vector.extract_strided_slice %12 {offsets = [0, 0], sizes = [8, 8], strides = [1, 1]} : vector<8x32xf32> to vector<8x8xf32>
    %22 = arith.truncf %21 : vector<8x8xf32> to vector<8x8xbf16>
    %23 = vector.extract_strided_slice %13 {offsets = [0, 0], sizes = [8, 8], strides = [1, 1]} : vector<8x32xf32> to vector<8x8xf32>
    %24 = arith.truncf %23 : vector<8x8xf32> to vector<8x8xbf16>
    %cst_17 = arith.constant dense<0.000000e+00> : vector<8x8xf32>
    %25 = tpu.matmul %20, %22, %cst_17 {dimension_numbers = #tpu.dot_dimension_numbers<[1], [1], [0], [0], [0, 0, 1, 0], [], []>} : vector<8x8xbf16>, vector<8x8xbf16>, vector<8x8xf32> -> vector<8x8xf32>
    %26 = arith.addf %25, %4 : vector<8x8xf32>
    %cst_18 = arith.constant dense<0xFF800000> : vector<8xf32>
    %27 = vector.multi_reduction <maximumf>, %26, %cst_18 [1] : vector<8x8xf32> to vector<8xf32>
    %28 = vector.shape_cast %27 : vector<8xf32> to vector<8x1xf32>
    %29 = vector.broadcast %28 : vector<8x1xf32> to vector<8x8xf32>
    %30 = arith.subf %26, %29 : vector<8x8xf32>
    %31 = math.exp %30 : vector<8x8xf32>
    %cst_19 = arith.constant dense<0.000000e+00> : vector<8xf32>
    %32 = vector.multi_reduction <add>, %31, %cst_19 [1] : vector<8x8xf32> to vector<8xf32>
    %33 = vector.shape_cast %32 : vector<8xf32> to vector<8x1xf32>
    %34 = arith.truncf %31 : vector<8x8xf32> to vector<8x8xbf16>
    %cst_20 = arith.constant dense<0.000000e+00> : vector<8x8xf32>
    %35 = tpu.matmul %34, %24, %cst_20 {dimension_numbers = #tpu.dot_dimension_numbers<[1], [0], [0], [1], [0, 0, 1, 1], [], []>} : vector<8x8xbf16>, vector<8x8xbf16>, vector<8x8xf32> -> vector<8x8xf32>
    %36 = tpu.reciprocal %33 {approx = true} : vector<8x1xf32> -> vector<8x1xf32>
    %37 = vector.broadcast %36 : vector<8x1xf32> to vector<8x8xf32>
    %38 = arith.mulf %35, %37 : vector<8x8xf32>
    %39 = arith.truncf %38 : vector<8x8xf32> to vector<8x8xbf16>
    %40 = vector.extract_strided_slice %14 {offsets = [0, 0], sizes = [8, 32], strides = [1, 1]} : vector<32x32xbf16> to vector<8x32xbf16>
    %cst_21 = arith.constant dense<0.000000e+00> : vector<8x32xf32>
    %41 = tpu.matmul %39, %40, %cst_21 {dimension_numbers = #tpu.dot_dimension_numbers<[1], [0], [0], [1], [0, 0, 1, 1], [], []>} : vector<8x8xbf16>, vector<8x32xbf16>, vector<8x32xf32> -> vector<8x32xf32>
    %42 = arith.addf %16, %41 : vector<8x32xf32>
    %43 = vector.extract_strided_slice %11 {offsets = [0, 8], sizes = [8, 8], strides = [1, 1]} : vector<8x32xf32> to vector<8x8xf32>
    %cst_22 = arith.constant 0.353553385 : f32
    %44 = vector.broadcast %cst_22 : f32 to vector<8x8xf32>
    %45 = arith.mulf %43, %44 : vector<8x8xf32>
    %46 = arith.truncf %45 : vector<8x8xf32> to vector<8x8xbf16>
    %47 = vector.extract_strided_slice %12 {offsets = [0, 8], sizes = [8, 8], strides = [1, 1]} : vector<8x32xf32> to vector<8x8xf32>
    %48 = arith.truncf %47 : vector<8x8xf32> to vector<8x8xbf16>
    %49 = vector.extract_strided_slice %13 {offsets = [0, 8], sizes = [8, 8], strides = [1, 1]} : vector<8x32xf32> to vector<8x8xf32>
    %50 = arith.truncf %49 : vector<8x8xf32> to vector<8x8xbf16>
    %cst_23 = arith.constant dense<0.000000e+00> : vector<8x8xf32>
    %51 = tpu.matmul %46, %48, %cst_23 {dimension_numbers = #tpu.dot_dimension_numbers<[1], [1], [0], [0], [0, 0, 1, 0], [], []>} : vector<8x8xbf16>, vector<8x8xbf16>, vector<8x8xf32> -> vector<8x8xf32>
    %52 = arith.addf %51, %4 : vector<8x8xf32>
    %cst_24 = arith.constant dense<0xFF800000> : vector<8xf32>
    %53 = vector.multi_reduction <maximumf>, %52, %cst_24 [1] : vector<8x8xf32> to vector<8xf32>
    %54 = vector.shape_cast %53 : vector<8xf32> to vector<8x1xf32>
    %55 = vector.broadcast %54 : vector<8x1xf32> to vector<8x8xf32>
    %56 = arith.subf %52, %55 : vector<8x8xf32>
    %57 = math.exp %56 : vector<8x8xf32>
    %cst_25 = arith.constant dense<0.000000e+00> : vector<8xf32>
    %58 = vector.multi_reduction <add>, %57, %cst_25 [1] : vector<8x8xf32> to vector<8xf32>
    %59 = vector.shape_cast %58 : vector<8xf32> to vector<8x1xf32>
    %60 = arith.truncf %57 : vector<8x8xf32> to vector<8x8xbf16>
    %cst_26 = arith.constant dense<0.000000e+00> : vector<8x8xf32>
    %61 = tpu.matmul %60, %50, %cst_26 {dimension_numbers = #tpu.dot_dimension_numbers<[1], [0], [0], [1], [0, 0, 1, 1], [], []>} : vector<8x8xbf16>, vector<8x8xbf16>, vector<8x8xf32> -> vector<8x8xf32>
    %62 = tpu.reciprocal %59 {approx = true} : vector<8x1xf32> -> vector<8x1xf32>
    %63 = vector.broadcast %62 : vector<8x1xf32> to vector<8x8xf32>
    %64 = arith.mulf %61, %63 : vector<8x8xf32>
    %65 = arith.truncf %64 : vector<8x8xf32> to vector<8x8xbf16>
    %66 = vector.extract_strided_slice %14 {offsets = [8, 0], sizes = [8, 32], strides = [1, 1]} : vector<32x32xbf16> to vector<8x32xbf16>
    %cst_27 = arith.constant dense<0.000000e+00> : vector<8x32xf32>
    %67 = tpu.matmul %65, %66, %cst_27 {dimension_numbers = #tpu.dot_dimension_numbers<[1], [0], [0], [1], [0, 0, 1, 1], [], []>} : vector<8x8xbf16>, vector<8x32xbf16>, vector<8x32xf32> -> vector<8x32xf32>
    %68 = arith.addf %42, %67 : vector<8x32xf32>
    %69 = vector.extract_strided_slice %11 {offsets = [0, 16], sizes = [8, 8], strides = [1, 1]} : vector<8x32xf32> to vector<8x8xf32>
    %cst_28 = arith.constant 0.353553385 : f32
    %70 = vector.broadcast %cst_28 : f32 to vector<8x8xf32>
    %71 = arith.mulf %69, %70 : vector<8x8xf32>
    %72 = arith.truncf %71 : vector<8x8xf32> to vector<8x8xbf16>
    %73 = vector.extract_strided_slice %12 {offsets = [0, 16], sizes = [8, 8], strides = [1, 1]} : vector<8x32xf32> to vector<8x8xf32>
    %74 = arith.truncf %73 : vector<8x8xf32> to vector<8x8xbf16>
    %75 = vector.extract_strided_slice %13 {offsets = [0, 16], sizes = [8, 8], strides = [1, 1]} : vector<8x32xf32> to vector<8x8xf32>
    %76 = arith.truncf %75 : vector<8x8xf32> to vector<8x8xbf16>
    %cst_29 = arith.constant dense<0.000000e+00> : vector<8x8xf32>
    %77 = tpu.matmul %72, %74, %cst_29 {dimension_numbers = #tpu.dot_dimension_numbers<[1], [1], [0], [0], [0, 0, 1, 0], [], []>} : vector<8x8xbf16>, vector<8x8xbf16>, vector<8x8xf32> -> vector<8x8xf32>
    %78 = arith.addf %77, %4 : vector<8x8xf32>
    %cst_30 = arith.constant dense<0xFF800000> : vector<8xf32>
    %79 = vector.multi_reduction <maximumf>, %78, %cst_30 [1] : vector<8x8xf32> to vector<8xf32>
    %80 = vector.shape_cast %79 : vector<8xf32> to vector<8x1xf32>
    %81 = vector.broadcast %80 : vector<8x1xf32> to vector<8x8xf32>
    %82 = arith.subf %78, %81 : vector<8x8xf32>
    %83 = math.exp %82 : vector<8x8xf32>
    %cst_31 = arith.constant dense<0.000000e+00> : vector<8xf32>
    %84 = vector.multi_reduction <add>, %83, %cst_31 [1] : vector<8x8xf32> to vector<8xf32>
    %85 = vector.shape_cast %84 : vector<8xf32> to vector<8x1xf32>
    %86 = arith.truncf %83 : vector<8x8xf32> to vector<8x8xbf16>
    %cst_32 = arith.constant dense<0.000000e+00> : vector<8x8xf32>
    %87 = tpu.matmul %86, %76, %cst_32 {dimension_numbers = #tpu.dot_dimension_numbers<[1], [0], [0], [1], [0, 0, 1, 1], [], []>} : vector<8x8xbf16>, vector<8x8xbf16>, vector<8x8xf32> -> vector<8x8xf32>
    %88 = tpu.reciprocal %85 {approx = true} : vector<8x1xf32> -> vector<8x1xf32>
    %89 = vector.broadcast %88 : vector<8x1xf32> to vector<8x8xf32>
    %90 = arith.mulf %87, %89 : vector<8x8xf32>
    %91 = arith.truncf %90 : vector<8x8xf32> to vector<8x8xbf16>
    %92 = vector.extract_strided_slice %14 {offsets = [16, 0], sizes = [8, 32], strides = [1, 1]} : vector<32x32xbf16> to vector<8x32xbf16>
    %cst_33 = arith.constant dense<0.000000e+00> : vector<8x32xf32>
    %93 = tpu.matmul %91, %92, %cst_33 {dimension_numbers = #tpu.dot_dimension_numbers<[1], [0], [0], [1], [0, 0, 1, 1], [], []>} : vector<8x8xbf16>, vector<8x32xbf16>, vector<8x32xf32> -> vector<8x32xf32>
    %94 = arith.addf %68, %93 : vector<8x32xf32>
    %95 = vector.extract_strided_slice %11 {offsets = [0, 24], sizes = [8, 8], strides = [1, 1]} : vector<8x32xf32> to vector<8x8xf32>
    %cst_34 = arith.constant 0.353553385 : f32
    %96 = vector.broadcast %cst_34 : f32 to vector<8x8xf32>
    %97 = arith.mulf %95, %96 : vector<8x8xf32>
    %98 = arith.truncf %97 : vector<8x8xf32> to vector<8x8xbf16>
    %99 = vector.extract_strided_slice %12 {offsets = [0, 24], sizes = [8, 8], strides = [1, 1]} : vector<8x32xf32> to vector<8x8xf32>
    %100 = arith.truncf %99 : vector<8x8xf32> to vector<8x8xbf16>
    %101 = vector.extract_strided_slice %13 {offsets = [0, 24], sizes = [8, 8], strides = [1, 1]} : vector<8x32xf32> to vector<8x8xf32>
    %102 = arith.truncf %101 : vector<8x8xf32> to vector<8x8xbf16>
    %cst_35 = arith.constant dense<0.000000e+00> : vector<8x8xf32>
    %103 = tpu.matmul %98, %100, %cst_35 {dimension_numbers = #tpu.dot_dimension_numbers<[1], [1], [0], [0], [0, 0, 1, 0], [], []>} : vector<8x8xbf16>, vector<8x8xbf16>, vector<8x8xf32> -> vector<8x8xf32>
    %104 = arith.addf %103, %4 : vector<8x8xf32>
    %cst_36 = arith.constant dense<0xFF800000> : vector<8xf32>
    %105 = vector.multi_reduction <maximumf>, %104, %cst_36 [1] : vector<8x8xf32> to vector<8xf32>
    %106 = vector.shape_cast %105 : vector<8xf32> to vector<8x1xf32>
    %107 = vector.broadcast %106 : vector<8x1xf32> to vector<8x8xf32>
    %108 = arith.subf %104, %107 : vector<8x8xf32>
    %109 = math.exp %108 : vector<8x8xf32>
    %cst_37 = arith.constant dense<0.000000e+00> : vector<8xf32>
    %110 = vector.multi_reduction <add>, %109, %cst_37 [1] : vector<8x8xf32> to vector<8xf32>
    %111 = vector.shape_cast %110 : vector<8xf32> to vector<8x1xf32>
    %112 = arith.truncf %109 : vector<8x8xf32> to vector<8x8xbf16>
    %cst_38 = arith.constant dense<0.000000e+00> : vector<8x8xf32>
    %113 = tpu.matmul %112, %102, %cst_38 {dimension_numbers = #tpu.dot_dimension_numbers<[1], [0], [0], [1], [0, 0, 1, 1], [], []>} : vector<8x8xbf16>, vector<8x8xbf16>, vector<8x8xf32> -> vector<8x8xf32>
    %114 = tpu.reciprocal %111 {approx = true} : vector<8x1xf32> -> vector<8x1xf32>
    %115 = vector.broadcast %114 : vector<8x1xf32> to vector<8x8xf32>
    %116 = arith.mulf %113, %115 : vector<8x8xf32>
    %117 = arith.truncf %116 : vector<8x8xf32> to vector<8x8xbf16>
    %118 = vector.extract_strided_slice %14 {offsets = [24, 0], sizes = [8, 32], strides = [1, 1]} : vector<32x32xbf16> to vector<8x32xbf16>
    %cst_39 = arith.constant dense<0.000000e+00> : vector<8x32xf32>
    %119 = tpu.matmul %117, %118, %cst_39 {dimension_numbers = #tpu.dot_dimension_numbers<[1], [0], [0], [1], [0, 0, 1, 1], [], []>} : vector<8x8xbf16>, vector<8x32xbf16>, vector<8x32xf32> -> vector<8x32xf32>
    %120 = arith.addf %94, %119 : vector<8x32xf32>
    %121 = vector.broadcast %15 : vector<1x32xf32> to vector<8x32xf32>
    %122 = arith.addf %120, %121 : vector<8x32xf32>
    %123 = arith.addf %1, %122 : vector<8x32xf32>
    %c0_40 = arith.constant 0 : index
    %c0_41 = arith.constant 0 : index
    %124 = vector.load %arg8[%c0_40, %c0_41] : memref<1x32xf32, #tpu.memory_space<vmem>>, vector<1x32xf32>
    %c0_42 = arith.constant 0 : index
    %c0_43 = arith.constant 0 : index
    %125 = vector.load %arg9[%c0_42, %c0_43] : memref<1x32xf32, #tpu.memory_space<vmem>>, vector<1x32xf32>
    %cst_44 = arith.constant dense<0.000000e+00> : vector<8xf32>
    %126 = vector.multi_reduction <add>, %123, %cst_44 [1] : vector<8x32xf32> to vector<8xf32>
    %127 = vector.shape_cast %126 : vector<8xf32> to vector<8x1xf32>
    %cst_45 = arith.constant 3.200000e+01 : f32
    %128 = vector.broadcast %cst_45 : f32 to vector<8x1xf32>
    %129 = arith.divf %127, %128 : vector<8x1xf32>
    %130 = vector.broadcast %129 : vector<8x1xf32> to vector<8x32xf32>
    %131 = arith.subf %123, %130 : vector<8x32xf32>
    %132 = arith.mulf %131, %131 : vector<8x32xf32>
    %cst_46 = arith.constant dense<0.000000e+00> : vector<8xf32>
    %133 = vector.multi_reduction <add>, %132, %cst_46 [1] : vector<8x32xf32> to vector<8xf32>
    %134 = vector.shape_cast %133 : vector<8xf32> to vector<8x1xf32>
    %cst_47 = arith.constant 3.200000e+01 : f32
    %135 = vector.broadcast %cst_47 : f32 to vector<8x1xf32>
    %136 = arith.divf %134, %135 : vector<8x1xf32>
    %137 = vector.broadcast %129 : vector<8x1xf32> to vector<8x32xf32>
    %138 = arith.subf %123, %137 : vector<8x32xf32>
    %cst_48 = arith.constant 9.99999974E-6 : f32
    %139 = vector.broadcast %cst_48 : f32 to vector<8x1xf32>
    %140 = arith.addf %136, %139 : vector<8x1xf32>
    %141 = math.rsqrt %140 : vector<8x1xf32>
    %142 = vector.broadcast %141 : vector<8x1xf32> to vector<8x32xf32>
    %143 = arith.mulf %138, %142 : vector<8x32xf32>
    %144 = vector.broadcast %124 : vector<1x32xf32> to vector<8x32xf32>
    %145 = arith.mulf %143, %144 : vector<8x32xf32>
    %146 = vector.broadcast %125 : vector<1x32xf32> to vector<8x32xf32>
    %147 = arith.addf %145, %146 : vector<8x32xf32>
    %c0_49 = arith.constant 0 : index
    %c0_50 = arith.constant 0 : index
    %148 = vector.load %arg10[%c0_49, %c0_50] : memref<32x32xbf16, #tpu.memory_space<vmem>>, vector<32x32xbf16>
    %c0_51 = arith.constant 0 : index
    %c0_52 = arith.constant 0 : index
    %149 = vector.load %arg11[%c0_51, %c0_52] : memref<1x32xf32, #tpu.memory_space<vmem>>, vector<1x32xf32>
    %150 = arith.truncf %147 : vector<8x32xf32> to vector<8x32xbf16>
    %cst_53 = arith.constant dense<0.000000e+00> : vector<8x32xf32>
    %151 = tpu.matmul %150, %148, %cst_53 {dimension_numbers = #tpu.dot_dimension_numbers<[1], [0], [0], [1], [0, 0, 1, 1], [], []>} : vector<8x32xbf16>, vector<32x32xbf16>, vector<8x32xf32> -> vector<8x32xf32>
    %152 = vector.broadcast %149 : vector<1x32xf32> to vector<8x32xf32>
    %153 = arith.addf %151, %152 : vector<8x32xf32>
    %c0_54 = arith.constant 0 : index
    %c0_55 = arith.constant 0 : index
    %154 = vector.load %arg12[%c0_54, %c0_55] : memref<32x64xbf16, #tpu.memory_space<vmem>>, vector<32x64xbf16>
    %c0_56 = arith.constant 0 : index
    %c0_57 = arith.constant 0 : index
    %155 = vector.load %arg13[%c0_56, %c0_57] : memref<1x64xf32, #tpu.memory_space<vmem>>, vector<1x64xf32>
    %156 = arith.truncf %3 : vector<8x32xf32> to vector<8x32xbf16>
    %cst_58 = arith.constant dense<0.000000e+00> : vector<8x64xf32>
    %157 = tpu.matmul %156, %154, %cst_58 {dimension_numbers = #tpu.dot_dimension_numbers<[1], [0], [0], [1], [0, 0, 1, 1], [], []>} : vector<8x32xbf16>, vector<32x64xbf16>, vector<8x64xf32> -> vector<8x64xf32>
    %158 = vector.broadcast %155 : vector<1x64xf32> to vector<8x64xf32>
    %159 = arith.addf %157, %158 : vector<8x64xf32>
    %160 = vector.extract_strided_slice %159 {offsets = [0, 0], sizes = [8, 32], strides = [1, 1]} : vector<8x64xf32> to vector<8x32xf32>
    %161 = vector.extract_strided_slice %159 {offsets = [0, 32], sizes = [8, 32], strides = [1, 1]} : vector<8x64xf32> to vector<8x32xf32>
    %c0_59 = arith.constant 0 : index
    %c0_60 = arith.constant 0 : index
    %162 = vector.load %arg14[%c0_59, %c0_60] : memref<32x32xbf16, #tpu.memory_space<vmem>>, vector<32x32xbf16>
    %c0_61 = arith.constant 0 : index
    %c0_62 = arith.constant 0 : index
    %163 = vector.load %arg15[%c0_61, %c0_62] : memref<1x32xf32, #tpu.memory_space<vmem>>, vector<1x32xf32>
    %cst_63 = arith.constant 0.000000e+00 : f32
    %164 = vector.broadcast %cst_63 : f32 to vector<8x32xf32>
    %165 = vector.extract_strided_slice %153 {offsets = [0, 0], sizes = [8, 8], strides = [1, 1]} : vector<8x32xf32> to vector<8x8xf32>
    %cst_64 = arith.constant 0.353553385 : f32
    %166 = vector.broadcast %cst_64 : f32 to vector<8x8xf32>
    %167 = arith.mulf %165, %166 : vector<8x8xf32>
    %168 = arith.truncf %167 : vector<8x8xf32> to vector<8x8xbf16>
    %169 = vector.extract_strided_slice %160 {offsets = [0, 0], sizes = [8, 8], strides = [1, 1]} : vector<8x32xf32> to vector<8x8xf32>
    %170 = arith.truncf %169 : vector<8x8xf32> to vector<8x8xbf16>
    %171 = vector.extract_strided_slice %161 {offsets = [0, 0], sizes = [8, 8], strides = [1, 1]} : vector<8x32xf32> to vector<8x8xf32>
    %172 = arith.truncf %171 : vector<8x8xf32> to vector<8x8xbf16>
    %cst_65 = arith.constant dense<0.000000e+00> : vector<8x8xf32>
    %173 = tpu.matmul %168, %170, %cst_65 {dimension_numbers = #tpu.dot_dimension_numbers<[1], [1], [0], [0], [0, 0, 1, 0], [], []>} : vector<8x8xbf16>, vector<8x8xbf16>, vector<8x8xf32> -> vector<8x8xf32>
    %cst_66 = arith.constant dense<0xFF800000> : vector<8xf32>
    %174 = vector.multi_reduction <maximumf>, %173, %cst_66 [1] : vector<8x8xf32> to vector<8xf32>
    %175 = vector.shape_cast %174 : vector<8xf32> to vector<8x1xf32>
    %176 = vector.broadcast %175 : vector<8x1xf32> to vector<8x8xf32>
    %177 = arith.subf %173, %176 : vector<8x8xf32>
    %178 = math.exp %177 : vector<8x8xf32>
    %cst_67 = arith.constant dense<0.000000e+00> : vector<8xf32>
    %179 = vector.multi_reduction <add>, %178, %cst_67 [1] : vector<8x8xf32> to vector<8xf32>
    %180 = vector.shape_cast %179 : vector<8xf32> to vector<8x1xf32>
    %181 = arith.truncf %178 : vector<8x8xf32> to vector<8x8xbf16>
    %cst_68 = arith.constant dense<0.000000e+00> : vector<8x8xf32>
    %182 = tpu.matmul %181, %172, %cst_68 {dimension_numbers = #tpu.dot_dimension_numbers<[1], [0], [0], [1], [0, 0, 1, 1], [], []>} : vector<8x8xbf16>, vector<8x8xbf16>, vector<8x8xf32> -> vector<8x8xf32>
    %183 = tpu.reciprocal %180 {approx = true} : vector<8x1xf32> -> vector<8x1xf32>
    %184 = vector.broadcast %183 : vector<8x1xf32> to vector<8x8xf32>
    %185 = arith.mulf %182, %184 : vector<8x8xf32>
    %186 = arith.truncf %185 : vector<8x8xf32> to vector<8x8xbf16>
    %187 = vector.extract_strided_slice %162 {offsets = [0, 0], sizes = [8, 32], strides = [1, 1]} : vector<32x32xbf16> to vector<8x32xbf16>
    %cst_69 = arith.constant dense<0.000000e+00> : vector<8x32xf32>
    %188 = tpu.matmul %186, %187, %cst_69 {dimension_numbers = #tpu.dot_dimension_numbers<[1], [0], [0], [1], [0, 0, 1, 1], [], []>} : vector<8x8xbf16>, vector<8x32xbf16>, vector<8x32xf32> -> vector<8x32xf32>
    %189 = arith.addf %164, %188 : vector<8x32xf32>
    %190 = vector.extract_strided_slice %153 {offsets = [0, 8], sizes = [8, 8], strides = [1, 1]} : vector<8x32xf32> to vector<8x8xf32>
    %cst_70 = arith.constant 0.353553385 : f32
    %191 = vector.broadcast %cst_70 : f32 to vector<8x8xf32>
    %192 = arith.mulf %190, %191 : vector<8x8xf32>
    %193 = arith.truncf %192 : vector<8x8xf32> to vector<8x8xbf16>
    %194 = vector.extract_strided_slice %160 {offsets = [0, 8], sizes = [8, 8], strides = [1, 1]} : vector<8x32xf32> to vector<8x8xf32>
    %195 = arith.truncf %194 : vector<8x8xf32> to vector<8x8xbf16>
    %196 = vector.extract_strided_slice %161 {offsets = [0, 8], sizes = [8, 8], strides = [1, 1]} : vector<8x32xf32> to vector<8x8xf32>
    %197 = arith.truncf %196 : vector<8x8xf32> to vector<8x8xbf16>
    %cst_71 = arith.constant dense<0.000000e+00> : vector<8x8xf32>
    %198 = tpu.matmul %193, %195, %cst_71 {dimension_numbers = #tpu.dot_dimension_numbers<[1], [1], [0], [0], [0, 0, 1, 0], [], []>} : vector<8x8xbf16>, vector<8x8xbf16>, vector<8x8xf32> -> vector<8x8xf32>
    %cst_72 = arith.constant dense<0xFF800000> : vector<8xf32>
    %199 = vector.multi_reduction <maximumf>, %198, %cst_72 [1] : vector<8x8xf32> to vector<8xf32>
    %200 = vector.shape_cast %199 : vector<8xf32> to vector<8x1xf32>
    %201 = vector.broadcast %200 : vector<8x1xf32> to vector<8x8xf32>
    %202 = arith.subf %198, %201 : vector<8x8xf32>
    %203 = math.exp %202 : vector<8x8xf32>
    %cst_73 = arith.constant dense<0.000000e+00> : vector<8xf32>
    %204 = vector.multi_reduction <add>, %203, %cst_73 [1] : vector<8x8xf32> to vector<8xf32>
    %205 = vector.shape_cast %204 : vector<8xf32> to vector<8x1xf32>
    %206 = arith.truncf %203 : vector<8x8xf32> to vector<8x8xbf16>
    %cst_74 = arith.constant dense<0.000000e+00> : vector<8x8xf32>
    %207 = tpu.matmul %206, %197, %cst_74 {dimension_numbers = #tpu.dot_dimension_numbers<[1], [0], [0], [1], [0, 0, 1, 1], [], []>} : vector<8x8xbf16>, vector<8x8xbf16>, vector<8x8xf32> -> vector<8x8xf32>
    %208 = tpu.reciprocal %205 {approx = true} : vector<8x1xf32> -> vector<8x1xf32>
    %209 = vector.broadcast %208 : vector<8x1xf32> to vector<8x8xf32>
    %210 = arith.mulf %207, %209 : vector<8x8xf32>
    %211 = arith.truncf %210 : vector<8x8xf32> to vector<8x8xbf16>
    %212 = vector.extract_strided_slice %162 {offsets = [8, 0], sizes = [8, 32], strides = [1, 1]} : vector<32x32xbf16> to vector<8x32xbf16>
    %cst_75 = arith.constant dense<0.000000e+00> : vector<8x32xf32>
    %213 = tpu.matmul %211, %212, %cst_75 {dimension_numbers = #tpu.dot_dimension_numbers<[1], [0], [0], [1], [0, 0, 1, 1], [], []>} : vector<8x8xbf16>, vector<8x32xbf16>, vector<8x32xf32> -> vector<8x32xf32>
    %214 = arith.addf %189, %213 : vector<8x32xf32>
    %215 = vector.extract_strided_slice %153 {offsets = [0, 16], sizes = [8, 8], strides = [1, 1]} : vector<8x32xf32> to vector<8x8xf32>
    %cst_76 = arith.constant 0.353553385 : f32
    %216 = vector.broadcast %cst_76 : f32 to vector<8x8xf32>
    %217 = arith.mulf %215, %216 : vector<8x8xf32>
    %218 = arith.truncf %217 : vector<8x8xf32> to vector<8x8xbf16>
    %219 = vector.extract_strided_slice %160 {offsets = [0, 16], sizes = [8, 8], strides = [1, 1]} : vector<8x32xf32> to vector<8x8xf32>
    %220 = arith.truncf %219 : vector<8x8xf32> to vector<8x8xbf16>
    %221 = vector.extract_strided_slice %161 {offsets = [0, 16], sizes = [8, 8], strides = [1, 1]} : vector<8x32xf32> to vector<8x8xf32>
    %222 = arith.truncf %221 : vector<8x8xf32> to vector<8x8xbf16>
    %cst_77 = arith.constant dense<0.000000e+00> : vector<8x8xf32>
    %223 = tpu.matmul %218, %220, %cst_77 {dimension_numbers = #tpu.dot_dimension_numbers<[1], [1], [0], [0], [0, 0, 1, 0], [], []>} : vector<8x8xbf16>, vector<8x8xbf16>, vector<8x8xf32> -> vector<8x8xf32>
    %cst_78 = arith.constant dense<0xFF800000> : vector<8xf32>
    %224 = vector.multi_reduction <maximumf>, %223, %cst_78 [1] : vector<8x8xf32> to vector<8xf32>
    %225 = vector.shape_cast %224 : vector<8xf32> to vector<8x1xf32>
    %226 = vector.broadcast %225 : vector<8x1xf32> to vector<8x8xf32>
    %227 = arith.subf %223, %226 : vector<8x8xf32>
    %228 = math.exp %227 : vector<8x8xf32>
    %cst_79 = arith.constant dense<0.000000e+00> : vector<8xf32>
    %229 = vector.multi_reduction <add>, %228, %cst_79 [1] : vector<8x8xf32> to vector<8xf32>
    %230 = vector.shape_cast %229 : vector<8xf32> to vector<8x1xf32>
    %231 = arith.truncf %228 : vector<8x8xf32> to vector<8x8xbf16>
    %cst_80 = arith.constant dense<0.000000e+00> : vector<8x8xf32>
    %232 = tpu.matmul %231, %222, %cst_80 {dimension_numbers = #tpu.dot_dimension_numbers<[1], [0], [0], [1], [0, 0, 1, 1], [], []>} : vector<8x8xbf16>, vector<8x8xbf16>, vector<8x8xf32> -> vector<8x8xf32>
    %233 = tpu.reciprocal %230 {approx = true} : vector<8x1xf32> -> vector<8x1xf32>
    %234 = vector.broadcast %233 : vector<8x1xf32> to vector<8x8xf32>
    %235 = arith.mulf %232, %234 : vector<8x8xf32>
    %236 = arith.truncf %235 : vector<8x8xf32> to vector<8x8xbf16>
    %237 = vector.extract_strided_slice %162 {offsets = [16, 0], sizes = [8, 32], strides = [1, 1]} : vector<32x32xbf16> to vector<8x32xbf16>
    %cst_81 = arith.constant dense<0.000000e+00> : vector<8x32xf32>
    %238 = tpu.matmul %236, %237, %cst_81 {dimension_numbers = #tpu.dot_dimension_numbers<[1], [0], [0], [1], [0, 0, 1, 1], [], []>} : vector<8x8xbf16>, vector<8x32xbf16>, vector<8x32xf32> -> vector<8x32xf32>
    %239 = arith.addf %214, %238 : vector<8x32xf32>
    %240 = vector.extract_strided_slice %153 {offsets = [0, 24], sizes = [8, 8], strides = [1, 1]} : vector<8x32xf32> to vector<8x8xf32>
    %cst_82 = arith.constant 0.353553385 : f32
    %241 = vector.broadcast %cst_82 : f32 to vector<8x8xf32>
    %242 = arith.mulf %240, %241 : vector<8x8xf32>
    %243 = arith.truncf %242 : vector<8x8xf32> to vector<8x8xbf16>
    %244 = vector.extract_strided_slice %160 {offsets = [0, 24], sizes = [8, 8], strides = [1, 1]} : vector<8x32xf32> to vector<8x8xf32>
    %245 = arith.truncf %244 : vector<8x8xf32> to vector<8x8xbf16>
    %246 = vector.extract_strided_slice %161 {offsets = [0, 24], sizes = [8, 8], strides = [1, 1]} : vector<8x32xf32> to vector<8x8xf32>
    %247 = arith.truncf %246 : vector<8x8xf32> to vector<8x8xbf16>
    %cst_83 = arith.constant dense<0.000000e+00> : vector<8x8xf32>
    %248 = tpu.matmul %243, %245, %cst_83 {dimension_numbers = #tpu.dot_dimension_numbers<[1], [1], [0], [0], [0, 0, 1, 0], [], []>} : vector<8x8xbf16>, vector<8x8xbf16>, vector<8x8xf32> -> vector<8x8xf32>
    %cst_84 = arith.constant dense<0xFF800000> : vector<8xf32>
    %249 = vector.multi_reduction <maximumf>, %248, %cst_84 [1] : vector<8x8xf32> to vector<8xf32>
    %250 = vector.shape_cast %249 : vector<8xf32> to vector<8x1xf32>
    %251 = vector.broadcast %250 : vector<8x1xf32> to vector<8x8xf32>
    %252 = arith.subf %248, %251 : vector<8x8xf32>
    %253 = math.exp %252 : vector<8x8xf32>
    %cst_85 = arith.constant dense<0.000000e+00> : vector<8xf32>
    %254 = vector.multi_reduction <add>, %253, %cst_85 [1] : vector<8x8xf32> to vector<8xf32>
    %255 = vector.shape_cast %254 : vector<8xf32> to vector<8x1xf32>
    %256 = arith.truncf %253 : vector<8x8xf32> to vector<8x8xbf16>
    %cst_86 = arith.constant dense<0.000000e+00> : vector<8x8xf32>
    %257 = tpu.matmul %256, %247, %cst_86 {dimension_numbers = #tpu.dot_dimension_numbers<[1], [0], [0], [1], [0, 0, 1, 1], [], []>} : vector<8x8xbf16>, vector<8x8xbf16>, vector<8x8xf32> -> vector<8x8xf32>
    %258 = tpu.reciprocal %255 {approx = true} : vector<8x1xf32> -> vector<8x1xf32>
    %259 = vector.broadcast %258 : vector<8x1xf32> to vector<8x8xf32>
    %260 = arith.mulf %257, %259 : vector<8x8xf32>
    %261 = arith.truncf %260 : vector<8x8xf32> to vector<8x8xbf16>
    %262 = vector.extract_strided_slice %162 {offsets = [24, 0], sizes = [8, 32], strides = [1, 1]} : vector<32x32xbf16> to vector<8x32xbf16>
    %cst_87 = arith.constant dense<0.000000e+00> : vector<8x32xf32>
    %263 = tpu.matmul %261, %262, %cst_87 {dimension_numbers = #tpu.dot_dimension_numbers<[1], [0], [0], [1], [0, 0, 1, 1], [], []>} : vector<8x8xbf16>, vector<8x32xbf16>, vector<8x32xf32> -> vector<8x32xf32>
    %264 = arith.addf %239, %263 : vector<8x32xf32>
    %265 = vector.broadcast %163 : vector<1x32xf32> to vector<8x32xf32>
    %266 = arith.addf %264, %265 : vector<8x32xf32>
    %267 = arith.addf %147, %266 : vector<8x32xf32>
    %c0_88 = arith.constant 0 : index
    %c0_89 = arith.constant 0 : index
    %268 = vector.load %arg16[%c0_88, %c0_89] : memref<1x32xf32, #tpu.memory_space<vmem>>, vector<1x32xf32>
    %c0_90 = arith.constant 0 : index
    %c0_91 = arith.constant 0 : index
    %269 = vector.load %arg17[%c0_90, %c0_91] : memref<1x32xf32, #tpu.memory_space<vmem>>, vector<1x32xf32>
    %cst_92 = arith.constant dense<0.000000e+00> : vector<8xf32>
    %270 = vector.multi_reduction <add>, %267, %cst_92 [1] : vector<8x32xf32> to vector<8xf32>
    %271 = vector.shape_cast %270 : vector<8xf32> to vector<8x1xf32>
    %cst_93 = arith.constant 3.200000e+01 : f32
    %272 = vector.broadcast %cst_93 : f32 to vector<8x1xf32>
    %273 = arith.divf %271, %272 : vector<8x1xf32>
    %274 = vector.broadcast %273 : vector<8x1xf32> to vector<8x32xf32>
    %275 = arith.subf %267, %274 : vector<8x32xf32>
    %276 = arith.mulf %275, %275 : vector<8x32xf32>
    %cst_94 = arith.constant dense<0.000000e+00> : vector<8xf32>
    %277 = vector.multi_reduction <add>, %276, %cst_94 [1] : vector<8x32xf32> to vector<8xf32>
    %278 = vector.shape_cast %277 : vector<8xf32> to vector<8x1xf32>
    %cst_95 = arith.constant 3.200000e+01 : f32
    %279 = vector.broadcast %cst_95 : f32 to vector<8x1xf32>
    %280 = arith.divf %278, %279 : vector<8x1xf32>
    %281 = vector.broadcast %273 : vector<8x1xf32> to vector<8x32xf32>
    %282 = arith.subf %267, %281 : vector<8x32xf32>
    %cst_96 = arith.constant 9.99999974E-6 : f32
    %283 = vector.broadcast %cst_96 : f32 to vector<8x1xf32>
    %284 = arith.addf %280, %283 : vector<8x1xf32>
    %285 = math.rsqrt %284 : vector<8x1xf32>
    %286 = vector.broadcast %285 : vector<8x1xf32> to vector<8x32xf32>
    %287 = arith.mulf %282, %286 : vector<8x32xf32>
    %288 = vector.broadcast %268 : vector<1x32xf32> to vector<8x32xf32>
    %289 = arith.mulf %287, %288 : vector<8x32xf32>
    %290 = vector.broadcast %269 : vector<1x32xf32> to vector<8x32xf32>
    %291 = arith.addf %289, %290 : vector<8x32xf32>
    %c0_97 = arith.constant 0 : index
    %c0_98 = arith.constant 0 : index
    %292 = vector.load %arg18[%c0_97, %c0_98] : memref<32x2048xbf16, #tpu.memory_space<vmem>>, vector<32x2048xbf16>
    %c0_99 = arith.constant 0 : index
    %c0_100 = arith.constant 0 : index
    %293 = vector.load %arg19[%c0_99, %c0_100] : memref<1x2048xf32, #tpu.memory_space<vmem>>, vector<1x2048xf32>
    %294 = arith.truncf %291 : vector<8x32xf32> to vector<8x32xbf16>
    %cst_101 = arith.constant dense<0.000000e+00> : vector<8x2048xf32>
    %295 = tpu.matmul %294, %292, %cst_101 {dimension_numbers = #tpu.dot_dimension_numbers<[1], [0], [0], [1], [0, 0, 1, 1], [], []>} : vector<8x32xbf16>, vector<32x2048xbf16>, vector<8x2048xf32> -> vector<8x2048xf32>
    %296 = vector.broadcast %293 : vector<1x2048xf32> to vector<8x2048xf32>
    %297 = arith.addf %295, %296 : vector<8x2048xf32>
    %cst_102 = arith.constant 0.000000e+00 : f32
    %298 = vector.broadcast %cst_102 : f32 to vector<8x2048xf32>
    %299 = arith.maximumf %297, %298 : vector<8x2048xf32>
    %c0_103 = arith.constant 0 : index
    %c0_104 = arith.constant 0 : index
    %300 = vector.load %arg20[%c0_103, %c0_104] : memref<2048x32xbf16, #tpu.memory_space<vmem>>, vector<2048x32xbf16>
    %c0_105 = arith.constant 0 : index
    %c0_106 = arith.constant 0 : index
    %301 = vector.load %arg21[%c0_105, %c0_106] : memref<1x32xf32, #tpu.memory_space<vmem>>, vector<1x32xf32>
    %302 = arith.truncf %299 : vector<8x2048xf32> to vector<8x2048xbf16>
    %cst_107 = arith.constant dense<0.000000e+00> : vector<8x32xf32>
    %303 = tpu.matmul %302, %300, %cst_107 {dimension_numbers = #tpu.dot_dimension_numbers<[1], [0], [0], [1], [0, 0, 1, 1], [], []>} : vector<8x2048xbf16>, vector<2048x32xbf16>, vector<8x32xf32> -> vector<8x32xf32>
    %304 = vector.broadcast %301 : vector<1x32xf32> to vector<8x32xf32>
    %305 = arith.addf %303, %304 : vector<8x32xf32>
    %306 = arith.addf %291, %305 : vector<8x32xf32>
    %c0_108 = arith.constant 0 : index
    %c0_109 = arith.constant 0 : index
    %307 = vector.load %arg22[%c0_108, %c0_109] : memref<1x32xf32, #tpu.memory_space<vmem>>, vector<1x32xf32>
    %c0_110 = arith.constant 0 : index
    %c0_111 = arith.constant 0 : index
    %308 = vector.load %arg23[%c0_110, %c0_111] : memref<1x32xf32, #tpu.memory_space<vmem>>, vector<1x32xf32>
    %cst_112 = arith.constant dense<0.000000e+00> : vector<8xf32>
    %309 = vector.multi_reduction <add>, %306, %cst_112 [1] : vector<8x32xf32> to vector<8xf32>
    %310 = vector.shape_cast %309 : vector<8xf32> to vector<8x1xf32>
    %cst_113 = arith.constant 3.200000e+01 : f32
    %311 = vector.broadcast %cst_113 : f32 to vector<8x1xf32>
    %312 = arith.divf %310, %311 : vector<8x1xf32>
    %313 = vector.broadcast %312 : vector<8x1xf32> to vector<8x32xf32>
    %314 = arith.subf %306, %313 : vector<8x32xf32>
    %315 = arith.mulf %314, %314 : vector<8x32xf32>
    %cst_114 = arith.constant dense<0.000000e+00> : vector<8xf32>
    %316 = vector.multi_reduction <add>, %315, %cst_114 [1] : vector<8x32xf32> to vector<8xf32>
    %317 = vector.shape_cast %316 : vector<8xf32> to vector<8x1xf32>
    %cst_115 = arith.constant 3.200000e+01 : f32
    %318 = vector.broadcast %cst_115 : f32 to vector<8x1xf32>
    %319 = arith.divf %317, %318 : vector<8x1xf32>
    %320 = vector.broadcast %312 : vector<8x1xf32> to vector<8x32xf32>
    %321 = arith.subf %306, %320 : vector<8x32xf32>
    %cst_116 = arith.constant 9.99999974E-6 : f32
    %322 = vector.broadcast %cst_116 : f32 to vector<8x1xf32>
    %323 = arith.addf %319, %322 : vector<8x1xf32>
    %324 = math.rsqrt %323 : vector<8x1xf32>
    %325 = vector.broadcast %324 : vector<8x1xf32> to vector<8x32xf32>
    %326 = arith.mulf %321, %325 : vector<8x32xf32>
    %327 = vector.broadcast %307 : vector<1x32xf32> to vector<8x32xf32>
    %328 = arith.mulf %326, %327 : vector<8x32xf32>
    %329 = vector.broadcast %308 : vector<1x32xf32> to vector<8x32xf32>
    %330 = arith.addf %328, %329 : vector<8x32xf32>
    %c0_117 = arith.constant 0 : index
    %c0_118 = arith.constant 0 : index
    %c0_119 = arith.constant 0 : index
    %331 = vector.load %arg24[%c0_117, %c0_118, %c0_119] : memref<1x8x32xf32, #tpu.memory_space<vmem>>, vector<1x8x32xf32>
    %332 = vector.shape_cast %331 : vector<1x8x32xf32> to vector<8x32xf32>
    %333 = vector.shape_cast %330 : vector<8x32xf32> to vector<1x8x32xf32>
    tpu.vector_store %arg24[%c0_117, %c0_118, %c0_119], %333 {strides = array<i32>} : memref<1x8x32xf32, #tpu.memory_space<vmem>>, vector<1x8x32xf32>,
    return
  }
  func.func @transform_0(%arg0: i32) -> (i32, i32, i32) {
    %c0_i32 = arith.constant 0 : i32
    %c0_i32_0 = arith.constant 0 : i32
    %c0_i32_1 = arith.constant 0 : i32
    return %arg0, %c0_i32, %c0_i32_0 : i32, i32, i32
  }
  func.func @transform_1(%arg0: i32) -> (i32, i32, i32) {
    %c0_i32 = arith.constant 0 : i32
    %c0_i32_0 = arith.constant 0 : i32
    %c0_i32_1 = arith.constant 0 : i32
    return %arg0, %c0_i32, %c0_i32_0 : i32, i32, i32
  }
  func.func @transform_2(%arg0: i32) -> (i32, i32) {
    %c0_i32 = arith.constant 0 : i32
    %c0_i32_0 = arith.constant 0 : i32
    %c0_i32_1 = arith.constant 0 : i32
    return %c0_i32, %c0_i32_0 : i32, i32
  }
  func.func @transform_3(%arg0: i32) -> (i32, i32) {
    %c0_i32 = arith.constant 0 : i32
    %c0_i32_0 = arith.constant 0 : i32
    %c0_i32_1 = arith.constant 0 : i32
    return %c0_i32, %c0_i32_0 : i32, i32
  }
  func.func @transform_4(%arg0: i32) -> (i32, i32) {
    %c0_i32 = arith.constant 0 : i32
    %c0_i32_0 = arith.constant 0 : i32
    %c0_i32_1 = arith.constant 0 : i32
    return %c0_i32, %c0_i32_0 : i32, i32
  }
  func.func @transform_5(%arg0: i32) -> (i32, i32) {
    %c0_i32 = arith.constant 0 : i32
    %c0_i32_0 = arith.constant 0 : i32
    %c0_i32_1 = arith.constant 0 : i32
    return %c0_i32, %c0_i32_0 : i32, i32
  }
  func.func @transform_6(%arg0: i32) -> (i32, i32) {
    %c0_i32 = arith.constant 0 : i32
    %c0_i32_0 = arith.constant 0 : i32
    %c0_i32_1 = arith.constant 0 : i32
    return %c0_i32, %c0_i32_0 : i32, i32
  }
  func.func @transform_7(%arg0: i32) -> (i32, i32) {
    %c0_i32 = arith.constant 0 : i32
    %c0_i32_0 = arith.constant 0 : i32
    %c0_i32_1 = arith.constant 0 : i32
    return %c0_i32, %c0_i32_0 : i32, i32
  }
  func.func @transform_8(%arg0: i32) -> (i32, i32) {
    %c0_i32 = arith.constant 0 : i32
    %c0_i32_0 = arith.constant 0 : i32
    %c0_i32_1 = arith.constant 0 : i32
    return %c0_i32, %c0_i32_0 : i32, i32
  }
  func.func @transform_9(%arg0: i32) -> (i32, i32) {
    %c0_i32 = arith.constant 0 : i32
    %c0_i32_0 = arith.constant 0 : i32
    %c0_i32_1 = arith.constant 0 : i32
    return %c0_i32, %c0_i32_0 : i32, i32
  }
  func.func @transform_10(%arg0: i32) -> (i32, i32) {
    %c0_i32 = arith.constant 0 : i32
    %c0_i32_0 = arith.constant 0 : i32
    %c0_i32_1 = arith.constant 0 : i32
    return %c0_i32, %c0_i32_0 : i32, i32
  }
  func.func @transform_11(%arg0: i32) -> (i32, i32) {
    %c0_i32 = arith.constant 0 : i32
    %c0_i32_0 = arith.constant 0 : i32
    %c0_i32_1 = arith.constant 0 : i32
    return %c0_i32, %c0_i32_0 : i32, i32
  }
  func.func @transform_12(%arg0: i32) -> (i32, i32) {
    %c0_i32 = arith.constant 0 : i32
    %c0_i32_0 = arith.constant 0 : i32
    %c0_i32_1 = arith.constant 0 : i32
    return %c0_i32, %c0_i32_0 : i32, i32
  }
  func.func @transform_13(%arg0: i32) -> (i32, i32) {
    %c0_i32 = arith.constant 0 : i32
    %c0_i32_0 = arith.constant 0 : i32
    %c0_i32_1 = arith.constant 0 : i32
    return %c0_i32, %c0_i32_0 : i32, i32
  }
  func.func @transform_14(%arg0: i32) -> (i32, i32) {
    %c0_i32 = arith.constant 0 : i32
    %c0_i32_0 = arith.constant 0 : i32
    %c0_i32_1 = arith.constant 0 : i32
    return %c0_i32, %c0_i32_0 : i32, i32
  }
  func.func @transform_15(%arg0: i32) -> (i32, i32) {
    %c0_i32 = arith.constant 0 : i32
    %c0_i32_0 = arith.constant 0 : i32
    %c0_i32_1 = arith.constant 0 : i32
    return %c0_i32, %c0_i32_0 : i32, i32
  }
  func.func @transform_16(%arg0: i32) -> (i32, i32) {
    %c0_i32 = arith.constant 0 : i32
    %c0_i32_0 = arith.constant 0 : i32
    %c0_i32_1 = arith.constant 0 : i32
    return %c0_i32, %c0_i32_0 : i32, i32
  }
  func.func @transform_17(%arg0: i32) -> (i32, i32) {
    %c0_i32 = arith.constant 0 : i32
    %c0_i32_0 = arith.constant 0 : i32
    %c0_i32_1 = arith.constant 0 : i32
    return %c0_i32, %c0_i32_0 : i32, i32
  }
  func.func @transform_18(%arg0: i32) -> (i32, i32) {
    %c0_i32 = arith.constant 0 : i32
    %c0_i32_0 = arith.constant 0 : i32
    %c0_i32_1 = arith.constant 0 : i32
    return %c0_i32, %c0_i32_0 : i32, i32
  }
  func.func @transform_19(%arg0: i32) -> (i32, i32) {
    %c0_i32 = arith.constant 0 : i32
    %c0_i32_0 = arith.constant 0 : i32
    %c0_i32_1 = arith.constant 0 : i32
    return %c0_i32, %c0_i32_0 : i32, i32
  }
  func.func @transform_20(%arg0: i32) -> (i32, i32) {
    %c0_i32 = arith.constant 0 : i32
    %c0_i32_0 = arith.constant 0 : i32
    %c0_i32_1 = arith.constant 0 : i32
    return %c0_i32, %c0_i32_0 : i32, i32
  }
  func.func @transform_21(%arg0: i32) -> (i32, i32) {
    %c0_i32 = arith.constant 0 : i32
    %c0_i32_0 = arith.constant 0 : i32
    %c0_i32_1 = arith.constant 0 : i32
    return %c0_i32, %c0_i32_0 : i32, i32
  }
  func.func @transform_22(%arg0: i32) -> (i32, i32) {
    %c0_i32 = arith.constant 0 : i32
    %c0_i32_0 = arith.constant 0 : i32
    %c0_i32_1 = arith.constant 0 : i32
    return %c0_i32, %c0_i32_0 : i32, i32
  }
  func.func @transform_23(%arg0: i32) -> (i32, i32, i32) {
    %c0_i32 = arith.constant 0 : i32
    %c0_i32_0 = arith.constant 0 : i32
    %c0_i32_1 = arith.constant 0 : i32
    return %arg0, %c0_i32, %c0_i32_0 : i32, i32, i32
  }
}

module attributes {stable_mosaic.version = 11 : i64} {
  func.func @_decoder_layer_kernel(%arg0: i32, %arg1: memref<1x8x32xf32, #tpu.memory_space<vmem>>, %arg2: memref<1x8x32xf32, #tpu.memory_space<vmem>>, %arg3: memref<8x8xf32, #tpu.memory_space<vmem>>, %arg4: memref<32x96xbf16, #tpu.memory_space<vmem>>, %arg5: memref<1x96xf32, #tpu.memory_space<vmem>>, %arg6: memref<32x32xbf16, #tpu.memory_space<vmem>>, %arg7: memref<1x32xf32, #tpu.memory_space<vmem>>, %arg8: memref<1x32xf32, #tpu.memory_space<vmem>>, %arg9: memref<1x32xf32, #tpu.memory_space<vmem>>, %arg10: memref<32x32xbf16, #tpu.memory_space<vmem>>, %arg11: memref<1x32xf32, #tpu.memory_space<vmem>>, %arg12: memref<32x64xbf16, #tpu.memory_space<vmem>>, %arg13: memref<1x64xf32, #tpu.memory_space<vmem>>, %arg14: memref<32x32xbf16, #tpu.memory_space<vmem>>, %arg15: memref<1x32xf32, #tpu.memory_space<vmem>>, %arg16: memref<1x32xf32, #tpu.memory_space<vmem>>, %arg17: memref<1x32xf32, #tpu.memory_space<vmem>>, %arg18: memref<32x2048xbf16, #tpu.memory_space<vmem>>, %arg19: memref<1x2048xf32, #tpu.memory_space<vmem>>, %arg20: memref<2048x32xbf16, #tpu.memory_space<vmem>>, %arg21: memref<1x32xf32, #tpu.memory_space<vmem>>, %arg22: memref<1x32xf32, #tpu.memory_space<vmem>>, %arg23: memref<1x32xf32, #tpu.memory_space<vmem>>, %arg24: memref<1x8x32xf32, #tpu.memory_space<vmem>>) attributes {dimension_semantics = [#tpu.dimension_semantics<parallel>], iteration_bounds = array<i64: 2>, scalar_prefetch = 0 : i64, scratch_operands = 0 : i64, tpu.core_type = #tpu.core_type<tc>, window_params = [{transform_indices = @transform_0, window_bounds = array<i64: 1, 8, 32>}, {transform_indices = @transform_1, window_bounds = array<i64: 1, 8, 32>}, {pipeline_mode = #tpu.pipeline_mode<synchronous>, transform_indices = @transform_2, window_bounds = array<i64: 8, 8>}, {pipeline_mode = #tpu.pipeline_mode<synchronous>, transform_indices = @transform_3, window_bounds = array<i64: 32, 96>}, {pipeline_mode = #tpu.pipeline_mode<synchronous>, transform_indices = @transform_4, window_bounds = array<i64: 1, 96>}, {pipeline_mode = #tpu.pipeline_mode<synchronous>, transform_indices = @transform_5, window_bounds = array<i64: 32, 32>}, {pipeline_mode = #tpu.pipeline_mode<synchronous>, transform_indices = @transform_6, window_bounds = array<i64: 1, 32>}, {pipeline_mode = #tpu.pipeline_mode<synchronous>, transform_indices = @transform_7, window_bounds = array<i64: 1, 32>}, {pipeline_mode = #tpu.pipeline_mode<synchronous>, transform_indices = @transform_8, window_bounds = array<i64: 1, 32>}, {pipeline_mode = #tpu.pipeline_mode<synchronous>, transform_indices = @transform_9, window_bounds = array<i64: 32, 32>}, {pipeline_mode = #tpu.pipeline_mode<synchronous>, transform_indices = @transform_10, window_bounds = array<i64: 1, 32>}, {pipeline_mode = #tpu.pipeline_mode<synchronous>, transform_indices = @transform_11, window_bounds = array<i64: 32, 64>}, {pipeline_mode = #tpu.pipeline_mode<synchronous>, transform_indices = @transform_12, window_bounds = array<i64: 1, 64>}, {pipeline_mode = #tpu.pipeline_mode<synchronous>, transform_indices = @transform_13, window_bounds = array<i64: 32, 32>}, {pipeline_mode = #tpu.pipeline_mode<synchronous>, transform_indices = @transform_14, window_bounds = array<i64: 1, 32>}, {pipeline_mode = #tpu.pipeline_mode<synchronous>, transform_indices = @transform_15, window_bounds = array<i64: 1, 32>}, {pipeline_mode = #tpu.pipeline_mode<synchronous>, transform_indices = @transform_16, window_bounds = array<i64: 1, 32>}, {pipeline_mode = #tpu.pipeline_mode<synchronous>, transform_indices = @transform_17, window_bounds = array<i64: 32, 2048>}, {pipeline_mode = #tpu.pipeline_mode<synchronous>, transform_indices = @transform_18, window_bounds = array<i64: 1, 2048>}, {pipeline_mode = #tpu.pipeline_mode<synchronous>, transform_indices = @transform_19, window_bounds = array<i64: 2048, 32>}, {pipeline_mode = #tpu.pipeline_mode<synchronous>, transform_indices = @transform_20, window_bounds = array<i64: 1, 32>}, {pipeline_mode = #tpu.pipeline_mode<synchronous>, transform_indices = @transform_21, window_bounds = array<i64: 1, 32>}, {pipeline_mode = #tpu.pipeline_mode<synchronous>, transform_indices = @transform_22, window_bounds = array<i64: 1, 32>}, {transform_indices = @transform_23, window_bounds = array<i64: 1, 8, 32>}]} {
    %c0 = arith.constant 0 : index
    %c0_0 = arith.constant 0 : index
    %c0_1 = arith.constant 0 : index
    %0 = vector.load %arg1[%c0, %c0_0, %c0_1] : memref<1x8x32xf32, #tpu.memory_space<vmem>>, vector<1x8x32xf32>
    %1 = vector.shape_cast %0 : vector<1x8x32xf32> to vector<8x32xf32>
    %c0_2 = arith.constant 0 : index
    %c0_3 = arith.constant 0 : index
    %c0_4 = arith.constant 0 : index
    %2 = vector.load %arg2[%c0_2, %c0_3, %c0_4] : memref<1x8x32xf32, #tpu.memory_space<vmem>>, vector<1x8x32xf32>
    %3 = vector.shape_cast %2 : vector<1x8x32xf32> to vector<8x32xf32>
    %c0_5 = arith.constant 0 : index
    %c0_6 = arith.constant 0 : index
    %4 = vector.load %arg3[%c0_5, %c0_6] : memref<8x8xf32, #tpu.memory_space<vmem>>, vector<8x8xf32>
    %c0_7 = arith.constant 0 : index
    %c0_8 = arith.constant 0 : index
    %5 = vector.load %arg4[%c0_7, %c0_8] : memref<32x96xbf16, #tpu.memory_space<vmem>>, vector<32x96xbf16>
    %c0_9 = arith.constant 0 : index
    %c0_10 = arith.constant 0 : index
    %6 = vector.load %arg5[%c0_9, %c0_10] : memref<1x96xf32, #tpu.memory_space<vmem>>, vector<1x96xf32>
    %7 = arith.truncf %1 : vector<8x32xf32> to vector<8x32xbf16>
    %cst = arith.constant dense<0.000000e+00> : vector<8x96xf32>
    %8 = tpu.matmul %7, %5, %cst {dimension_numbers = #tpu.dot_dimension_numbers<[1], [0], [0], [1], [0, 0, 1, 1], [], []>} : vector<8x32xbf16>, vector<32x96xbf16>, vector<8x96xf32> -> vector<8x96xf32>
    %9 = vector.broadcast %6 : vector<1x96xf32> to vector<8x96xf32>
    %10 = arith.addf %8, %9 : vector<8x96xf32>
    %11 = vector.extract_strided_slice %10 {offsets = [0, 0], sizes = [8, 32], strides = [1, 1]} : vector<8x96xf32> to vector<8x32xf32>
    %12 = vector.extract_strided_slice %10 {offsets = [0, 32], sizes = [8, 32], strides = [1, 1]} : vector<8x96xf32> to vector<8x32xf32>
    %13 = vector.extract_strided_slice %10 {offsets = [0, 64], sizes = [8, 32], strides = [1, 1]} : vector<8x96xf32> to vector<8x32xf32>
    %c0_11 = arith.constant 0 : index
    %c0_12 = arith.constant 0 : index
    %14 = vector.load %arg6[%c0_11, %c0_12] : memref<32x32xbf16, #tpu.memory_space<vmem>>, vector<32x32xbf16>
    %c0_13 = arith.constant 0 : index
    %c0_14 = arith.constant 0 : index
    %15 = vector.load %arg7[%c0_13, %c0_14] : memref<1x32xf32, #tpu.memory_space<vmem>>, vector<1x32xf32>
    %cst_15 = arith.constant 0.000000e+00 : f32
    %16 = vector.broadcast %cst_15 : f32 to vector<8x32xf32>
    %17 = vector.extract_strided_slice %11 {offsets = [0, 0], sizes = [8, 8], strides = [1, 1]} : vector<8x32xf32> to vector<8x8xf32>
    %cst_16 = arith.constant 0.353553385 : f32
    %18 = vector.broadcast %cst_16 : f32 to vector<8x8xf32>
    %19 = arith.mulf %17, %18 : vector<8x8xf32>
    %20 = arith.truncf %19 : vector<8x8xf32> to vector<8x8xbf16>
    %21 = vector.extract_strided_slice %12 {offsets = [0, 0], sizes = [8, 8], strides = [1, 1]} : vector<8x32xf32> to vector<8x8xf32>
    %22 = arith.truncf %21 : vector<8x8xf32> to vector<8x8xbf16>
    %23 = vector.extract_strided_slice %13 {offsets = [0, 0], sizes = [8, 8], strides = [1, 1]} : vector<8x32xf32> to vector<8x8xf32>
    %24 = arith.truncf %23 : vector<8x8xf32> to vector<8x8xbf16>
    %cst_17 = arith.constant dense<0.000000e+00> : vector<8x8xf32>
    %25 = tpu.matmul %20, %22, %cst_17 {dimension_numbers = #tpu.dot_dimension_numbers<[1], [1], [0], [0], [0, 0, 1, 0], [], []>} : vector<8x8xbf16>, vector<8x8xbf16>, vector<8x8xf32> -> vector<8x8xf32>
    %26 = arith.addf %25, %4 : vector<8x8xf32>
    %cst_18 = arith.constant dense<0xFF800000> : vector<8xf32>
    %27 = vector.multi_reduction <maximumf>, %26, %cst_18 [1] : vector<8x8xf32> to vector<8xf32>
    %28 = vector.shape_cast %27 : vector<8xf32> to vector<8x1xf32>
    %29 = vector.broadcast %28 : vector<8x1xf32> to vector<8x8xf32>
    %30 = arith.subf %26, %29 : vector<8x8xf32>
    %31 = math.exp %30 : vector<8x8xf32>
    %cst_19 = arith.constant dense<0.000000e+00> : vector<8xf32>
    %32 = vector.multi_reduction <add>, %31, %cst_19 [1] : vector<8x8xf32> to vector<8xf32>
    %33 = vector.shape_cast %32 : vector<8xf32> to vector<8x1xf32>
    %34 = arith.truncf %31 : vector<8x8xf32> to vector<8x8xbf16>
    %cst_20 = arith.constant dense<0.000000e+00> : vector<8x8xf32>
    %35 = tpu.matmul %34, %24, %cst_20 {dimension_numbers = #tpu.dot_dimension_numbers<[1], [0], [0], [1], [0, 0, 1, 1], [], []>} : vector<8x8xbf16>, vector<8x8xbf16>, vector<8x8xf32> -> vector<8x8xf32>
    %36 = tpu.reciprocal %33 {approx = true} : vector<8x1xf32> -> vector<8x1xf32>
    %37 = vector.broadcast %36 : vector<8x1xf32> to vector<8x8xf32>
    %38 = arith.mulf %35, %37 : vector<8x8xf32>
    %39 = arith.truncf %38 : vector<8x8xf32> to vector<8x8xbf16>
    %40 = vector.extract_strided_slice %14 {offsets = [0, 0], sizes = [8, 32], strides = [1, 1]} : vector<32x32xbf16> to vector<8x32xbf16>
    %cst_21 = arith.constant dense<0.000000e+00> : vector<8x32xf32>
    %41 = tpu.matmul %39, %40, %cst_21 {dimension_numbers = #tpu.dot_dimension_numbers<[1], [0], [0], [1], [0, 0, 1, 1], [], []>} : vector<8x8xbf16>, vector<8x32xbf16>, vector<8x32xf32> -> vector<8x32xf32>
    %42 = arith.addf %16, %41 : vector<8x32xf32>
    %43 = vector.extract_strided_slice %11 {offsets = [0, 8], sizes = [8, 8], strides = [1, 1]} : vector<8x32xf32> to vector<8x8xf32>
    %cst_22 = arith.constant 0.353553385 : f32
    %44 = vector.broadcast %cst_22 : f32 to vector<8x8xf32>
    %45 = arith.mulf %43, %44 : vector<8x8xf32>
    %46 = arith.truncf %45 : vector<8x8xf32> to vector<8x8xbf16>
    %47 = vector.extract_strided_slice %12 {offsets = [0, 8], sizes = [8, 8], strides = [1, 1]} : vector<8x32xf32> to vector<8x8xf32>
    %48 = arith.truncf %47 : vector<8x8xf32> to vector<8x8xbf16>
    %49 = vector.extract_strided_slice %13 {offsets = [0, 8], sizes = [8, 8], strides = [1, 1]} : vector<8x32xf32> to vector<8x8xf32>
    %50 = arith.truncf %49 : vector<8x8xf32> to vector<8x8xbf16>
    %cst_23 = arith.constant dense<0.000000e+00> : vector<8x8xf32>
    %51 = tpu.matmul %46, %48, %cst_23 {dimension_numbers = #tpu.dot_dimension_numbers<[1], [1], [0], [0], [0, 0, 1, 0], [], []>} : vector<8x8xbf16>, vector<8x8xbf16>, vector<8x8xf32> -> vector<8x8xf32>
    %52 = arith.addf %51, %4 : vector<8x8xf32>
    %cst_24 = arith.constant dense<0xFF800000> : vector<8xf32>
    %53 = vector.multi_reduction <maximumf>, %52, %cst_24 [1] : vector<8x8xf32> to vector<8xf32>
    %54 = vector.shape_cast %53 : vector<8xf32> to vector<8x1xf32>
    %55 = vector.broadcast %54 : vector<8x1xf32> to vector<8x8xf32>
    %56 = arith.subf %52, %55 : vector<8x8xf32>
    %57 = math.exp %56 : vector<8x8xf32>
    %cst_25 = arith.constant dense<0.000000e+00> : vector<8xf32>
    %58 = vector.multi_reduction <add>, %57, %cst_25 [1] : vector<8x8xf32> to vector<8xf32>
    %59 = vector.shape_cast %58 : vector<8xf32> to vector<8x1xf32>
    %60 = arith.truncf %57 : vector<8x8xf32> to vector<8x8xbf16>
    %cst_26 = arith.constant dense<0.000000e+00> : vector<8x8xf32>
    %61 = tpu.matmul %60, %50, %cst_26 {dimension_numbers = #tpu.dot_dimension_numbers<[1], [0], [0], [1], [0, 0, 1, 1], [], []>} : vector<8x8xbf16>, vector<8x8xbf16>, vector<8x8xf32> -> vector<8x8xf32>
    %62 = tpu.reciprocal %59 {approx = true} : vector<8x1xf32> -> vector<8x1xf32>
    %63 = vector.broadcast %62 : vector<8x1xf32> to vector<8x8xf32>
    %64 = arith.mulf %61, %63 : vector<8x8xf32>
    %65 = arith.truncf %64 : vector<8x8xf32> to vector<8x8xbf16>
    %66 = vector.extract_strided_slice %14 {offsets = [8, 0], sizes = [8, 32], strides = [1, 1]} : vector<32x32xbf16> to vector<8x32xbf16>
    %cst_27 = arith.constant dense<0.000000e+00> : vector<8x32xf32>
    %67 = tpu.matmul %65, %66, %cst_27 {dimension_numbers = #tpu.dot_dimension_numbers<[1], [0], [0], [1], [0, 0, 1, 1], [], []>} : vector<8x8xbf16>, vector<8x32xbf16>, vector<8x32xf32> -> vector<8x32xf32>
    %68 = arith.addf %42, %67 : vector<8x32xf32>
    %69 = vector.extract_strided_slice %11 {offsets = [0, 16], sizes = [8, 8], strides = [1, 1]} : vector<8x32xf32> to vector<8x8xf32>
    %cst_28 = arith.constant 0.353553385 : f32
    %70 = vector.broadcast %cst_28 : f32 to vector<8x8xf32>
    %71 = arith.mulf %69, %70 : vector<8x8xf32>
    %72 = arith.truncf %71 : vector<8x8xf32> to vector<8x8xbf16>
    %73 = vector.extract_strided_slice %12 {offsets = [0, 16], sizes = [8, 8], strides = [1, 1]} : vector<8x32xf32> to vector<8x8xf32>
    %74 = arith.truncf %73 : vector<8x8xf32> to vector<8x8xbf16>
    %75 = vector.extract_strided_slice %13 {offsets = [0, 16], sizes = [8, 8], strides = [1, 1]} : vector<8x32xf32> to vector<8x8xf32>
    %76 = arith.truncf %75 : vector<8x8xf32> to vector<8x8xbf16>
    %cst_29 = arith.constant dense<0.000000e+00> : vector<8x8xf32>
    %77 = tpu.matmul %72, %74, %cst_29 {dimension_numbers = #tpu.dot_dimension_numbers<[1], [1], [0], [0], [0, 0, 1, 0], [], []>} : vector<8x8xbf16>, vector<8x8xbf16>, vector<8x8xf32> -> vector<8x8xf32>
    %78 = arith.addf %77, %4 : vector<8x8xf32>
    %cst_30 = arith.constant dense<0xFF800000> : vector<8xf32>
    %79 = vector.multi_reduction <maximumf>, %78, %cst_30 [1] : vector<8x8xf32> to vector<8xf32>
    %80 = vector.shape_cast %79 : vector<8xf32> to vector<8x1xf32>
    %81 = vector.broadcast %80 : vector<8x1xf32> to vector<8x8xf32>
    %82 = arith.subf %78, %81 : vector<8x8xf32>
    %83 = math.exp %82 : vector<8x8xf32>
    %cst_31 = arith.constant dense<0.000000e+00> : vector<8xf32>
    %84 = vector.multi_reduction <add>, %83, %cst_31 [1] : vector<8x8xf32> to vector<8xf32>
    %85 = vector.shape_cast %84 : vector<8xf32> to vector<8x1xf32>
    %86 = arith.truncf %83 : vector<8x8xf32> to vector<8x8xbf16>
    %cst_32 = arith.constant dense<0.000000e+00> : vector<8x8xf32>
    %87 = tpu.matmul %86, %76, %cst_32 {dimension_numbers = #tpu.dot_dimension_numbers<[1], [0], [0], [1], [0, 0, 1, 1], [], []>} : vector<8x8xbf16>, vector<8x8xbf16>, vector<8x8xf32> -> vector<8x8xf32>
    %88 = tpu.reciprocal %85 {approx = true} : vector<8x1xf32> -> vector<8x1xf32>
    %89 = vector.broadcast %88 : vector<8x1xf32> to vector<8x8xf32>
    %90 = arith.mulf %87, %89 : vector<8x8xf32>
    %91 = arith.truncf %90 : vector<8x8xf32> to vector<8x8xbf16>
    %92 = vector.extract_strided_slice %14 {offsets = [16, 0], sizes = [8, 32], strides = [1, 1]} : vector<32x32xbf16> to vector<8x32xbf16>
    %cst_33 = arith.constant dense<0.000000e+00> : vector<8x32xf32>
    %93 = tpu.matmul %91, %92, %cst_33 {dimension_numbers = #tpu.dot_dimension_numbers<[1], [0], [0], [1], [0, 0, 1, 1], [], []>} : vector<8x8xbf16>, vector<8x32xbf16>, vector<8x32xf32> -> vector<8x32xf32>
    %94 = arith.addf %68, %93 : vector<8x32xf32>
    %95 = vector.extract_strided_slice %11 {offsets = [0, 24], sizes = [8, 8], strides = [1, 1]} : vector<8x32xf32> to vector<8x8xf32>
    %cst_34 = arith.constant 0.353553385 : f32
    %96 = vector.broadcast %cst_34 : f32 to vector<8x8xf32>
    %97 = arith.mulf %95, %96 : vector<8x8xf32>
    %98 = arith.truncf %97 : vector<8x8xf32> to vector<8x8xbf16>
    %99 = vector.extract_strided_slice %12 {offsets = [0, 24], sizes = [8, 8], strides = [1, 1]} : vector<8x32xf32> to vector<8x8xf32>
    %100 = arith.truncf %99 : vector<8x8xf32> to vector<8x8xbf16>
    %101 = vector.extract_strided_slice %13 {offsets = [0, 24], sizes = [8, 8], strides = [1, 1]} : vector<8x32xf32> to vector<8x8xf32>
    %102 = arith.truncf %101 : vector<8x8xf32> to vector<8x8xbf16>
    %cst_35 = arith.constant dense<0.000000e+00> : vector<8x8xf32>
    %103 = tpu.matmul %98, %100, %cst_35 {dimension_numbers = #tpu.dot_dimension_numbers<[1], [1], [0], [0], [0, 0, 1, 0], [], []>} : vector<8x8xbf16>, vector<8x8xbf16>, vector<8x8xf32> -> vector<8x8xf32>
    %104 = arith.addf %103, %4 : vector<8x8xf32>
    %cst_36 = arith.constant dense<0xFF800000> : vector<8xf32>
    %105 = vector.multi_reduction <maximumf>, %104, %cst_36 [1] : vector<8x8xf32> to vector<8xf32>
    %106 = vector.shape_cast %105 : vector<8xf32> to vector<8x1xf32>
    %107 = vector.broadcast %106 : vector<8x1xf32> to vector<8x8xf32>
    %108 = arith.subf %104, %107 : vector<8x8xf32>
    %109 = math.exp %108 : vector<8x8xf32>
    %cst_37 = arith.constant dense<0.000000e+00> : vector<8xf32>
    %110 = vector.multi_reduction <add>, %109, %cst_37 [1] : vector<8x8xf32> to vector<8xf32>
    %111 = vector.shape_cast %110 : vector<8xf32> to vector<8x1xf32>
    %112 = arith.truncf %109 : vector<8x8xf32> to vector<8x8xbf16>
    %cst_38 = arith.constant dense<0.000000e+00> : vector<8x8xf32>
    %113 = tpu.matmul %112, %102, %cst_38 {dimension_numbers = #tpu.dot_dimension_numbers<[1], [0], [0], [1], [0, 0, 1, 1], [], []>} : vector<8x8xbf16>, vector<8x8xbf16>, vector<8x8xf32> -> vector<8x8xf32>
    %114 = tpu.reciprocal %111 {approx = true} : vector<8x1xf32> -> vector<8x1xf32>
    %115 = vector.broadcast %114 : vector<8x1xf32> to vector<8x8xf32>
    %116 = arith.mulf %113, %115 : vector<8x8xf32>
    %117 = arith.truncf %116 : vector<8x8xf32> to vector<8x8xbf16>
    %118 = vector.extract_strided_slice %14 {offsets = [24, 0], sizes = [8, 32], strides = [1, 1]} : vector<32x32xbf16> to vector<8x32xbf16>
    %cst_39 = arith.constant dense<0.000000e+00> : vector<8x32xf32>
    %119 = tpu.matmul %117, %118, %cst_39 {dimension_numbers = #tpu.dot_dimension_numbers<[1], [0], [0], [1], [0, 0, 1, 1], [], []>} : vector<8x8xbf16>, vector<8x32xbf16>, vector<8x32xf32> -> vector<8x32xf32>
    %120 = arith.addf %94, %119 : vector<8x32xf32>
    %121 = vector.broadcast %15 : vector<1x32xf32> to vector<8x32xf32>
    %122 = arith.addf %120, %121 : vector<8x32xf32>
    %123 = arith.addf %1, %122 : vector<8x32xf32>
    %c0_40 = arith.constant 0 : index
    %c0_41 = arith.constant 0 : index
    %124 = vector.load %arg8[%c0_40, %c0_41] : memref<1x32xf32, #tpu.memory_space<vmem>>, vector<1x32xf32>
    %c0_42 = arith.constant 0 : index
    %c0_43 = arith.constant 0 : index
    %125 = vector.load %arg9[%c0_42, %c0_43] : memref<1x32xf32, #tpu.memory_space<vmem>>, vector<1x32xf32>
    %cst_44 = arith.constant dense<0.000000e+00> : vector<8xf32>
    %126 = vector.multi_reduction <add>, %123, %cst_44 [1] : vector<8x32xf32> to vector<8xf32>
    %127 = vector.shape_cast %126 : vector<8xf32> to vector<8x1xf32>
    %cst_45 = arith.constant 3.200000e+01 : f32
    %128 = vector.broadcast %cst_45 : f32 to vector<8x1xf32>
    %129 = arith.divf %127, %128 : vector<8x1xf32>
    %130 = vector.broadcast %129 : vector<8x1xf32> to vector<8x32xf32>
    %131 = arith.subf %123, %130 : vector<8x32xf32>
    %132 = arith.mulf %131, %131 : vector<8x32xf32>
    %cst_46 = arith.constant dense<0.000000e+00> : vector<8xf32>
    %133 = vector.multi_reduction <add>, %132, %cst_46 [1] : vector<8x32xf32> to vector<8xf32>
    %134 = vector.shape_cast %133 : vector<8xf32> to vector<8x1xf32>
    %cst_47 = arith.constant 3.200000e+01 : f32
    %135 = vector.broadcast %cst_47 : f32 to vector<8x1xf32>
    %136 = arith.divf %134, %135 : vector<8x1xf32>
    %137 = vector.broadcast %129 : vector<8x1xf32> to vector<8x32xf32>
    %138 = arith.subf %123, %137 : vector<8x32xf32>
    %cst_48 = arith.constant 9.99999974E-6 : f32
    %139 = vector.broadcast %cst_48 : f32 to vector<8x1xf32>
    %140 = arith.addf %136, %139 : vector<8x1xf32>
    %141 = math.rsqrt %140 : vector<8x1xf32>
    %142 = vector.broadcast %141 : vector<8x1xf32> to vector<8x32xf32>
    %143 = arith.mulf %138, %142 : vector<8x32xf32>
    %144 = vector.broadcast %124 : vector<1x32xf32> to vector<8x32xf32>
    %145 = arith.mulf %143, %144 : vector<8x32xf32>
    %146 = vector.broadcast %125 : vector<1x32xf32> to vector<8x32xf32>
    %147 = arith.addf %145, %146 : vector<8x32xf32>
    %c0_49 = arith.constant 0 : index
    %c0_50 = arith.constant 0 : index
    %148 = vector.load %arg10[%c0_49, %c0_50] : memref<32x32xbf16, #tpu.memory_space<vmem>>, vector<32x32xbf16>
    %c0_51 = arith.constant 0 : index
    %c0_52 = arith.constant 0 : index
    %149 = vector.load %arg11[%c0_51, %c0_52] : memref<1x32xf32, #tpu.memory_space<vmem>>, vector<1x32xf32>
    %150 = arith.truncf %147 : vector<8x32xf32> to vector<8x32xbf16>
    %cst_53 = arith.constant dense<0.000000e+00> : vector<8x32xf32>
    %151 = tpu.matmul %150, %148, %cst_53 {dimension_numbers = #tpu.dot_dimension_numbers<[1], [0], [0], [1], [0, 0, 1, 1], [], []>} : vector<8x32xbf16>, vector<32x32xbf16>, vector<8x32xf32> -> vector<8x32xf32>
    %152 = vector.broadcast %149 : vector<1x32xf32> to vector<8x32xf32>
    %153 = arith.addf %151, %152 : vector<8x32xf32>
    %c0_54 = arith.constant 0 : index
    %c0_55 = arith.constant 0 : index
    %154 = vector.load %arg12[%c0_54, %c0_55] : memref<32x64xbf16, #tpu.memory_space<vmem>>, vector<32x64xbf16>
    %c0_56 = arith.constant 0 : index
    %c0_57 = arith.constant 0 : index
    %155 = vector.load %arg13[%c0_56, %c0_57] : memref<1x64xf32, #tpu.memory_space<vmem>>, vector<1x64xf32>
    %156 = arith.truncf %3 : vector<8x32xf32> to vector<8x32xbf16>
    %cst_58 = arith.constant dense<0.000000e+00> : vector<8x64xf32>
    %157 = tpu.matmul %156, %154, %cst_58 {dimension_numbers = #tpu.dot_dimension_numbers<[1], [0], [0], [1], [0, 0, 1, 1], [], []>} : vector<8x32xbf16>, vector<32x64xbf16>, vector<8x64xf32> -> vector<8x64xf32>
    %158 = vector.broadcast %155 : vector<1x64xf32> to vector<8x64xf32>
    %159 = arith.addf %157, %158 : vector<8x64xf32>
    %160 = vector.extract_strided_slice %159 {offsets = [0, 0], sizes = [8, 32], strides = [1, 1]} : vector<8x64xf32> to vector<8x32xf32>
    %161 = vector.extract_strided_slice %159 {offsets = [0, 32], sizes = [8, 32], strides = [1, 1]} : vector<8x64xf32> to vector<8x32xf32>
    %c0_59 = arith.constant 0 : index
    %c0_60 = arith.constant 0 : index
    %162 = vector.load %arg14[%c0_59, %c0_60] : memref<32x32xbf16, #tpu.memory_space<vmem>>, vector<32x32xbf16>
    %c0_61 = arith.constant 0 : index
    %c0_62 = arith.constant 0 : index
    %163 = vector.load %arg15[%c0_61, %c0_62] : memref<1x32xf32, #tpu.memory_space<vmem>>, vector<1x32xf32>
    %cst_63 = arith.constant 0.000000e+00 : f32
    %164 = vector.broadcast %cst_63 : f32 to vector<8x32xf32>
    %165 = vector.extract_strided_slice %153 {offsets = [0, 0], sizes = [8, 8], strides = [1, 1]} : vector<8x32xf32> to vector<8x8xf32>
    %cst_64 = arith.constant 0.353553385 : f32
    %166 = vector.broadcast %cst_64 : f32 to vector<8x8xf32>
    %167 = arith.mulf %165, %166 : vector<8x8xf32>
    %168 = arith.truncf %167 : vector<8x8xf32> to vector<8x8xbf16>
    %169 = vector.extract_strided_slice %160 {offsets = [0, 0], sizes = [8, 8], strides = [1, 1]} : vector<8x32xf32> to vector<8x8xf32>
    %170 = arith.truncf %169 : vector<8x8xf32> to vector<8x8xbf16>
    %171 = vector.extract_strided_slice %161 {offsets = [0, 0], sizes = [8, 8], strides = [1, 1]} : vector<8x32xf32> to vector<8x8xf32>
    %172 = arith.truncf %171 : vector<8x8xf32> to vector<8x8xbf16>
    %cst_65 = arith.constant dense<0.000000e+00> : vector<8x8xf32>
    %173 = tpu.matmul %168, %170, %cst_65 {dimension_numbers = #tpu.dot_dimension_numbers<[1], [1], [0], [0], [0, 0, 1, 0], [], []>} : vector<8x8xbf16>, vector<8x8xbf16>, vector<8x8xf32> -> vector<8x8xf32>
    %cst_66 = arith.constant dense<0xFF800000> : vector<8xf32>
    %174 = vector.multi_reduction <maximumf>, %173, %cst_66 [1] : vector<8x8xf32> to vector<8xf32>
    %175 = vector.shape_cast %174 : vector<8xf32> to vector<8x1xf32>
    %176 = vector.broadcast %175 : vector<8x1xf32> to vector<8x8xf32>
    %177 = arith.subf %173, %176 : vector<8x8xf32>
    %178 = math.exp %177 : vector<8x8xf32>
    %cst_67 = arith.constant dense<0.000000e+00> : vector<8xf32>
    %179 = vector.multi_reduction <add>, %178, %cst_67 [1] : vector<8x8xf32> to vector<8xf32>
    %180 = vector.shape_cast %179 : vector<8xf32> to vector<8x1xf32>
    %181 = arith.truncf %178 : vector<8x8xf32> to vector<8x8xbf16>
    %cst_68 = arith.constant dense<0.000000e+00> : vector<8x8xf32>
    %182 = tpu.matmul %181, %172, %cst_68 {dimension_numbers = #tpu.dot_dimension_numbers<[1], [0], [0], [1], [0, 0, 1, 1], [], []>} : vector<8x8xbf16>, vector<8x8xbf16>, vector<8x8xf32> -> vector<8x8xf32>
    %183 = tpu.reciprocal %180 {approx = true} : vector<8x1xf32> -> vector<8x1xf32>
    %184 = vector.broadcast %183 : vector<8x1xf32> to vector<8x8xf32>
    %185 = arith.mulf %182, %184 : vector<8x8xf32>
    %186 = arith.truncf %185 : vector<8x8xf32> to vector<8x8xbf16>
    %187 = vector.extract_strided_slice %162 {offsets = [0, 0], sizes = [8, 32], strides = [1, 1]} : vector<32x32xbf16> to vector<8x32xbf16>
    %cst_69 = arith.constant dense<0.000000e+00> : vector<8x32xf32>
    %188 = tpu.matmul %186, %187, %cst_69 {dimension_numbers = #tpu.dot_dimension_numbers<[1], [0], [0], [1], [0, 0, 1, 1], [], []>} : vector<8x8xbf16>, vector<8x32xbf16>, vector<8x32xf32> -> vector<8x32xf32>
    %189 = arith.addf %164, %188 : vector<8x32xf32>
    %190 = vector.extract_strided_slice %153 {offsets = [0, 8], sizes = [8, 8], strides = [1, 1]} : vector<8x32xf32> to vector<8x8xf32>
    %cst_70 = arith.constant 0.353553385 : f32
    %191 = vector.broadcast %cst_70 : f32 to vector<8x8xf32>
    %192 = arith.mulf %190, %191 : vector<8x8xf32>
    %193 = arith.truncf %192 : vector<8x8xf32> to vector<8x8xbf16>
    %194 = vector.extract_strided_slice %160 {offsets = [0, 8], sizes = [8, 8], strides = [1, 1]} : vector<8x32xf32> to vector<8x8xf32>
    %195 = arith.truncf %194 : vector<8x8xf32> to vector<8x8xbf16>
    %196 = vector.extract_strided_slice %161 {offsets = [0, 8], sizes = [8, 8], strides = [1, 1]} : vector<8x32xf32> to vector<8x8xf32>
    %197 = arith.truncf %196 : vector<8x8xf32> to vector<8x8xbf16>
    %cst_71 = arith.constant dense<0.000000e+00> : vector<8x8xf32>
    %198 = tpu.matmul %193, %195, %cst_71 {dimension_numbers = #tpu.dot_dimension_numbers<[1], [1], [0], [0], [0, 0, 1, 0], [], []>} : vector<8x8xbf16>, vector<8x8xbf16>, vector<8x8xf32> -> vector<8x8xf32>
    %cst_72 = arith.constant dense<0xFF800000> : vector<8xf32>
    %199 = vector.multi_reduction <maximumf>, %198, %cst_72 [1] : vector<8x8xf32> to vector<8xf32>
    %200 = vector.shape_cast %199 : vector<8xf32> to vector<8x1xf32>
    %201 = vector.broadcast %200 : vector<8x1xf32> to vector<8x8xf32>
    %202 = arith.subf %198, %201 : vector<8x8xf32>
    %203 = math.exp %202 : vector<8x8xf32>
    %cst_73 = arith.constant dense<0.000000e+00> : vector<8xf32>
    %204 = vector.multi_reduction <add>, %203, %cst_73 [1] : vector<8x8xf32> to vector<8xf32>
    %205 = vector.shape_cast %204 : vector<8xf32> to vector<8x1xf32>
    %206 = arith.truncf %203 : vector<8x8xf32> to vector<8x8xbf16>
    %cst_74 = arith.constant dense<0.000000e+00> : vector<8x8xf32>
    %207 = tpu.matmul %206, %197, %cst_74 {dimension_numbers = #tpu.dot_dimension_numbers<[1], [0], [0], [1], [0, 0, 1, 1], [], []>} : vector<8x8xbf16>, vector<8x8xbf16>, vector<8x8xf32> -> vector<8x8xf32>
    %208 = tpu.reciprocal %205 {approx = true} : vector<8x1xf32> -> vector<8x1xf32>
    %209 = vector.broadcast %208 : vector<8x1xf32> to vector<8x8xf32>
    %210 = arith.mulf %207, %209 : vector<8x8xf32>
    %211 = arith.truncf %210 : vector<8x8xf32> to vector<8x8xbf16>
    %212 = vector.extract_strided_slice %162 {offsets = [8, 0], sizes = [8, 32], strides = [1, 1]} : vector<32x32xbf16> to vector<8x32xbf16>
    %cst_75 = arith.constant dense<0.000000e+00> : vector<8x32xf32>
    %213 = tpu.matmul %211, %212, %cst_75 {dimension_numbers = #tpu.dot_dimension_numbers<[1], [0], [0], [1], [0, 0, 1, 1], [], []>} : vector<8x8xbf16>, vector<8x32xbf16>, vector<8x32xf32> -> vector<8x32xf32>
    %214 = arith.addf %189, %213 : vector<8x32xf32>
    %215 = vector.extract_strided_slice %153 {offsets = [0, 16], sizes = [8, 8], strides = [1, 1]} : vector<8x32xf32> to vector<8x8xf32>
    %cst_76 = arith.constant 0.353553385 : f32
    %216 = vector.broadcast %cst_76 : f32 to vector<8x8xf32>
    %217 = arith.mulf %215, %216 : vector<8x8xf32>
    %218 = arith.truncf %217 : vector<8x8xf32> to vector<8x8xbf16>
    %219 = vector.extract_strided_slice %160 {offsets = [0, 16], sizes = [8, 8], strides = [1, 1]} : vector<8x32xf32> to vector<8x8xf32>
    %220 = arith.truncf %219 : vector<8x8xf32> to vector<8x8xbf16>
    %221 = vector.extract_strided_slice %161 {offsets = [0, 16], sizes = [8, 8], strides = [1, 1]} : vector<8x32xf32> to vector<8x8xf32>
    %222 = arith.truncf %221 : vector<8x8xf32> to vector<8x8xbf16>
    %cst_77 = arith.constant dense<0.000000e+00> : vector<8x8xf32>
    %223 = tpu.matmul %218, %220, %cst_77 {dimension_numbers = #tpu.dot_dimension_numbers<[1], [1], [0], [0], [0, 0, 1, 0], [], []>} : vector<8x8xbf16>, vector<8x8xbf16>, vector<8x8xf32> -> vector<8x8xf32>
    %cst_78 = arith.constant dense<0xFF800000> : vector<8xf32>
    %224 = vector.multi_reduction <maximumf>, %223, %cst_78 [1] : vector<8x8xf32> to vector<8xf32>
    %225 = vector.shape_cast %224 : vector<8xf32> to vector<8x1xf32>
    %226 = vector.broadcast %225 : vector<8x1xf32> to vector<8x8xf32>
    %227 = arith.subf %223, %226 : vector<8x8xf32>
    %228 = math.exp %227 : vector<8x8xf32>
    %cst_79 = arith.constant dense<0.000000e+00> : vector<8xf32>
    %229 = vector.multi_reduction <add>, %228, %cst_79 [1] : vector<8x8xf32> to vector<8xf32>
    %230 = vector.shape_cast %229 : vector<8xf32> to vector<8x1xf32>
    %231 = arith.truncf %228 : vector<8x8xf32> to vector<8x8xbf16>
    %cst_80 = arith.constant dense<0.000000e+00> : vector<8x8xf32>
    %232 = tpu.matmul %231, %222, %cst_80 {dimension_numbers = #tpu.dot_dimension_numbers<[1], [0], [0], [1], [0, 0, 1, 1], [], []>} : vector<8x8xbf16>, vector<8x8xbf16>, vector<8x8xf32> -> vector<8x8xf32>
    %233 = tpu.reciprocal %230 {approx = true} : vector<8x1xf32> -> vector<8x1xf32>
    %234 = vector.broadcast %233 : vector<8x1xf32> to vector<8x8xf32>
    %235 = arith.mulf %232, %234 : vector<8x8xf32>
    %236 = arith.truncf %235 : vector<8x8xf32> to vector<8x8xbf16>
    %237 = vector.extract_strided_slice %162 {offsets = [16, 0], sizes = [8, 32], strides = [1, 1]} : vector<32x32xbf16> to vector<8x32xbf16>
    %cst_81 = arith.constant dense<0.000000e+00> : vector<8x32xf32>
    %238 = tpu.matmul %236, %237, %cst_81 {dimension_numbers = #tpu.dot_dimension_numbers<[1], [0], [0], [1], [0, 0, 1, 1], [], []>} : vector<8x8xbf16>, vector<8x32xbf16>, vector<8x32xf32> -> vector<8x32xf32>
    %239 = arith.addf %214, %238 : vector<8x32xf32>
    %240 = vector.extract_strided_slice %153 {offsets = [0, 24], sizes = [8, 8], strides = [1, 1]} : vector<8x32xf32> to vector<8x8xf32>
    %cst_82 = arith.constant 0.353553385 : f32
    %241 = vector.broadcast %cst_82 : f32 to vector<8x8xf32>
    %242 = arith.mulf %240, %241 : vector<8x8xf32>
    %243 = arith.truncf %242 : vector<8x8xf32> to vector<8x8xbf16>
    %244 = vector.extract_strided_slice %160 {offsets = [0, 24], sizes = [8, 8], strides = [1, 1]} : vector<8x32xf32> to vector<8x8xf32>
    %245 = arith.truncf %244 : vector<8x8xf32> to vector<8x8xbf16>
    %246 = vector.extract_strided_slice %161 {offsets = [0, 24], sizes = [8, 8], strides = [1, 1]} : vector<8x32xf32> to vector<8x8xf32>
    %247 = arith.truncf %246 : vector<8x8xf32> to vector<8x8xbf16>
    %cst_83 = arith.constant dense<0.000000e+00> : vector<8x8xf32>
    %248 = tpu.matmul %243, %245, %cst_83 {dimension_numbers = #tpu.dot_dimension_numbers<[1], [1], [0], [0], [0, 0, 1, 0], [], []>} : vector<8x8xbf16>, vector<8x8xbf16>, vector<8x8xf32> -> vector<8x8xf32>
    %cst_84 = arith.constant dense<0xFF800000> : vector<8xf32>
    %249 = vector.multi_reduction <maximumf>, %248, %cst_84 [1] : vector<8x8xf32> to vector<8xf32>
    %250 = vector.shape_cast %249 : vector<8xf32> to vector<8x1xf32>
    %251 = vector.broadcast %250 : vector<8x1xf32> to vector<8x8xf32>
    %252 = arith.subf %248, %251 : vector<8x8xf32>
    %253 = math.exp %252 : vector<8x8xf32>
    %cst_85 = arith.constant dense<0.000000e+00> : vector<8xf32>
    %254 = vector.multi_reduction <add>, %253, %cst_85 [1] : vector<8x8xf32> to vector<8xf32>
    %255 = vector.shape_cast %254 : vector<8xf32> to vector<8x1xf32>
    %256 = arith.truncf %253 : vector<8x8xf32> to vector<8x8xbf16>
    %cst_86 = arith.constant dense<0.000000e+00> : vector<8x8xf32>
    %257 = tpu.matmul %256, %247, %cst_86 {dimension_numbers = #tpu.dot_dimension_numbers<[1], [0], [0], [1], [0, 0, 1, 1], [], []>} : vector<8x8xbf16>, vector<8x8xbf16>, vector<8x8xf32> -> vector<8x8xf32>
    %258 = tpu.reciprocal %255 {approx = true} : vector<8x1xf32> -> vector<8x1xf32>
    %259 = vector.broadcast %258 : vector<8x1xf32> to vector<8x8xf32>
    %260 = arith.mulf %257, %259 : vector<8x8xf32>
    %261 = arith.truncf %260 : vector<8x8xf32> to vector<8x8xbf16>
    %262 = vector.extract_strided_slice %162 {offsets = [24, 0], sizes = [8, 32], strides = [1, 1]} : vector<32x32xbf16> to vector<8x32xbf16>
    %cst_87 = arith.constant dense<0.000000e+00> : vector<8x32xf32>
    %263 = tpu.matmul %261, %262, %cst_87 {dimension_numbers = #tpu.dot_dimension_numbers<[1], [0], [0], [1], [0, 0, 1, 1], [], []>} : vector<8x8xbf16>, vector<8x32xbf16>, vector<8x32xf32> -> vector<8x32xf32>
    %264 = arith.addf %239, %263 : vector<8x32xf32>
    %265 = vector.broadcast %163 : vector<1x32xf32> to vector<8x32xf32>
    %266 = arith.addf %264, %265 : vector<8x32xf32>
    %267 = arith.addf %147, %266 : vector<8x32xf32>
    %c0_88 = arith.constant 0 : index
    %c0_89 = arith.constant 0 : index
    %268 = vector.load %arg16[%c0_88, %c0_89] : memref<1x32xf32, #tpu.memory_space<vmem>>, vector<1x32xf32>
    %c0_90 = arith.constant 0 : index
    %c0_91 = arith.constant 0 : index
    %269 = vector.load %arg17[%c0_90, %c0_91] : memref<1x32xf32, #tpu.memory_space<vmem>>, vector<1x32xf32>
    %cst_92 = arith.constant dense<0.000000e+00> : vector<8xf32>
    %270 = vector.multi_reduction <add>, %267, %cst_92 [1] : vector<8x32xf32> to vector<8xf32>
    %271 = vector.shape_cast %270 : vector<8xf32> to vector<8x1xf32>
    %cst_93 = arith.constant 3.200000e+01 : f32
    %272 = vector.broadcast %cst_93 : f32 to vector<8x1xf32>
    %273 = arith.divf %271, %272 : vector<8x1xf32>
    %274 = vector.broadcast %273 : vector<8x1xf32> to vector<8x32xf32>
    %275 = arith.subf %267, %274 : vector<8x32xf32>
    %276 = arith.mulf %275, %275 : vector<8x32xf32>
    %cst_94 = arith.constant dense<0.000000e+00> : vector<8xf32>
    %277 = vector.multi_reduction <add>, %276, %cst_94 [1] : vector<8x32xf32> to vector<8xf32>
    %278 = vector.shape_cast %277 : vector<8xf32> to vector<8x1xf32>
    %cst_95 = arith.constant 3.200000e+01 : f32
    %279 = vector.broadcast %cst_95 : f32 to vector<8x1xf32>
    %280 = arith.divf %278, %279 : vector<8x1xf32>
    %281 = vector.broadcast %273 : vector<8x1xf32> to vector<8x32xf32>
    %282 = arith.subf %267, %281 : vector<8x32xf32>
    %cst_96 = arith.constant 9.99999974E-6 : f32
    %283 = vector.broadcast %cst_96 : f32 to vector<8x1xf32>
    %284 = arith.addf %280, %283 : vector<8x1xf32>
    %285 = math.rsqrt %284 : vector<8x1xf32>
    %286 = vector.broadcast %285 : vector<8x1xf32> to vector<8x32xf32>
    %287 = arith.mulf %282, %286 : vector<8x32xf32>
    %288 = vector.broadcast %268 : vector<1x32xf32> to vector<8x32xf32>
    %289 = arith.mulf %287, %288 : vector<8x32xf32>
    %290 = vector.broadcast %269 : vector<1x32xf32> to vector<8x32xf32>
    %291 = arith.addf %289, %290 : vector<8x32xf32>
    %c0_97 = arith.constant 0 : index
    %c0_98 = arith.constant 0 : index
    %292 = vector.load %arg18[%c0_97, %c0_98] : memref<32x2048xbf16, #tpu.memory_space<vmem>>, vector<32x2048xbf16>
    %c0_99 = arith.constant 0 : index
    %c0_100 = arith.constant 0 : index
    %293 = vector.load %arg19[%c0_99, %c0_100] : memref<1x2048xf32, #tpu.memory_space<vmem>>, vector<1x2048xf32>
    %294 = arith.truncf %291 : vector<8x32xf32> to vector<8x32xbf16>
    %cst_101 = arith.constant dense<0.000000e+00> : vector<8x2048xf32>
    %295 = tpu.matmul %294, %292, %cst_101 {dimension_numbers = #tpu.dot_dimension_numbers<[1], [0], [0], [1], [0, 0, 1, 1], [], []>} : vector<8x32xbf16>, vector<32x2048xbf16>, vector<8x2048xf32> -> vector<8x2048xf32>
    %296 = vector.broadcast %293 : vector<1x2048xf32> to vector<8x2048xf32>
    %297 = arith.addf %295, %296 : vector<8x2048xf32>
    %cst_102 = arith.constant 0.000000e+00 : f32
    %298 = vector.broadcast %cst_102 : f32 to vector<8x2048xf32>
    %299 = arith.maximumf %297, %298 : vector<8x2048xf32>
    %c0_103 = arith.constant 0 : index
    %c0_104 = arith.constant 0 : index
    %300 = vector.load %arg20[%c0_103, %c0_104] : memref<2048x32xbf16, #tpu.memory_space<vmem>>, vector<2048x32xbf16>
    %c0_105 = arith.constant 0 : index
    %c0_106 = arith.constant 0 : index
    %301 = vector.load %arg21[%c0_105, %c0_106] : memref<1x32xf32, #tpu.memory_space<vmem>>, vector<1x32xf32>
    %302 = arith.truncf %299 : vector<8x2048xf32> to vector<8x2048xbf16>
    %cst_107 = arith.constant dense<0.000000e+00> : vector<8x32xf32>
    %303 = tpu.matmul %302, %300, %cst_107 {dimension_numbers = #tpu.dot_dimension_numbers<[1], [0], [0], [1], [0, 0, 1, 1], [], []>} : vector<8x2048xbf16>, vector<2048x32xbf16>, vector<8x32xf32> -> vector<8x32xf32>
    %304 = vector.broadcast %301 : vector<1x32xf32> to vector<8x32xf32>
    %305 = arith.addf %303, %304 : vector<8x32xf32>
    %306 = arith.addf %291, %305 : vector<8x32xf32>
    %c0_108 = arith.constant 0 : index
    %c0_109 = arith.constant 0 : index
    %307 = vector.load %arg22[%c0_108, %c0_109] : memref<1x32xf32, #tpu.memory_space<vmem>>, vector<1x32xf32>
    %c0_110 = arith.constant 0 : index
    %c0_111 = arith.constant 0 : index
    %308 = vector.load %arg23[%c0_110, %c0_111] : memref<1x32xf32, #tpu.memory_space<vmem>>, vector<1x32xf32>
    %cst_112 = arith.constant dense<0.000000e+00> : vector<8xf32>
    %309 = vector.multi_reduction <add>, %306, %cst_112 [1] : vector<8x32xf32> to vector<8xf32>
    %310 = vector.shape_cast %309 : vector<8xf32> to vector<8x1xf32>
    %cst_113 = arith.constant 3.200000e+01 : f32
    %311 = vector.broadcast %cst_113 : f32 to vector<8x1xf32>
    %312 = arith.divf %310, %311 : vector<8x1xf32>
    %313 = vector.broadcast %312 : vector<8x1xf32> to vector<8x32xf32>
    %314 = arith.subf %306, %313 : vector<8x32xf32>
    %315 = arith.mulf %314, %314 : vector<8x32xf32>
    %cst_114 = arith.constant dense<0.000000e+00> : vector<8xf32>
    %316 = vector.multi_reduction <add>, %315, %cst_114 [1] : vector<8x32xf32> to vector<8xf32>
    %317 = vector.shape_cast %316 : vector<8xf32> to vector<8x1xf32>
    %cst_115 = arith.constant 3.200000e+01 : f32
    %318 = vector.broadcast %cst_115 : f32 to vector<8x1xf32>
    %319 = arith.divf %317, %318 : vector<8x1xf32>
    %320 = vector.broadcast %312 : vector<8x1xf32> to vector<8x32xf32>
    %321 = arith.subf %306, %320 : vector<8x32xf32>
    %cst_116 = arith.constant 9.99999974E-6 : f32
    %322 = vector.broadcast %cst_116 : f32 to vector<8x1xf32>
    %323 = arith.addf %319, %322 : vector<8x1xf32>
    %324 = math.rsqrt %323 : vector<8x1xf32>
    %325 = vector.broadcast %324 : vector<8x1xf32> to vector<8x32xf32>
    %326 = arith.mulf %321, %325 : vector<8x32xf32>
    %327 = vector.broadcast %307 : vector<1x32xf32> to vector<8x32xf32>
    %328 = arith.mulf %326, %327 : vector<8x32xf32>
    %329 = vector.broadcast %308 : vector<1x32xf32> to vector<8x32xf32>
    %330 = arith.addf %328, %329 : vector<8x32xf32>
    %c0_117 = arith.constant 0 : index
    %c0_118 = arith.constant 0 : index
    %c0_119 = arith.constant 0 : index
    %331 = vector.load %arg24[%c0_117, %c0_118, %c0_119] : memref<1x8x32xf32, #tpu.memory_space<vmem>>, vector<1x8x32xf32>
    %332 = vector.shape_cast %331 : vector<1x8x32xf32> to vector<8x32xf32>
    %333 = vector.shape_cast %330 : vector<8x32xf32> to vector<1x8x32xf32>
    tpu.vector_store %arg24[%c0_117, %c0_118, %c0_119], %333 {strides = array<i32>} : memref<1x8x32xf32, #tpu.memory_space<vmem>>, vector<1x8x32xf32>,
    return
  }
  func.func @transform_0(%arg0: i32) -> (i32, i32, i32) {
    %c0_i32 = arith.constant 0 : i32
    %c0_i32_0 = arith.constant 0 : i32
    %c0_i32_1 = arith.constant 0 : i32
    return %arg0, %c0_i32, %c0_i32_0 : i32, i32, i32
  }
  func.func @transform_1(%arg0: i32) -> (i32, i32, i32) {
    %c0_i32 = arith.constant 0 : i32
    %c0_i32_0 = arith.constant 0 : i32
    %c0_i32_1 = arith.constant 0 : i32
    return %arg0, %c0_i32, %c0_i32_0 : i32, i32, i32
  }
  func.func @transform_2(%arg0: i32) -> (i32, i32) {
    %c0_i32 = arith.constant 0 : i32
    %c0_i32_0 = arith.constant 0 : i32
    %c0_i32_1 = arith.constant 0 : i32
    return %c0_i32, %c0_i32_0 : i32, i32
  }
  func.func @transform_3(%arg0: i32) -> (i32, i32) {
    %c0_i32 = arith.constant 0 : i32
    %c0_i32_0 = arith.constant 0 : i32
    %c0_i32_1 = arith.constant 0 : i32
    return %c0_i32, %c0_i32_0 : i32, i32
  }
  func.func @transform_4(%arg0: i32) -> (i32, i32) {
    %c0_i32 = arith.constant 0 : i32
    %c0_i32_0 = arith.constant 0 : i32
    %c0_i32_1 = arith.constant 0 : i32
    return %c0_i32, %c0_i32_0 : i32, i32
  }
  func.func @transform_5(%arg0: i32) -> (i32, i32) {
    %c0_i32 = arith.constant 0 : i32
    %c0_i32_0 = arith.constant 0 : i32
    %c0_i32_1 = arith.constant 0 : i32
    return %c0_i32, %c0_i32_0 : i32, i32
  }
  func.func @transform_6(%arg0: i32) -> (i32, i32) {
    %c0_i32 = arith.constant 0 : i32
    %c0_i32_0 = arith.constant 0 : i32
    %c0_i32_1 = arith.constant 0 : i32
    return %c0_i32, %c0_i32_0 : i32, i32
  }
  func.func @transform_7(%arg0: i32) -> (i32, i32) {
    %c0_i32 = arith.constant 0 : i32
    %c0_i32_0 = arith.constant 0 : i32
    %c0_i32_1 = arith.constant 0 : i32
    return %c0_i32, %c0_i32_0 : i32, i32
  }
  func.func @transform_8(%arg0: i32) -> (i32, i32) {
    %c0_i32 = arith.constant 0 : i32
    %c0_i32_0 = arith.constant 0 : i32
    %c0_i32_1 = arith.constant 0 : i32
    return %c0_i32, %c0_i32_0 : i32, i32
  }
  func.func @transform_9(%arg0: i32) -> (i32, i32) {
    %c0_i32 = arith.constant 0 : i32
    %c0_i32_0 = arith.constant 0 : i32
    %c0_i32_1 = arith.constant 0 : i32
    return %c0_i32, %c0_i32_0 : i32, i32
  }
  func.func @transform_10(%arg0: i32) -> (i32, i32) {
    %c0_i32 = arith.constant 0 : i32
    %c0_i32_0 = arith.constant 0 : i32
    %c0_i32_1 = arith.constant 0 : i32
    return %c0_i32, %c0_i32_0 : i32, i32
  }
  func.func @transform_11(%arg0: i32) -> (i32, i32) {
    %c0_i32 = arith.constant 0 : i32
    %c0_i32_0 = arith.constant 0 : i32
    %c0_i32_1 = arith.constant 0 : i32
    return %c0_i32, %c0_i32_0 : i32, i32
  }
  func.func @transform_12(%arg0: i32) -> (i32, i32) {
    %c0_i32 = arith.constant 0 : i32
    %c0_i32_0 = arith.constant 0 : i32
    %c0_i32_1 = arith.constant 0 : i32
    return %c0_i32, %c0_i32_0 : i32, i32
  }
  func.func @transform_13(%arg0: i32) -> (i32, i32) {
    %c0_i32 = arith.constant 0 : i32
    %c0_i32_0 = arith.constant 0 : i32
    %c0_i32_1 = arith.constant 0 : i32
    return %c0_i32, %c0_i32_0 : i32, i32
  }
  func.func @transform_14(%arg0: i32) -> (i32, i32) {
    %c0_i32 = arith.constant 0 : i32
    %c0_i32_0 = arith.constant 0 : i32
    %c0_i32_1 = arith.constant 0 : i32
    return %c0_i32, %c0_i32_0 : i32, i32
  }
  func.func @transform_15(%arg0: i32) -> (i32, i32) {
    %c0_i32 = arith.constant 0 : i32
    %c0_i32_0 = arith.constant 0 : i32
    %c0_i32_1 = arith.constant 0 : i32
    return %c0_i32, %c0_i32_0 : i32, i32
  }
  func.func @transform_16(%arg0: i32) -> (i32, i32) {
    %c0_i32 = arith.constant 0 : i32
    %c0_i32_0 = arith.constant 0 : i32
    %c0_i32_1 = arith.constant 0 : i32
    return %c0_i32, %c0_i32_0 : i32, i32
  }
  func.func @transform_17(%arg0: i32) -> (i32, i32) {
    %c0_i32 = arith.constant 0 : i32
    %c0_i32_0 = arith.constant 0 : i32
    %c0_i32_1 = arith.constant 0 : i32
    return %c0_i32, %c0_i32_0 : i32, i32
  }
  func.func @transform_18(%arg0: i32) -> (i32, i32) {
    %c0_i32 = arith.constant 0 : i32
    %c0_i32_0 = arith.constant 0 : i32
    %c0_i32_1 = arith.constant 0 : i32
    return %c0_i32, %c0_i32_0 : i32, i32
  }
  func.func @transform_19(%arg0: i32) -> (i32, i32) {
    %c0_i32 = arith.constant 0 : i32
    %c0_i32_0 = arith.constant 0 : i32
    %c0_i32_1 = arith.constant 0 : i32
    return %c0_i32, %c0_i32_0 : i32, i32
  }
  func.func @transform_20(%arg0: i32) -> (i32, i32) {
    %c0_i32 = arith.constant 0 : i32
    %c0_i32_0 = arith.constant 0 : i32
    %c0_i32_1 = arith.constant 0 : i32
    return %c0_i32, %c0_i32_0 : i32, i32
  }
  func.func @transform_21(%arg0: i32) -> (i32, i32) {
    %c0_i32 = arith.constant 0 : i32
    %c0_i32_0 = arith.constant 0 : i32
    %c0_i32_1 = arith.constant 0 : i32
    return %c0_i32, %c0_i32_0 : i32, i32
  }
  func.func @transform_22(%arg0: i32) -> (i32, i32) {
    %c0_i32 = arith.constant 0 : i32
    %c0_i32_0 = arith.constant 0 : i32
    %c0_i32_1 = arith.constant 0 : i32
    return %c0_i32, %c0_i32_0 : i32, i32
  }
  func.func @transform_23(%arg0: i32) -> (i32, i32, i32) {
    %c0_i32 = arith.constant 0 : i32
    %c0_i32_0 = arith.constant 0 : i32
    %c0_i32_1 = arith.constant 0 : i32
    return %arg0, %c0_i32, %c0_i32_0 : i32, i32, i32
  }
}

module attributes {stable_mosaic.version = 11 : i64} {
  func.func @_norm_linear_kernel(%arg0: i32, %arg1: memref<16x32xf32, #tpu.memory_space<vmem>>, %arg2: memref<1x32xf32, #tpu.memory_space<vmem>>, %arg3: memref<1x32xf32, #tpu.memory_space<vmem>>, %arg4: memref<32x128xbf16, #tpu.memory_space<vmem>>, %arg5: memref<1x128xf32, #tpu.memory_space<vmem>>, %arg6: memref<16x128xf32, #tpu.memory_space<vmem>>) attributes {dimension_semantics = [#tpu.dimension_semantics<arbitrary>], iteration_bounds = array<i64: 1>, scalar_prefetch = 0 : i64, scratch_operands = 0 : i64, tpu.core_type = #tpu.core_type<tc>, window_params = [{pipeline_mode = #tpu.pipeline_mode<synchronous>, transform_indices = @transform_0, window_bounds = array<i64: 16, 32>}, {pipeline_mode = #tpu.pipeline_mode<synchronous>, transform_indices = @transform_1, window_bounds = array<i64: 1, 32>}, {pipeline_mode = #tpu.pipeline_mode<synchronous>, transform_indices = @transform_2, window_bounds = array<i64: 1, 32>}, {pipeline_mode = #tpu.pipeline_mode<synchronous>, transform_indices = @transform_3, window_bounds = array<i64: 32, 128>}, {pipeline_mode = #tpu.pipeline_mode<synchronous>, transform_indices = @transform_4, window_bounds = array<i64: 1, 128>}, {pipeline_mode = #tpu.pipeline_mode<synchronous>, transform_indices = @transform_5, window_bounds = array<i64: 16, 128>}]} {
    %c0 = arith.constant 0 : index
    %c0_0 = arith.constant 0 : index
    %0 = vector.load %arg1[%c0, %c0_0] : memref<16x32xf32, #tpu.memory_space<vmem>>, vector<16x32xf32>
    %c0_1 = arith.constant 0 : index
    %c0_2 = arith.constant 0 : index
    %1 = vector.load %arg2[%c0_1, %c0_2] : memref<1x32xf32, #tpu.memory_space<vmem>>, vector<1x32xf32>
    %c0_3 = arith.constant 0 : index
    %c0_4 = arith.constant 0 : index
    %2 = vector.load %arg3[%c0_3, %c0_4] : memref<1x32xf32, #tpu.memory_space<vmem>>, vector<1x32xf32>
    %cst = arith.constant dense<0.000000e+00> : vector<16xf32>
    %3 = vector.multi_reduction <add>, %0, %cst [1] : vector<16x32xf32> to vector<16xf32>
    %4 = vector.shape_cast %3 : vector<16xf32> to vector<16x1xf32>
    %cst_5 = arith.constant 3.200000e+01 : f32
    %5 = vector.broadcast %cst_5 : f32 to vector<16x1xf32>
    %6 = arith.divf %4, %5 : vector<16x1xf32>
    %7 = vector.broadcast %6 : vector<16x1xf32> to vector<16x32xf32>
    %8 = arith.subf %0, %7 : vector<16x32xf32>
    %9 = arith.mulf %8, %8 : vector<16x32xf32>
    %cst_6 = arith.constant dense<0.000000e+00> : vector<16xf32>
    %10 = vector.multi_reduction <add>, %9, %cst_6 [1] : vector<16x32xf32> to vector<16xf32>
    %11 = vector.shape_cast %10 : vector<16xf32> to vector<16x1xf32>
    %cst_7 = arith.constant 3.200000e+01 : f32
    %12 = vector.broadcast %cst_7 : f32 to vector<16x1xf32>
    %13 = arith.divf %11, %12 : vector<16x1xf32>
    %14 = vector.broadcast %6 : vector<16x1xf32> to vector<16x32xf32>
    %15 = arith.subf %0, %14 : vector<16x32xf32>
    %cst_8 = arith.constant 9.99999974E-6 : f32
    %16 = vector.broadcast %cst_8 : f32 to vector<16x1xf32>
    %17 = arith.addf %13, %16 : vector<16x1xf32>
    %18 = math.rsqrt %17 : vector<16x1xf32>
    %19 = vector.broadcast %18 : vector<16x1xf32> to vector<16x32xf32>
    %20 = arith.mulf %15, %19 : vector<16x32xf32>
    %21 = vector.broadcast %1 : vector<1x32xf32> to vector<16x32xf32>
    %22 = arith.mulf %20, %21 : vector<16x32xf32>
    %23 = vector.broadcast %2 : vector<1x32xf32> to vector<16x32xf32>
    %24 = arith.addf %22, %23 : vector<16x32xf32>
    %c0_9 = arith.constant 0 : index
    %c0_10 = arith.constant 0 : index
    %25 = vector.load %arg4[%c0_9, %c0_10] : memref<32x128xbf16, #tpu.memory_space<vmem>>, vector<32x128xbf16>
    %c0_11 = arith.constant 0 : index
    %c0_12 = arith.constant 0 : index
    %26 = vector.load %arg5[%c0_11, %c0_12] : memref<1x128xf32, #tpu.memory_space<vmem>>, vector<1x128xf32>
    %27 = arith.truncf %24 : vector<16x32xf32> to vector<16x32xbf16>
    %cst_13 = arith.constant dense<0.000000e+00> : vector<16x128xf32>
    %28 = tpu.matmul %27, %25, %cst_13 {dimension_numbers = #tpu.dot_dimension_numbers<[1], [0], [0], [1], [0, 0, 1, 1], [], []>} : vector<16x32xbf16>, vector<32x128xbf16>, vector<16x128xf32> -> vector<16x128xf32>
    %29 = vector.broadcast %26 : vector<1x128xf32> to vector<16x128xf32>
    %30 = arith.addf %28, %29 : vector<16x128xf32>
    %c0_14 = arith.constant 0 : index
    %c0_15 = arith.constant 0 : index
    %31 = vector.load %arg6[%c0_14, %c0_15] : memref<16x128xf32, #tpu.memory_space<vmem>>, vector<16x128xf32>
    tpu.vector_store %arg6[%c0_14, %c0_15], %30 {strides = array<i32>} : memref<16x128xf32, #tpu.memory_space<vmem>>, vector<16x128xf32>,
    return
  }
  func.func @transform_0(%arg0: i32) -> (i32, i32) {
    %c0_i32 = arith.constant 0 : i32
    %c0_i32_0 = arith.constant 0 : i32
    %c0_i32_1 = arith.constant 0 : i32
    return %c0_i32, %c0_i32_0 : i32, i32
  }
  func.func @transform_1(%arg0: i32) -> (i32, i32) {
    %c0_i32 = arith.constant 0 : i32
    %c0_i32_0 = arith.constant 0 : i32
    %c0_i32_1 = arith.constant 0 : i32
    return %c0_i32, %c0_i32_0 : i32, i32
  }
  func.func @transform_2(%arg0: i32) -> (i32, i32) {
    %c0_i32 = arith.constant 0 : i32
    %c0_i32_0 = arith.constant 0 : i32
    %c0_i32_1 = arith.constant 0 : i32
    return %c0_i32, %c0_i32_0 : i32, i32
  }
  func.func @transform_3(%arg0: i32) -> (i32, i32) {
    %c0_i32 = arith.constant 0 : i32
    %c0_i32_0 = arith.constant 0 : i32
    %c0_i32_1 = arith.constant 0 : i32
    return %c0_i32, %c0_i32_0 : i32, i32
  }
  func.func @transform_4(%arg0: i32) -> (i32, i32) {
    %c0_i32 = arith.constant 0 : i32
    %c0_i32_0 = arith.constant 0 : i32
    %c0_i32_1 = arith.constant 0 : i32
    return %c0_i32, %c0_i32_0 : i32, i32
  }
  func.func @transform_5(%arg0: i32) -> (i32, i32) {
    %c0_i32 = arith.constant 0 : i32
    %c0_i32_0 = arith.constant 0 : i32
    %c0_i32_1 = arith.constant 0 : i32
    return %c0_i32, %c0_i32_0 : i32, i32
  }
}

</mosaic_0001>

<bundles_post_ra>
// kernel: transformer_forward.12
= control target key start
LH: loop header
LB: loop body
LE: loop exit
PB: predicated region body
PF: predicated region fallthrough
CT: control target
= control target key end

     0   :  { %vm18_vm0 = vcmask 261120   ;;  %v95_v4 = vmov 32.0   ;;  %s140_s0 = inlined_call_operand.vmem [shape: f32[16,32], index: 0, kind: input, shape index: {}]   ;;  %s141_s1 = inlined_call_operand.vmem [shape: f32[1,32], index: 1, kind: input, shape index: {}]   ;;  %s142_s2 = inlined_call_operand.vmem [shape: f32[1,32], index: 2, kind: input, shape index: {}]   ;;  %s143_s3 = inlined_call_operand.vmem [shape: f32[16,32], index: 3, kind: output, shape index: {}]  }
   0x1   :  { %v14_v0 = vld [vmem:[%s140_s0] sm:$0xff]  ;;  %v15_v2 = vld [vmem:[%s140_s0 + $0x8] sm:$0xff]  ;;  %89 = vrcp.f32 %v95_v4 }
   0x2   :  { %v19_v1 = vsel %vm18_vm0, %v14_v0, 0.0  ;;  %v22_v3 = vsel %vm18_vm0, %v15_v2, 0.0  ;;  %v87_v35 = vld [vmem:[%s141_s1] ss:$0 sm:$0xff] }
   0x3   :  { %20 = vadd.xlane.f32.xlu0 %v19_v1  ;;  %v88_v38 = vld [vmem:[%s142_s2] ss:$0 sm:$0xff] }
   0x7   :  { %v90_v5 = vpop.eup %89 }
   0x8   :  { %v26_v6 = vmul.f32 32.0, %v90_v5  ;;  %vm30_vm1 = vweird.f32 %v90_v5 }
   0xa   :  { %v27_v7 = vsub.f32 1.0, %v26_v6 }
   0xb   :  { %23 = vadd.xlane.f32.xlu0 %v22_v3 }
   0xc   :  { %v28_v8 = vmul.f32 %v90_v5, %v27_v7 }
   0xe   :  { %v29_v9 = vadd.f32 %v90_v5, %v28_v8 }
  0x10   :  { %v31_v10 = vsel %vm30_vm1, %v90_v5, %v29_v9 }
  0x76   :  { %v21_v11 = vpop.xlane.xlu0 %20 }
  0x77   :  { %v32_v12 = vmul.f32 %v31_v10, %v21_v11 }
  0x79   :  { %v34_v13 = vsub.f32 %v14_v0, %v32_v12 }
  0x7b   :  { %v36_v14 = vmul.f32 %v34_v13, %v34_v13 }
  0x7d   :  { %v38_v15 = vsel %vm18_vm0, %v36_v14, 0.0 }
  0x7e   :  { %39 = vadd.xlane.f32.xlu1 %v38_v15  ;;  %v24_v16 = vpop.xlane.xlu0 %23 }
  0x7f   :  { %v33_v17 = vmul.f32 %v31_v10, %v24_v16 }
  0x81   :  { %v35_v18 = vsub.f32 %v15_v2, %v33_v17 }
  0x83   :  { %v37_v19 = vmul.f32 %v35_v18, %v35_v18 }
  0x85   :  { %v41_v20 = vsel %vm18_vm0, %v37_v19, 0.0 }
  0x86   :  { %42 = vadd.xlane.f32.xlu1 %v41_v20 }
  0xf1   :  { %v40_v21 = vpop.xlane.xlu1 %39 }
  0xf2   :  { %v44_v22 = vmul.f32 %v40_v21, %v31_v10 }
  0xf4   :  { %v46_v23 = vadd.f32 1e-05, %v44_v22 }
  0xf6   :  { %91 = vrsqrt.f32 %v46_v23  ;;  %vm54_vm3 = vweird.f32 %v46_v23 }
  0xf9   :  { %v43_v24 = vpop.xlane.xlu1 %42 }
  0xfa   :  { %v45_v25 = vmul.f32 %v43_v24, %v31_v10 }
  0xfc   :  { %v92_v26 = vpop.eup %91  ;;  %v47_v27 = vadd.f32 1e-05, %v45_v25 }
  0xfd   :  { %v49_v28 = vmul.f32 %v92_v26, %v46_v23  ;;  %vm55_vm2 = vweird.f32 %v92_v26 }
  0xfe   :  { %93 = vrsqrt.f32 %v47_v27  ;;  %vm56_vm4 = vmor %vm54_vm3, %vm55_vm2  ;;  %vm64_vm6 = vweird.f32 %v47_v27 }
  0xff   :  { %v50_v29 = vmul.f32 %v92_v26, %v49_v28 }
 0x101   :  { %v51_v30 = vmul.f32 0.5, %v50_v29 }
 0x103   :  { %v52_v31 = vsub.f32 1.5, %v51_v30 }
 0x104   :  { %v94_v32 = vpop.eup %93 }
 0x105   :  { %v53_v33 = vmul.f32 %v92_v26, %v52_v31  ;;  %v59_v34 = vmul.f32 %v94_v32, %v47_v27  ;;  %vm65_vm5 = vweird.f32 %v94_v32 }
 0x106   :  { %vm66_vm7 = vmor %vm64_vm6, %vm65_vm5 }
 0x107   :  { %v57_v36 = vsel %vm56_vm4, %v92_v26, %v53_v33  ;;  %v60_v37 = vmul.f32 %v94_v32, %v59_v34 }
 0x108   :  { %v68_v39 = vmul.f32 %v57_v36, %v34_v13 }
 0x109   :  { %v61_v40 = vmul.f32 0.5, %v60_v37 }
 0x10a   :  { %v73_v41 = vmul.f32 %v87_v35, %v68_v39 }
 0x10b   :  { %v62_v42 = vsub.f32 1.5, %v61_v40 }
 0x10c   :  { %v78_v43 = vadd.f32 %v88_v38, %v73_v41 }
 0x10d   :  { %v63_v44 = vmul.f32 %v94_v32, %v62_v42 }
 0x10e   :  { %80 = vst.msk [vmem:[%s143_s3] sm:$0xff] %vm18_vm0, %v78_v43 }
 0x10f   :  { %v67_v45 = vsel %vm66_vm7, %v94_v32, %v63_v44 }
 0x110   :  { %v69_v46 = vmul.f32 %v67_v45, %v35_v18 }
 0x112   :  { %v74_v47 = vmul.f32 %v87_v35, %v69_v46 }
 0x114   :  { %v79_v48 = vadd.f32 %v88_v38, %v74_v47 }
 0x116   :  { %81 = vst.msk [vmem:[%s143_s3 + $0x8] sm:$0xff] %vm18_vm0, %v79_v48 }

// kernel: transformer_forward.8
= control target key start
LH: loop header
LB: loop body
LE: loop exit
PB: predicated region body
PF: predicated region fallthrough
CT: control target
= control target key end

     0   :  { %vm25_vm0 = vcmask 261120   ;;  %s67_s0 = inlined_call_operand.vmem [shape: f32[2,8,32], index: 0, kind: input, shape index: {}]   ;;  %s68_s1 = inlined_call_operand.vmem [shape: f32[2,1,32], index: 1, kind: input, shape index: {}]   ;;  %s69_s2 = inlined_call_operand.vmem [shape: f32[2,8,32], index: 2, kind: output, shape index: {}]  }
   0x1   :  { %v32_v0 = vld [vmem:[%s68_s1] ss:$0 sm:$0xff]  ;;  %v33_v3 = vld [vmem:[%s68_s1 + $0x1] ss:$0 sm:$0xff]  ;;  %v20_v4 = vld [vmem:[%s67_s0 + $0x8] sm:$0xff] }
   0x2   :  { %v19_v1 = vld [vmem:[%s67_s0] sm:$0xff]  ;;  %v22_v6 = vmul.f32 5.656854, %v20_v4 }
   0x3   :  { %v21_v2 = vmul.f32 5.656854, %v19_v1 }
   0x4   :  { %v24_v7 = vadd.f32 %v33_v3, %v22_v6 }
   0x5   :  { %v23_v5 = vadd.f32 %v32_v0, %v21_v2 }
   0x6   :  { %27 = vst.msk [vmem:[%s69_s2 + $0x8] sm:$0xff] %vm25_vm0, %v24_v7 }
   0x7   :  { %26 = vst.msk [vmem:[%s69_s2] sm:$0xff] %vm25_vm0, %v23_v5 }

// kernel: transformer_forward.15
= control target key start
LH: loop header
LB: loop body
LE: loop exit
PB: predicated region body
PF: predicated region fallthrough
CT: control target
= control target key end

     0   :  { %vm25_vm0 = vcmask 261120   ;;  %v152_v4 = vmov 32.0   ;;  %s215_s0 = inlined_call_operand.vmem [shape: f32[16,32], index: 0, kind: input, shape index: {}]   ;;  %s216_s1 = inlined_call_operand.vmem [shape: f32[1,32], index: 1, kind: input, shape index: {}]   ;;  %s217_s2 = inlined_call_operand.vmem [shape: f32[1,32], index: 2, kind: input, shape index: {}]   ;;  %s218_s4 = inlined_call_operand.vmem [shape: f32[1,128], index: 4, kind: input, shape index: {}]   ;;  %s219_s3 = inlined_call_operand.vmem [shape: bf16[32,128], index: 3, kind: input, shape index: {}]   ;;  %s220_s5 = inlined_call_operand.vmem [shape: f32[16,128], index: 5, kind: output, shape index: {}]  }
   0x1   :  { %v21_v0 = vld [vmem:[%s215_s0] sm:$0xff]  ;;  %v22_v2 = vld [vmem:[%s215_s0 + $0x8] sm:$0xff]  ;;  %146 = vrcp.f32 %v152_v4 }
   0x2   :  { %v26_v1 = vsel %vm25_vm0, %v21_v0, 0.0  ;;  %v29_v3 = vsel %vm25_vm0, %v22_v2, 0.0  ;;  %v141_v21 = vld [vmem:[%s219_s3 + $0x8] sm:$0xff]  ;;  %v140_v23 = vld [vmem:[%s219_s3] sm:$0xff] }
   0x3   :  { %27 = vadd.xlane.f32.xlu0 %v26_v1  ;;  %117 = vmatpush.bf16.msra.mxu0 %v141_v21  ;;  %v143_v42 = vld [vmem:[%s216_s1] ss:$0 sm:$0xff] }
   0x4   :  { %v144_v47 = vld [vmem:[%s217_s2] ss:$0 sm:$0xff] }
   0x5   :  { %v145_v52 = vld [vmem:[%s218_s4] ss:$0 sm:$0xff] }
   0x7   :  { %v147_v5 = vpop.eup %146  ;;  %118 = vmatpush.bf16.msra.mxu0 %v140_v23 }
   0x8   :  { %v33_v6 = vmul.f32 32.0, %v147_v5  ;;  %vm37_vm1 = vweird.f32 %v147_v5 }
   0xa   :  { %v34_v7 = vsub.f32 1.0, %v33_v6 }
   0xb   :  { %30 = vadd.xlane.f32.xlu0 %v29_v3 }
   0xc   :  { %v35_v8 = vmul.f32 %v147_v5, %v34_v7 }
   0xe   :  { %v36_v9 = vadd.f32 %v147_v5, %v35_v8 }
  0x10   :  { %v38_v10 = vsel %vm37_vm1, %v147_v5, %v36_v9 }
  0x76   :  { %v28_v11 = vpop.xlane.xlu0 %27 }
  0x77   :  { %v39_v12 = vmul.f32 %v38_v10, %v28_v11 }
  0x79   :  { %v41_v13 = vsub.f32 %v21_v0, %v39_v12 }
  0x7b   :  { %v43_v14 = vmul.f32 %v41_v13, %v41_v13 }
  0x7d   :  { %v45_v15 = vsel %vm25_vm0, %v43_v14, 0.0 }
  0x7e   :  { %46 = vadd.xlane.f32.xlu1 %v45_v15  ;;  %v31_v16 = vpop.xlane.xlu0 %30 }
  0x7f   :  { %v40_v17 = vmul.f32 %v38_v10, %v31_v16 }
  0x81   :  { %v42_v18 = vsub.f32 %v22_v2, %v40_v17 }
  0x83   :  { %v44_v19 = vmul.f32 %v42_v18, %v42_v18 }
  0x85   :  { %v48_v20 = vsel %vm25_vm0, %v44_v19, 0.0 }
  0x86   :  { %49 = vadd.xlane.f32.xlu1 %v48_v20 }
  0xf1   :  { %v47_v22 = vpop.xlane.xlu1 %46 }
  0xf2   :  { %v51_v24 = vmul.f32 %v47_v22, %v38_v10 }
  0xf4   :  { %v53_v25 = vadd.f32 1e-05, %v51_v24 }
  0xf6   :  { %148 = vrsqrt.f32 %v53_v25  ;;  %vm61_vm3 = vweird.f32 %v53_v25 }
  0xf9   :  { %v50_v26 = vpop.xlane.xlu1 %49 }
  0xfa   :  { %v52_v27 = vmul.f32 %v50_v26, %v38_v10 }
  0xfc   :  { %v149_v28 = vpop.eup %148  ;;  %v54_v29 = vadd.f32 1e-05, %v52_v27 }
  0xfd   :  { %v56_v30 = vmul.f32 %v149_v28, %v53_v25  ;;  %vm62_vm2 = vweird.f32 %v149_v28 }
  0xfe   :  { %150 = vrsqrt.f32 %v54_v29  ;;  %vm63_vm4 = vmor %vm61_vm3, %vm62_vm2  ;;  %vm71_vm6 = vweird.f32 %v54_v29 }
  0xff   :  { %v57_v31 = vmul.f32 %v149_v28, %v56_v30 }
 0x101   :  { %v58_v32 = vmul.f32 0.5, %v57_v31 }
 0x103   :  { %v59_v33 = vsub.f32 1.5, %v58_v32 }
 0x104   :  { %v151_v34 = vpop.eup %150 }
 0x105   :  { %v60_v35 = vmul.f32 %v149_v28, %v59_v33  ;;  %v66_v36 = vmul.f32 %v151_v34, %v54_v29  ;;  %vm72_vm5 = vweird.f32 %v151_v34 }
 0x106   :  { %vm73_vm7 = vmor %vm71_vm6, %vm72_vm5 }
 0x107   :  { %v67_v37 = vmul.f32 %v151_v34, %v66_v36  ;;  %v64_v38 = vsel %vm63_vm4, %v149_v28, %v60_v35 }
 0x108   :  { %v75_v41 = vmul.f32 %v64_v38, %v41_v13 }
 0x109   :  { %v68_v39 = vmul.f32 0.5, %v67_v37 }
 0x10a   :  { %v80_v46 = vmul.f32 %v143_v42, %v75_v41 }
 0x10b   :  { %v69_v40 = vsub.f32 1.5, %v68_v39 }
 0x10c   :  { %v85_v49 = vadd.f32 %v144_v47, %v80_v46 }
 0x10d   :  { %v70_v43 = vmul.f32 %v151_v34, %v69_v40 }
 0x10f   :  { %v74_v44 = vsel %vm73_vm7, %v151_v34, %v70_v43 }
 0x110   :  { %v76_v45 = vmul.f32 %v74_v44, %v42_v18 }
 0x112   :  { %v81_v48 = vmul.f32 %v143_v42, %v76_v45 }
 0x114   :  { %v86_v50 = vadd.f32 %v144_v47, %v81_v48 }
 0x116   :  { %v92_v51 = vpack.c.bf16 %v86_v50, %v85_v49 }
 0x118   :  { %139 = vmatmul.msk.bf16.vlgmr.msra.gmra.mxu0 %vm25_vm0, %v92_v51 }
 0x195   :  { %v120_v53 = vpop.f32.mrf.mxu0 }
 0x196   :  { %v121_v54 = vadd.f32 %v145_v52, %v120_v53 }
 0x198   :  { %125 = vst [vmem:[%s220_s5] sm:$0xff] %v121_v54 }
 0x19d   :  { %v122_v55 = vpop.f32.mrf.mxu0 }
 0x19e   :  { %v123_v56 = vadd.f32 %v145_v52, %v122_v55 }
 0x1a0   :  { %126 = vst [vmem:[%s220_s5 + $0x8] sm:$0xff] %v123_v56 }

// kernel: transformer_forward.10
= control target key start
LH: loop header
LB: loop body
LE: loop exit
PB: predicated region body
PF: predicated region fallthrough
CT: control target
= control target key end

     0   :  { %s3618_s25 = smov 0   ;;  %s4386_s0 = inlined_call_operand.vmem [shape: f32[2,8,32], index: 0, kind: input, shape index: {}]   ;;  %s4387_s1 = inlined_call_operand.vmem [shape: bf16[32,96], index: 1, kind: input, shape index: {}]   ;;  %s4388_s2 = inlined_call_operand.vmem [shape: f32[1,96], index: 2, kind: input, shape index: {}]   ;;  %s4389_s3 = inlined_call_operand.vmem [shape: bf16[32,32], index: 3, kind: input, shape index: {}]   ;;  %s4390_s4 = inlined_call_operand.vmem [shape: f32[1,32], index: 4, kind: input, shape index: {}]   ;;  %s4391_s5 = inlined_call_operand.vmem [shape: f32[1,32], index: 5, kind: input, shape index: {}]   ;;  %s4392_s6 = inlined_call_operand.vmem [shape: f32[1,32], index: 6, kind: input, shape index: {}]   ;;  %s4393_s7 = inlined_call_operand.vmem [shape: bf16[32,2048], index: 7, kind: input, shape index: {}]   ;;  %s4394_s8 = inlined_call_operand.vmem [shape: f32[1,2048], index: 8, kind: input, shape index: {}]   ;;  %s4395_s9 = inlined_call_operand.vmem [shape: bf16[2048,32], index: 9, kind: input, shape index: {}]   ;;  %s4396_s10 = inlined_call_operand.vmem [shape: f32[1,32], index: 10, kind: input, shape index: {}]   ;;  %s4397_s11 = inlined_call_operand.vmem [shape: f32[1,32], index: 11, kind: input, shape index: {}]   ;;  %s4398_s12 = inlined_call_operand.vmem [shape: f32[1,32], index: 12, kind: input, shape index: {}]   ;;  %s4399_s13 = inlined_call_operand.vmem [shape: f32[2,8,32], index: 13, kind: output, shape index: {}]  }
   0x1 LB: > { %s2631_s26 = sadd.s32 4294967295, %s3534_s25   ;;  %p2635_p0 = scmp.ge.s32.totalorder %s3534_s25, 1  ;;  %s3534_s25 = sphi %s3618_s25, %s23_s25  }
   0x2   : > { %p386_p1 = scmp.lt.s32.totalorder %s3534_s25, 3 }
   0x4   : > { %p387_p2 = pnand %p2635_p0, %p386_p1 }
   0x5   : > { %p428_p3 = scmp.lt.s32.totalorder (!%p387_p2), %s2631_s26, 1  ;;  %s3536_s20 = smov (!%p387_p2), 88  }
   0x6   : > { %390 = sbr.rel (%p387_p2) target bundleno = 2106 (0x83a), region = 72  ;;  %s3537_s21 = smov (!%p387_p2), 64  }
   0x7   : > { %s3538_s22 = smov (!%p387_p2), 96   ;;  %s3539_s23 = smov (!%p387_p2), 120  }
   0x8   : > { %s3540_s24 = smov (!%p387_p2), 80   ;;  %s3541_s27 = smov (!%p387_p2), 72  }
   0x9   : > { %s3542_s28 = smov (!%p387_p2), 112   ;;  %s3543_s29 = smov (!%p387_p2), 104  }
   0xa   : > { %s3544_s16 = smov (!%p387_p2), 56  }
   0xb   : > { %v3318_v0 = vld [vmem:[%s4387_s1 + $0x8] sm:$0xff]  ;;  %v3317_v1 = vld [vmem:[%s4387_s1] sm:$0xff]  ;;  %s4401_s26 = smov (!%p428_p3, %s2631_s26), 1  ;;  %vm459_vm0 = vcmask 261120   ;;  %vm487_vm1 = vcmask 64512   ;;  %vm522_vm2 = vcmask 1043456  }
   0xc   : > { %469 = vmatpush.bf16.msra.mxu0 %v3318_v0  ;;  %s2636_s14 = sshll.u32 %s4401_s26, 3  ;;  %v3499_v4 = vld [vmem:[%s4388_s2] ss:$0 sm:$0xff]  ;;  %v477_v52 = vld [vmem:[%s4389_s3 + $0x4] sm:$0xf] }
   0xd   : > { %s431_s17 = scalar_lea.vmem %s4386_s0, %s2636_s14  ;;  %v476_v16 = vld [vmem:[%s4389_s3] sm:$0xf]  ;;  %v604_v53 = vsel %vm522_vm2, %v477_v52, 0 }
   0xe   : > { %v3640_v2 = vld [vmem:[%s431_s17] sm:$0xff]  ;;  %v623_v21 = vsel %vm522_vm2, %v476_v16, 0  ;;  %s3545_s17 = smov 48  }
   0xf   : > { %v443_v3 = vpack.c.bf16 %v3640_v2, %v3640_v2 }
  0x10   : > { %470 = vmatpush.bf16.msra.mxu0 %v3317_v1 }
  0x13   : > { %2646 = vmatmul.msk.bf16.vlgmr.msra.gmra.mxu0 %vm459_vm0, %v443_v3 }
  0x14   : > { %613 = vmatpush.bf16.msrb.mxu0 %v604_v53 }
  0x90   : > { %v472_v5 = vpop.f32.mrf.mxu0 }
  0x91   : > { %v473_v6 = vadd.f32 %v3499_v4, %v472_v5 }
  0x93   : > { %v3648_v7 = vpack.c.bf16 %v473_v6, %v473_v6  ;;  %v481_v8 = vmul.f32 0.35355338, %v473_v6 }
  0x95   : > { %545 = vrot.lane.b32.xlu2 %v3648_v7, %s3536_s20  ;;  %517 = vrot.lane.b32.xlu1 %v3648_v7, %s3537_s21  ;;  %v482_v10 = vpack.c.bf16 %v481_v8, %v481_v8  ;;  %s3546_s20 = smov 40   ;;  %s435_s21 = scalar_lea.vmem %s4399_s13, %s2636_s14 }
  0x96   : > { %485 = vrot.lane.b32.xlu0 %v3648_v7, %s3538_s22 }
  0x98   : > { %v474_v9 = vpop.f32.mrf.mxu0 }
  0x9d   : > { %543 = vrot.lane.b32.xlu2 %v482_v10, %s3539_s23 }
  0xa5   : > { %640 = vrot.lane.b32.xlu2 %v3648_v7, %s3540_s24 }
  0xad   : > { %717 = vrot.lane.b32.xlu2 %v3648_v7, %s3541_s27 }
  0xb5   : > { %638 = vrot.lane.b32.xlu2 %v482_v10, %s3542_s28 }
  0xbd   : > { %715 = vrot.lane.b32.xlu2 %v482_v10, %s3543_s29 }
  0xef   : > { %v546_v11 = vpop.permute.xlu2 %545 }
  0xf0   : > { %v551_v12 = vsel %vm487_vm1, %v546_v11, 0 }
  0xf1   : > { %560 = vmatpush.bf16.xpose.msra.mxu3 %v551_v12 }
  0xf7   : > { %v544_v13 = vpop.permute.xlu2 %543 }
  0xf8   : > { %2649 = vmatmul.msk.bf16.vlgmr.msra.gmra.mxu3 %vm487_vm1, %v544_v13 }
  0xff   : > { %v641_v14 = vpop.permute.xlu2 %640 }
 0x100   : > { %v646_v15 = vsel %vm487_vm1, %v641_v14, 0 }
 0x101   : > { %655 = vmatpush.bf16.xpose.msrb.mxu3 %v646_v15 }
 0x107   : > { %v518_v17 = vpop.permute.xlu1 %517  ;;  %v718_v18 = vpop.permute.xlu2 %717 }
 0x108   : > { %v486_v19 = vpop.permute.xlu0 %485  ;;  %v524_v20 = vsel %vm522_vm2, %v518_v17, 0  ;;  %v723_v24 = vsel %vm487_vm1, %v718_v18, 0 }
 0x109   : > { %v492_v22 = vsel %vm487_vm1, %v486_v19, 0  ;;  %533 = vmatpush.bf16.msra.mxu2 %v524_v20 }
 0x10a   : > { %501 = vmatpush.bf16.xpose.msra.mxu1 %v492_v22 }
 0x10f   : > { %v639_v23 = vpop.permute.xlu2 %638 }
 0x110   : > { %2653 = vmatmul.msk.bf16.vlgmr.msrb.gmra.mxu3 %vm487_vm1, %v639_v23 }
 0x111   : > { %2647 = vmatmul.msk.bf16.vlgmr.msra.gmra.mxu1 %vm487_vm1, %v482_v10 }
 0x112   : > { %632 = vmatpush.bf16.msrb.mxu1 %v623_v21 }
 0x116   : > { %732 = vmatpush.bf16.xpose.msra.mxu1 %v723_v24 }
 0x117   : > { %v716_v33 = vpop.permute.xlu2 %715 }
 0x17b   : > { %v562_v25 = vpop.f32.mrf.mxu3 }
 0x17c   : > { %v566_v26 = vsel %vm487_vm1, %v562_v25, -inf }
 0x17d   : > { %567 = vmax.xlane.f32.xlu2 %v566_v26 }
 0x183   : > { %v564_v27 = vpop.f32.mrf.mxu3 }
 0x18e   : > { %v503_v28 = vpop.f32.mrf.mxu1 }
 0x18f   : > { %v507_v29 = vsel %vm487_vm1, %v503_v28, -inf }
 0x190   : > { %508 = vmax.xlane.f32.xlu0 %v507_v29 }
 0x193   : > { %v657_v30 = vpop.f32.mrf.mxu3 }
 0x194   : > { %v661_v46 = vsel %vm487_vm1, %v657_v30, -inf }
 0x196   : > { %v505_v31 = vpop.f32.mrf.mxu1 }
 0x19b   : > { %v659_v32 = vpop.f32.mrf.mxu3 }
 0x19c   : > { %v479_v32 = vld [vmem:[%s4389_s3 + $0xc] sm:$0xf] }
 0x1a4   : > { %576 = vrot.lane.b32.xlu0 %v3648_v7, %s3544_s16 }
 0x1ac   : > { %671 = vrot.lane.b32.xlu0 %v3648_v7, %s3545_s17 }
 0x1f0   : > { %v568_v34 = vpop.xlane.xlu2 %567 }
 0x1f1   : > { %v569_v35 = vsub.f32 %v562_v25, %v568_v34 }
 0x1f3   : > { %v570_v36 = vmul.f32 1.442695, %v569_v35 }
 0x1f5   : > { %3506 = vpow2.f32 %v570_v36 }
 0x1fb   : > { %v3507_v37 = vpop.eup %3506 }
 0x1fc   : > { %v572_v38 = vsel %vm487_vm1, %v3507_v37, 0.0  ;;  %v575_v50 = vpack.c.bf16 %v3507_v37, %v3507_v37 }
 0x1fd   : > { %573 = vadd.xlane.f32.xlu0 %v572_v38 }
 0x203   : > { %v509_v39 = vpop.xlane.xlu0 %508 }
 0x204   : > { %v510_v40 = vsub.f32 %v503_v28, %v509_v39 }
 0x206   : > { %v511_v41 = vmul.f32 1.442695, %v510_v40 }
 0x208   : > { %3508 = vpow2.f32 %v511_v41 }
 0x20e   : > { %v3509_v42 = vpop.eup %3508 }
 0x20f   : > { %v513_v43 = vsel %vm487_vm1, %v3509_v42, 0.0  ;;  %v516_v44 = vpack.c.bf16 %v3509_v42, %v3509_v42 }
 0x210   : > { %514 = vadd.xlane.f32.xlu1 %v513_v43  ;;  %v3500_v43 = vld [vmem:[%s4390_s4] ss:$0 sm:$0xff] }
 0x211   : > { %2648 = vmatmul.msk.bf16.vlgmr.msra.gmra.mxu2 %vm487_vm1, %v516_v44 }
 0x216   : > { %v577_v45 = vpop.permute.xlu0 %576 }
 0x217   : > { %v582_v47 = vsel %vm522_vm2, %v577_v45, 0 }
 0x218   : > { %662 = vmax.xlane.f32.xlu1 %v661_v46  ;;  %591 = vmatpush.bf16.msrb.mxu2 %v582_v47 }
 0x21e   : > { %v672_v48 = vpop.permute.xlu0 %671 }
 0x21f   : > { %v677_v49 = vsel %vm522_vm2, %v672_v48, 0 }
 0x220   : > { %686 = vmatpush.bf16.msra.mxu2 %v677_v49 }
 0x221   : > { %2650 = vmatmul.msk.bf16.vlgmr.msrb.gmra.mxu2 %vm487_vm1, %v575_v50  ;;  %v3547_v50 = vmov 32.0  }
 0x270   : > { %v574_v63 = vpop.xlane.xlu0 %573 }
 0x283   : > { %v515_v51 = vpop.xlane.xlu1 %514 }
 0x284   : > { %3510 = vrcp.f32 %v515_v51 }
 0x28a   : > { %v3511_v57 = vpop.eup %3510 }
 0x28b   : > { %v663_v54 = vpop.xlane.xlu1 %662 }
 0x28c   : > { %v664_v55 = vsub.f32 %v657_v30, %v663_v54 }
 0x28e   : > { %v665_v56 = vmul.f32 1.442695, %v664_v55 }
 0x290   : > { %3512 = vpow2.f32 %v665_v56 }
 0x291   : > { %3514 = vrcp.f32 %v574_v63  ;;  %v3335_v63 = vld [vmem:[%s4393_s7 + $0x84] sm:$0xf] }
 0x294   : > { %v535_v58 = vpop.f32.mrf.mxu2 }
 0x295   : > { %v540_v59 = vmul.f32 %v3511_v57, %v535_v58 }
 0x296   : > { %v3513_v60 = vpop.eup %3512 }
 0x297   : > { %v670_v61 = vpack.c.bf16 %v3513_v60, %v3513_v60  ;;  %v541_v62 = vpack.c.bf16 %v540_v59, %v540_v59  ;;  %v3515_v1 = vpop.eup %3514  ;;  %v667_v18 = vsel %vm487_vm1, %v3513_v60, 0.0 }
 0x299   : > { %2652 = vmatmul.msk.bf16.vlgmr.msrb.gmra.mxu1 %vm487_vm1, %v541_v62  ;;  %2654 = vmatmul.msk.bf16.vlgmr.msra.gmra.mxu2 %vm487_vm1, %v670_v61  ;;  %v2725_v61 = vld [vmem:[%s4393_s7 + $0x80] sm:$0xf] }
 0x29a   : > { %v3343_v62 = vld [vmem:[%s4393_s7 + $0xbc] sm:$0xf0] }
 0x29c   : > { %v537_v0 = vpop.f32.mrf.mxu2 }
 0x29d   : > { %v2726_v0 = vor.u32 %v3343_v62, %v2725_v61  ;;  %v2757_v61 = vld [vmem:[%s4393_s7 + $0xa0] sm:$0xf] }
 0x29e   : > { %v3347_v62 = vld [vmem:[%s4393_s7 + $0xdc] sm:$0xf0] }
 0x2a4   : > { %v593_v3 = vpop.f32.mrf.mxu2 }
 0x2a5   : > { %v598_v4 = vmul.f32 %v3515_v1, %v593_v3  ;;  %v2727_v1 = vld [vmem:[%s4393_s7 + $0xc0] sm:$0xf0]  ;;  %v2733_v3 = vld [vmem:[%s4393_s7 + $0x88] sm:$0xf] }
 0x2a7   : > { %v599_v5 = vpack.c.bf16 %v598_v4, %v598_v4  ;;  %v3344_v4 = vld [vmem:[%s4393_s7 + $0xc4] sm:$0xf0] }
 0x2a9   : > { %2651 = vmatmul.msk.bf16.vlgmr.msrb.gmra.mxu0 %vm487_vm1, %v599_v5  ;;  %2656 = vmatmul.msk.bf16.vlgmr.msra.gmra.mxu1 %vm487_vm1, %v716_v33  ;;  %v776_v33 = vsel %vm522_vm2, %v479_v32, 0  ;;  %v2730_v5 = vor.u32 %v3335_v63, %v2727_v1  ;;  %v3339_v63 = vld [vmem:[%s4393_s7 + $0xa4] sm:$0xf] }
 0x2aa   : > { %785 = vmatpush.bf16.msrb.mxu2 %v776_v33  ;;  %v3338_v33 = vld [vmem:[%s4393_s7 + $0x9c] sm:$0xf] }
 0x2ab   : > { %1087 = vmatpush.bf16.msrb.mxu1 %v2730_v5  ;;  %v2767_v5 = vld [vmem:[%s4393_s7 + $0xe8] sm:$0xf0] }
 0x2ac   : > { %v595_v6 = vpop.f32.mrf.mxu2 }
 0x2ad   : > { %v2734_v6 = vor.u32 %v3344_v4, %v2733_v3  ;;  %v3348_v3 = vld [vmem:[%s4393_s7 + $0xe4] sm:$0xf0]  ;;  %v3340_v4 = vld [vmem:[%s4393_s7 + $0xac] sm:$0xf] }
 0x316   : > { %v634_v8 = vpop.f32.mrf.mxu1 }
 0x31c   : > { %v688_v9 = vpop.f32.mrf.mxu2 }
 0x31e   : > { %v636_v10 = vpop.f32.mrf.mxu1 }
 0x324   : > { %v690_v11 = vpop.f32.mrf.mxu2 }
 0x325   : > { %v2661_v11 = vld [vmem:[%s4393_s7] sm:$0xf] }
 0x326   : > { %v615_v12 = vpop.f32.mrf.mxu0  ;;  %v734_v13 = vpop.f32.mrf.mxu1 }
 0x327   : > { %v635_v14 = vadd.f32 %v634_v8, %v615_v12  ;;  %v738_v15 = vsel %vm487_vm1, %v734_v13, -inf  ;;  %v3336_v8 = vld [vmem:[%s4393_s7 + $0x8c] sm:$0xf]  ;;  %v3327_v12 = vld [vmem:[%s4393_s7 + $0x3c] sm:$0xf0] }
 0x328   : > { %739 = vmax.xlane.f32.xlu1 %v738_v15  ;;  %v2663_v15 = vld [vmem:[%s4393_s7 + $0x40] sm:$0xf0] }
 0x32e   : > { %v617_v16 = vpop.f32.mrf.mxu0  ;;  %v736_v17 = vpop.f32.mrf.mxu1 }
 0x32f   : > { %v2669_v16 = vld [vmem:[%s4393_s7 + $0x8] sm:$0xf] }
 0x330   : > { %v3328_v17 = vld [vmem:[%s4393_s7 + $0x44] sm:$0xf0] }
 0x341   : > { %748 = vrot.lane.b32.xlu1 %v3648_v7, %s3546_s20  ;;  %v478_v7 = vld [vmem:[%s4389_s3 + $0x8] sm:$0xf] }
 0x342   : > { %v699_v27 = vsel %vm522_vm2, %v478_v7, 0 }
 0x343   : > { %708 = vmatpush.bf16.msra.mxu0 %v699_v27 }
 0x347   : > { %1074 = vmatpush.bf16.msrb.mxu0 %v2726_v0  ;;  %v2759_v0 = vld [vmem:[%s4393_s7 + $0xe0] sm:$0xf0] }
 0x36b   : > { %668 = vadd.xlane.f32.xlu1 %v667_v18 }
 0x39b   : > { %v740_v19 = vpop.xlane.xlu1 %739 }
 0x39c   : > { %v741_v20 = vsub.f32 %v734_v13, %v740_v19  ;;  %v3319_v13 = vld [vmem:[%s4393_s7 + $0x4] sm:$0xf]  ;;  %v2670_v19 = vor.u32 %v3328_v17, %v2669_v16  ;;  %v2701_v16 = vld [vmem:[%s4393_s7 + $0x28] sm:$0xf] }
 0x39d   : > { %v2666_v18 = vor.u32 %v3319_v13, %v2663_v15  ;;  %v2770_v13 = vor.u32 %v3340_v4, %v2767_v5  ;;  %v2695_v15 = vld [vmem:[%s4393_s7 + $0x60] sm:$0xf0]  ;;  %v3332_v17 = vld [vmem:[%s4393_s7 + $0x64] sm:$0xf0]  ;;  %v3378_v4 = vld [vmem:[%s4395_s9 + $0xd8] sm:$0xff] }
 0x39e   : > { %v742_v21 = vmul.f32 1.442695, %v741_v20  ;;  %v3320_v20 = vld [vmem:[%s4393_s7 + $0xc] sm:$0xf]  ;;  %v3353_v5 = vld [vmem:[%s4395_s9 + $0x10] sm:$0xff] }
 0x39f   : > { %1088 = vmatpush.bf16.msrb.mxu1 %v2666_v18  ;;  %v3324_v18 = vld [vmem:[%s4393_s7 + $0x2c] sm:$0xf] }
 0x3a0   : > { %3516 = vpow2.f32 %v742_v21  ;;  %v2671_v21 = vld [vmem:[%s4393_s7 + $0x48] sm:$0xf0] }
 0x3a6   : > { %v3517_v22 = vpop.eup %3516 }
 0x3a7   : > { %v744_v23 = vsel %vm487_vm1, %v3517_v22, 0.0  ;;  %v747_v26 = vpack.c.bf16 %v3517_v22, %v3517_v22  ;;  %v2674_v22 = vor.u32 %v3320_v20, %v2671_v21 }
 0x3a8   : > { %745 = vadd.xlane.f32.xlu2 %v744_v23 }
 0x3b3   : > { %v749_v24 = vpop.permute.xlu1 %748 }
 0x3b4   : > { %v754_v25 = vsel %vm522_vm2, %v749_v24, 0  ;;  %v2741_v24 = vld [vmem:[%s4393_s7 + $0x90] sm:$0xf] }
 0x3b5   : > { %763 = vmatpush.bf16.msra.mxu3 %v754_v25  ;;  %v3345_v25 = vld [vmem:[%s4393_s7 + $0xcc] sm:$0xf0] }
 0x3b6   : > { %v2742_v27 = vor.u32 %v3345_v25, %v2741_v24  ;;  %v2773_v24 = vld [vmem:[%s4393_s7 + $0xb0] sm:$0xf] }
 0x3b7   : > { %v3349_v25 = vld [vmem:[%s4393_s7 + $0xec] sm:$0xf0] }
 0x3b8   : > { %2657 = vmatmul.msk.bf16.vlgmr.msra.gmra.mxu3 %vm487_vm1, %v747_v26  ;;  %v3337_v26 = vld [vmem:[%s4393_s7 + $0x94] sm:$0xf] }
 0x3b9   : > { %1100 = vmatpush.bf16.msrb.mxu3 %v2734_v6 }
 0x3bd   : > { %1101 = vmatpush.bf16.msrb.mxu3 %v2670_v19  ;;  %v2703_v19 = vld [vmem:[%s4393_s7 + $0x68] sm:$0xf0] }
 0x3de   : > { %v669_v28 = vpop.xlane.xlu1 %668 }
 0x3df   : > { %3518 = vrcp.f32 %v669_v28  ;;  %v2743_v28 = vld [vmem:[%s4393_s7 + $0xd0] sm:$0xf0] }
 0x3e5   : > { %v3519_v29 = vpop.eup %3518 }
 0x3e6   : > { %v693_v30 = vmul.f32 %v3519_v29, %v688_v9  ;;  %v2735_v9 = vld [vmem:[%s4393_s7 + $0xc8] sm:$0xf0]  ;;  %v2749_v29 = vld [vmem:[%s4393_s7 + $0x98] sm:$0xf] }
 0x3e7   : > { %v2738_v10 = vor.u32 %v3336_v8, %v2735_v9  ;;  %v2758_v8 = vor.u32 %v3347_v62, %v2757_v61  ;;  %v2762_v9 = vor.u32 %v3339_v63, %v2759_v0  ;;  %v3363_v61 = vld [vmem:[%s4395_s9 + $0x60] sm:$0xff]  ;;  %v3354_v0 = vld [vmem:[%s4395_s9 + $0x18] sm:$0xff] }
 0x3e8   : > { %v694_v31 = vpack.c.bf16 %v693_v30, %v693_v30  ;;  %v3346_v30 = vld [vmem:[%s4393_s7 + $0xd4] sm:$0xf0]  ;;  %v3371_v62 = vld [vmem:[%s4395_s9 + $0xa0] sm:$0xff] }
 0x3e9   : > { %1113 = vmatpush.bf16.msra.mxu2 %v2738_v10  ;;  %v2750_v32 = vor.u32 %v3346_v30, %v2749_v29  ;;  %v2693_v10 = vld [vmem:[%s4393_s7 + $0x20] sm:$0xf]  ;;  %v3342_v29 = vld [vmem:[%s4393_s7 + $0xbc] sm:$0xf] }
 0x3ea   : > { %2655 = vmatmul.msk.bf16.vlgmr.msra.gmra.mxu0 %vm487_vm1, %v694_v31  ;;  %v2746_v31 = vor.u32 %v3337_v26, %v2743_v28  ;;  %v3341_v26 = vld [vmem:[%s4393_s7 + $0xb4] sm:$0xf]  ;;  %v3350_v28 = vld [vmem:[%s4393_s7 + $0xf4] sm:$0xf0]  ;;  %v2783_v30 = vld [vmem:[%s4393_s7 + $0xf8] sm:$0xf0] }
 0x3eb   : > { %1152 = vmatpush.bf16.msra.mxu3 %v2750_v32  ;;  %v3379_v63 = vld [vmem:[%s4395_s9 + $0xe0] sm:$0xff] }
 0x3ec   : > { %1139 = vmatpush.bf16.msra.mxu1 %v2746_v31  ;;  %v2774_v31 = vor.u32 %v3349_v25, %v2773_v24  ;;  %v3405_v24 = vld [vmem:[%s4395_s9 + $0x1b0] sm:$0xff] }
 0x3ed   : > { %1114 = vmatpush.bf16.msra.mxu2 %v2674_v22  ;;  %v2702_v22 = vor.u32 %v3332_v17, %v2701_v16  ;;  %v3390_v16 = vld [vmem:[%s4395_s9 + $0x138] sm:$0xff]  ;;  %v3413_v25 = vld [vmem:[%s4395_s9 + $0x1f0] sm:$0xff] }
 0x3ee   : > { %v3398_v17 = vld [vmem:[%s4395_s9 + $0x178] sm:$0xff] }
 0x41b   : > { %v746_v34 = vpop.xlane.xlu2 %745 }
 0x41c   : > { %3520 = vrcp.f32 %v746_v34  ;;  %v2751_v34 = vld [vmem:[%s4393_s7 + $0xd8] sm:$0xf0] }
 0x41d   : > { %3522 = vrcp.f32 %v3547_v50 }
 0x422   : > { %v3521_v35 = vpop.eup %3520 }
 0x423   : > { %v3523_v51 = vpop.eup %3522 }
 0x424   : > { %v803_v52 = vmul.f32 32.0, %v3523_v51  ;;  %vm807_vm3 = vweird.f32 %v3523_v51 }
 0x426   : > { %v804_v53 = vsub.f32 1.0, %v803_v52 }
 0x428   : > { %v805_v54 = vmul.f32 %v3523_v51, %v804_v53 }
 0x42a   : > { %v806_v55 = vadd.f32 %v3523_v51, %v805_v54 }
 0x42c   : > { %v3707_v56 = vsel %vm807_vm3, %v3523_v51, %v806_v55  ;;  %v3501_v55 = vld [vmem:[%s4391_s5] ss:$0 sm:$0xff] }
 0x43b   : > { %v765_v36 = vpop.f32.mrf.mxu3 }
 0x43c   : > { %v770_v37 = vmul.f32 %v3521_v35, %v765_v36  ;;  %v2677_v35 = vld [vmem:[%s4393_s7 + $0x10] sm:$0xf] }
 0x43e   : > { %v771_v38 = vpack.c.bf16 %v770_v37, %v770_v37  ;;  %v2754_v37 = vor.u32 %v3338_v33, %v2751_v34  ;;  %v2709_v33 = vld [vmem:[%s4393_s7 + $0x30] sm:$0xf] }
 0x43f   : > { %v3333_v34 = vld [vmem:[%s4393_s7 + $0x6c] sm:$0xf0] }
 0x440   : > { %2658 = vmatmul.msk.bf16.vlgmr.msrb.gmra.mxu2 %vm487_vm1, %v771_v38  ;;  %v3329_v38 = vld [vmem:[%s4393_s7 + $0x4c] sm:$0xf0] }
 0x441   : > { %1165 = vmatpush.bf16.msrb.mxu2 %v2754_v37  ;;  %v3325_v37 = vld [vmem:[%s4393_s7 + $0x34] sm:$0xf] }
 0x443   : > { %v767_v39 = vpop.f32.mrf.mxu3 }
 0x444   : > { %v3321_v39 = vld [vmem:[%s4393_s7 + $0x14] sm:$0xf] }
 0x467   : > { %v710_v40 = vpop.f32.mrf.mxu0 }
 0x468   : > { %v714_v41 = vadd.f32 %v710_v40, %v635_v14  ;;  %v2662_v14 = vor.u32 %v3327_v12, %v2661_v11  ;;  %v2678_v40 = vor.u32 %v3329_v38, %v2677_v35  ;;  %v3331_v11 = vld [vmem:[%s4393_s7 + $0x5c] sm:$0xf0]  ;;  %v2711_v38 = vld [vmem:[%s4393_s7 + $0x70] sm:$0xf0] }
 0x469   : > { %v2694_v20 = vor.u32 %v3331_v11, %v2693_v10  ;;  %v3352_v10 = vld [vmem:[%s4395_s9 + $0x8] sm:$0xff] }
 0x46a   : > { %1075 = vmatpush.bf16.msrb.mxu0 %v2662_v14  ;;  %v3323_v14 = vld [vmem:[%s4393_s7 + $0x24] sm:$0xf]  ;;  %v3360_v11 = vld [vmem:[%s4395_s9 + $0x48] sm:$0xff] }
 0x46b   : > { %v2698_v21 = vor.u32 %v3323_v14, %v2695_v15  ;;  %v3351_v14 = vld [vmem:[%s4395_s9] sm:$0xff] }
 0x46c   : > { %v3359_v15 = vld [vmem:[%s4395_s9 + $0x40] sm:$0xff] }
 0x46e   : > { %1126 = vmatpush.bf16.msra.mxu0 %v2742_v27  ;;  %v2781_v27 = vld [vmem:[%s4393_s7 + $0xb8] sm:$0xf] }
 0x46f   : > { %v712_v42 = vpop.f32.mrf.mxu0  ;;  %v2782_v35 = vor.u32 %v3350_v28, %v2781_v27  ;;  %v3404_v27 = vld [vmem:[%s4395_s9 + $0x1a8] sm:$0xff] }
 0x470   : > { %v2685_v42 = vld [vmem:[%s4393_s7 + $0x18] sm:$0xf]  ;;  %v3412_v28 = vld [vmem:[%s4395_s9 + $0x1e8] sm:$0xff] }
 0x472   : > { %1127 = vmatpush.bf16.msra.mxu0 %v2678_v40  ;;  %v3334_v40 = vld [vmem:[%s4393_s7 + $0x74] sm:$0xf0] }
 0x4c3   : > { %v787_v44 = vpop.f32.mrf.mxu2 }
 0x4c4   : > { %v791_v45 = vadd.f32 %v787_v44, %v714_v41  ;;  %v2679_v41 = vld [vmem:[%s4393_s7 + $0x50] sm:$0xf0] }
 0x4c5   : > { %v2682_v44 = vor.u32 %v3321_v39, %v2679_v41  ;;  %v2717_v39 = vld [vmem:[%s4393_s7 + $0x38] sm:$0xf]  ;;  %v3326_v41 = vld [vmem:[%s4393_s7 + $0x3c] sm:$0xf] }
 0x4c6   : > { %v795_v46 = vadd.f32 %v3500_v43, %v791_v45  ;;  %v3330_v43 = vld [vmem:[%s4393_s7 + $0x54] sm:$0xf0] }
 0x4c7   : > { %v2686_v45 = vor.u32 %v3330_v43, %v2685_v42  ;;  %1140 = vmatpush.bf16.msra.mxu1 %v2682_v44  ;;  %v2719_v42 = vld [vmem:[%s4393_s7 + $0x78] sm:$0xf0]  ;;  %v2710_v43 = vor.u32 %v3333_v34, %v2709_v33  ;;  %v2714_v44 = vor.u32 %v3325_v37, %v2711_v38 }
 0x4c8   : > { %v796_v47 = vadd.f32 %v795_v46, %v3640_v2  ;;  %v3322_v46 = vld [vmem:[%s4393_s7 + $0x1c] sm:$0xf] }
 0x4c9   : > { %1153 = vmatpush.bf16.msra.mxu3 %v2686_v45  ;;  %v2718_v45 = vor.u32 %v3334_v40, %v2717_v39  ;;  %v3386_v33 = vld [vmem:[%s4395_s9 + $0x118] sm:$0xff]  ;;  %v3384_v39 = vld [vmem:[%s4395_s9 + $0x108] sm:$0xff] }
 0x4ca   : > { %v799_v48 = vsel %vm459_vm0, %v796_v47, 0.0  ;;  %v3394_v34 = vld [vmem:[%s4395_s9 + $0x158] sm:$0xff]  ;;  %v3392_v40 = vld [vmem:[%s4395_s9 + $0x148] sm:$0xff] }
 0x4cb   : > { %v789_v49 = vpop.f32.mrf.mxu2  ;;  %800 = vadd.xlane.f32.xlu2 %v799_v48  ;;  %v3402_v37 = vld [vmem:[%s4395_s9 + $0x198] sm:$0xff] }
 0x4cc   : > { %v3410_v38 = vld [vmem:[%s4395_s9 + $0x1d8] sm:$0xff] }
 0x53e   : > { %v801_v57 = vpop.xlane.xlu2 %800 }
 0x53f   : > { %v809_v58 = vmul.f32 %v3707_v56, %v801_v57 }
 0x541   : > { %v3710_v59 = vsub.f32 %v796_v47, %v809_v58  ;;  %v2687_v47 = vld [vmem:[%s4393_s7 + $0x58] sm:$0xf0]  ;;  %v3502_v58 = vld [vmem:[%s4392_s6] ss:$0 sm:$0xff] }
 0x542   : > { %v2690_v48 = vor.u32 %v3322_v46, %v2687_v47  ;;  %v2722_v46 = vor.u32 %v3326_v41, %v2719_v42  ;;  %v3358_v47 = vld [vmem:[%s4395_s9 + $0x38] sm:$0xff]  ;;  %v3401_v41 = vld [vmem:[%s4395_s9 + $0x190] sm:$0xff] }
 0x543   : > { %v811_v2 = vmul.f32 %v3710_v59, %v3710_v59  ;;  %v3409_v42 = vld [vmem:[%s4395_s9 + $0x1d0] sm:$0xff] }
 0x544   : > { %1166 = vmatpush.bf16.msrb.mxu2 %v2690_v48  ;;  %v3366_v48 = vld [vmem:[%s4395_s9 + $0x78] sm:$0xff] }
 0x545   : > { %v812_v60 = vsel %vm459_vm0, %v811_v2, 0.0 }
 0x546   : > { %813 = vadd.xlane.f32.xlu2 %v812_v60 }
 0x5b9   : > { %v814_v23 = vpop.xlane.xlu2 %813 }
 0x5ba   : > { %v815_v7 = vmul.f32 %v814_v23, %v3707_v56  ;;  %v2706_v23 = vor.u32 %v3324_v18, %v2703_v19  ;;  %v3367_v18 = vld [vmem:[%s4395_s9 + $0x80] sm:$0xff] }
 0x5bb   : > { %v3375_v19 = vld [vmem:[%s4395_s9 + $0xc0] sm:$0xff] }
 0x5bc   : > { %v816_v36 = vadd.f32 1e-05, %v815_v7  ;;  %v2775_v7 = vld [vmem:[%s4393_s7 + $0xf0] sm:$0xf0] }
 0x5bd   : > { %v2778_v32 = vor.u32 %v3341_v26, %v2775_v7  ;;  %v3388_v26 = vld [vmem:[%s4395_s9 + $0x128] sm:$0xff] }
 0x5be   : > { %3524 = vrsqrt.f32 %v816_v36  ;;  %vm823_vm5 = vweird.f32 %v816_v36  ;;  %v3396_v7 = vld [vmem:[%s4395_s9 + $0x168] sm:$0xff] }
 0x5c4   : > { %v3525_v49 = vpop.eup %3524 }
 0x5c5   : > { %v818_v50 = vmul.f32 %v3525_v49, %v816_v36  ;;  %vm824_vm4 = vweird.f32 %v3525_v49  ;;  %v2786_v36 = vor.u32 %v3342_v29, %v2783_v30  ;;  %v3387_v29 = vld [vmem:[%s4395_s9 + $0x120] sm:$0xff] }
 0x5c6   : > { %vm825_vm6 = vmor %vm823_vm5, %vm824_vm4  ;;  %v3395_v30 = vld [vmem:[%s4395_s9 + $0x160] sm:$0xff] }
 0x5c7   : > { %v819_v51 = vmul.f32 %v3525_v49, %v818_v50  ;;  %v3382_v50 = vld [vmem:[%s4395_s9 + $0xf8] sm:$0xff] }
 0x5c9   : > { %v820_v52 = vmul.f32 0.5, %v819_v51  ;;  %v3357_v51 = vld [vmem:[%s4395_s9 + $0x30] sm:$0xff] }
 0x5cb   : > { %v821_v53 = vsub.f32 1.5, %v820_v52  ;;  %v3365_v52 = vld [vmem:[%s4395_s9 + $0x70] sm:$0xff] }
 0x5cd   : > { %v822_v54 = vmul.f32 %v3525_v49, %v821_v53  ;;  %v3373_v53 = vld [vmem:[%s4395_s9 + $0xb0] sm:$0xff] }
 0x5cf   : > { %v826_v57 = vsel %vm825_vm6, %v3525_v49, %v822_v54  ;;  %v3374_v49 = vld [vmem:[%s4395_s9 + $0xb8] sm:$0xff]  ;;  %v3381_v54 = vld [vmem:[%s4395_s9 + $0xf0] sm:$0xff] }
 0x5d0   : > { %v827_v2 = vmul.f32 %v826_v57, %v3710_v59  ;;  %v2765_v59 = vld [vmem:[%s4393_s7 + $0xa8] sm:$0xf] }
 0x5d1   : > { %v2766_v12 = vor.u32 %v3348_v3, %v2765_v59  ;;  %v3364_v57 = vld [vmem:[%s4395_s9 + $0x68] sm:$0xff]  ;;  %v3362_v59 = vld [vmem:[%s4395_s9 + $0x58] sm:$0xff] }
 0x5d2   : > { %v831_v60 = vmul.f32 %v3501_v55, %v827_v2  ;;  %v3356_v55 = vld [vmem:[%s4395_s9 + $0x28] sm:$0xff]  ;;  %v3370_v3 = vld [vmem:[%s4395_s9 + $0x98] sm:$0xff] }
 0x5d3   : > { %v3380_v2 = vld [vmem:[%s4395_s9 + $0xe8] sm:$0xff] }
 0x5d4   : > { %v3834_v1 = vadd.f32 %v3502_v58, %v831_v60  ;;  %v3372_v58 = vld [vmem:[%s4395_s9 + $0xa8] sm:$0xff]  ;;  %v3355_v60 = vld [vmem:[%s4395_s9 + $0x20] sm:$0xff] }
 0x5d6   : > { %v3847_v6 = vpack.c.bf16 %v3834_v1, %v3834_v1 }
 0x5d8   : > { %2787 = vmatmul.msk.bf16.vlgmr.msrb.gmra.mxu0 %vm459_vm0, %v3847_v6  ;;  %2788 = vmatmul.msk.bf16.vlgmr.msrb.gmra.mxu1 %vm459_vm0, %v3847_v6 }
 0x5d9   : > { %2789 = vmatmul.msk.bf16.vlgmr.msrb.gmra.mxu3 %vm459_vm0, %v3847_v6  ;;  %2790 = vmatmul.msk.bf16.vlgmr.msra.gmra.mxu2 %vm459_vm0, %v3847_v6 }
 0x5da   : > { %1178 = vmatpush.bf16.msrb.mxu0 %v2758_v8  ;;  %1191 = vmatpush.bf16.msrb.mxu1 %v2762_v9  ;;  %v3361_v8 = vld [vmem:[%s4395_s9 + $0x50] sm:$0xff] }
 0x5db   : > { %1204 = vmatpush.bf16.msrb.mxu3 %v2766_v12  ;;  %1217 = vmatpush.bf16.msra.mxu2 %v2770_v13  ;;  %v3369_v9 = vld [vmem:[%s4395_s9 + $0x90] sm:$0xff]  ;;  %v3368_v12 = vld [vmem:[%s4395_s9 + $0x88] sm:$0xff] }
 0x5dc   : > { %v3376_v13 = vld [vmem:[%s4395_s9 + $0xc8] sm:$0xff] }
 0x5de   : > { %1179 = vmatpush.bf16.msrb.mxu0 %v2694_v20  ;;  %1192 = vmatpush.bf16.msrb.mxu1 %v2698_v21  ;;  %v3406_v20 = vld [vmem:[%s4395_s9 + $0x1b8] sm:$0xff] }
 0x5df   : > { %1205 = vmatpush.bf16.msrb.mxu3 %v2702_v22  ;;  %1218 = vmatpush.bf16.msra.mxu2 %v2706_v23  ;;  %v3414_v21 = vld [vmem:[%s4395_s9 + $0x1f8] sm:$0xff]  ;;  %v3389_v22 = vld [vmem:[%s4395_s9 + $0x130] sm:$0xff] }
 0x5e0   : > { %v3397_v23 = vld [vmem:[%s4395_s9 + $0x170] sm:$0xff] }
 0x5e8   : > { %2791 = vmatmul.msk.bf16.vlgmr.msra.gmra.mxu0 %vm459_vm0, %v3847_v6  ;;  %2792 = vmatmul.msk.bf16.vlgmr.msra.gmra.mxu1 %vm459_vm0, %v3847_v6 }
 0x5e9   : > { %2793 = vmatmul.msk.bf16.vlgmr.msra.gmra.mxu3 %vm459_vm0, %v3847_v6  ;;  %2794 = vmatmul.msk.bf16.vlgmr.msrb.gmra.mxu2 %vm459_vm0, %v3847_v6 }
 0x5ea   : > { %1230 = vmatpush.bf16.msra.mxu0 %v2774_v31  ;;  %1243 = vmatpush.bf16.msra.mxu1 %v2778_v32  ;;  %v3403_v31 = vld [vmem:[%s4395_s9 + $0x1a0] sm:$0xff] }
 0x5eb   : > { %1256 = vmatpush.bf16.msra.mxu3 %v2782_v35  ;;  %1269 = vmatpush.bf16.msrb.mxu2 %v2786_v36  ;;  %v3411_v32 = vld [vmem:[%s4395_s9 + $0x1e0] sm:$0xff]  ;;  %v3385_v35 = vld [vmem:[%s4395_s9 + $0x110] sm:$0xff] }
 0x5ec   : > { %v3393_v36 = vld [vmem:[%s4395_s9 + $0x150] sm:$0xff] }
 0x5ee   : > { %1231 = vmatpush.bf16.msra.mxu0 %v2710_v43  ;;  %1244 = vmatpush.bf16.msra.mxu1 %v2714_v44  ;;  %v3383_v43 = vld [vmem:[%s4395_s9 + $0x100] sm:$0xff] }
 0x5ef   : > { %1257 = vmatpush.bf16.msra.mxu3 %v2718_v45  ;;  %1270 = vmatpush.bf16.msrb.mxu2 %v2722_v46  ;;  %v3391_v44 = vld [vmem:[%s4395_s9 + $0x140] sm:$0xff]  ;;  %v3400_v45 = vld [vmem:[%s4395_s9 + $0x188] sm:$0xff] }
 0x5f0   : > { %v3408_v46 = vld [vmem:[%s4395_s9 + $0x1c8] sm:$0xff] }
 0x5f8   : > { %2795 = vmatmul.msk.bf16.vlgmr.msrb.gmra.mxu0 %vm459_vm0, %v3847_v6  ;;  %2796 = vmatmul.msk.bf16.vlgmr.msrb.gmra.mxu1 %vm459_vm0, %v3847_v6 }
 0x5f9   : > { %2797 = vmatmul.msk.bf16.vlgmr.msrb.gmra.mxu3 %vm459_vm0, %v3847_v6  ;;  %2798 = vmatmul.msk.bf16.vlgmr.msra.gmra.mxu2 %vm459_vm0, %v3847_v6 }
 0x5fa   : > { %2336 = vmatpush.bf16.msrb.mxu0 %v3358_v47  ;;  %2349 = vmatpush.bf16.msrb.mxu1 %v3366_v48  ;;  %v3399_v47 = vld [vmem:[%s4395_s9 + $0x180] sm:$0xff] }
 0x5fb   : > { %2362 = vmatpush.bf16.msrb.mxu3 %v3374_v49  ;;  %2375 = vmatpush.bf16.msra.mxu2 %v3382_v50  ;;  %v3407_v48 = vld [vmem:[%s4395_s9 + $0x1c0] sm:$0xff] }
 0x5fc   : > { %v4148_v49 = vld [vmem:[%s4394_s8] sm:$0xff] }
 0x5fd   : > { %v873_v50 = vperm.slane %v4148_v49, 0 }
 0x5fe   : > { %2337 = vmatpush.bf16.msrb.mxu0 %v3357_v51  ;;  %2350 = vmatpush.bf16.msrb.mxu1 %v3365_v52  ;;  %v874_v51 = vperm.slane %v4148_v49, 1 }
 0x5ff   : > { %2363 = vmatpush.bf16.msrb.mxu3 %v3373_v53  ;;  %2376 = vmatpush.bf16.msra.mxu2 %v3381_v54 }
 0x602   : > { %2338 = vmatpush.bf16.msrb.mxu0 %v3356_v55  ;;  %2351 = vmatpush.bf16.msrb.mxu1 %v3364_v57 }
 0x603   : > { %2364 = vmatpush.bf16.msrb.mxu3 %v3372_v58  ;;  %2377 = vmatpush.bf16.msra.mxu2 %v3380_v2  ;;  %v875_v2 = vperm.slane %v4148_v49, 2 }
 0x606   : > { %2339 = vmatpush.bf16.msrb.mxu0 %v3355_v60  ;;  %2352 = vmatpush.bf16.msrb.mxu1 %v3363_v61  ;;  %v876_v60 = vperm.slane %v4148_v49, 3  ;;  %v3422_v61 = vld [vmem:[%s4395_s9 + $0x238] sm:$0xff] }
 0x607   : > { %2365 = vmatpush.bf16.msrb.mxu3 %v3371_v62  ;;  %2378 = vmatpush.bf16.msra.mxu2 %v3379_v63  ;;  %v3430_v62 = vld [vmem:[%s4395_s9 + $0x278] sm:$0xff] }
 0x608   : > { %2799 = vmatmul.msk.bf16.vlgmr.msra.gmra.mxu0 %vm459_vm0, %v3847_v6  ;;  %2800 = vmatmul.msk.bf16.vlgmr.msra.gmra.mxu1 %vm459_vm0, %v3847_v6 }
 0x609   : > { %2801 = vmatmul.msk.bf16.vlgmr.msra.gmra.mxu3 %vm459_vm0, %v3847_v6  ;;  %2802 = vmatmul.msk.bf16.vlgmr.msrb.gmra.mxu2 %vm459_vm0, %v3847_v6  ;;  %v3377_v6 = vld [vmem:[%s4395_s9 + $0xd0] sm:$0xff] }
 0x60a   : > { %2340 = vmatpush.bf16.msrb.mxu0 %v3354_v0  ;;  %2353 = vmatpush.bf16.msrb.mxu1 %v3362_v59 }
 0x60b   : > { %2366 = vmatpush.bf16.msrb.mxu3 %v3370_v3  ;;  %2379 = vmatpush.bf16.msra.mxu2 %v3378_v4 }
 0x60e   : > { %2341 = vmatpush.bf16.msrb.mxu0 %v3353_v5  ;;  %2354 = vmatpush.bf16.msrb.mxu1 %v3361_v8 }
 0x60f   : > { %2367 = vmatpush.bf16.msrb.mxu3 %v3369_v9  ;;  %2380 = vmatpush.bf16.msra.mxu2 %v3377_v6  ;;  %v3421_v6 = vld [vmem:[%s4395_s9 + $0x230] sm:$0xff] }
 0x612   : > { %2342 = vmatpush.bf16.msrb.mxu0 %v3352_v10  ;;  %2355 = vmatpush.bf16.msrb.mxu1 %v3360_v11  ;;  %v3429_v10 = vld [vmem:[%s4395_s9 + $0x270] sm:$0xff] }
 0x613   : > { %2368 = vmatpush.bf16.msrb.mxu3 %v3368_v12  ;;  %2381 = vmatpush.bf16.msra.mxu2 %v3376_v13  ;;  %v3438_v13 = vld [vmem:[%s4395_s9 + $0x2b8] sm:$0xff] }
 0x616   : > { %2343 = vmatpush.bf16.msrb.mxu0 %v3351_v14  ;;  %2356 = vmatpush.bf16.msrb.mxu1 %v3359_v15  ;;  %v3446_v14 = vld [vmem:[%s4395_s9 + $0x2f8] sm:$0xff] }
 0x617   : > { %2369 = vmatpush.bf16.msrb.mxu3 %v3367_v18  ;;  %2382 = vmatpush.bf16.msra.mxu2 %v3375_v19  ;;  %v3428_v18 = vld [vmem:[%s4395_s9 + $0x268] sm:$0xff]  ;;  %v877_v19 = vperm.slane %v4148_v49, 4 }
 0x61a   : > { %2388 = vmatpush.bf16.msra.mxu0 %v3390_v16  ;;  %2401 = vmatpush.bf16.msra.mxu1 %v3398_v17  ;;  %v3420_v17 = vld [vmem:[%s4395_s9 + $0x228] sm:$0xff] }
 0x61b   : > { %2414 = vmatpush.bf16.msra.mxu3 %v3406_v20  ;;  %2427 = vmatpush.bf16.msrb.mxu2 %v3414_v21  ;;  %v878_v20 = vperm.slane %v4148_v49, 5 }
 0x61e   : > { %2389 = vmatpush.bf16.msra.mxu0 %v3389_v22  ;;  %2402 = vmatpush.bf16.msra.mxu1 %v3397_v23  ;;  %v3437_v23 = vld [vmem:[%s4395_s9 + $0x2b0] sm:$0xff] }
 0x61f   : > { %2415 = vmatpush.bf16.msra.mxu3 %v3405_v24  ;;  %2428 = vmatpush.bf16.msrb.mxu2 %v3413_v25  ;;  %v3445_v24 = vld [vmem:[%s4395_s9 + $0x2f0] sm:$0xff] }
 0x622   : > { %2390 = vmatpush.bf16.msra.mxu0 %v3388_v26  ;;  %2403 = vmatpush.bf16.msra.mxu1 %v3396_v7  ;;  %v3419_v7 = vld [vmem:[%s4395_s9 + $0x220] sm:$0xff] }
 0x623   : > { %2416 = vmatpush.bf16.msra.mxu3 %v3404_v27  ;;  %2429 = vmatpush.bf16.msrb.mxu2 %v3412_v28  ;;  %v3427_v27 = vld [vmem:[%s4395_s9 + $0x260] sm:$0xff] }
 0x626   : > { %2391 = vmatpush.bf16.msra.mxu0 %v3387_v29  ;;  %2404 = vmatpush.bf16.msra.mxu1 %v3395_v30 }
 0x627   : > { %2417 = vmatpush.bf16.msra.mxu3 %v3403_v31  ;;  %2430 = vmatpush.bf16.msrb.mxu2 %v3411_v32  ;;  %v3436_v32 = vld [vmem:[%s4395_s9 + $0x2a8] sm:$0xff] }
 0x62a   : > { %2392 = vmatpush.bf16.msra.mxu0 %v3386_v33  ;;  %2405 = vmatpush.bf16.msra.mxu1 %v3394_v34  ;;  %v3444_v33 = vld [vmem:[%s4395_s9 + $0x2e8] sm:$0xff]  ;;  %v879_v34 = vperm.slane %v4148_v49, 6 }
 0x62b   : > { %2418 = vmatpush.bf16.msra.mxu3 %v3402_v37  ;;  %2431 = vmatpush.bf16.msrb.mxu2 %v3410_v38  ;;  %v3418_v38 = vld [vmem:[%s4395_s9 + $0x218] sm:$0xff] }
 0x62e   : > { %2393 = vmatpush.bf16.msra.mxu0 %v3385_v35  ;;  %2406 = vmatpush.bf16.msra.mxu1 %v3393_v36  ;;  %v880_v35 = vperm.slane %v4148_v49, 7  ;;  %v3425_v49 = vld [vmem:[%s4395_s9 + $0x250] sm:$0xff] }
 0x62f   : > { %2419 = vmatpush.bf16.msra.mxu3 %v3401_v41  ;;  %2432 = vmatpush.bf16.msrb.mxu2 %v3409_v42  ;;  %v3435_v42 = vld [vmem:[%s4395_s9 + $0x2a0] sm:$0xff] }
 0x632   : > { %2394 = vmatpush.bf16.msra.mxu0 %v3384_v39  ;;  %2407 = vmatpush.bf16.msra.mxu1 %v3392_v40  ;;  %v3426_v39 = vld [vmem:[%s4395_s9 + $0x258] sm:$0xff] }
 0x633   : > { %2420 = vmatpush.bf16.msra.mxu3 %v3400_v45  ;;  %2433 = vmatpush.bf16.msrb.mxu2 %v3408_v46 }
 0x636   : > { %2395 = vmatpush.bf16.msra.mxu0 %v3383_v43  ;;  %2408 = vmatpush.bf16.msra.mxu1 %v3391_v44  ;;  %v3443_v43 = vld [vmem:[%s4395_s9 + $0x2e0] sm:$0xff] }
 0x637   : > { %2421 = vmatpush.bf16.msra.mxu3 %v3399_v47  ;;  %2434 = vmatpush.bf16.msrb.mxu2 %v3407_v48  ;;  %v3417_v48 = vld [vmem:[%s4395_s9 + $0x210] sm:$0xff] }
 0x655   : > { %v1077_v52 = vpop.f32.mrf.mxu0  ;;  %v1090_v53 = vpop.f32.mrf.mxu1 }
 0x656   : > { %v1078_v54 = vadd.f32 %v1077_v52, %v873_v50  ;;  %v1091_v55 = vadd.f32 %v1090_v53, %v874_v51  ;;  %v4221_v52 = vld [vmem:[%s4394_s8 + $0x8] sm:$0xff]  ;;  %v3434_v53 = vld [vmem:[%s4395_s9 + $0x298] sm:$0xff] }
 0x658   : > { %v1276_v57 = vmax.f32 %v1078_v54, 0.0  ;;  %v1277_v58 = vmax.f32 %v1091_v55, 0.0  ;;  %v3442_v54 = vld [vmem:[%s4395_s9 + $0x2d8] sm:$0xff] }
 0x65a   : > { %v1549_v63 = vpack.c.bf16 %v1276_v57, %v1276_v57  ;;  %v1550_v0 = vpack.c.bf16 %v1277_v58, %v1277_v58  ;;  %v3416_v58 = vld [vmem:[%s4395_s9 + $0x208] sm:$0xff] }
 0x65c   : > { %v1103_v59 = vpop.f32.mrf.mxu3  ;;  %v1116_v3 = vpop.f32.mrf.mxu2  ;;  %2344 = vmatmul.bf16.vlgmr.msrb.gmra.mxu0 %v1549_v63  ;;  %2357 = vmatmul.bf16.vlgmr.msrb.gmra.mxu1 %v1550_v0  ;;  %v3433_v0 = vld [vmem:[%s4395_s9 + $0x290] sm:$0xff] }
 0x65d   : > { %v1104_v4 = vadd.f32 %v1103_v59, %v875_v2  ;;  %v1117_v5 = vadd.f32 %v1116_v3, %v876_v60  ;;  %2440 = vmatpush.bf16.msrb.mxu0 %v3422_v61  ;;  %2453 = vmatpush.bf16.msrb.mxu1 %v3430_v62  ;;  %v1079_v8 = vpop.f32.mrf.mxu0  ;;  %v1092_v9 = vpop.f32.mrf.mxu1  ;;  %v3424_v2 = vld [vmem:[%s4395_s9 + $0x248] sm:$0xff]  ;;  %v881_v60 = vperm.slane %v4221_v52, 0  ;;  %v882_v61 = vperm.slane %v4221_v52, 1  ;;  %v3441_v59 = vld [vmem:[%s4395_s9 + $0x2d0] sm:$0xff] }
 0x65e   : > { %v3415_v9 = vld [vmem:[%s4395_s9 + $0x200] sm:$0xff] }
 0x65f   : > { %v1278_v11 = vmax.f32 %v1104_v4, 0.0  ;;  %v1279_v12 = vmax.f32 %v1117_v5, 0.0 }
 0x661   : > { %v1551_v15 = vpack.c.bf16 %v1278_v11, %v1278_v11  ;;  %v1552_v16 = vpack.c.bf16 %v1279_v12, %v1279_v12  ;;  %2441 = vmatpush.bf16.msrb.mxu0 %v3421_v6  ;;  %2454 = vmatpush.bf16.msrb.mxu1 %v3429_v10  ;;  %v3423_v6 = vld [vmem:[%s4395_s9 + $0x240] sm:$0xff]  ;;  %v3454_v10 = vld [vmem:[%s4395_s9 + $0x338] sm:$0xff] }
 0x662   : > { %v3462_v11 = vld [vmem:[%s4395_s9 + $0x378] sm:$0xff] }
 0x663   : > { %2370 = vmatmul.bf16.vlgmr.msrb.gmra.mxu3 %v1551_v15  ;;  %2383 = vmatmul.bf16.vlgmr.msra.gmra.mxu2 %v1552_v16  ;;  %v3440_v15 = vld [vmem:[%s4395_s9 + $0x2c8] sm:$0xff]  ;;  %v883_v16 = vperm.slane %v4221_v52, 2 }
 0x664   : > { %2466 = vmatpush.bf16.msrb.mxu3 %v3438_v13  ;;  %2479 = vmatpush.bf16.msra.mxu2 %v3446_v14  ;;  %v1105_v21 = vpop.f32.mrf.mxu3  ;;  %v1118_v22 = vpop.f32.mrf.mxu2  ;;  %v3432_v14 = vld [vmem:[%s4395_s9 + $0x288] sm:$0xff] }
 0x665   : > { %2442 = vmatpush.bf16.msrb.mxu0 %v3420_v17  ;;  %2455 = vmatpush.bf16.msrb.mxu1 %v3428_v18  ;;  %v1129_v25 = vpop.f32.mrf.mxu0  ;;  %v1142_v26 = vpop.f32.mrf.mxu1  ;;  %v884_v17 = vperm.slane %v4221_v52, 3  ;;  %v3461_v21 = vld [vmem:[%s4395_s9 + $0x370] sm:$0xff] }
 0x666   : > { %v1130_v28 = vadd.f32 %v1129_v25, %v877_v19  ;;  %v1143_v29 = vadd.f32 %v1142_v26, %v878_v20  ;;  %v3453_v20 = vld [vmem:[%s4395_s9 + $0x330] sm:$0xff]  ;;  %v3439_v25 = vld [vmem:[%s4395_s9 + $0x2c0] sm:$0xff] }
 0x668   : > { %v1280_v30 = vmax.f32 %v1130_v28, 0.0  ;;  %v1281_v31 = vmax.f32 %v1143_v29, 0.0  ;;  %2467 = vmatpush.bf16.msrb.mxu3 %v3437_v23  ;;  %2480 = vmatpush.bf16.msra.mxu2 %v3445_v24  ;;  %v3431_v24 = vld [vmem:[%s4395_s9 + $0x280] sm:$0xff]  ;;  %v3470_v29 = vld [vmem:[%s4395_s9 + $0x3b8] sm:$0xff] }
 0x669   : > { %2443 = vmatpush.bf16.msrb.mxu0 %v3419_v7  ;;  %2456 = vmatpush.bf16.msrb.mxu1 %v3427_v27 }
 0x66a   : > { %v1553_v36 = vpack.c.bf16 %v1280_v30, %v1280_v30  ;;  %v1554_v37 = vpack.c.bf16 %v1281_v31, %v1281_v31  ;;  %v3478_v30 = vld [vmem:[%s4395_s9 + $0x3f8] sm:$0xff] }
 0x66c   : > { %2468 = vmatpush.bf16.msrb.mxu3 %v3436_v32  ;;  %2481 = vmatpush.bf16.msra.mxu2 %v3444_v33  ;;  %v1155_v40 = vpop.f32.mrf.mxu3  ;;  %v1168_v41 = vpop.f32.mrf.mxu2  ;;  %v3452_v33 = vld [vmem:[%s4395_s9 + $0x328] sm:$0xff] }
 0x66d   : > { %v1156_v44 = vadd.f32 %v1155_v40, %v879_v34  ;;  %v1169_v45 = vadd.f32 %v1168_v41, %v880_v35  ;;  %2396 = vmatmul.bf16.vlgmr.msra.gmra.mxu0 %v1553_v36  ;;  %2409 = vmatmul.bf16.vlgmr.msra.gmra.mxu1 %v1554_v37  ;;  %v1131_v46 = vpop.f32.mrf.mxu0  ;;  %v1144_v47 = vpop.f32.mrf.mxu1  ;;  %v3460_v34 = vld [vmem:[%s4395_s9 + $0x368] sm:$0xff]  ;;  %v3469_v37 = vld [vmem:[%s4395_s9 + $0x3b0] sm:$0xff]  ;;  %v3459_v40 = vld [vmem:[%s4395_s9 + $0x360] sm:$0xff] }
 0x66e   : > { %2444 = vmatpush.bf16.msrb.mxu0 %v3418_v38  ;;  %2457 = vmatpush.bf16.msrb.mxu1 %v3426_v39  ;;  %v3477_v38 = vld [vmem:[%s4395_s9 + $0x3f0] sm:$0xff]  ;;  %v3451_v39 = vld [vmem:[%s4395_s9 + $0x320] sm:$0xff]  ;;  %v3476_v46 = vld [vmem:[%s4395_s9 + $0x3e8] sm:$0xff] }
 0x66f   : > { %v1282_v50 = vmax.f32 %v1156_v44, 0.0  ;;  %v1283_v51 = vmax.f32 %v1169_v45, 0.0  ;;  %v3468_v45 = vld [vmem:[%s4395_s9 + $0x3a8] sm:$0xff]  ;;  %v3450_v47 = vld [vmem:[%s4395_s9 + $0x318] sm:$0xff] }
 0x670   : > { %2469 = vmatpush.bf16.msrb.mxu3 %v3435_v42  ;;  %2482 = vmatpush.bf16.msra.mxu2 %v3443_v43 }
 0x671   : > { %v1555_v55 = vpack.c.bf16 %v1282_v50, %v1282_v50  ;;  %v1556_v57 = vpack.c.bf16 %v1283_v51, %v1283_v51  ;;  %v3475_v50 = vld [vmem:[%s4395_s9 + $0x3e0] sm:$0xff]  ;;  %v3449_v51 = vld [vmem:[%s4395_s9 + $0x310] sm:$0xff] }
 0x672   : > { %2445 = vmatpush.bf16.msrb.mxu0 %v3417_v48  ;;  %2458 = vmatpush.bf16.msrb.mxu1 %v3425_v49  ;;  %v3458_v48 = vld [vmem:[%s4395_s9 + $0x358] sm:$0xff]  ;;  %v3467_v49 = vld [vmem:[%s4395_s9 + $0x3a0] sm:$0xff] }
 0x673   : > { %2422 = vmatmul.bf16.vlgmr.msra.gmra.mxu3 %v1555_v55  ;;  %2435 = vmatmul.bf16.vlgmr.msrb.gmra.mxu2 %v1556_v57  ;;  %v886_v55 = vperm.slane %v4221_v52, 5 }
 0x674   : > { %2470 = vmatpush.bf16.msrb.mxu3 %v3434_v53  ;;  %2483 = vmatpush.bf16.msra.mxu2 %v3442_v54  ;;  %v1157_v62 = vpop.f32.mrf.mxu3  ;;  %v1170_v63 = vpop.f32.mrf.mxu2  ;;  %v3457_v53 = vld [vmem:[%s4395_s9 + $0x350] sm:$0xff]  ;;  %v885_v54 = vperm.slane %v4221_v52, 4 }
 0x675   : > { %v1181_v3 = vpop.f32.mrf.mxu0  ;;  %v1194_v4 = vpop.f32.mrf.mxu1  ;;  %v3474_v62 = vld [vmem:[%s4395_s9 + $0x3d8] sm:$0xff]  ;;  %v3448_v63 = vld [vmem:[%s4395_s9 + $0x308] sm:$0xff] }
 0x676   : > { %2446 = vmatpush.bf16.msrb.mxu0 %v3416_v58  ;;  %2459 = vmatpush.bf16.msrb.mxu1 %v3424_v2  ;;  %v1182_v5 = vadd.f32 %v1181_v3, %v881_v60  ;;  %v1195_v8 = vadd.f32 %v1194_v4, %v882_v61  ;;  %v3466_v61 = vld [vmem:[%s4395_s9 + $0x398] sm:$0xff]  ;;  %v3465_v4 = vld [vmem:[%s4395_s9 + $0x390] sm:$0xff] }
 0x678   : > { %v1284_v12 = vmax.f32 %v1182_v5, 0.0  ;;  %v1285_v13 = vmax.f32 %v1195_v8, 0.0  ;;  %2471 = vmatpush.bf16.msrb.mxu3 %v3433_v0  ;;  %2484 = vmatpush.bf16.msra.mxu2 %v3441_v59  ;;  %v3456_v0 = vld [vmem:[%s4395_s9 + $0x348] sm:$0xff]  ;;  %v3473_v5 = vld [vmem:[%s4395_s9 + $0x3d0] sm:$0xff]  ;;  %v887_v8 = vperm.slane %v4221_v52, 6 }
 0x67a   : > { %v1557_v18 = vpack.c.bf16 %v1284_v12, %v1284_v12  ;;  %v1558_v19 = vpack.c.bf16 %v1285_v13, %v1285_v13  ;;  %2447 = vmatpush.bf16.msrb.mxu0 %v3415_v9  ;;  %2460 = vmatpush.bf16.msrb.mxu1 %v3423_v6  ;;  %v888_v9 = vperm.slane %v4221_v52, 7  ;;  %v3447_v6 = vld [vmem:[%s4395_s9 + $0x300] sm:$0xff]  ;;  %v3464_v52 = vld [vmem:[%s4395_s9 + $0x388] sm:$0xff] }
 0x67c   : > { %2472 = vmatpush.bf16.msrb.mxu3 %v3432_v14  ;;  %2485 = vmatpush.bf16.msra.mxu2 %v3440_v15  ;;  %v1207_v22 = vpop.f32.mrf.mxu3  ;;  %v1220_v23 = vpop.f32.mrf.mxu2  ;;  %v3472_v15 = vld [vmem:[%s4395_s9 + $0x3c8] sm:$0xff] }
 0x67d   : > { %v1208_v26 = vadd.f32 %v1207_v22, %v883_v16  ;;  %v1221_v7 = vadd.f32 %v1220_v23, %v884_v17  ;;  %2448 = vmatmul.bf16.vlgmr.msrb.gmra.mxu0 %v1557_v18  ;;  %2461 = vmatmul.bf16.vlgmr.msrb.gmra.mxu1 %v1558_v19  ;;  %v1183_v27 = vpop.f32.mrf.mxu0  ;;  %v1196_v28 = vpop.f32.mrf.mxu1 }
 0x67e   : > { %2492 = vmatpush.bf16.msra.mxu0 %v3454_v10  ;;  %2505 = vmatpush.bf16.msra.mxu1 %v3462_v11  ;;  %v3455_v10 = vld [vmem:[%s4395_s9 + $0x340] sm:$0xff] }
 0x67f   : > { %v1286_v31 = vmax.f32 %v1208_v26, 0.0  ;;  %v1287_v32 = vmax.f32 %v1221_v7, 0.0 }
 0x680   : > { %2473 = vmatpush.bf16.msrb.mxu3 %v3431_v24  ;;  %2486 = vmatpush.bf16.msra.mxu2 %v3439_v25 }
 0x681   : > { %v1559_v35 = vpack.c.bf16 %v1286_v31, %v1286_v31  ;;  %v1560_v36 = vpack.c.bf16 %v1287_v32, %v1287_v32 }
 0x682   : > { %2493 = vmatpush.bf16.msra.mxu0 %v3453_v20  ;;  %2506 = vmatpush.bf16.msra.mxu1 %v3461_v21  ;;  %v3463_v20 = vld [vmem:[%s4395_s9 + $0x380] sm:$0xff] }
 0x683   : > { %2474 = vmatmul.bf16.vlgmr.msrb.gmra.mxu3 %v1559_v35  ;;  %2487 = vmatmul.bf16.vlgmr.msra.gmra.mxu2 %v1560_v36  ;;  %v3471_v21 = vld [vmem:[%s4395_s9 + $0x3c0] sm:$0xff] }
 0x684   : > { %2518 = vmatpush.bf16.msra.mxu3 %v3470_v29  ;;  %2531 = vmatpush.bf16.msrb.mxu2 %v3478_v30  ;;  %v1209_v41 = vpop.f32.mrf.mxu3  ;;  %v1222_v42 = vpop.f32.mrf.mxu2  ;;  %v3503_v35 = vld [vmem:[%s4396_s10] ss:$0 sm:$0xff] }
 0x685   : > { %v1233_v43 = vpop.f32.mrf.mxu0  ;;  %v1246_v44 = vpop.f32.mrf.mxu1 }
 0x686   : > { %2494 = vmatpush.bf16.msra.mxu0 %v3452_v33  ;;  %2507 = vmatpush.bf16.msra.mxu1 %v3460_v34  ;;  %v1234_v59 = vadd.f32 %v1233_v43, %v885_v54  ;;  %v1247_v3 = vadd.f32 %v1246_v44, %v886_v55 }
 0x688   : > { %2519 = vmatpush.bf16.msra.mxu3 %v3469_v37  ;;  %2532 = vmatpush.bf16.msrb.mxu2 %v3477_v38  ;;  %v1288_v11 = vmax.f32 %v1234_v59, 0.0  ;;  %v1289_v12 = vmax.f32 %v1247_v3, 0.0 }
 0x68a   : > { %2495 = vmatpush.bf16.msra.mxu0 %v3451_v39  ;;  %2508 = vmatpush.bf16.msra.mxu1 %v3459_v40  ;;  %v1561_v18 = vpack.c.bf16 %v1288_v11, %v1288_v11  ;;  %v1562_v19 = vpack.c.bf16 %v1289_v12, %v1289_v12 }
 0x68c   : > { %2520 = vmatpush.bf16.msra.mxu3 %v3468_v45  ;;  %2533 = vmatpush.bf16.msrb.mxu2 %v3476_v46  ;;  %v1259_v57 = vpop.f32.mrf.mxu3  ;;  %v1272_v58 = vpop.f32.mrf.mxu2 }
 0x68d   : > { %v1235_v2 = vpop.f32.mrf.mxu0  ;;  %v1248_v60 = vpop.f32.mrf.mxu1  ;;  %v1260_v16 = vadd.f32 %v1259_v57, %v887_v8  ;;  %v1273_v17 = vadd.f32 %v1272_v58, %v888_v9 }
 0x68e   : > { %2496 = vmatpush.bf16.msra.mxu0 %v3450_v47  ;;  %2509 = vmatpush.bf16.msra.mxu1 %v3458_v48 }
 0x68f   : > { %v1290_v22 = vmax.f32 %v1260_v16, 0.0  ;;  %v1291_v23 = vmax.f32 %v1273_v17, 0.0 }
 0x690   : > { %2521 = vmatpush.bf16.msra.mxu3 %v3467_v49  ;;  %2534 = vmatpush.bf16.msrb.mxu2 %v3475_v50 }
 0x691   : > { %v1563_v24 = vpack.c.bf16 %v1290_v22, %v1290_v22  ;;  %v1564_v25 = vpack.c.bf16 %v1291_v23, %v1291_v23 }
 0x692   : > { %2497 = vmatpush.bf16.msra.mxu0 %v3449_v51  ;;  %2510 = vmatpush.bf16.msra.mxu1 %v3457_v53 }
 0x694   : > { %2522 = vmatpush.bf16.msra.mxu3 %v3466_v61  ;;  %2535 = vmatpush.bf16.msrb.mxu2 %v3474_v62  ;;  %v1261_v13 = vpop.f32.mrf.mxu3  ;;  %v1274_v14 = vpop.f32.mrf.mxu2 }
 0x696   : > { %2498 = vmatpush.bf16.msra.mxu0 %v3448_v63  ;;  %2511 = vmatpush.bf16.msra.mxu1 %v3456_v0 }
 0x698   : > { %2523 = vmatpush.bf16.msra.mxu3 %v3465_v4  ;;  %2536 = vmatpush.bf16.msrb.mxu2 %v3473_v5 }
 0x69a   : > { %2499 = vmatpush.bf16.msra.mxu0 %v3447_v6  ;;  %2512 = vmatpush.bf16.msra.mxu1 %v3455_v10 }
 0x69c   : > { %2524 = vmatpush.bf16.msra.mxu3 %v3464_v52  ;;  %2537 = vmatpush.bf16.msrb.mxu2 %v3472_v15 }
 0x69d   : > { %2500 = vmatmul.bf16.vlgmr.msra.gmra.mxu0 %v1561_v18  ;;  %2513 = vmatmul.bf16.vlgmr.msra.gmra.mxu1 %v1562_v19 }
 0x6a0   : > { %2525 = vmatpush.bf16.msra.mxu3 %v3463_v20  ;;  %2538 = vmatpush.bf16.msrb.mxu2 %v3471_v21 }
 0x6a3   : > { %2526 = vmatmul.bf16.vlgmr.msra.gmra.mxu3 %v1563_v24  ;;  %2539 = vmatmul.bf16.vlgmr.msrb.gmra.mxu2 %v1564_v25 }
 0x6d9   : > { %v2345_v26 = vpop.f32.mrf.mxu0  ;;  %v2358_v7 = vpop.f32.mrf.mxu1 }
 0x6da   : > { %v2346_v38 = vadd.f32 %v3503_v35, %v2345_v26 }
 0x6dc   : > { %v2359_v41 = vadd.f32 %v2358_v7, %v2346_v38 }
 0x6e1   : > { %v2347_v27 = vpop.f32.mrf.mxu0  ;;  %v2360_v28 = vpop.f32.mrf.mxu1 }
 0x6e2   : > { %v3504_v27 = vld [vmem:[%s4397_s11] ss:$0 sm:$0xff] }
 0x6e6   : > { %v2371_v29 = vpop.f32.mrf.mxu3  ;;  %v2384_v30 = vpop.f32.mrf.mxu2 }
 0x6e7   : > { %v2372_v44 = vadd.f32 %v2371_v29, %v2359_v41 }
 0x6e9   : > { %v2385_v47 = vadd.f32 %v2384_v30, %v2372_v44 }
 0x6ea   : > { %v2397_v31 = vpop.f32.mrf.mxu0  ;;  %v2410_v32 = vpop.f32.mrf.mxu1 }
 0x6eb   : > { %v2398_v50 = vadd.f32 %v2397_v31, %v2385_v47 }
 0x6ed   : > { %v2411_v54 = vadd.f32 %v2410_v32, %v2398_v50 }
 0x6ee   : > { %v2373_v33 = vpop.f32.mrf.mxu3  ;;  %v2386_v34 = vpop.f32.mrf.mxu2 }
 0x6f2   : > { %v2399_v36 = vpop.f32.mrf.mxu0  ;;  %v2412_v37 = vpop.f32.mrf.mxu1 }
 0x6f6   : > { %v2423_v39 = vpop.f32.mrf.mxu3  ;;  %v2436_v40 = vpop.f32.mrf.mxu2 }
 0x6f7   : > { %v2424_v55 = vadd.f32 %v2423_v39, %v2411_v54 }
 0x6f9   : > { %v2437_v57 = vadd.f32 %v2436_v40, %v2424_v55 }
 0x6fa   : > { %v2449_v42 = vpop.f32.mrf.mxu0  ;;  %v2462_v43 = vpop.f32.mrf.mxu1 }
 0x6fb   : > { %v2450_v60 = vadd.f32 %v2449_v42, %v2437_v57 }
 0x6fd   : > { %v2463_v61 = vadd.f32 %v2462_v43, %v2450_v60 }
 0x6fe   : > { %v2425_v45 = vpop.f32.mrf.mxu3  ;;  %v2438_v46 = vpop.f32.mrf.mxu2 }
 0x702   : > { %v2451_v48 = vpop.f32.mrf.mxu0  ;;  %v2464_v49 = vpop.f32.mrf.mxu1 }
 0x706   : > { %v2475_v51 = vpop.f32.mrf.mxu3  ;;  %v2488_v53 = vpop.f32.mrf.mxu2 }
 0x707   : > { %v2476_v0 = vadd.f32 %v2475_v51, %v2463_v61 }
 0x709   : > { %v2489_v59 = vadd.f32 %v2488_v53, %v2476_v0 }
 0x70e   : > { %v2477_v58 = vpop.f32.mrf.mxu3  ;;  %v2490_v2 = vpop.f32.mrf.mxu2 }
 0x71a   : > { %v2501_v62 = vpop.f32.mrf.mxu0  ;;  %v2514_v63 = vpop.f32.mrf.mxu1 }
 0x71b   : > { %v2502_v3 = vadd.f32 %v2501_v62, %v2489_v59 }
 0x71d   : > { %v2515_v8 = vadd.f32 %v2514_v63, %v2502_v3 }
 0x722   : > { %v2503_v4 = vpop.f32.mrf.mxu0  ;;  %v2516_v5 = vpop.f32.mrf.mxu1 }
 0x726   : > { %v2527_v9 = vpop.f32.mrf.mxu3  ;;  %v2540_v6 = vpop.f32.mrf.mxu2 }
 0x727   : > { %v2528_v10 = vadd.f32 %v2527_v9, %v2515_v8 }
 0x729   : > { %v2541_v11 = vadd.f32 %v2540_v6, %v2528_v10 }
 0x72b   : > { %v2544_v12 = vadd.f32 %v2541_v11, %v3834_v1 }
 0x72d   : > { %v2547_v13 = vsel %vm459_vm0, %v2544_v12, 0.0 }
 0x72e   : > { %v2529_v14 = vpop.f32.mrf.mxu3  ;;  %v2542_v52 = vpop.f32.mrf.mxu2  ;;  %2548 = vadd.xlane.f32.xlu2 %v2547_v13 }
 0x7a1   : > { %v2549_v15 = vpop.xlane.xlu2 %2548 }
 0x7a2   : > { %v2550_v16 = vmul.f32 %v2549_v15, %v3707_v56 }
 0x7a4   : > { %v2551_v17 = vsub.f32 %v2544_v12, %v2550_v16 }
 0x7a6   : > { %v2552_v18 = vmul.f32 %v2551_v17, %v2551_v17 }
 0x7a8   : > { %v2553_v19 = vsel %vm459_vm0, %v2552_v18, 0.0 }
 0x7a9   : > { %2554 = vadd.xlane.f32.xlu0 %v2553_v19 }
 0x81c   : > { %v2555_v20 = vpop.xlane.xlu0 %2554 }
 0x81d   : > { %v2556_v21 = vmul.f32 %v2555_v20, %v3707_v56  ;;  %v3505_v56 = vld [vmem:[%s4398_s12] ss:$0 sm:$0xff] }
 0x81f   : > { %v2557_v22 = vadd.f32 1e-05, %v2556_v21 }
 0x821   : > { %3526 = vrsqrt.f32 %v2557_v22  ;;  %vm2564_vm8 = vweird.f32 %v2557_v22 }
 0x827   : > { %v3527_v1 = vpop.eup %3526 }
 0x828   : > { %v2559_v23 = vmul.f32 %v3527_v1, %v2557_v22  ;;  %vm2565_vm7 = vweird.f32 %v3527_v1 }
 0x829   : > { %vm2566_vm9 = vmor %vm2564_vm8, %vm2565_vm7 }
 0x82a   : > { %v2560_v24 = vmul.f32 %v3527_v1, %v2559_v23 }
 0x82c   : > { %v2561_v25 = vmul.f32 0.5, %v2560_v24 }
 0x82e   : > { %v2562_v26 = vsub.f32 1.5, %v2561_v25 }
 0x830   : > { %v2563_v7 = vmul.f32 %v3527_v1, %v2562_v26 }
 0x832   : > { %v2567_v28 = vsel %vm2566_vm9, %v3527_v1, %v2563_v7 }
 0x833   : > { %v2568_v29 = vmul.f32 %v2567_v28, %v2551_v17 }
 0x835   : > { %v2572_v30 = vmul.f32 %v3504_v27, %v2568_v29 }
 0x837   : > { %v2576_v31 = vadd.f32 %v3505_v56, %v2572_v30 }
 0x839   : > { %2577 = vst.msk [vmem:[%s435_s21] sm:$0xff] %vm459_vm0, %v2576_v31 }
 0x83a PF: > { %s23_s25 = sadd.s32 1, %s3534_s25  }
 0x83b   : > { %p20_p4 = scmp.ge.s32.totalorder %s23_s25, 4  }
 0x83d   :  { %22 = sbr.rel (!%p20_p4) target bundleno = 1 (0x1), region = 102 }

// kernel: transformer_forward.14
= control target key start
LH: loop header
LB: loop body
LE: loop exit
PB: predicated region body
PF: predicated region fallthrough
CT: control target
= control target key end

     0   :  { %s5415_s0 = inlined_call_operand.vmem [shape: f32[2,8,32], index: 0, kind: input, shape index: {}]   ;;  %s5416_s1 = inlined_call_operand.vmem [shape: f32[2,8,32], index: 1, kind: input, shape index: {}]   ;;  %s5417_s2 = inlined_call_operand.vmem [shape: f32[8,8], index: 2, kind: input, shape index: {}]   ;;  %s5418_s3 = inlined_call_operand.vmem [shape: bf16[32,96], index: 3, kind: input, shape index: {}]   ;;  %s5419_s4 = inlined_call_operand.vmem [shape: f32[1,96], index: 4, kind: input, shape index: {}]   ;;  %s5420_s5 = inlined_call_operand.vmem [shape: bf16[32,32], index: 5, kind: input, shape index: {}]   ;;  %s5421_s6 = inlined_call_operand.vmem [shape: f32[1,32], index: 6, kind: input, shape index: {}]   ;;  %s5422_s7 = inlined_call_operand.vmem [shape: f32[1,32], index: 7, kind: input, shape index: {}]   ;;  %s5423_s8 = inlined_call_operand.vmem [shape: f32[1,32], index: 8, kind: input, shape index: {}]   ;;  %s5424_s9 = inlined_call_operand.vmem [shape: bf16[32,32], index: 9, kind: input, shape index: {}]   ;;  %s5425_s10 = inlined_call_operand.vmem [shape: f32[1,32], index: 10, kind: input, shape index: {}]   ;;  %s5426_s11 = inlined_call_operand.vmem [shape: bf16[32,64], index: 11, kind: input, shape index: {}]   ;;  %s5427_s12 = inlined_call_operand.vmem [shape: f32[1,64], index: 12, kind: input, shape index: {}]   ;;  %s5428_s13 = inlined_call_operand.vmem [shape: bf16[32,32], index: 13, kind: input, shape index: {}]   ;;  %s5429_s14 = inlined_call_operand.vmem [shape: f32[1,32], index: 14, kind: input, shape index: {}]   ;;  %s5430_s15 = inlined_call_operand.vmem [shape: f32[1,32], index: 15, kind: input, shape index: {}]   ;;  %s5431_s16 = inlined_call_operand.vmem [shape: f32[1,32], index: 16, kind: input, shape index: {}]   ;;  %s5432_s17 = inlined_call_operand.vmem [shape: bf16[32,2048], index: 17, kind: input, shape index: {}]   ;;  %s5433_s18 = inlined_call_operand.vmem [shape: f32[1,2048], index: 18, kind: input, shape index: {}]   ;;  %s5434_s19 = inlined_call_operand.vmem [shape: bf16[2048,32], index: 19, kind: input, shape index: {}]   ;;  %s5435_s20 = inlined_call_operand.vmem [shape: f32[1,32], index: 20, kind: input, shape index: {}]   ;;  %s5436_s21 = inlined_call_operand.vmem [shape: f32[1,32], index: 21, kind: input, shape index: {}]   ;;  %s5437_s22 = inlined_call_operand.hbm [shape: f32[1,32], index: 22, kind: input, shape index: {}]   ;;  %s5438_s23 = inlined_call_operand.vmem [shape: f32[2,8,32], index: 23, kind: output, shape index: {}]  }
   0x1   :  { %5451 = sst [smem:[#allocation5_spill]] %s5415_s0 }
   0x2   :  { %5452 = sst [smem:[#allocation6_spill]] %s5416_s1 }
   0x3   :  { %5453 = sst [smem:[#allocation7_spill]] %s5417_s2 }
   0x4   :  { %5454 = sst [smem:[#allocation8_spill]] %s5418_s3 }
   0x5   :  { %5455 = sst [smem:[#allocation9_spill]] %s5419_s4 }
   0x6   :  { %5456 = sst [smem:[#allocation10_spill]] %s5420_s5 }
   0x7   :  { %5457 = sst [smem:[#allocation11_spill]] %s5421_s6 }
   0x8   :  { %5458 = sst [smem:[#allocation12_spill]] %s5422_s7 }
   0x9   :  { %28 = vsyncpa [#allocation3], 0  ;;  %s4525_s4 = smov 0  }
   0xa LB: > { %s3382_s30 = sadd.s32 4294967295, %s4390_s4   ;;  %p3384_p0 = scmp.ge.s32.totalorder %s4390_s4, 1  ;;  %s4390_s4 = sphi %s4525_s4, %s34_s4  }
   0xb   : > { %p558_p1 = scmp.lt.s32.totalorder %s4390_s4, 3  ;;  %s630_s5 = sshll.u32 %s5437_s22, 4  ;;  %s631_s5 = int_to_ptr.hbm [resolvable:$true] %s630_s5 }
   0xc   : > { %p4275_p3 = scmp.eq.s32.totalorder %s3382_s30, 0  ;;  %s4392_s1 = smov [#allocation2]  }
   0xd   : > { %p559_p2 = pnand %p3384_p0, %p558_p1  ;;  %s632_s26 = sshll.u32 %s4392_s1, 4  ;;  %s633_s26 = int_to_ptr.vmem [resolvable:$true] %s632_s26 }
   0xf   : > { %p4271_p4 = pneg %p559_p2  ;;  %659 = sbr.rel (%p559_p2) target bundleno = 3472 (0xd90), region = 112 }
  0x11   : > { %p4272_p5 = pnand %p4275_p3, %p4271_p4 }
  0x13   : > { %4274 = dma.hbm_to_vmem [thread:$0]  (!%p4272_p5), %s631_s5, 16, %s633_s26, [#allocation3]  }
  0x14   : > { %4385 = dma.done.wait (%p4275_p3), [#allocation3], 16  }
  0x15   : > { %4387 = vsyncadd (%p4275_p3), [#allocation3], 4294967280  ;;  %p726_p6 = scmp.lt.s32.totalorder %s3382_s30, 1  ;;  %s5459_s7 = sld [smem:[#allocation5_spill]]  ;;  %vm763_vm0 = vcmask 261120   ;;  %vm791_vm1 = vcmask 64512  }
  0x16   : > { %s5460_s0 = sld [smem:[#allocation8_spill]]  ;;  %s5443_s26 = smov 88   ;;  %vm826_vm2 = vcmask 1043456  }
  0x17   : > { %s5474_s30 = smov (!%p726_p6, %s3382_s30), 1  ;;  %s5461_s1 = sld [smem:[#allocation9_spill]] }
  0x18   : > { %s4536_s2 = sshll.u32 %s5474_s30, 3  ;;  %s4394_s6 = smov 64  }
  0x19   : > { %s4395_s27 = smov 96   ;;  %s5441_s29 = smov 72  }
  0x1a   : > { %s5448_s3 = smov 112   ;;  %s5446_s24 = smov 104  }
  0x1b   : > { %s729_s28 = scalar_lea.vmem %s5459_s7, %s4536_s2  ;;  %s5444_s7 = smov 120  }
  0x1c   : > { %v4102_v0 = vld [vmem:[%s5460_s0 + $0x8] sm:$0xff]  ;;  %v4101_v1 = vld [vmem:[%s5460_s0] sm:$0xff]  ;;  %s5462_s5 = sld [smem:[#allocation10_spill]]  ;;  %s4401_s30 = smov 56  }
  0x1d   : > { %v4548_v2 = vld [vmem:[%s729_s28] sm:$0xff]  ;;  %773 = vmatpush.bf16.msra.mxu0 %v4102_v0  ;;  %s5442_s28 = smov 80   ;;  %s5463_s25 = sld [smem:[#allocation7_spill]] }
  0x1e   : > { %v747_v3 = vpack.c.bf16 %v4548_v2, %v4548_v2  ;;  %v4298_v4 = vld [vmem:[%s5461_s1] ss:$0 sm:$0xff]  ;;  %s4402_s1 = smov 48  }
  0x21   : > { %774 = vmatpush.bf16.msra.mxu0 %v4101_v1 }
  0x22   : > { %v780_v16 = vld [vmem:[%s5462_s5] sm:$0xf]  ;;  %v781_v56 = vld [vmem:[%s5462_s5 + $0x4] sm:$0xf] }
  0x23   : > { %v927_v21 = vsel %vm826_vm2, %v780_v16, 0  ;;  %v4585_v25 = vld [vmem:[%s5463_s25] sm:$0xff]  ;;  %v908_v57 = vsel %vm826_vm2, %v781_v56, 0 }
  0x24   : > { %3400 = vmatmul.msk.bf16.vlgmr.msra.gmra.mxu0 %vm763_vm0, %v747_v3 }
  0x25   : > { %917 = vmatpush.bf16.msrb.mxu0 %v908_v57 }
  0xa1   : > { %v776_v5 = vpop.f32.mrf.mxu0 }
  0xa2   : > { %v777_v6 = vadd.f32 %v4298_v4, %v776_v5 }
  0xa4   : > { %v4556_v7 = vpack.c.bf16 %v777_v6, %v777_v6  ;;  %v785_v8 = vmul.f32 0.35355338, %v777_v6 }
  0xa6   : > { %849 = vrot.lane.b32.xlu2 %v4556_v7, %s5443_s26  ;;  %821 = vrot.lane.b32.xlu1 %v4556_v7, %s4394_s6  ;;  %v786_v10 = vpack.c.bf16 %v785_v8, %v785_v8  ;;  %s5467_s6 = smov 112  }
  0xa7   : > { %789 = vrot.lane.b32.xlu0 %v4556_v7, %s4395_s27 }
  0xa9   : > { %v778_v9 = vpop.f32.mrf.mxu0 }
  0xae   : > { %847 = vrot.lane.b32.xlu2 %v786_v10, %s5444_s7 }
  0xb6   : > { %944 = vrot.lane.b32.xlu2 %v4556_v7, %s5442_s28  ;;  %s5466_s28 = sld [smem:[#allocation12_spill]] }
  0xbe   : > { %1021 = vrot.lane.b32.xlu2 %v4556_v7, %s5441_s29  ;;  %s5464_s29 = sld [smem:[#allocation11_spill]] }
  0xc6   : > { %942 = vrot.lane.b32.xlu2 %v786_v10, %s5448_s3  ;;  %s5470_s3 = smov 88  }
  0xce   : > { %1019 = vrot.lane.b32.xlu2 %v786_v10, %s5446_s24  ;;  %s5471_s24 = smov 80  }
 0x100   : > { %v850_v11 = vpop.permute.xlu2 %849 }
 0x101   : > { %v855_v12 = vsel %vm791_vm1, %v850_v11, 0 }
 0x102   : > { %864 = vmatpush.bf16.xpose.msra.mxu3 %v855_v12 }
 0x108   : > { %v848_v13 = vpop.permute.xlu2 %847 }
 0x109   : > { %3403 = vmatmul.msk.bf16.vlgmr.msra.gmra.mxu3 %vm791_vm1, %v848_v13 }
 0x110   : > { %v945_v14 = vpop.permute.xlu2 %944 }
 0x111   : > { %v950_v15 = vsel %vm791_vm1, %v945_v14, 0 }
 0x112   : > { %959 = vmatpush.bf16.xpose.msrb.mxu3 %v950_v15 }
 0x118   : > { %v822_v17 = vpop.permute.xlu1 %821  ;;  %v1022_v18 = vpop.permute.xlu2 %1021 }
 0x119   : > { %v790_v19 = vpop.permute.xlu0 %789  ;;  %v828_v20 = vsel %vm826_vm2, %v822_v17, 0  ;;  %v1027_v24 = vsel %vm791_vm1, %v1022_v18, 0 }
 0x11a   : > { %v796_v22 = vsel %vm791_vm1, %v790_v19, 0  ;;  %837 = vmatpush.bf16.msra.mxu2 %v828_v20 }
 0x11b   : > { %805 = vmatpush.bf16.xpose.msra.mxu1 %v796_v22 }
 0x120   : > { %v943_v23 = vpop.permute.xlu2 %942 }
 0x121   : > { %3407 = vmatmul.msk.bf16.vlgmr.msrb.gmra.mxu3 %vm791_vm1, %v943_v23 }
 0x122   : > { %3401 = vmatmul.msk.bf16.vlgmr.msra.gmra.mxu1 %vm791_vm1, %v786_v10 }
 0x123   : > { %936 = vmatpush.bf16.msrb.mxu1 %v927_v21 }
 0x127   : > { %1036 = vmatpush.bf16.xpose.msra.mxu1 %v1027_v24 }
 0x128   : > { %v1020_v36 = vpop.permute.xlu2 %1019 }
 0x18c   : > { %v866_v26 = vpop.f32.mrf.mxu3 }
 0x18d   : > { %v867_v27 = vadd.f32 %v866_v26, %v4585_v25 }
 0x18f   : > { %v870_v28 = vsel %vm791_vm1, %v867_v27, -inf }
 0x190   : > { %871 = vmax.xlane.f32.xlu2 %v870_v28 }
 0x194   : > { %v868_v29 = vpop.f32.mrf.mxu3 }
 0x19f   : > { %v807_v30 = vpop.f32.mrf.mxu1 }
 0x1a0   : > { %v808_v31 = vadd.f32 %v807_v30, %v4585_v25 }
 0x1a2   : > { %v811_v32 = vsel %vm791_vm1, %v808_v31, -inf }
 0x1a3   : > { %812 = vmax.xlane.f32.xlu0 %v811_v32 }
 0x1a4   : > { %v961_v33 = vpop.f32.mrf.mxu3 }
 0x1a5   : > { %v962_v48 = vadd.f32 %v961_v33, %v4585_v25 }
 0x1a7   : > { %v809_v34 = vpop.f32.mrf.mxu1  ;;  %v965_v50 = vsel %vm791_vm1, %v962_v48, -inf }
 0x1ac   : > { %v963_v35 = vpop.f32.mrf.mxu3 }
 0x1b7   : > { %880 = vrot.lane.b32.xlu0 %v4556_v7, %s4401_s30  ;;  %s4403_s30 = smov 40  }
 0x1bf   : > { %975 = vrot.lane.b32.xlu0 %v4556_v7, %s4402_s1 }
 0x203   : > { %v872_v37 = vpop.xlane.xlu2 %871 }
 0x204   : > { %v873_v38 = vsub.f32 %v867_v27, %v872_v37  ;;  %v783_v37 = vld [vmem:[%s5462_s5 + $0xc] sm:$0xf] }
 0x206   : > { %v874_v39 = vmul.f32 1.442695, %v873_v38  ;;  %v1080_v38 = vsel %vm826_vm2, %v783_v37, 0 }
 0x208   : > { %4310 = vpow2.f32 %v874_v39 }
 0x20e   : > { %v4311_v40 = vpop.eup %4310 }
 0x20f   : > { %v876_v41 = vsel %vm791_vm1, %v4311_v40, 0.0  ;;  %v879_v54 = vpack.c.bf16 %v4311_v40, %v4311_v40 }
 0x210   : > { %877 = vadd.xlane.f32.xlu0 %v876_v41 }
 0x216   : > { %v813_v42 = vpop.xlane.xlu0 %812 }
 0x217   : > { %v814_v43 = vsub.f32 %v808_v31, %v813_v42 }
 0x219   : > { %v815_v44 = vmul.f32 1.442695, %v814_v43 }
 0x21b   : > { %4312 = vpow2.f32 %v815_v44 }
 0x221   : > { %v4313_v45 = vpop.eup %4312 }
 0x222   : > { %v817_v46 = vsel %vm791_vm1, %v4313_v45, 0.0  ;;  %v820_v47 = vpack.c.bf16 %v4313_v45, %v4313_v45 }
 0x223   : > { %818 = vadd.xlane.f32.xlu1 %v817_v46 }
 0x224   : > { %3402 = vmatmul.msk.bf16.vlgmr.msra.gmra.mxu2 %vm791_vm1, %v820_v47 }
 0x229   : > { %v881_v49 = vpop.permute.xlu0 %880 }
 0x22a   : > { %v886_v51 = vsel %vm826_vm2, %v881_v49, 0 }
 0x22b   : > { %966 = vmax.xlane.f32.xlu1 %v965_v50  ;;  %895 = vmatpush.bf16.msrb.mxu2 %v886_v51 }
 0x231   : > { %v976_v52 = vpop.permute.xlu0 %975 }
 0x232   : > { %v981_v53 = vsel %vm826_vm2, %v976_v52, 0 }
 0x233   : > { %990 = vmatpush.bf16.msra.mxu2 %v981_v53 }
 0x234   : > { %3404 = vmatmul.msk.bf16.vlgmr.msrb.gmra.mxu2 %vm791_vm1, %v879_v54 }
 0x237   : > { %1089 = vmatpush.bf16.msrb.mxu2 %v1080_v38 }
 0x283   : > { %v878_v4 = vpop.xlane.xlu0 %877 }
 0x296   : > { %v819_v55 = vpop.xlane.xlu1 %818 }
 0x297   : > { %4314 = vrcp.f32 %v819_v55  ;;  %v4404_v55 = vmov 32.0  }
 0x29d   : > { %v4315_v61 = vpop.eup %4314 }
 0x29e   : > { %v967_v58 = vpop.xlane.xlu1 %966 }
 0x29f   : > { %v968_v59 = vsub.f32 %v962_v48, %v967_v58  ;;  %v4299_v48 = vld [vmem:[%s5464_s29] ss:$0 sm:$0xff]  ;;  %s5468_s29 = smov 104  }
 0x2a1   : > { %v969_v60 = vmul.f32 1.442695, %v968_v59 }
 0x2a3   : > { %4316 = vpow2.f32 %v969_v60 }
 0x2a4   : > { %4318 = vrcp.f32 %v878_v4 }
 0x2a7   : > { %v839_v62 = vpop.f32.mrf.mxu2 }
 0x2a8   : > { %v844_v63 = vmul.f32 %v4315_v61, %v839_v62 }
 0x2a9   : > { %v4317_v0 = vpop.eup %4316 }
 0x2aa   : > { %v974_v1 = vpack.c.bf16 %v4317_v0, %v4317_v0  ;;  %v845_v3 = vpack.c.bf16 %v844_v63, %v844_v63  ;;  %v4319_v6 = vpop.eup %4318  ;;  %v971_v23 = vsel %vm791_vm1, %v4317_v0, 0.0 }
 0x2ac   : > { %3406 = vmatmul.msk.bf16.vlgmr.msrb.gmra.mxu1 %vm791_vm1, %v845_v3  ;;  %3408 = vmatmul.msk.bf16.vlgmr.msra.gmra.mxu2 %vm791_vm1, %v974_v1  ;;  %v4106_v3 = vld [vmem:[%s5426_s11 + $0x8] sm:$0xff] }
 0x2ad   : > { %1207 = vmatpush.bf16.msrb.mxu1 %v4106_v3 }
 0x2af   : > { %v841_v5 = vpop.f32.mrf.mxu2 }
 0x2b0   : > { %v4105_v5 = vld [vmem:[%s5426_s11] sm:$0xff] }
 0x2b1   : > { %1208 = vmatpush.bf16.msrb.mxu1 %v4105_v5 }
 0x2b7   : > { %v897_v8 = vpop.f32.mrf.mxu2 }
 0x2b8   : > { %v902_v9 = vmul.f32 %v4319_v6, %v897_v8  ;;  %v4104_v8 = vld [vmem:[%s5424_s9 + $0x8] sm:$0xff] }
 0x2ba   : > { %v903_v10 = vpack.c.bf16 %v902_v9, %v902_v9  ;;  %v4103_v9 = vld [vmem:[%s5424_s9] sm:$0xff] }
 0x2bc   : > { %3405 = vmatmul.msk.bf16.vlgmr.msrb.gmra.mxu0 %vm791_vm1, %v903_v10  ;;  %3410 = vmatmul.msk.bf16.vlgmr.msra.gmra.mxu1 %vm791_vm1, %v1020_v36 }
 0x2bf   : > { %v899_v11 = vpop.f32.mrf.mxu2 }
 0x329   : > { %v938_v12 = vpop.f32.mrf.mxu1 }
 0x32f   : > { %v992_v13 = vpop.f32.mrf.mxu2 }
 0x331   : > { %v940_v14 = vpop.f32.mrf.mxu1 }
 0x337   : > { %v994_v15 = vpop.f32.mrf.mxu2 }
 0x339   : > { %v919_v16 = vpop.f32.mrf.mxu0  ;;  %v1038_v17 = vpop.f32.mrf.mxu1 }
 0x33a   : > { %v939_v18 = vadd.f32 %v938_v12, %v919_v16  ;;  %v1039_v19 = vadd.f32 %v1038_v17, %v4585_v25 }
 0x33c   : > { %v1042_v20 = vsel %vm791_vm1, %v1039_v19, -inf }
 0x33d   : > { %1043 = vmax.xlane.f32.xlu1 %v1042_v20 }
 0x341   : > { %v921_v21 = vpop.f32.mrf.mxu0  ;;  %v1040_v22 = vpop.f32.mrf.mxu1 }
 0x342   : > { %v4301_v21 = vld [vmem:[%s5423_s8] ss:$0 sm:$0xff] }
 0x356   : > { %1052 = vrot.lane.b32.xlu1 %v4556_v7, %s4403_s30  ;;  %v782_v7 = vld [vmem:[%s5462_s5 + $0x8] sm:$0xf]  ;;  %s5465_s30 = sld [smem:[#allocation6_spill]] }
 0x357   : > { %v1003_v32 = vsel %vm826_vm2, %v782_v7, 0  ;;  %v4303_v7 = vld [vmem:[%s5425_s10] ss:$0 sm:$0xff] }
 0x358   : > { %1012 = vmatpush.bf16.msra.mxu0 %v1003_v32 }
 0x35c   : > { %s733_s1 = scalar_lea.vmem %s5465_s30, %s4536_s2  ;;  %1170 = vmatpush.bf16.msrb.mxu0 %v4104_v8  ;;  %s5472_s30 = smov 72  }
 0x35d   : > { %v740_v4 = vld [vmem:[%s733_s1] sm:$0xff] }
 0x35e   : > { %v1182_v6 = vpack.c.bf16 %v740_v4, %v740_v4 }
 0x360   : > { %3430 = vmatmul.msk.bf16.vlgmr.msrb.gmra.mxu1 %vm763_vm0, %v1182_v6  ;;  %1171 = vmatpush.bf16.msrb.mxu0 %v4103_v9 }
 0x380   : > { %972 = vadd.xlane.f32.xlu1 %v971_v23 }
 0x3b0   : > { %v1044_v24 = vpop.xlane.xlu1 %1043 }
 0x3b1   : > { %v1045_v26 = vsub.f32 %v1039_v19, %v1044_v24  ;;  %v4300_v19 = vld [vmem:[%s5466_s28] ss:$0 sm:$0xff]  ;;  %s737_s28 = scalar_lea.vmem %s5438_s23, %s4536_s2 }
 0x3b3   : > { %v1046_v27 = vmul.f32 1.442695, %v1045_v26 }
 0x3b5   : > { %4320 = vpow2.f32 %v1046_v27  ;;  %v4302_v27 = vld [vmem:[%s5427_s12] ss:$0 sm:$0xff] }
 0x3bb   : > { %v4321_v28 = vpop.eup %4320 }
 0x3bc   : > { %v1048_v29 = vsel %vm791_vm1, %v4321_v28, 0.0  ;;  %v1051_v31 = vpack.c.bf16 %v4321_v28, %v4321_v28 }
 0x3bd   : > { %1049 = vadd.xlane.f32.xlu2 %v1048_v29 }
 0x3c8   : > { %v1053_v25 = vpop.permute.xlu1 %1052 }
 0x3c9   : > { %v1058_v30 = vsel %vm826_vm2, %v1053_v25, 0 }
 0x3ca   : > { %1067 = vmatpush.bf16.msra.mxu3 %v1058_v30 }
 0x3cd   : > { %3411 = vmatmul.msk.bf16.vlgmr.msra.gmra.mxu3 %vm791_vm1, %v1051_v31 }
 0x3dd   : > { %v1210_v28 = vpop.f32.mrf.mxu1 }
 0x3de   : > { %v1211_v29 = vadd.f32 %v4302_v27, %v1210_v28 }
 0x3e0   : > { %v4667_v25 = vpack.c.bf16 %v1211_v29, %v1211_v29 }
 0x3e2   : > { %1252 = vrot.lane.b32.xlu0 %v4667_v25, %s4395_s27  ;;  %v1226_v31 = vsel %vm791_vm1, %v4667_v25, 0  ;;  %s5469_s27 = smov 120  }
 0x3e3   : > { %1235 = vmatpush.bf16.xpose.msrb.mxu3 %v1226_v31 }
 0x3e5   : > { %v1212_v30 = vpop.f32.mrf.mxu1 }
 0x3ea   : > { %1374 = vrot.lane.b32.xlu0 %v4667_v25, %s5467_s6 }
 0x3f2   : > { %1451 = vrot.lane.b32.xlu0 %v4667_v25, %s5468_s29 }
 0x3f3   : > { %v973_v33 = vpop.xlane.xlu1 %972 }
 0x3f4   : > { %4322 = vrcp.f32 %v973_v33 }
 0x3fa   : > { %v4323_v34 = vpop.eup %4322 }
 0x3fb   : > { %v997_v35 = vmul.f32 %v4323_v34, %v992_v13 }
 0x3fd   : > { %v998_v36 = vpack.c.bf16 %v997_v35, %v997_v35 }
 0x3ff   : > { %3409 = vmatmul.msk.bf16.vlgmr.msra.gmra.mxu0 %vm791_vm1, %v998_v36 }
 0x430   : > { %v1050_v39 = vpop.xlane.xlu2 %1049 }
 0x431   : > { %4324 = vrcp.f32 %v1050_v39 }
 0x432   : > { %4326 = vrcp.f32 %v4404_v55 }
 0x437   : > { %v4325_v40 = vpop.eup %4324 }
 0x438   : > { %v4327_v56 = vpop.eup %4326 }
 0x439   : > { %v1107_v57 = vmul.f32 32.0, %v4327_v56  ;;  %vm1111_vm3 = vweird.f32 %v4327_v56 }
 0x43b   : > { %v1108_v58 = vsub.f32 1.0, %v1107_v57 }
 0x43d   : > { %v1109_v59 = vmul.f32 %v4327_v56, %v1108_v58 }
 0x43f   : > { %v1110_v60 = vadd.f32 %v4327_v56, %v1109_v59 }
 0x441   : > { %v4631_v61 = vsel %vm1111_vm3, %v4327_v56, %v1110_v60 }
 0x450   : > { %v1069_v41 = vpop.f32.mrf.mxu3 }
 0x451   : > { %v1074_v42 = vmul.f32 %v4325_v40, %v1069_v41 }
 0x453   : > { %v1075_v43 = vpack.c.bf16 %v1074_v42, %v1074_v42  ;;  %v1214_v42 = vld [vmem:[%s5428_s13] sm:$0xf] }
 0x454   : > { %v1253_v37 = vpop.permute.xlu0 %1252 }
 0x455   : > { %3412 = vmatmul.msk.bf16.vlgmr.msrb.gmra.mxu2 %vm791_vm1, %v1075_v43  ;;  %v1258_v38 = vsel %vm826_vm2, %v1253_v37, 0  ;;  %v1357_v43 = vsel %vm826_vm2, %v1214_v42, 0 }
 0x456   : > { %1267 = vmatpush.bf16.msra.mxu2 %v1258_v38 }
 0x458   : > { %v1071_v44 = vpop.f32.mrf.mxu3 }
 0x45a   : > { %1366 = vmatpush.bf16.msrb.mxu2 %v1357_v43 }
 0x47c   : > { %v1014_v45 = vpop.f32.mrf.mxu0 }
 0x47d   : > { %v1018_v46 = vadd.f32 %v1014_v45, %v939_v18  ;;  %v1375_v45 = vpop.permute.xlu0 %1374 }
 0x484   : > { %v1016_v47 = vpop.f32.mrf.mxu0 }
 0x4d8   : > { %v1091_v49 = vpop.f32.mrf.mxu2 }
 0x4d9   : > { %v1095_v50 = vadd.f32 %v1091_v49, %v1018_v46 }
 0x4db   : > { %v1099_v51 = vadd.f32 %v4299_v48, %v1095_v50  ;;  %v1380_v50 = vsel %vm791_vm1, %v1375_v45, 0 }
 0x4dd   : > { %v1100_v52 = vadd.f32 %v1099_v51, %v4548_v2 }
 0x4df   : > { %v1103_v53 = vsel %vm763_vm0, %v1100_v52, 0.0 }
 0x4e0   : > { %v1093_v54 = vpop.f32.mrf.mxu2  ;;  %1104 = vadd.xlane.f32.xlu2 %v1103_v53 }
 0x553   : > { %v1105_v62 = vpop.xlane.xlu2 %1104 }
 0x554   : > { %v1113_v63 = vmul.f32 %v4631_v61, %v1105_v62 }
 0x556   : > { %v1114_v0 = vsub.f32 %v1100_v52, %v1113_v63  ;;  %v1452_v52 = vpop.permute.xlu0 %1451 }
 0x557   : > { %v1457_v55 = vsel %vm791_vm1, %v1452_v52, 0 }
 0x558   : > { %v1115_v2 = vmul.f32 %v1114_v0, %v1114_v0 }
 0x55a   : > { %v1116_v1 = vsel %vm763_vm0, %v1115_v2, 0.0 }
 0x55b   : > { %1117 = vadd.xlane.f32.xlu2 %v1116_v1 }
 0x5ce   : > { %v1118_v10 = vpop.xlane.xlu2 %1117 }
 0x5cf   : > { %v1119_v11 = vmul.f32 %v1118_v10, %v4631_v61 }
 0x5d1   : > { %v1120_v12 = vadd.f32 1e-05, %v1119_v11 }
 0x5d3   : > { %4328 = vrsqrt.f32 %v1120_v12  ;;  %vm1127_vm5 = vweird.f32 %v1120_v12 }
 0x5d9   : > { %v4329_v13 = vpop.eup %4328 }
 0x5da   : > { %v1122_v14 = vmul.f32 %v4329_v13, %v1120_v12  ;;  %vm1128_vm4 = vweird.f32 %v4329_v13 }
 0x5db   : > { %vm1129_vm6 = vmor %vm1127_vm5, %vm1128_vm4 }
 0x5dc   : > { %v1123_v15 = vmul.f32 %v4329_v13, %v1122_v14 }
 0x5de   : > { %v1124_v16 = vmul.f32 0.5, %v1123_v15 }
 0x5e0   : > { %v1125_v17 = vsub.f32 1.5, %v1124_v16 }
 0x5e2   : > { %v1126_v18 = vmul.f32 %v4329_v13, %v1125_v17 }
 0x5e4   : > { %v1130_v20 = vsel %vm1129_vm6, %v4329_v13, %v1126_v18 }
 0x5e5   : > { %v1131_v22 = vmul.f32 %v1130_v20, %v1114_v0 }
 0x5e7   : > { %v1135_v23 = vmul.f32 %v4300_v19, %v1131_v22 }
 0x5e9   : > { %v4659_v24 = vadd.f32 %v4301_v21, %v1135_v23 }
 0x5eb   : > { %v1145_v26 = vpack.c.bf16 %v4659_v24, %v4659_v24 }
 0x5ed   : > { %3421 = vmatmul.msk.bf16.vlgmr.msrb.gmra.mxu0 %vm763_vm0, %v1145_v26 }
 0x66a   : > { %v1173_v32 = vpop.f32.mrf.mxu0 }
 0x66b   : > { %v1174_v33 = vadd.f32 %v4303_v7, %v1173_v32  ;;  %v1215_v32 = vld [vmem:[%s5428_s13 + $0x4] sm:$0xf] }
 0x66d   : > { %v1219_v34 = vmul.f32 0.35355338, %v1174_v33 }
 0x66f   : > { %v1220_v35 = vpack.c.bf16 %v1219_v34, %v1219_v34  ;;  %v1338_v34 = vsel %vm826_vm2, %v1215_v32, 0 }
 0x670   : > { %1347 = vmatpush.bf16.msra.mxu3 %v1338_v34  ;;  %v3453_v34 = vld [vmem:[%s5432_s17 + $0x8] sm:$0xf] }
 0x671   : > { %1449 = vrot.lane.b32.xlu0 %v1220_v35, %s5468_s29  ;;  %1277 = vrot.lane.b32.xlu1 %v1220_v35, %s5469_s27 }
 0x672   : > { %3431 = vmatmul.msk.bf16.vlgmr.msrb.gmra.mxu3 %vm791_vm1, %v1220_v35  ;;  %v1175_v36 = vpop.f32.mrf.mxu0 }
 0x6e3   : > { %v1278_v56 = vpop.permute.xlu1 %1277  ;;  %v1450_v6 = vpop.permute.xlu0 %1449 }
 0x6f5   : > { %v1237_v39 = vpop.f32.mrf.mxu3 }
 0x6f6   : > { %v1241_v40 = vsel %vm791_vm1, %v1237_v39, -inf }
 0x6f7   : > { %1242 = vmax.xlane.f32.xlu2 %v1241_v40 }
 0x6fd   : > { %v1239_v41 = vpop.f32.mrf.mxu3 }
 0x70f   : > { %1279 = vrot.lane.b32.xlu2 %v4667_v25, %s5469_s27 }
 0x76a   : > { %v1243_v44 = vpop.xlane.xlu2 %1242 }
 0x76b   : > { %v1244_v46 = vsub.f32 %v1237_v39, %v1243_v44 }
 0x76d   : > { %v1245_v47 = vmul.f32 1.442695, %v1244_v46  ;;  %v1216_v46 = vld [vmem:[%s5428_s13 + $0x8] sm:$0xf] }
 0x76f   : > { %4330 = vpow2.f32 %v1245_v47  ;;  %v1433_v47 = vsel %vm826_vm2, %v1216_v46, 0 }
 0x770   : > { %1442 = vmatpush.bf16.msrb.mxu3 %v1433_v47  ;;  %v3527_v47 = vld [vmem:[%s5432_s17 + $0xd0] sm:$0xf0] }
 0x772   : > { %v1280_v48 = vpop.permute.xlu2 %1279 }
 0x773   : > { %v1285_v49 = vsel %vm791_vm1, %v1280_v48, 0 }
 0x774   : > { %1294 = vmatpush.bf16.xpose.msra.mxu0 %v1285_v49 }
 0x775   : > { %v4331_v51 = vpop.eup %4330 }
 0x776   : > { %v1250_v53 = vpack.c.bf16 %v4331_v51, %v4331_v51  ;;  %v1247_v54 = vsel %vm791_vm1, %v4331_v51, 0.0 }
 0x777   : > { %1248 = vadd.xlane.f32.xlu2 %v1247_v54 }
 0x778   : > { %3432 = vmatmul.msk.bf16.vlgmr.msra.gmra.mxu2 %vm791_vm1, %v1250_v53  ;;  %v1217_v53 = vld [vmem:[%s5428_s13 + $0xc] sm:$0xf] }
 0x779   : > { %1466 = vmatpush.bf16.xpose.msra.mxu2 %v1457_v55  ;;  %v1510_v54 = vsel %vm826_vm2, %v1217_v53, 0  ;;  %v3535_v53 = vld [vmem:[%s5432_s17 + $0xd8] sm:$0xf0] }
 0x77b   : > { %3433 = vmatmul.msk.bf16.vlgmr.msra.gmra.mxu0 %vm791_vm1, %v1278_v56 }
 0x77c   : > { %1389 = vmatpush.bf16.xpose.msrb.mxu0 %v1380_v50 }
 0x78f   : > { %1372 = vrot.lane.b32.xlu2 %v1220_v35, %s5467_s6 }
 0x797   : > { %1310 = vrot.lane.b32.xlu2 %v4667_v25, %s5470_s3 }
 0x7ea   : > { %v1249_v57 = vpop.xlane.xlu2 %1248 }
 0x7eb   : > { %4332 = vrcp.f32 %v1249_v57 }
 0x7f1   : > { %v4333_v63 = vpop.eup %4332 }
 0x7f2   : > { %v1373_v58 = vpop.permute.xlu2 %1372 }
 0x7f3   : > { %3437 = vmatmul.msk.bf16.vlgmr.msrb.gmra.mxu0 %vm791_vm1, %v1373_v58 }
 0x7f8   : > { %v1296_v59 = vpop.f32.mrf.mxu0 }
 0x7f9   : > { %v1300_v60 = vsel %vm791_vm1, %v1296_v59, -inf }
 0x7fa   : > { %1301 = vmax.xlane.f32.xlu1 %v1300_v60  ;;  %v1311_v62 = vpop.permute.xlu2 %1310 }
 0x7fb   : > { %v1316_v0 = vsel %vm826_vm2, %v1311_v62, 0  ;;  %v1269_v2 = vpop.f32.mrf.mxu2 }
 0x7fc   : > { %v1274_v1 = vmul.f32 %v4333_v63, %v1269_v2  ;;  %1325 = vmatpush.bf16.msra.mxu1 %v1316_v0 }
 0x7fe   : > { %v1275_v3 = vpack.c.bf16 %v1274_v1, %v1274_v1 }
 0x800   : > { %v1298_v4 = vpop.f32.mrf.mxu0  ;;  %3436 = vmatmul.msk.bf16.vlgmr.msrb.gmra.mxu2 %vm791_vm1, %v1275_v3 }
 0x803   : > { %v1271_v5 = vpop.f32.mrf.mxu2 }
 0x804   : > { %v4304_v5 = vld [vmem:[%s5429_s14] ss:$0 sm:$0xff] }
 0x810   : > { %3440 = vmatmul.msk.bf16.vlgmr.msra.gmra.mxu2 %vm791_vm1, %v1450_v6 }
 0x813   : > { %1405 = vrot.lane.b32.xlu1 %v4667_v25, %s5471_s24 }
 0x86d   : > { %v1302_v8 = vpop.xlane.xlu1 %1301 }
 0x86e   : > { %v1303_v9 = vsub.f32 %v1296_v59, %v1302_v8 }
 0x870   : > { %v1304_v10 = vmul.f32 1.442695, %v1303_v9  ;;  %v1391_v11 = vpop.f32.mrf.mxu0 }
 0x871   : > { %v1395_v12 = vsel %vm791_vm1, %v1391_v11, -inf }
 0x872   : > { %4334 = vpow2.f32 %v1304_v10  ;;  %1396 = vmax.xlane.f32.xlu0 %v1395_v12 }
 0x878   : > { %v4335_v13 = vpop.eup %4334  ;;  %v1393_v14 = vpop.f32.mrf.mxu0 }
 0x879   : > { %v1309_v15 = vpack.c.bf16 %v4335_v13, %v4335_v13  ;;  %v1306_v23 = vsel %vm791_vm1, %v4335_v13, 0.0 }
 0x87b   : > { %3434 = vmatmul.msk.bf16.vlgmr.msra.gmra.mxu1 %vm791_vm1, %v1309_v15 }
 0x883   : > { %v4709_v16 = vpop.f32.mrf.mxu2 }
 0x885   : > { %v1406_v17 = vpop.permute.xlu1 %1405 }
 0x886   : > { %v1411_v18 = vsel %vm826_vm2, %v1406_v17, 0  ;;  %1482 = vrot.lane.b32.xlu0 %v4667_v25, %s5472_s30 }
 0x887   : > { %1420 = vmatpush.bf16.msrb.mxu1 %v1411_v18  ;;  %v3509_v18 = vld [vmem:[%s5432_s17 + $0x80] sm:$0xf] }
 0x88b   : > { %v1370_v19 = vpop.f32.mrf.mxu2  ;;  %1519 = vmatpush.bf16.msra.mxu1 %v1510_v54  ;;  %v3461_v54 = vld [vmem:[%s5432_s17 + $0x10] sm:$0xf] }
 0x88c   : > { %v4123_v19 = vld [vmem:[%s5432_s17 + $0x84] sm:$0xf] }
 0x893   : > { %v1468_v20 = vpop.f32.mrf.mxu2 }
 0x894   : > { %v1472_v21 = vsel %vm791_vm1, %v1468_v20, -inf }
 0x895   : > { %1473 = vmax.xlane.f32.xlu2 %v1472_v21  ;;  %v3511_v21 = vld [vmem:[%s5432_s17 + $0xc0] sm:$0xf0] }
 0x89b   : > { %v1470_v22 = vpop.f32.mrf.mxu2 }
 0x89c   : > { %v3517_v22 = vld [vmem:[%s5432_s17 + $0x88] sm:$0xf] }
 0x89d   : > { %1307 = vadd.xlane.f32.xlu2 %v1306_v23  ;;  %v4132_v23 = vld [vmem:[%s5432_s17 + $0xc4] sm:$0xf0] }
 0x8e5   : > { %v1397_v26 = vpop.xlane.xlu0 %1396 }
 0x8e6   : > { %v1398_v27 = vsub.f32 %v1391_v11, %v1397_v26  ;;  %v3514_v26 = vor.u32 %v4123_v19, %v3511_v21  ;;  %v4127_v19 = vld [vmem:[%s5432_s17 + $0xa4] sm:$0xf] }
 0x8e8   : > { %v1399_v28 = vmul.f32 1.442695, %v1398_v27  ;;  %v3518_v27 = vor.u32 %v4132_v23, %v3517_v22  ;;  %1814 = vmatpush.bf16.msrb.mxu2 %v3514_v26  ;;  %v4136_v22 = vld [vmem:[%s5432_s17 + $0xe4] sm:$0xf0]  ;;  %v4128_v23 = vld [vmem:[%s5432_s17 + $0xac] sm:$0xf] }
 0x8e9   : > { %v3551_v26 = vld [vmem:[%s5432_s17 + $0xe8] sm:$0xf0] }
 0x8ea   : > { %4336 = vpow2.f32 %v1399_v28  ;;  %v4124_v28 = vld [vmem:[%s5432_s17 + $0x8c] sm:$0xf] }
 0x8f0   : > { %v4337_v29 = vpop.eup %4336 }
 0x8f1   : > { %v1404_v30 = vpack.c.bf16 %v4337_v29, %v4337_v29  ;;  %v1401_v31 = vsel %vm791_vm1, %v4337_v29, 0.0  ;;  %v3519_v29 = vld [vmem:[%s5432_s17 + $0xc8] sm:$0xf0] }
 0x8f2   : > { %1402 = vadd.xlane.f32.xlu2 %v1401_v31  ;;  %v3445_v31 = vld [vmem:[%s5432_s17] sm:$0xf] }
 0x8f3   : > { %3438 = vmatmul.msk.bf16.vlgmr.msrb.gmra.mxu1 %vm791_vm1, %v1404_v30  ;;  %v3522_v30 = vor.u32 %v4124_v28, %v3519_v29 }
 0x8f5   : > { %1840 = vmatpush.bf16.msrb.mxu1 %v3522_v30  ;;  %v3477_v30 = vld [vmem:[%s5432_s17 + $0x20] sm:$0xf] }
 0x8f8   : > { %v1327_v25 = vpop.f32.mrf.mxu1  ;;  %v1483_v7 = vpop.permute.xlu0 %1482 }
 0x8f9   : > { %v1488_v33 = vsel %vm826_vm2, %v1483_v7, 0  ;;  %v4107_v7 = vld [vmem:[%s5432_s17 + $0x4] sm:$0xf] }
 0x8fa   : > { %1497 = vmatpush.bf16.msra.mxu0 %v1488_v33  ;;  %v3447_v33 = vld [vmem:[%s5432_s17 + $0x40] sm:$0xf0] }
 0x8fe   : > { %1827 = vmatpush.bf16.msrb.mxu0 %v3518_v27 }
 0x900   : > { %v1329_v35 = vpop.f32.mrf.mxu1 }
 0x901   : > { %v4116_v35 = vld [vmem:[%s5432_s17 + $0x44] sm:$0xf0] }
 0x908   : > { %v1474_v36 = vpop.xlane.xlu2 %1473 }
 0x909   : > { %v1475_v37 = vsub.f32 %v1468_v20, %v1474_v36  ;;  %v3450_v36 = vor.u32 %v4107_v7, %v3447_v33  ;;  %v3554_v7 = vor.u32 %v4128_v23, %v3551_v26  ;;  %v3479_v33 = vld [vmem:[%s5432_s17 + $0x60] sm:$0xf0]  ;;  %v4150_v23 = vld [vmem:[%s5434_s19 + $0x58] sm:$0xff]  ;;  %v4157_v26 = vld [vmem:[%s5434_s19 + $0x90] sm:$0xff] }
 0x90b   : > { %v1476_v38 = vmul.f32 1.442695, %v1475_v37  ;;  %v3454_v37 = vor.u32 %v4116_v35, %v3453_v34  ;;  %1815 = vmatpush.bf16.msrb.mxu2 %v3450_v36  ;;  %v3485_v34 = vld [vmem:[%s5432_s17 + $0x28] sm:$0xf]  ;;  %v4112_v36 = vld [vmem:[%s5432_s17 + $0x2c] sm:$0xf] }
 0x90c   : > { %v4120_v35 = vld [vmem:[%s5432_s17 + $0x64] sm:$0xf0] }
 0x90d   : > { %4338 = vpow2.f32 %v1476_v38  ;;  %v4108_v38 = vld [vmem:[%s5432_s17 + $0xc] sm:$0xf]  ;;  %1828 = vmatpush.bf16.msrb.mxu0 %v3454_v37 }
 0x90e   : > { %v3487_v37 = vld [vmem:[%s5432_s17 + $0x68] sm:$0xf0] }
 0x910   : > { %v1308_v39 = vpop.xlane.xlu2 %1307 }
 0x911   : > { %4340 = vrcp.f32 %v1308_v39  ;;  %v3455_v39 = vld [vmem:[%s5432_s17 + $0x48] sm:$0xf0] }
 0x913   : > { %v4339_v40 = vpop.eup %4338 }
 0x914   : > { %v1481_v41 = vpack.c.bf16 %v4339_v40, %v4339_v40  ;;  %v1478_v42 = vsel %vm791_vm1, %v4339_v40, 0.0  ;;  %v3458_v40 = vor.u32 %v4108_v38, %v3455_v39 }
 0x915   : > { %1479 = vadd.xlane.f32.xlu1 %v1478_v42  ;;  %v3525_v42 = vld [vmem:[%s5432_s17 + $0x90] sm:$0xf] }
 0x916   : > { %3441 = vmatmul.msk.bf16.vlgmr.msra.gmra.mxu0 %vm791_vm1, %v1481_v41  ;;  %1841 = vmatpush.bf16.msrb.mxu1 %v3458_v40  ;;  %v3486_v40 = vor.u32 %v4120_v35, %v3485_v34  ;;  %v4194_v34 = vld [vmem:[%s5434_s19 + $0x1b8] sm:$0xff] }
 0x917   : > { %v4341_v43 = vpop.eup %4340  ;;  %v4202_v35 = vld [vmem:[%s5434_s19 + $0x1f8] sm:$0xff] }
 0x918   : > { %v1332_v44 = vmul.f32 %v4341_v43, %v1327_v25  ;;  %v4115_v25 = vld [vmem:[%s5432_s17 + $0x3c] sm:$0xf0]  ;;  %v4133_v43 = vld [vmem:[%s5432_s17 + $0xcc] sm:$0xf0] }
 0x919   : > { %v3446_v32 = vor.u32 %v4115_v25, %v3445_v31  ;;  %v3526_v46 = vor.u32 %v4133_v43, %v3525_v42  ;;  %v4119_v31 = vld [vmem:[%s5432_s17 + $0x5c] sm:$0xf0]  ;;  %v3557_v42 = vld [vmem:[%s5432_s17 + $0xb0] sm:$0xf] }
 0x91a   : > { %v1333_v45 = vpack.c.bf16 %v1332_v44, %v1332_v44  ;;  %v4125_v44 = vld [vmem:[%s5432_s17 + $0x94] sm:$0xf]  ;;  %v3478_v38 = vor.u32 %v4119_v31, %v3477_v30  ;;  %v4137_v43 = vld [vmem:[%s5432_s17 + $0xec] sm:$0xf0]  ;;  %v4156_v30 = vld [vmem:[%s5434_s19 + $0x88] sm:$0xff] }
 0x91b   : > { %v4164_v31 = vld [vmem:[%s5434_s19 + $0xc8] sm:$0xff] }
 0x91c   : > { %3435 = vmatmul.msk.bf16.vlgmr.msra.gmra.mxu3 %vm791_vm1, %v1333_v45 }
 0x965   : > { %v1403_v48 = vpop.xlane.xlu2 %1402 }
 0x966   : > { %4342 = vrcp.f32 %v1403_v48  ;;  %v3533_v48 = vld [vmem:[%s5432_s17 + $0x98] sm:$0xf] }
 0x96c   : > { %v4343_v49 = vpop.eup %4342 }
 0x970   : > { %v1422_v50 = vpop.f32.mrf.mxu1 }
 0x971   : > { %v1427_v51 = vmul.f32 %v4343_v49, %v1422_v50  ;;  %v4134_v49 = vld [vmem:[%s5432_s17 + $0xd4] sm:$0xf0]  ;;  %v3530_v50 = vor.u32 %v4125_v44, %v3527_v47  ;;  %v4129_v44 = vld [vmem:[%s5432_s17 + $0xb4] sm:$0xf] }
 0x972   : > { %v4138_v47 = vld [vmem:[%s5432_s17 + $0xf4] sm:$0xf0] }
 0x973   : > { %v1428_v52 = vpack.c.bf16 %v1427_v51, %v1427_v51  ;;  %v3534_v51 = vor.u32 %v4134_v49, %v3533_v48  ;;  %1866 = vmatpush.bf16.msra.mxu2 %v3530_v50  ;;  %v4130_v48 = vld [vmem:[%s5432_s17 + $0xbc] sm:$0xf]  ;;  %v3558_v50 = vor.u32 %v4137_v43, %v3557_v42  ;;  %v4177_v42 = vld [vmem:[%s5434_s19 + $0x130] sm:$0xff] }
 0x974   : > { %v3567_v49 = vld [vmem:[%s5432_s17 + $0xf8] sm:$0xf0]  ;;  %v4185_v43 = vld [vmem:[%s5434_s19 + $0x170] sm:$0xff] }
 0x975   : > { %3439 = vmatmul.msk.bf16.vlgmr.msrb.gmra.mxu3 %vm791_vm1, %v1428_v52  ;;  %v4126_v52 = vld [vmem:[%s5432_s17 + $0x9c] sm:$0xf]  ;;  %1879 = vmatpush.bf16.msra.mxu0 %v3534_v51 }
 0x978   : > { %v1424_v55 = vpop.f32.mrf.mxu1 }
 0x988   : > { %v1480_v56 = vpop.xlane.xlu1 %1479 }
 0x989   : > { %4344 = vrcp.f32 %v1480_v56  ;;  %v3538_v56 = vor.u32 %v4126_v52, %v3535_v53  ;;  %v3493_v52 = vld [vmem:[%s5432_s17 + $0x30] sm:$0xf] }
 0x98a   : > { %v4121_v53 = vld [vmem:[%s5432_s17 + $0x6c] sm:$0xf0] }
 0x98f   : > { %v4345_v57 = vpop.eup %4344 }
 0x993   : > { %v1499_v58 = vpop.f32.mrf.mxu0 }
 0x994   : > { %v1504_v59 = vmul.f32 %v4345_v57, %v1499_v58  ;;  %v4117_v57 = vld [vmem:[%s5432_s17 + $0x4c] sm:$0xf0]  ;;  %v4109_v58 = vld [vmem:[%s5432_s17 + $0x14] sm:$0xf] }
 0x996   : > { %v1505_v60 = vpack.c.bf16 %v1504_v59, %v1504_v59  ;;  %v3462_v59 = vor.u32 %v4117_v57, %v3461_v54  ;;  %v3495_v57 = vld [vmem:[%s5432_s17 + $0x70] sm:$0xf0] }
 0x998   : > { %3442 = vmatmul.msk.bf16.vlgmr.msra.gmra.mxu1 %vm791_vm1, %v1505_v60  ;;  %v3463_v60 = vld [vmem:[%s5432_s17 + $0x50] sm:$0xf0] }
 0x999   : > { %1892 = vmatpush.bf16.msra.mxu1 %v3538_v56  ;;  %v4113_v56 = vld [vmem:[%s5432_s17 + $0x34] sm:$0xf] }
 0x99b   : > { %v1501_v62 = vpop.f32.mrf.mxu0 }
 0x99c   : > { %v3469_v62 = vld [vmem:[%s5432_s17 + $0x18] sm:$0xf] }
 0x99f   : > { %v1349_v63 = vpop.f32.mrf.mxu3 }
 0x9a0   : > { %v1369_v3 = vadd.f32 %v4709_v16, %v1349_v63  ;;  %v4118_v63 = vld [vmem:[%s5432_s17 + $0x54] sm:$0xf0] }
 0x9a7   : > { %v1351_v0 = vpop.f32.mrf.mxu3 }
 0x9a8   : > { %v3466_v0 = vor.u32 %v4109_v58, %v3463_v60  ;;  %v3501_v58 = vld [vmem:[%s5432_s17 + $0x38] sm:$0xf]  ;;  %v4114_v60 = vld [vmem:[%s5432_s17 + $0x3c] sm:$0xf] }
 0x9aa   : > { %1867 = vmatpush.bf16.msra.mxu2 %v3466_v0  ;;  %v3498_v0 = vor.u32 %v4113_v56, %v3495_v57  ;;  %v4174_v56 = vld [vmem:[%s5434_s19 + $0x118] sm:$0xff] }
 0x9ab   : > { %v4182_v57 = vld [vmem:[%s5434_s19 + $0x158] sm:$0xff] }
 0x9f8   : > { %v1444_v2 = vpop.f32.mrf.mxu3 }
 0x9f9   : > { %v1448_v4 = vadd.f32 %v1444_v2, %v1369_v3  ;;  %v3470_v2 = vor.u32 %v4118_v63, %v3469_v62  ;;  %v3471_v3 = vld [vmem:[%s5432_s17 + $0x58] sm:$0xf0]  ;;  %v3494_v63 = vor.u32 %v4121_v53, %v3493_v52 }
 0x9fa   : > { %v3503_v62 = vld [vmem:[%s5432_s17 + $0x78] sm:$0xf0] }
 0x9fb   : > { %1880 = vmatpush.bf16.msra.mxu0 %v3470_v2  ;;  %v4190_v52 = vld [vmem:[%s5434_s19 + $0x198] sm:$0xff] }
 0x9fc   : > { %v4198_v53 = vld [vmem:[%s5434_s19 + $0x1d8] sm:$0xff] }
 0xa00   : > { %v1446_v1 = vpop.f32.mrf.mxu3 }
 0xa01   : > { %v4110_v1 = vld [vmem:[%s5432_s17 + $0x1c] sm:$0xf] }
 0xa15   : > { %v1521_v6 = vpop.f32.mrf.mxu1 }
 0xa16   : > { %v1525_v8 = vadd.f32 %v1521_v6, %v1448_v4  ;;  %v3474_v4 = vor.u32 %v4110_v1, %v3471_v3  ;;  %v3506_v1 = vor.u32 %v4114_v60, %v3503_v62  ;;  %v4162_v3 = vld [vmem:[%s5434_s19 + $0xb8] sm:$0xff]  ;;  %v4173_v60 = vld [vmem:[%s5434_s19 + $0x110] sm:$0xff] }
 0xa17   : > { %v4181_v62 = vld [vmem:[%s5434_s19 + $0x150] sm:$0xff] }
 0xa18   : > { %v1529_v9 = vadd.f32 %v4304_v5, %v1525_v8  ;;  %1893 = vmatpush.bf16.msra.mxu1 %v3474_v4  ;;  %v4170_v4 = vld [vmem:[%s5434_s19 + $0xf8] sm:$0xff] }
 0xa1a   : > { %v1530_v10 = vadd.f32 %v1529_v9, %v4659_v24  ;;  %v4131_v24 = vld [vmem:[%s5432_s17 + $0xbc] sm:$0xf0] }
 0xa1b   : > { %v3510_v20 = vor.u32 %v4131_v24, %v3509_v18  ;;  %v3541_v18 = vld [vmem:[%s5432_s17 + $0xa0] sm:$0xf] }
 0xa1c   : > { %v1533_v11 = vsel %vm763_vm0, %v1530_v10, 0.0  ;;  %v4135_v24 = vld [vmem:[%s5432_s17 + $0xdc] sm:$0xf0] }
 0xa1d   : > { %1534 = vadd.xlane.f32.xlu0 %v1533_v11  ;;  %v1523_v12 = vpop.f32.mrf.mxu1  ;;  %1801 = vmatpush.bf16.msra.mxu3 %v3510_v20  ;;  %v3543_v20 = vld [vmem:[%s5432_s17 + $0xe0] sm:$0xf0]  ;;  %v3542_v28 = vor.u32 %v4135_v24, %v3541_v18 }
 0xa1e   : > { %v4305_v12 = vld [vmem:[%s5430_s15] ss:$0 sm:$0xff]  ;;  %v3546_v29 = vor.u32 %v4127_v19, %v3543_v20  ;;  %v4158_v20 = vld [vmem:[%s5434_s19 + $0x98] sm:$0xff] }
 0xa1f   : > { %v4167_v18 = vld [vmem:[%s5434_s19 + $0xe0] sm:$0xff] }
 0xa20   : > { %v4143_v24 = vld [vmem:[%s5434_s19 + $0x20] sm:$0xff] }
 0xa21   : > { %1802 = vmatpush.bf16.msra.mxu3 %v3446_v32  ;;  %v4111_v32 = vld [vmem:[%s5432_s17 + $0x24] sm:$0xf] }
 0xa22   : > { %v3482_v39 = vor.u32 %v4111_v32, %v3479_v33  ;;  %v4151_v19 = vld [vmem:[%s5434_s19 + $0x60] sm:$0xff] }
 0xa23   : > { %v4155_v32 = vld [vmem:[%s5434_s19 + $0x80] sm:$0xff] }
 0xa24   : > { %v4163_v33 = vld [vmem:[%s5434_s19 + $0xc0] sm:$0xff] }
 0xa25   : > { %1853 = vmatpush.bf16.msrb.mxu3 %v3526_v46  ;;  %v3565_v46 = vld [vmem:[%s5432_s17 + $0xb8] sm:$0xf] }
 0xa26   : > { %v3566_v54 = vor.u32 %v4138_v47, %v3565_v46  ;;  %v4176_v46 = vld [vmem:[%s5434_s19 + $0x128] sm:$0xff] }
 0xa27   : > { %v4184_v47 = vld [vmem:[%s5434_s19 + $0x168] sm:$0xff] }
 0xa29   : > { %1854 = vmatpush.bf16.msrb.mxu3 %v3462_v59  ;;  %v4122_v59 = vld [vmem:[%s5432_s17 + $0x74] sm:$0xf0] }
 0xa2a   : > { %v3502_v2 = vor.u32 %v4122_v59, %v3501_v58  ;;  %v4188_v58 = vld [vmem:[%s5434_s19 + $0x188] sm:$0xff] }
 0xa2b   : > { %v4196_v59 = vld [vmem:[%s5434_s19 + $0x1c8] sm:$0xff] }
 0xa90   : > { %v1535_v13 = vpop.xlane.xlu0 %1534 }
 0xa91   : > { %v1536_v14 = vmul.f32 %v1535_v13, %v4631_v61 }
 0xa93   : > { %v4743_v15 = vsub.f32 %v1530_v10, %v1536_v14  ;;  %v4306_v14 = vld [vmem:[%s5431_s16] ss:$0 sm:$0xff] }
 0xa95   : > { %v1538_v16 = vmul.f32 %v4743_v15, %v4743_v15 }
 0xa97   : > { %v1539_v17 = vsel %vm763_vm0, %v1538_v16, 0.0 }
 0xa98   : > { %1540 = vadd.xlane.f32.xlu2 %v1539_v17 }
 0xb0b   : > { %v1541_v41 = vpop.xlane.xlu2 %1540 }
 0xb0c   : > { %v1542_v45 = vmul.f32 %v1541_v41, %v4631_v61  ;;  %v3490_v41 = vor.u32 %v4112_v36, %v3487_v37  ;;  %v4139_v36 = vld [vmem:[%s5434_s19] sm:$0xff] }
 0xb0d   : > { %v4147_v37 = vld [vmem:[%s5434_s19 + $0x40] sm:$0xff] }
 0xb0e   : > { %v1543_v55 = vadd.f32 1e-05, %v1542_v45  ;;  %v3559_v45 = vld [vmem:[%s5432_s17 + $0xf0] sm:$0xf0] }
 0xb0f   : > { %v3562_v51 = vor.u32 %v4129_v44, %v3559_v45  ;;  %v4192_v44 = vld [vmem:[%s5434_s19 + $0x1a8] sm:$0xff] }
 0xb10   : > { %4346 = vrsqrt.f32 %v1543_v55  ;;  %vm1550_vm8 = vweird.f32 %v1543_v55  ;;  %v4200_v45 = vld [vmem:[%s5434_s19 + $0x1e8] sm:$0xff] }
 0xb16   : > { %v4347_v5 = vpop.eup %4346 }
 0xb17   : > { %v1545_v6 = vmul.f32 %v4347_v5, %v1543_v55  ;;  %vm1551_vm7 = vweird.f32 %v4347_v5  ;;  %v3570_v55 = vor.u32 %v4130_v48, %v3567_v49  ;;  %v4191_v48 = vld [vmem:[%s5434_s19 + $0x1a0] sm:$0xff] }
 0xb18   : > { %vm1552_vm9 = vmor %vm1550_vm8, %vm1551_vm7  ;;  %v4199_v49 = vld [vmem:[%s5434_s19 + $0x1e0] sm:$0xff] }
 0xb19   : > { %v1546_v8 = vmul.f32 %v4347_v5, %v1545_v6  ;;  %v4154_v6 = vld [vmem:[%s5434_s19 + $0x78] sm:$0xff] }
 0xb1b   : > { %v1547_v9 = vmul.f32 0.5, %v1546_v8  ;;  %v4161_v8 = vld [vmem:[%s5434_s19 + $0xb0] sm:$0xff] }
 0xb1d   : > { %v1548_v10 = vsub.f32 1.5, %v1547_v9  ;;  %v4169_v9 = vld [vmem:[%s5434_s19 + $0xf0] sm:$0xff] }
 0xb1f   : > { %v1549_v11 = vmul.f32 %v4347_v5, %v1548_v10  ;;  %v4145_v10 = vld [vmem:[%s5434_s19 + $0x30] sm:$0xff] }
 0xb21   : > { %v1553_v13 = vsel %vm1552_vm9, %v4347_v5, %v1549_v11  ;;  %v4146_v5 = vld [vmem:[%s5434_s19 + $0x38] sm:$0xff]  ;;  %v4153_v11 = vld [vmem:[%s5434_s19 + $0x70] sm:$0xff] }
 0xb22   : > { %v1554_v16 = vmul.f32 %v1553_v13, %v4743_v15  ;;  %v3549_v15 = vld [vmem:[%s5432_s17 + $0xa8] sm:$0xf] }
 0xb23   : > { %v3550_v25 = vor.u32 %v4136_v22, %v3549_v15  ;;  %v4168_v13 = vld [vmem:[%s5434_s19 + $0xe8] sm:$0xff]  ;;  %v4166_v15 = vld [vmem:[%s5434_s19 + $0xd8] sm:$0xff] }
 0xb24   : > { %v1558_v17 = vmul.f32 %v4305_v12, %v1554_v16  ;;  %v4160_v12 = vld [vmem:[%s5434_s19 + $0xa8] sm:$0xff]  ;;  %v4142_v22 = vld [vmem:[%s5434_s19 + $0x18] sm:$0xff] }
 0xb25   : > { %v4152_v16 = vld [vmem:[%s5434_s19 + $0x68] sm:$0xff] }
 0xb26   : > { %v4867_v21 = vadd.f32 %v4306_v14, %v1558_v17  ;;  %v4144_v14 = vld [vmem:[%s5434_s19 + $0x28] sm:$0xff]  ;;  %v4159_v17 = vld [vmem:[%s5434_s19 + $0xa0] sm:$0xff] }
 0xb28   : > { %v4880_v27 = vpack.c.bf16 %v4867_v21, %v4867_v21 }
 0xb2a   : > { %3571 = vmatmul.msk.bf16.vlgmr.msra.gmra.mxu3 %vm763_vm0, %v4880_v27  ;;  %3572 = vmatmul.msk.bf16.vlgmr.msrb.gmra.mxu2 %vm763_vm0, %v4880_v27 }
 0xb2b   : > { %3573 = vmatmul.msk.bf16.vlgmr.msrb.gmra.mxu0 %vm763_vm0, %v4880_v27  ;;  %3574 = vmatmul.msk.bf16.vlgmr.msrb.gmra.mxu1 %vm763_vm0, %v4880_v27 }
 0xb2c   : > { %1905 = vmatpush.bf16.msra.mxu3 %v3542_v28  ;;  %1918 = vmatpush.bf16.msrb.mxu2 %v3546_v29  ;;  %v4165_v28 = vld [vmem:[%s5434_s19 + $0xd0] sm:$0xff] }
 0xb2d   : > { %1931 = vmatpush.bf16.msrb.mxu0 %v3550_v25  ;;  %1944 = vmatpush.bf16.msrb.mxu1 %v3554_v7  ;;  %v4141_v29 = vld [vmem:[%s5434_s19 + $0x10] sm:$0xff]  ;;  %v4140_v25 = vld [vmem:[%s5434_s19 + $0x8] sm:$0xff] }
 0xb2e   : > { %v4148_v7 = vld [vmem:[%s5434_s19 + $0x48] sm:$0xff] }
 0xb30   : > { %1906 = vmatpush.bf16.msra.mxu3 %v3478_v38  ;;  %1919 = vmatpush.bf16.msrb.mxu2 %v3482_v39  ;;  %v4178_v38 = vld [vmem:[%s5434_s19 + $0x138] sm:$0xff] }
 0xb31   : > { %1932 = vmatpush.bf16.msrb.mxu0 %v3486_v40  ;;  %1945 = vmatpush.bf16.msrb.mxu1 %v3490_v41  ;;  %v4186_v39 = vld [vmem:[%s5434_s19 + $0x178] sm:$0xff]  ;;  %v4193_v40 = vld [vmem:[%s5434_s19 + $0x1b0] sm:$0xff] }
 0xb32   : > { %v4201_v41 = vld [vmem:[%s5434_s19 + $0x1f0] sm:$0xff] }
 0xb3a   : > { %3575 = vmatmul.msk.bf16.vlgmr.msrb.gmra.mxu3 %vm763_vm0, %v4880_v27  ;;  %3576 = vmatmul.msk.bf16.vlgmr.msra.gmra.mxu2 %vm763_vm0, %v4880_v27 }
 0xb3b   : > { %3577 = vmatmul.msk.bf16.vlgmr.msra.gmra.mxu0 %vm763_vm0, %v4880_v27  ;;  %3578 = vmatmul.msk.bf16.vlgmr.msra.gmra.mxu1 %vm763_vm0, %v4880_v27 }
 0xb3c   : > { %1957 = vmatpush.bf16.msrb.mxu3 %v3558_v50  ;;  %1970 = vmatpush.bf16.msra.mxu2 %v3562_v51  ;;  %v4175_v50 = vld [vmem:[%s5434_s19 + $0x120] sm:$0xff] }
 0xb3d   : > { %1983 = vmatpush.bf16.msra.mxu0 %v3566_v54  ;;  %1996 = vmatpush.bf16.msra.mxu1 %v3570_v55  ;;  %v4183_v51 = vld [vmem:[%s5434_s19 + $0x160] sm:$0xff]  ;;  %v4189_v54 = vld [vmem:[%s5434_s19 + $0x190] sm:$0xff] }
 0xb3e   : > { %v4197_v55 = vld [vmem:[%s5434_s19 + $0x1d0] sm:$0xff] }
 0xb40   : > { %1958 = vmatpush.bf16.msrb.mxu3 %v3494_v63  ;;  %1971 = vmatpush.bf16.msra.mxu2 %v3498_v0  ;;  %v4187_v63 = vld [vmem:[%s5434_s19 + $0x180] sm:$0xff] }
 0xb41   : > { %1984 = vmatpush.bf16.msra.mxu0 %v3502_v2  ;;  %1997 = vmatpush.bf16.msra.mxu1 %v3506_v1  ;;  %v4195_v0 = vld [vmem:[%s5434_s19 + $0x1c0] sm:$0xff]  ;;  %v4172_v2 = vld [vmem:[%s5434_s19 + $0x108] sm:$0xff] }
 0xb42   : > { %v4180_v1 = vld [vmem:[%s5434_s19 + $0x148] sm:$0xff] }
 0xb4a   : > { %3579 = vmatmul.msk.bf16.vlgmr.msra.gmra.mxu3 %vm763_vm0, %v4880_v27  ;;  %3580 = vmatmul.msk.bf16.vlgmr.msrb.gmra.mxu2 %vm763_vm0, %v4880_v27 }
 0xb4b   : > { %3581 = vmatmul.msk.bf16.vlgmr.msrb.gmra.mxu0 %vm763_vm0, %v4880_v27  ;;  %3582 = vmatmul.msk.bf16.vlgmr.msrb.gmra.mxu1 %vm763_vm0, %v4880_v27 }
 0xb4c   : > { %3089 = vmatpush.bf16.msrb.mxu0 %v4162_v3  ;;  %3102 = vmatpush.bf16.msrb.mxu1 %v4170_v4  ;;  %v4171_v3 = vld [vmem:[%s5434_s19 + $0x100] sm:$0xff] }
 0xb4d   : > { %3063 = vmatpush.bf16.msra.mxu3 %v4146_v5  ;;  %3076 = vmatpush.bf16.msrb.mxu2 %v4154_v6  ;;  %v4179_v4 = vld [vmem:[%s5434_s19 + $0x140] sm:$0xff] }
 0xb4e   : > { %v5181_v5 = vld [vmem:[%s5433_s18] sm:$0xff] }
 0xb4f   : > { %v1602_v6 = vperm.slane %v5181_v5, 2 }
 0xb50   : > { %3090 = vmatpush.bf16.msrb.mxu0 %v4161_v8  ;;  %3103 = vmatpush.bf16.msrb.mxu1 %v4169_v9  ;;  %v1603_v8 = vperm.slane %v5181_v5, 3 }
 0xb51   : > { %3064 = vmatpush.bf16.msra.mxu3 %v4145_v10  ;;  %3077 = vmatpush.bf16.msrb.mxu2 %v4153_v11 }
 0xb54   : > { %3091 = vmatpush.bf16.msrb.mxu0 %v4160_v12  ;;  %3104 = vmatpush.bf16.msrb.mxu1 %v4168_v13  ;;  %v1600_v13 = vperm.slane %v5181_v5, 0 }
 0xb55   : > { %3065 = vmatpush.bf16.msra.mxu3 %v4144_v14  ;;  %3078 = vmatpush.bf16.msrb.mxu2 %v4152_v16  ;;  %v1601_v14 = vperm.slane %v5181_v5, 1 }
 0xb58   : > { %3092 = vmatpush.bf16.msrb.mxu0 %v4159_v17  ;;  %3105 = vmatpush.bf16.msrb.mxu1 %v4167_v18  ;;  %v4226_v18 = vld [vmem:[%s5434_s19 + $0x2b8] sm:$0xff] }
 0xb59   : > { %3066 = vmatpush.bf16.msra.mxu3 %v4143_v24  ;;  %3079 = vmatpush.bf16.msrb.mxu2 %v4151_v19  ;;  %v4234_v24 = vld [vmem:[%s5434_s19 + $0x2f8] sm:$0xff] }
 0xb5a   : > { %3583 = vmatmul.msk.bf16.vlgmr.msrb.gmra.mxu3 %vm763_vm0, %v4880_v27  ;;  %3584 = vmatmul.msk.bf16.vlgmr.msra.gmra.mxu2 %vm763_vm0, %v4880_v27 }
 0xb5b   : > { %3585 = vmatmul.msk.bf16.vlgmr.msra.gmra.mxu0 %vm763_vm0, %v4880_v27  ;;  %3586 = vmatmul.msk.bf16.vlgmr.msra.gmra.mxu1 %vm763_vm0, %v4880_v27  ;;  %v4149_v27 = vld [vmem:[%s5434_s19 + $0x50] sm:$0xff] }
 0xb5c   : > { %3093 = vmatpush.bf16.msrb.mxu0 %v4158_v20  ;;  %3106 = vmatpush.bf16.msrb.mxu1 %v4166_v15 }
 0xb5d   : > { %3067 = vmatpush.bf16.msra.mxu3 %v4142_v22  ;;  %3080 = vmatpush.bf16.msrb.mxu2 %v4150_v23 }
 0xb60   : > { %3094 = vmatpush.bf16.msrb.mxu0 %v4157_v26  ;;  %3107 = vmatpush.bf16.msrb.mxu1 %v4165_v28 }
 0xb61   : > { %3068 = vmatpush.bf16.msra.mxu3 %v4141_v29  ;;  %3081 = vmatpush.bf16.msrb.mxu2 %v4149_v27 }
 0xb64   : > { %3095 = vmatpush.bf16.msrb.mxu0 %v4156_v30  ;;  %3108 = vmatpush.bf16.msrb.mxu1 %v4164_v31  ;;  %v4225_v31 = vld [vmem:[%s5434_s19 + $0x2b0] sm:$0xff] }
 0xb65   : > { %3069 = vmatpush.bf16.msra.mxu3 %v4140_v25  ;;  %3082 = vmatpush.bf16.msrb.mxu2 %v4148_v7  ;;  %v4233_v25 = vld [vmem:[%s5434_s19 + $0x2f0] sm:$0xff] }
 0xb68   : > { %3096 = vmatpush.bf16.msrb.mxu0 %v4155_v32  ;;  %3109 = vmatpush.bf16.msrb.mxu1 %v4163_v33  ;;  %v4210_v33 = vld [vmem:[%s5434_s19 + $0x238] sm:$0xff] }
 0xb69   : > { %3070 = vmatpush.bf16.msra.mxu3 %v4139_v36  ;;  %3083 = vmatpush.bf16.msrb.mxu2 %v4147_v37  ;;  %v4232_v36 = vld [vmem:[%s5434_s19 + $0x2e8] sm:$0xff] }
 0xb6c   : > { %3141 = vmatpush.bf16.msra.mxu0 %v4194_v34  ;;  %3154 = vmatpush.bf16.msra.mxu1 %v4202_v35  ;;  %v4218_v34 = vld [vmem:[%s5434_s19 + $0x278] sm:$0xff]  ;;  %v4224_v35 = vld [vmem:[%s5434_s19 + $0x2a8] sm:$0xff] }
 0xb6d   : > { %3115 = vmatpush.bf16.msrb.mxu3 %v4178_v38  ;;  %3128 = vmatpush.bf16.msra.mxu2 %v4186_v39  ;;  %v1606_v39 = vperm.slane %v5181_v5, 6 }
 0xb70   : > { %3142 = vmatpush.bf16.msra.mxu0 %v4193_v40  ;;  %3155 = vmatpush.bf16.msra.mxu1 %v4201_v41  ;;  %v1607_v40 = vperm.slane %v5181_v5, 7  ;;  %v4209_v41 = vld [vmem:[%s5434_s19 + $0x230] sm:$0xff] }
 0xb71   : > { %3116 = vmatpush.bf16.msrb.mxu3 %v4177_v42  ;;  %3129 = vmatpush.bf16.msra.mxu2 %v4185_v43  ;;  %v4217_v42 = vld [vmem:[%s5434_s19 + $0x270] sm:$0xff] }
 0xb74   : > { %3143 = vmatpush.bf16.msra.mxu0 %v4192_v44  ;;  %3156 = vmatpush.bf16.msra.mxu1 %v4200_v45  ;;  %v4223_v45 = vld [vmem:[%s5434_s19 + $0x2a0] sm:$0xff] }
 0xb75   : > { %3117 = vmatpush.bf16.msrb.mxu3 %v4176_v46  ;;  %3130 = vmatpush.bf16.msra.mxu2 %v4184_v47  ;;  %v4231_v46 = vld [vmem:[%s5434_s19 + $0x2e0] sm:$0xff] }
 0xb78   : > { %3144 = vmatpush.bf16.msra.mxu0 %v4191_v48  ;;  %3157 = vmatpush.bf16.msra.mxu1 %v4199_v49  ;;  %v4208_v49 = vld [vmem:[%s5434_s19 + $0x228] sm:$0xff] }
 0xb79   : > { %3118 = vmatpush.bf16.msrb.mxu3 %v4175_v50  ;;  %3131 = vmatpush.bf16.msra.mxu2 %v4183_v51  ;;  %v4216_v50 = vld [vmem:[%s5434_s19 + $0x268] sm:$0xff]  ;;  %v1604_v51 = vperm.slane %v5181_v5, 4 }
 0xb7c   : > { %3145 = vmatpush.bf16.msra.mxu0 %v4190_v52  ;;  %3158 = vmatpush.bf16.msra.mxu1 %v4198_v53  ;;  %v1605_v52 = vperm.slane %v5181_v5, 5 }
 0xb7d   : > { %3119 = vmatpush.bf16.msrb.mxu3 %v4174_v56  ;;  %3132 = vmatpush.bf16.msra.mxu2 %v4182_v57  ;;  %v4230_v56 = vld [vmem:[%s5434_s19 + $0x2d8] sm:$0xff] }
 0xb80   : > { %3146 = vmatpush.bf16.msra.mxu0 %v4189_v54  ;;  %3159 = vmatpush.bf16.msra.mxu1 %v4197_v55  ;;  %v4222_v55 = vld [vmem:[%s5434_s19 + $0x298] sm:$0xff] }
 0xb81   : > { %3120 = vmatpush.bf16.msrb.mxu3 %v4173_v60  ;;  %3133 = vmatpush.bf16.msra.mxu2 %v4181_v62 }
 0xb84   : > { %3147 = vmatpush.bf16.msra.mxu0 %v4188_v58  ;;  %3160 = vmatpush.bf16.msra.mxu1 %v4196_v59 }
 0xb85   : > { %3121 = vmatpush.bf16.msrb.mxu3 %v4172_v2  ;;  %3134 = vmatpush.bf16.msra.mxu2 %v4180_v1  ;;  %v4215_v2 = vld [vmem:[%s5434_s19 + $0x260] sm:$0xff] }
 0xb88   : > { %3148 = vmatpush.bf16.msra.mxu0 %v4187_v63  ;;  %3161 = vmatpush.bf16.msra.mxu1 %v4195_v0  ;;  %v4207_v0 = vld [vmem:[%s5434_s19 + $0x220] sm:$0xff] }
 0xb89   : > { %3122 = vmatpush.bf16.msrb.mxu3 %v4171_v3  ;;  %3135 = vmatpush.bf16.msra.mxu2 %v4179_v4 }
 0xba8   : > { %v1830_v9 = vpop.f32.mrf.mxu0  ;;  %v1843_v10 = vpop.f32.mrf.mxu1 }
 0xba9   : > { %v1831_v11 = vadd.f32 %v1830_v9, %v1602_v6  ;;  %v1844_v12 = vadd.f32 %v1843_v10, %v1603_v8  ;;  %v4221_v6 = vld [vmem:[%s5434_s19 + $0x290] sm:$0xff] }
 0xbaa   : > { %v4229_v8 = vld [vmem:[%s5434_s19 + $0x2d0] sm:$0xff] }
 0xbab   : > { %v2005_v16 = vmax.f32 %v1831_v11, 0.0  ;;  %v2006_v17 = vmax.f32 %v1844_v12, 0.0  ;;  %v4206_v11 = vld [vmem:[%s5434_s19 + $0x218] sm:$0xff] }
 0xbac   : > { %v4214_v12 = vld [vmem:[%s5434_s19 + $0x258] sm:$0xff] }
 0xbad   : > { %v2278_v19 = vpack.c.bf16 %v2005_v16, %v2005_v16  ;;  %v2279_v20 = vpack.c.bf16 %v2006_v17, %v2006_v17  ;;  %v1804_v15 = vpop.f32.mrf.mxu3  ;;  %v1817_v22 = vpop.f32.mrf.mxu2  ;;  %v4228_v16 = vld [vmem:[%s5434_s19 + $0x2c8] sm:$0xff] }
 0xbae   : > { %v1805_v23 = vadd.f32 %v1804_v15, %v1600_v13  ;;  %v1818_v26 = vadd.f32 %v1817_v22, %v1601_v14  ;;  %v5260_v13 = vld [vmem:[%s5433_s18 + $0x8] sm:$0xff]  ;;  %v4213_v15 = vld [vmem:[%s5434_s19 + $0x250] sm:$0xff] }
 0xbaf   : > { %3097 = vmatmul.bf16.vlgmr.msrb.gmra.mxu0 %v2278_v19  ;;  %3110 = vmatmul.bf16.vlgmr.msrb.gmra.mxu1 %v2279_v20  ;;  %v4220_v14 = vld [vmem:[%s5434_s19 + $0x288] sm:$0xff]  ;;  %v1611_v19 = vperm.slane %v5260_v13, 3  ;;  %v4205_v20 = vld [vmem:[%s5434_s19 + $0x210] sm:$0xff] }
 0xbb0   : > { %v2003_v28 = vmax.f32 %v1805_v23, 0.0  ;;  %v2004_v29 = vmax.f32 %v1818_v26, 0.0  ;;  %3193 = vmatpush.bf16.msrb.mxu0 %v4226_v18  ;;  %3206 = vmatpush.bf16.msrb.mxu1 %v4234_v24  ;;  %v1832_v27 = vpop.f32.mrf.mxu0  ;;  %v1845_v30 = vpop.f32.mrf.mxu1  ;;  %v1610_v24 = vperm.slane %v5260_v13, 2  ;;  %v4219_v26 = vld [vmem:[%s5434_s19 + $0x280] sm:$0xff] }
 0xbb1   : > { %v4258_v30 = vld [vmem:[%s5434_s19 + $0x3b8] sm:$0xff] }
 0xbb2   : > { %v2276_v7 = vpack.c.bf16 %v2003_v28, %v2003_v28  ;;  %v2277_v32 = vpack.c.bf16 %v2004_v29, %v2004_v29  ;;  %v4227_v28 = vld [vmem:[%s5434_s19 + $0x2c0] sm:$0xff] }
 0xbb4   : > { %3194 = vmatpush.bf16.msrb.mxu0 %v4225_v31  ;;  %3207 = vmatpush.bf16.msrb.mxu1 %v4233_v25  ;;  %v4266_v31 = vld [vmem:[%s5434_s19 + $0x3f8] sm:$0xff]  ;;  %v4204_v25 = vld [vmem:[%s5434_s19 + $0x208] sm:$0xff] }
 0xbb5   : > { %3071 = vmatmul.bf16.vlgmr.msra.gmra.mxu3 %v2276_v7  ;;  %3084 = vmatmul.bf16.vlgmr.msrb.gmra.mxu2 %v2277_v32  ;;  %v1806_v37 = vpop.f32.mrf.mxu3  ;;  %v1819_v38 = vpop.f32.mrf.mxu2  ;;  %v4212_v7 = vld [vmem:[%s5434_s19 + $0x248] sm:$0xff]  ;;  %v1608_v32 = vperm.slane %v5260_v13, 0 }
 0xbb6   : > { %3167 = vmatpush.bf16.msra.mxu3 %v4210_v33  ;;  %3180 = vmatpush.bf16.msrb.mxu2 %v4218_v34  ;;  %v1609_v33 = vperm.slane %v5260_v13, 1 }
 0xbb8   : > { %3195 = vmatpush.bf16.msrb.mxu0 %v4224_v35  ;;  %3208 = vmatpush.bf16.msrb.mxu1 %v4232_v36  ;;  %v1882_v43 = vpop.f32.mrf.mxu0  ;;  %v1895_v44 = vpop.f32.mrf.mxu1 }
 0xbb9   : > { %v1883_v47 = vadd.f32 %v1882_v43, %v1606_v39  ;;  %v1896_v48 = vadd.f32 %v1895_v44, %v1607_v40  ;;  %v4257_v40 = vld [vmem:[%s5434_s19 + $0x3b0] sm:$0xff]  ;;  %v4203_v44 = vld [vmem:[%s5434_s19 + $0x200] sm:$0xff] }
 0xbba   : > { %3168 = vmatpush.bf16.msra.mxu3 %v4209_v41  ;;  %3181 = vmatpush.bf16.msrb.mxu2 %v4217_v42  ;;  %v4265_v41 = vld [vmem:[%s5434_s19 + $0x3f0] sm:$0xff] }
 0xbbb   : > { %v2009_v53 = vmax.f32 %v1883_v47, 0.0  ;;  %v2010_v54 = vmax.f32 %v1896_v48, 0.0  ;;  %v4250_v47 = vld [vmem:[%s5434_s19 + $0x378] sm:$0xff] }
 0xbbc   : > { %3196 = vmatpush.bf16.msrb.mxu0 %v4223_v45  ;;  %3209 = vmatpush.bf16.msrb.mxu1 %v4231_v46  ;;  %v4211_v45 = vld [vmem:[%s5434_s19 + $0x240] sm:$0xff]  ;;  %v4242_v46 = vld [vmem:[%s5434_s19 + $0x338] sm:$0xff] }
 0xbbd   : > { %v2282_v57 = vpack.c.bf16 %v2009_v53, %v2009_v53  ;;  %v2283_v58 = vpack.c.bf16 %v2010_v54, %v2010_v54  ;;  %v1856_v59 = vpop.f32.mrf.mxu3  ;;  %v1869_v60 = vpop.f32.mrf.mxu2  ;;  %v4264_v53 = vld [vmem:[%s5434_s19 + $0x3e8] sm:$0xff] }
 0xbbe   : > { %3169 = vmatpush.bf16.msra.mxu3 %v4208_v49  ;;  %3182 = vmatpush.bf16.msrb.mxu2 %v4216_v50  ;;  %v1857_v62 = vadd.f32 %v1856_v59, %v1604_v51  ;;  %v1870_v63 = vadd.f32 %v1869_v60, %v1605_v52  ;;  %v4256_v52 = vld [vmem:[%s5434_s19 + $0x3a8] sm:$0xff]  ;;  %v4255_v60 = vld [vmem:[%s5434_s19 + $0x3a0] sm:$0xff] }
 0xbbf   : > { %3149 = vmatmul.bf16.vlgmr.msra.gmra.mxu0 %v2282_v57  ;;  %3162 = vmatmul.bf16.vlgmr.msra.gmra.mxu1 %v2283_v58  ;;  %v4249_v57 = vld [vmem:[%s5434_s19 + $0x370] sm:$0xff] }
 0xbc0   : > { %v2007_v1 = vmax.f32 %v1857_v62, 0.0  ;;  %v2008_v3 = vmax.f32 %v1870_v63, 0.0  ;;  %3197 = vmatpush.bf16.msrb.mxu0 %v4222_v55  ;;  %3210 = vmatpush.bf16.msrb.mxu1 %v4230_v56  ;;  %v1884_v4 = vpop.f32.mrf.mxu0  ;;  %v1897_v5 = vpop.f32.mrf.mxu1  ;;  %v4241_v56 = vld [vmem:[%s5434_s19 + $0x330] sm:$0xff]  ;;  %v4263_v62 = vld [vmem:[%s5434_s19 + $0x3e0] sm:$0xff]  ;;  %v4240_v63 = vld [vmem:[%s5434_s19 + $0x328] sm:$0xff] }
 0xbc1   : > { %v4262_v4 = vld [vmem:[%s5434_s19 + $0x3d8] sm:$0xff]  ;;  %v4239_v5 = vld [vmem:[%s5434_s19 + $0x320] sm:$0xff] }
 0xbc2   : > { %v2280_v9 = vpack.c.bf16 %v2007_v1, %v2007_v1  ;;  %v2281_v10 = vpack.c.bf16 %v2008_v3, %v2008_v3  ;;  %3170 = vmatpush.bf16.msra.mxu3 %v4207_v0  ;;  %3183 = vmatpush.bf16.msrb.mxu2 %v4215_v2  ;;  %v4248_v0 = vld [vmem:[%s5434_s19 + $0x368] sm:$0xff]  ;;  %v4254_v3 = vld [vmem:[%s5434_s19 + $0x398] sm:$0xff] }
 0xbc4   : > { %3198 = vmatpush.bf16.msrb.mxu0 %v4221_v6  ;;  %3211 = vmatpush.bf16.msrb.mxu1 %v4229_v8  ;;  %v4247_v6 = vld [vmem:[%s5434_s19 + $0x360] sm:$0xff] }
 0xbc5   : > { %3123 = vmatmul.bf16.vlgmr.msrb.gmra.mxu3 %v2280_v9  ;;  %3136 = vmatmul.bf16.vlgmr.msra.gmra.mxu2 %v2281_v10  ;;  %v1858_v17 = vpop.f32.mrf.mxu3  ;;  %v1871_v18 = vpop.f32.mrf.mxu2  ;;  %v4253_v10 = vld [vmem:[%s5434_s19 + $0x390] sm:$0xff] }
 0xbc6   : > { %3171 = vmatpush.bf16.msra.mxu3 %v4206_v11  ;;  %3184 = vmatpush.bf16.msrb.mxu2 %v4214_v12  ;;  %v4261_v11 = vld [vmem:[%s5434_s19 + $0x3d0] sm:$0xff]  ;;  %v1614_v12 = vperm.slane %v5260_v13, 6  ;;  %v4246_v17 = vld [vmem:[%s5434_s19 + $0x358] sm:$0xff] }
 0xbc8   : > { %3199 = vmatpush.bf16.msrb.mxu0 %v4220_v14  ;;  %3212 = vmatpush.bf16.msrb.mxu1 %v4228_v16  ;;  %v1934_v22 = vpop.f32.mrf.mxu0  ;;  %v1947_v23 = vpop.f32.mrf.mxu1  ;;  %v1615_v14 = vperm.slane %v5260_v13, 7  ;;  %v4238_v16 = vld [vmem:[%s5434_s19 + $0x318] sm:$0xff] }
 0xbc9   : > { %v1935_v29 = vadd.f32 %v1934_v22, %v1610_v24  ;;  %v1948_v27 = vadd.f32 %v1947_v23, %v1611_v19  ;;  %v4252_v19 = vld [vmem:[%s5434_s19 + $0x388] sm:$0xff]  ;;  %v4237_v23 = vld [vmem:[%s5434_s19 + $0x310] sm:$0xff] }
 0xbca   : > { %3172 = vmatpush.bf16.msra.mxu3 %v4205_v20  ;;  %3185 = vmatpush.bf16.msrb.mxu2 %v4213_v15  ;;  %v4260_v20 = vld [vmem:[%s5434_s19 + $0x3c8] sm:$0xff] }
 0xbcb   : > { %v2013_v34 = vmax.f32 %v1935_v29, 0.0  ;;  %v2014_v35 = vmax.f32 %v1948_v27, 0.0  ;;  %v1613_v29 = vperm.slane %v5260_v13, 5 }
 0xbcc   : > { %3200 = vmatpush.bf16.msrb.mxu0 %v4219_v26  ;;  %3213 = vmatpush.bf16.msrb.mxu1 %v4227_v28  ;;  %v4245_v26 = vld [vmem:[%s5434_s19 + $0x350] sm:$0xff]  ;;  %v1612_v28 = vperm.slane %v5260_v13, 4  ;;  %v4236_v13 = vld [vmem:[%s5434_s19 + $0x308] sm:$0xff] }
 0xbcd   : > { %v2286_v36 = vpack.c.bf16 %v2013_v34, %v2013_v34  ;;  %v2287_v37 = vpack.c.bf16 %v2014_v35, %v2014_v35  ;;  %v1908_v38 = vpop.f32.mrf.mxu3  ;;  %v1921_v39 = vpop.f32.mrf.mxu2 }
 0xbce   : > { %3173 = vmatpush.bf16.msra.mxu3 %v4204_v25  ;;  %3186 = vmatpush.bf16.msrb.mxu2 %v4212_v7  ;;  %v1909_v42 = vadd.f32 %v1908_v38, %v1608_v32  ;;  %v1922_v43 = vadd.f32 %v1921_v39, %v1609_v33  ;;  %v4259_v25 = vld [vmem:[%s5434_s19 + $0x3c0] sm:$0xff]  ;;  %v4244_v33 = vld [vmem:[%s5434_s19 + $0x348] sm:$0xff] }
 0xbcf   : > { %3201 = vmatmul.bf16.vlgmr.msrb.gmra.mxu0 %v2286_v36  ;;  %3214 = vmatmul.bf16.vlgmr.msrb.gmra.mxu1 %v2287_v37  ;;  %v4235_v38 = vld [vmem:[%s5434_s19 + $0x300] sm:$0xff] }
 0xbd0   : > { %3245 = vmatpush.bf16.msra.mxu0 %v4258_v30  ;;  %3258 = vmatpush.bf16.msra.mxu1 %v4266_v31  ;;  %v2011_v48 = vmax.f32 %v1909_v42, 0.0  ;;  %v2012_v49 = vmax.f32 %v1922_v43, 0.0  ;;  %v1936_v50 = vpop.f32.mrf.mxu0  ;;  %v1949_v51 = vpop.f32.mrf.mxu1  ;;  %v4251_v31 = vld [vmem:[%s5434_s19 + $0x380] sm:$0xff] }
 0xbd1   : > { %v4243_v39 = vld [vmem:[%s5434_s19 + $0x340] sm:$0xff] }
 0xbd2   : > { %v2284_v54 = vpack.c.bf16 %v2011_v48, %v2011_v48  ;;  %v2285_v55 = vpack.c.bf16 %v2012_v49, %v2012_v49  ;;  %3174 = vmatpush.bf16.msra.mxu3 %v4203_v44  ;;  %3187 = vmatpush.bf16.msrb.mxu2 %v4211_v45 }
 0xbd4   : > { %3246 = vmatpush.bf16.msra.mxu0 %v4257_v40  ;;  %3259 = vmatpush.bf16.msra.mxu1 %v4265_v41 }
 0xbd5   : > { %v1910_v58 = vpop.f32.mrf.mxu3  ;;  %v1923_v59 = vpop.f32.mrf.mxu2  ;;  %3175 = vmatmul.bf16.vlgmr.msra.gmra.mxu3 %v2284_v54  ;;  %3188 = vmatmul.bf16.vlgmr.msrb.gmra.mxu2 %v2285_v55 }
 0xbd6   : > { %3219 = vmatpush.bf16.msrb.mxu3 %v4242_v46  ;;  %3232 = vmatpush.bf16.msra.mxu2 %v4250_v47 }
 0xbd8   : > { %3247 = vmatpush.bf16.msra.mxu0 %v4256_v52  ;;  %3260 = vmatpush.bf16.msra.mxu1 %v4264_v53  ;;  %v1986_v2 = vpop.f32.mrf.mxu0  ;;  %v1999_v1 = vpop.f32.mrf.mxu1 }
 0xbd9   : > { %v1987_v15 = vadd.f32 %v1986_v2, %v1614_v12  ;;  %v2000_v22 = vadd.f32 %v1999_v1, %v1615_v14 }
 0xbda   : > { %3220 = vmatpush.bf16.msrb.mxu3 %v4241_v56  ;;  %3233 = vmatpush.bf16.msra.mxu2 %v4249_v57  ;;  %v4307_v56 = vld [vmem:[%s5435_s20] ss:$0 sm:$0xff] }
 0xbdb   : > { %v2017_v7 = vmax.f32 %v1987_v15, 0.0  ;;  %v2018_v32 = vmax.f32 %v2000_v22, 0.0 }
 0xbdc   : > { %3248 = vmatpush.bf16.msra.mxu0 %v4255_v60  ;;  %3261 = vmatpush.bf16.msra.mxu1 %v4263_v62 }
 0xbdd   : > { %v1960_v8 = vpop.f32.mrf.mxu3  ;;  %v1973_v9 = vpop.f32.mrf.mxu2  ;;  %v2290_v36 = vpack.c.bf16 %v2017_v7, %v2017_v7  ;;  %v2291_v37 = vpack.c.bf16 %v2018_v32, %v2018_v32 }
 0xbde   : > { %3221 = vmatpush.bf16.msrb.mxu3 %v4240_v63  ;;  %3234 = vmatpush.bf16.msra.mxu2 %v4248_v0  ;;  %v1961_v34 = vadd.f32 %v1960_v8, %v1612_v28  ;;  %v1974_v35 = vadd.f32 %v1973_v9, %v1613_v29 }
 0xbe0   : > { %3249 = vmatpush.bf16.msra.mxu0 %v4254_v3  ;;  %3262 = vmatpush.bf16.msra.mxu1 %v4262_v4  ;;  %v1988_v18 = vpop.f32.mrf.mxu0  ;;  %v2001_v24 = vpop.f32.mrf.mxu1  ;;  %v2015_v40 = vmax.f32 %v1961_v34, 0.0  ;;  %v2016_v41 = vmax.f32 %v1974_v35, 0.0 }
 0xbe2   : > { %3222 = vmatpush.bf16.msrb.mxu3 %v4239_v5  ;;  %3235 = vmatpush.bf16.msra.mxu2 %v4247_v6  ;;  %v2288_v42 = vpack.c.bf16 %v2015_v40, %v2015_v40  ;;  %v2289_v43 = vpack.c.bf16 %v2016_v41, %v2016_v41 }
 0xbe4   : > { %3250 = vmatpush.bf16.msra.mxu0 %v4253_v10  ;;  %3263 = vmatpush.bf16.msra.mxu1 %v4261_v11 }
 0xbe5   : > { %v1962_v27 = vpop.f32.mrf.mxu3  ;;  %v1975_v30 = vpop.f32.mrf.mxu2 }
 0xbe6   : > { %3223 = vmatpush.bf16.msrb.mxu3 %v4238_v16  ;;  %3236 = vmatpush.bf16.msra.mxu2 %v4246_v17 }
 0xbe8   : > { %3251 = vmatpush.bf16.msra.mxu0 %v4252_v19  ;;  %3264 = vmatpush.bf16.msra.mxu1 %v4260_v20 }
 0xbea   : > { %3224 = vmatpush.bf16.msrb.mxu3 %v4237_v23  ;;  %3237 = vmatpush.bf16.msra.mxu2 %v4245_v26 }
 0xbec   : > { %3252 = vmatpush.bf16.msra.mxu0 %v4251_v31  ;;  %3265 = vmatpush.bf16.msra.mxu1 %v4259_v25 }
 0xbee   : > { %3225 = vmatpush.bf16.msrb.mxu3 %v4236_v13  ;;  %3238 = vmatpush.bf16.msra.mxu2 %v4244_v33 }
 0xbef   : > { %3253 = vmatmul.bf16.vlgmr.msra.gmra.mxu0 %v2290_v36  ;;  %3266 = vmatmul.bf16.vlgmr.msra.gmra.mxu1 %v2291_v37 }
 0xbf2   : > { %3226 = vmatpush.bf16.msrb.mxu3 %v4235_v38  ;;  %3239 = vmatpush.bf16.msra.mxu2 %v4243_v39 }
 0xbf5   : > { %3227 = vmatmul.bf16.vlgmr.msrb.gmra.mxu3 %v2288_v42  ;;  %3240 = vmatmul.bf16.vlgmr.msra.gmra.mxu2 %v2289_v43 }
 0xc2c   : > { %v3098_v44 = vpop.f32.mrf.mxu0  ;;  %v3111_v45 = vpop.f32.mrf.mxu1 }
 0xc34   : > { %v3100_v46 = vpop.f32.mrf.mxu0  ;;  %v3113_v47 = vpop.f32.mrf.mxu1 }
 0xc35   : > { %v4308_v46 = vld [vmem:[%s5436_s21] ss:$0 sm:$0xff] }
 0xc38   : > { %v3072_v48 = vpop.f32.mrf.mxu3  ;;  %v3085_v49 = vpop.f32.mrf.mxu2 }
 0xc39   : > { %v3073_v59 = vadd.f32 %v4307_v56, %v3072_v48  ;;  %v4309_v48 = vld [vmem:[#allocation2] ss:$0 sm:$0xff] }
 0xc3b   : > { %v3086_v63 = vadd.f32 %v3085_v49, %v3073_v59 }
 0xc3c   : > { %v3150_v50 = vpop.f32.mrf.mxu0  ;;  %v3163_v51 = vpop.f32.mrf.mxu1 }
 0xc3d   : > { %v3099_v1 = vadd.f32 %v3098_v44, %v3086_v63 }
 0xc3f   : > { %v3112_v5 = vadd.f32 %v3111_v45, %v3099_v1 }
 0xc40   : > { %v3074_v52 = vpop.f32.mrf.mxu3  ;;  %v3087_v53 = vpop.f32.mrf.mxu2 }
 0xc44   : > { %v3152_v54 = vpop.f32.mrf.mxu0  ;;  %v3165_v55 = vpop.f32.mrf.mxu1 }
 0xc48   : > { %v3124_v57 = vpop.f32.mrf.mxu3  ;;  %v3137_v58 = vpop.f32.mrf.mxu2 }
 0xc49   : > { %v3125_v9 = vadd.f32 %v3124_v57, %v3112_v5 }
 0xc4b   : > { %v3138_v10 = vadd.f32 %v3137_v58, %v3125_v9 }
 0xc4c   : > { %v3202_v60 = vpop.f32.mrf.mxu0  ;;  %v3215_v62 = vpop.f32.mrf.mxu1 }
 0xc4d   : > { %v3151_v14 = vadd.f32 %v3150_v50, %v3138_v10 }
 0xc4f   : > { %v3164_v16 = vadd.f32 %v3163_v51, %v3151_v14 }
 0xc50   : > { %v3126_v0 = vpop.f32.mrf.mxu3  ;;  %v3139_v2 = vpop.f32.mrf.mxu2 }
 0xc54   : > { %v3204_v3 = vpop.f32.mrf.mxu0  ;;  %v3217_v4 = vpop.f32.mrf.mxu1 }
 0xc58   : > { %v3176_v6 = vpop.f32.mrf.mxu3  ;;  %v3189_v8 = vpop.f32.mrf.mxu2 }
 0xc59   : > { %v3177_v17 = vadd.f32 %v3176_v6, %v3164_v16 }
 0xc5b   : > { %v3190_v19 = vadd.f32 %v3189_v8, %v3177_v17 }
 0xc5d   : > { %v3203_v20 = vadd.f32 %v3202_v60, %v3190_v19 }
 0xc5f   : > { %v3216_v23 = vadd.f32 %v3215_v62, %v3203_v20 }
 0xc60   : > { %v3178_v11 = vpop.f32.mrf.mxu3  ;;  %v3191_v12 = vpop.f32.mrf.mxu2 }
 0xc6c   : > { %v3254_v18 = vpop.f32.mrf.mxu0  ;;  %v3267_v24 = vpop.f32.mrf.mxu1 }
 0xc74   : > { %v3256_v15 = vpop.f32.mrf.mxu0  ;;  %v3269_v22 = vpop.f32.mrf.mxu1 }
 0xc78   : > { %v3228_v26 = vpop.f32.mrf.mxu3  ;;  %v3241_v28 = vpop.f32.mrf.mxu2 }
 0xc79   : > { %v3229_v29 = vadd.f32 %v3228_v26, %v3216_v23 }
 0xc7b   : > { %v3242_v27 = vadd.f32 %v3241_v28, %v3229_v29 }
 0xc7d   : > { %v3255_v30 = vadd.f32 %v3254_v18, %v3242_v27 }
 0xc7f   : > { %v3268_v31 = vadd.f32 %v3267_v24, %v3255_v30 }
 0xc80   : > { %v3230_v25 = vpop.f32.mrf.mxu3  ;;  %v3243_v7 = vpop.f32.mrf.mxu2 }
 0xc81   : > { %v3271_v32 = vadd.f32 %v3268_v31, %v4867_v21 }
 0xc83   : > { %v3274_v13 = vsel %vm763_vm0, %v3271_v32, 0.0 }
 0xc84   : > { %3275 = vadd.xlane.f32.xlu2 %v3274_v13 }
 0xcf7   : > { %v3276_v33 = vpop.xlane.xlu2 %3275 }
 0xcf8   : > { %v3277_v34 = vmul.f32 %v3276_v33, %v4631_v61 }
 0xcfa   : > { %v3278_v35 = vsub.f32 %v3271_v32, %v3277_v34 }
 0xcfc   : > { %v3279_v36 = vmul.f32 %v3278_v35, %v3278_v35 }
 0xcfe   : > { %v3280_v37 = vsel %vm763_vm0, %v3279_v36, 0.0 }
 0xcff   : > { %3281 = vadd.xlane.f32.xlu2 %v3280_v37 }
 0xd72   : > { %v3282_v38 = vpop.xlane.xlu2 %3281 }
 0xd73   : > { %v3283_v39 = vmul.f32 %v3282_v38, %v4631_v61 }
 0xd75   : > { %v3284_v40 = vadd.f32 1e-05, %v3283_v39 }
 0xd77   : > { %4348 = vrsqrt.f32 %v3284_v40  ;;  %vm3291_vm11 = vweird.f32 %v3284_v40 }
 0xd7d   : > { %v4349_v41 = vpop.eup %4348 }
 0xd7e   : > { %v3286_v42 = vmul.f32 %v4349_v41, %v3284_v40  ;;  %vm3292_vm10 = vweird.f32 %v4349_v41 }
 0xd7f   : > { %vm3293_vm12 = vmor %vm3291_vm11, %vm3292_vm10 }
 0xd80   : > { %v3287_v21 = vmul.f32 %v4349_v41, %v3286_v42 }
 0xd82   : > { %v3288_v43 = vmul.f32 0.5, %v3287_v21 }
 0xd84   : > { %v3289_v44 = vsub.f32 1.5, %v3288_v43 }
 0xd86   : > { %v3290_v45 = vmul.f32 %v4349_v41, %v3289_v44 }
 0xd88   : > { %v3294_v47 = vsel %vm3293_vm12, %v4349_v41, %v3290_v45 }
 0xd89   : > { %v3295_v49 = vmul.f32 %v3294_v47, %v3278_v35 }
 0xd8b   : > { %v3299_v61 = vmul.f32 %v4308_v46, %v3295_v49 }
 0xd8d   : > { %v3303_v50 = vadd.f32 %v4309_v48, %v3299_v61 }
 0xd8f   : > { %3304 = vst.msk [vmem:[%s737_s28] sm:$0xff] %vm763_vm0, %v3303_v50 }
 0xd90 PF: > { %s34_s4 = sadd.s32 1, %s4390_s4  }
 0xd91   : > { %p31_p7 = scmp.ge.s32.totalorder %s34_s4, 4  }
 0xd93   :  { %33 = sbr.rel (!%p31_p7) target bundleno = 10 (0xa), region = 150 }
 0xd98   :  { %3324 = vsyncpa [#allocation3], 1 }
 0xd99   :  { %3326 = vsyncpa [#allocation3 + $0x1], 1 }

// kernel: transformer_forward.13
= control target key start
LH: loop header
LB: loop body
LE: loop exit
PB: predicated region body
PF: predicated region fallthrough
CT: control target
= control target key end

     0   :  { %s5340_s0 = inlined_call_operand.vmem [shape: f32[2,8,32], index: 0, kind: input, shape index: {}]   ;;  %s5341_s1 = inlined_call_operand.vmem [shape: f32[2,8,32], index: 1, kind: input, shape index: {}]   ;;  %s5342_s2 = inlined_call_operand.vmem [shape: f32[8,8], index: 2, kind: input, shape index: {}]   ;;  %s5343_s3 = inlined_call_operand.vmem [shape: bf16[32,96], index: 3, kind: input, shape index: {}]   ;;  %s5344_s4 = inlined_call_operand.vmem [shape: f32[1,96], index: 4, kind: input, shape index: {}]   ;;  %s5345_s5 = inlined_call_operand.vmem [shape: bf16[32,32], index: 5, kind: input, shape index: {}]   ;;  %s5346_s6 = inlined_call_operand.vmem [shape: f32[1,32], index: 6, kind: input, shape index: {}]   ;;  %s5347_s7 = inlined_call_operand.vmem [shape: f32[1,32], index: 7, kind: input, shape index: {}]   ;;  %s5348_s8 = inlined_call_operand.vmem [shape: f32[1,32], index: 8, kind: input, shape index: {}]   ;;  %s5349_s9 = inlined_call_operand.vmem [shape: bf16[32,32], index: 9, kind: input, shape index: {}]   ;;  %s5350_s10 = inlined_call_operand.vmem [shape: f32[1,32], index: 10, kind: input, shape index: {}]   ;;  %s5351_s11 = inlined_call_operand.vmem [shape: bf16[32,64], index: 11, kind: input, shape index: {}]   ;;  %s5352_s12 = inlined_call_operand.vmem [shape: f32[1,64], index: 12, kind: input, shape index: {}]   ;;  %s5353_s13 = inlined_call_operand.vmem [shape: bf16[32,32], index: 13, kind: input, shape index: {}]   ;;  %s5354_s14 = inlined_call_operand.vmem [shape: f32[1,32], index: 14, kind: input, shape index: {}]   ;;  %s5355_s15 = inlined_call_operand.vmem [shape: f32[1,32], index: 15, kind: input, shape index: {}]   ;;  %s5356_s16 = inlined_call_operand.vmem [shape: f32[1,32], index: 16, kind: input, shape index: {}]   ;;  %s5357_s17 = inlined_call_operand.vmem [shape: bf16[32,2048], index: 17, kind: input, shape index: {}]   ;;  %s5358_s18 = inlined_call_operand.vmem [shape: f32[1,2048], index: 18, kind: input, shape index: {}]   ;;  %s5359_s19 = inlined_call_operand.vmem [shape: bf16[2048,32], index: 19, kind: input, shape index: {}]   ;;  %s5360_s20 = inlined_call_operand.vmem [shape: f32[1,32], index: 20, kind: input, shape index: {}]   ;;  %s5361_s21 = inlined_call_operand.vmem [shape: f32[1,32], index: 21, kind: input, shape index: {}]   ;;  %s5362_s22 = inlined_call_operand.vmem [shape: f32[1,32], index: 22, kind: input, shape index: {}]   ;;  %s5363_s23 = inlined_call_operand.vmem [shape: f32[2,8,32], index: 23, kind: output, shape index: {}]  }
   0x1   :  { %5376 = sst [smem:[#allocation2_spill]] %s5340_s0 }
   0x2   :  { %5377 = sst [smem:[#allocation3_spill]] %s5341_s1 }
   0x3   :  { %5378 = sst [smem:[#allocation4_spill]] %s5342_s2 }
   0x4   :  { %5379 = sst [smem:[#allocation5_spill]] %s5343_s3 }
   0x5   :  { %5380 = sst [smem:[#allocation6_spill]] %s5344_s4  ;;  %s4450_s4 = smov 0  }
   0x6   :  { %5381 = sst [smem:[#allocation7_spill]] %s5345_s5 }
   0x7   :  { %5382 = sst [smem:[#allocation8_spill]] %s5346_s6 }
   0x8   :  { %5383 = sst [smem:[#allocation9_spill]] %s5347_s7 }
   0x9 LB: > { %s3355_s30 = sadd.s32 4294967295, %s4316_s4   ;;  %p3359_p0 = scmp.ge.s32.totalorder %s4316_s4, 1  ;;  %s4316_s4 = sphi %s4450_s4, %s33_s4  }
   0xa   : > { %p645_p1 = scmp.lt.s32.totalorder %s4316_s4, 3 }
   0xc   : > { %p646_p2 = pnand %p3359_p0, %p645_p1 }
   0xd   : > { %s5384_s5 = sld [smem:[#allocation5_spill]] (!%p646_p2)  ;;  %p711_p3 = scmp.lt.s32.totalorder (!%p646_p2), %s3355_s30, 1 }
   0xe   : > { %649 = sbr.rel (%p646_p2) target bundleno = 3463 (0xd87), region = 112  ;;  %s5385_s7 = sld [smem:[#allocation2_spill]] (!%p646_p2) }
   0xf   : > { %s5386_s0 = sld [smem:[#allocation6_spill]] (!%p646_p2)  ;;  %s4319_s24 = smov (!%p646_p2), 64  }
  0x10   : > { %s4320_s25 = smov (!%p646_p2), 96   ;;  %s5369_s1 = smov (!%p646_p2), 120  }
  0x11   : > { %s5367_s26 = smov (!%p646_p2), 80   ;;  %s5366_s6 = smov (!%p646_p2), 72  }
  0x12   : > { %s5373_s27 = smov (!%p646_p2), 112   ;;  %s5387_s3 = sld [smem:[#allocation7_spill]] (!%p646_p2) }
  0x13   : > { %v4073_v0 = vld [vmem:[%s5384_s5 + $0x8] sm:$0xff]  ;;  %v4072_v1 = vld [vmem:[%s5384_s5] sm:$0xff]  ;;  %s5399_s30 = smov (!%p711_p3, %s3355_s30), 1  ;;  %vm748_vm0 = vcmask 261120   ;;  %vm776_vm1 = vcmask 64512   ;;  %vm811_vm2 = vcmask 1043456  }
  0x14   : > { %758 = vmatpush.bf16.msra.mxu0 %v4073_v0  ;;  %s4464_s2 = sshll.u32 %s5399_s30, 3  ;;  %s5368_s30 = smov 88  }
  0x15   : > { %s714_s28 = scalar_lea.vmem %s5385_s7, %s4464_s2  ;;  %v4258_v4 = vld [vmem:[%s5386_s0] ss:$0 sm:$0xff]  ;;  %s5371_s7 = smov 104  }
  0x16   : > { %v4470_v2 = vld [vmem:[%s714_s28] sm:$0xff]  ;;  %s5388_s28 = sld [smem:[#allocation4_spill]]  ;;  %s4326_s29 = smov 56  }
  0x17   : > { %v732_v3 = vpack.c.bf16 %v4470_v2, %v4470_v2  ;;  %s4327_s0 = smov 48  }
  0x18   : > { %759 = vmatpush.bf16.msra.mxu0 %v4072_v1  ;;  %v765_v16 = vld [vmem:[%s5387_s3] sm:$0xf]  ;;  %v766_v56 = vld [vmem:[%s5387_s3 + $0x4] sm:$0xf] }
  0x19   : > { %v912_v21 = vsel %vm811_vm2, %v765_v16, 0  ;;  %v893_v57 = vsel %vm811_vm2, %v766_v56, 0 }
  0x1b   : > { %3371 = vmatmul.msk.bf16.vlgmr.msra.gmra.mxu0 %vm748_vm0, %v732_v3 }
  0x1c   : > { %v4507_v25 = vld [vmem:[%s5388_s28] sm:$0xff]  ;;  %902 = vmatpush.bf16.msrb.mxu0 %v893_v57 }
  0x98   : > { %v761_v5 = vpop.f32.mrf.mxu0 }
  0x99   : > { %v762_v6 = vadd.f32 %v4258_v4, %v761_v5 }
  0x9b   : > { %v4478_v7 = vpack.c.bf16 %v762_v6, %v762_v6  ;;  %v770_v8 = vmul.f32 0.35355338, %v762_v6 }
  0x9d   : > { %834 = vrot.lane.b32.xlu2 %v4478_v7, %s5368_s30  ;;  %806 = vrot.lane.b32.xlu1 %v4478_v7, %s4319_s24  ;;  %v771_v10 = vpack.c.bf16 %v770_v8, %v770_v8  ;;  %s5392_s24 = smov 112  }
  0x9e   : > { %774 = vrot.lane.b32.xlu0 %v4478_v7, %s4320_s25 }
  0xa0   : > { %v763_v9 = vpop.f32.mrf.mxu0 }
  0xa5   : > { %832 = vrot.lane.b32.xlu2 %v771_v10, %s5369_s1 }
  0xad   : > { %929 = vrot.lane.b32.xlu2 %v4478_v7, %s5367_s26  ;;  %s5391_s26 = sld [smem:[#allocation9_spill]] }
  0xb5   : > { %1006 = vrot.lane.b32.xlu2 %v4478_v7, %s5366_s6  ;;  %s5389_s6 = sld [smem:[#allocation8_spill]] }
  0xbd   : > { %927 = vrot.lane.b32.xlu2 %v771_v10, %s5373_s27  ;;  %s5395_s27 = smov 88  }
  0xc5   : > { %1004 = vrot.lane.b32.xlu2 %v771_v10, %s5371_s7  ;;  %s5396_s7 = smov 80  }
  0xf7   : > { %v835_v11 = vpop.permute.xlu2 %834 }
  0xf8   : > { %v840_v12 = vsel %vm776_vm1, %v835_v11, 0 }
  0xf9   : > { %849 = vmatpush.bf16.xpose.msra.mxu3 %v840_v12 }
  0xff   : > { %v833_v13 = vpop.permute.xlu2 %832 }
 0x100   : > { %3374 = vmatmul.msk.bf16.vlgmr.msra.gmra.mxu3 %vm776_vm1, %v833_v13 }
 0x107   : > { %v930_v14 = vpop.permute.xlu2 %929 }
 0x108   : > { %v935_v15 = vsel %vm776_vm1, %v930_v14, 0 }
 0x109   : > { %944 = vmatpush.bf16.xpose.msrb.mxu3 %v935_v15 }
 0x10f   : > { %v807_v17 = vpop.permute.xlu1 %806  ;;  %v1007_v18 = vpop.permute.xlu2 %1006 }
 0x110   : > { %v775_v19 = vpop.permute.xlu0 %774  ;;  %v813_v20 = vsel %vm811_vm2, %v807_v17, 0  ;;  %v1012_v24 = vsel %vm776_vm1, %v1007_v18, 0 }
 0x111   : > { %v781_v22 = vsel %vm776_vm1, %v775_v19, 0  ;;  %822 = vmatpush.bf16.msra.mxu2 %v813_v20 }
 0x112   : > { %790 = vmatpush.bf16.xpose.msra.mxu1 %v781_v22 }
 0x117   : > { %v928_v23 = vpop.permute.xlu2 %927 }
 0x118   : > { %3378 = vmatmul.msk.bf16.vlgmr.msrb.gmra.mxu3 %vm776_vm1, %v928_v23 }
 0x119   : > { %3372 = vmatmul.msk.bf16.vlgmr.msra.gmra.mxu1 %vm776_vm1, %v771_v10 }
 0x11a   : > { %921 = vmatpush.bf16.msrb.mxu1 %v912_v21 }
 0x11e   : > { %1021 = vmatpush.bf16.xpose.msra.mxu1 %v1012_v24 }
 0x11f   : > { %v1005_v36 = vpop.permute.xlu2 %1004 }
 0x183   : > { %v851_v26 = vpop.f32.mrf.mxu3 }
 0x184   : > { %v852_v27 = vadd.f32 %v851_v26, %v4507_v25 }
 0x186   : > { %v855_v28 = vsel %vm776_vm1, %v852_v27, -inf }
 0x187   : > { %856 = vmax.xlane.f32.xlu2 %v855_v28 }
 0x18b   : > { %v853_v29 = vpop.f32.mrf.mxu3 }
 0x196   : > { %v792_v30 = vpop.f32.mrf.mxu1 }
 0x197   : > { %v793_v31 = vadd.f32 %v792_v30, %v4507_v25 }
 0x199   : > { %v796_v32 = vsel %vm776_vm1, %v793_v31, -inf }
 0x19a   : > { %797 = vmax.xlane.f32.xlu0 %v796_v32 }
 0x19b   : > { %v946_v33 = vpop.f32.mrf.mxu3 }
 0x19c   : > { %v947_v48 = vadd.f32 %v946_v33, %v4507_v25 }
 0x19e   : > { %v794_v34 = vpop.f32.mrf.mxu1  ;;  %v950_v50 = vsel %vm776_vm1, %v947_v48, -inf }
 0x1a3   : > { %v948_v35 = vpop.f32.mrf.mxu3 }
 0x1ae   : > { %865 = vrot.lane.b32.xlu0 %v4478_v7, %s4326_s29  ;;  %s4328_s29 = smov 40  }
 0x1b6   : > { %960 = vrot.lane.b32.xlu0 %v4478_v7, %s4327_s0 }
 0x1fa   : > { %v857_v37 = vpop.xlane.xlu2 %856 }
 0x1fb   : > { %v858_v38 = vsub.f32 %v852_v27, %v857_v37  ;;  %v768_v37 = vld [vmem:[%s5387_s3 + $0xc] sm:$0xf] }
 0x1fd   : > { %v859_v39 = vmul.f32 1.442695, %v858_v38  ;;  %v1065_v38 = vsel %vm811_vm2, %v768_v37, 0 }
 0x1ff   : > { %4270 = vpow2.f32 %v859_v39 }
 0x205   : > { %v4271_v40 = vpop.eup %4270 }
 0x206   : > { %v861_v41 = vsel %vm776_vm1, %v4271_v40, 0.0  ;;  %v864_v54 = vpack.c.bf16 %v4271_v40, %v4271_v40 }
 0x207   : > { %862 = vadd.xlane.f32.xlu0 %v861_v41 }
 0x20d   : > { %v798_v42 = vpop.xlane.xlu0 %797 }
 0x20e   : > { %v799_v43 = vsub.f32 %v793_v31, %v798_v42 }
 0x210   : > { %v800_v44 = vmul.f32 1.442695, %v799_v43 }
 0x212   : > { %4272 = vpow2.f32 %v800_v44 }
 0x218   : > { %v4273_v45 = vpop.eup %4272 }
 0x219   : > { %v802_v46 = vsel %vm776_vm1, %v4273_v45, 0.0  ;;  %v805_v47 = vpack.c.bf16 %v4273_v45, %v4273_v45 }
 0x21a   : > { %803 = vadd.xlane.f32.xlu1 %v802_v46 }
 0x21b   : > { %3373 = vmatmul.msk.bf16.vlgmr.msra.gmra.mxu2 %vm776_vm1, %v805_v47 }
 0x220   : > { %v866_v49 = vpop.permute.xlu0 %865 }
 0x221   : > { %v871_v51 = vsel %vm811_vm2, %v866_v49, 0 }
 0x222   : > { %951 = vmax.xlane.f32.xlu1 %v950_v50  ;;  %880 = vmatpush.bf16.msrb.mxu2 %v871_v51 }
 0x228   : > { %v961_v52 = vpop.permute.xlu0 %960 }
 0x229   : > { %v966_v53 = vsel %vm811_vm2, %v961_v52, 0 }
 0x22a   : > { %975 = vmatpush.bf16.msra.mxu2 %v966_v53 }
 0x22b   : > { %3375 = vmatmul.msk.bf16.vlgmr.msrb.gmra.mxu2 %vm776_vm1, %v864_v54 }
 0x22e   : > { %1074 = vmatpush.bf16.msrb.mxu2 %v1065_v38 }
 0x27a   : > { %v863_v4 = vpop.xlane.xlu0 %862 }
 0x28d   : > { %v804_v55 = vpop.xlane.xlu1 %803 }
 0x28e   : > { %4274 = vrcp.f32 %v804_v55  ;;  %v4329_v55 = vmov 32.0  }
 0x294   : > { %v4275_v61 = vpop.eup %4274 }
 0x295   : > { %v952_v58 = vpop.xlane.xlu1 %951 }
 0x296   : > { %v953_v59 = vsub.f32 %v947_v48, %v952_v58  ;;  %v4259_v48 = vld [vmem:[%s5389_s6] ss:$0 sm:$0xff]  ;;  %s5393_s6 = smov 104  }
 0x298   : > { %v954_v60 = vmul.f32 1.442695, %v953_v59 }
 0x29a   : > { %4276 = vpow2.f32 %v954_v60 }
 0x29b   : > { %4278 = vrcp.f32 %v863_v4 }
 0x29e   : > { %v824_v62 = vpop.f32.mrf.mxu2 }
 0x29f   : > { %v829_v63 = vmul.f32 %v4275_v61, %v824_v62 }
 0x2a0   : > { %v4277_v0 = vpop.eup %4276 }
 0x2a1   : > { %v959_v1 = vpack.c.bf16 %v4277_v0, %v4277_v0  ;;  %v830_v3 = vpack.c.bf16 %v829_v63, %v829_v63  ;;  %v4279_v6 = vpop.eup %4278  ;;  %v956_v23 = vsel %vm776_vm1, %v4277_v0, 0.0 }
 0x2a3   : > { %3377 = vmatmul.msk.bf16.vlgmr.msrb.gmra.mxu1 %vm776_vm1, %v830_v3  ;;  %3379 = vmatmul.msk.bf16.vlgmr.msra.gmra.mxu2 %vm776_vm1, %v959_v1  ;;  %v4077_v3 = vld [vmem:[%s5351_s11 + $0x8] sm:$0xff] }
 0x2a4   : > { %1192 = vmatpush.bf16.msrb.mxu1 %v4077_v3 }
 0x2a6   : > { %v826_v5 = vpop.f32.mrf.mxu2 }
 0x2a7   : > { %v4076_v5 = vld [vmem:[%s5351_s11] sm:$0xff] }
 0x2a8   : > { %1193 = vmatpush.bf16.msrb.mxu1 %v4076_v5 }
 0x2ae   : > { %v882_v8 = vpop.f32.mrf.mxu2 }
 0x2af   : > { %v887_v9 = vmul.f32 %v4279_v6, %v882_v8  ;;  %v4075_v8 = vld [vmem:[%s5349_s9 + $0x8] sm:$0xff] }
 0x2b1   : > { %v888_v10 = vpack.c.bf16 %v887_v9, %v887_v9  ;;  %v4074_v9 = vld [vmem:[%s5349_s9] sm:$0xff] }
 0x2b3   : > { %3376 = vmatmul.msk.bf16.vlgmr.msrb.gmra.mxu0 %vm776_vm1, %v888_v10  ;;  %3381 = vmatmul.msk.bf16.vlgmr.msra.gmra.mxu1 %vm776_vm1, %v1005_v36 }
 0x2b6   : > { %v884_v11 = vpop.f32.mrf.mxu2 }
 0x320   : > { %v923_v12 = vpop.f32.mrf.mxu1 }
 0x326   : > { %v977_v13 = vpop.f32.mrf.mxu2 }
 0x328   : > { %v925_v14 = vpop.f32.mrf.mxu1 }
 0x32e   : > { %v979_v15 = vpop.f32.mrf.mxu2 }
 0x330   : > { %v904_v16 = vpop.f32.mrf.mxu0  ;;  %v1023_v17 = vpop.f32.mrf.mxu1 }
 0x331   : > { %v924_v18 = vadd.f32 %v923_v12, %v904_v16  ;;  %v1024_v19 = vadd.f32 %v1023_v17, %v4507_v25 }
 0x333   : > { %v1027_v20 = vsel %vm776_vm1, %v1024_v19, -inf }
 0x334   : > { %1028 = vmax.xlane.f32.xlu1 %v1027_v20 }
 0x338   : > { %v906_v21 = vpop.f32.mrf.mxu0  ;;  %v1025_v22 = vpop.f32.mrf.mxu1 }
 0x339   : > { %v4261_v21 = vld [vmem:[%s5348_s8] ss:$0 sm:$0xff] }
 0x34d   : > { %1037 = vrot.lane.b32.xlu1 %v4478_v7, %s4328_s29  ;;  %v767_v7 = vld [vmem:[%s5387_s3 + $0x8] sm:$0xf]  ;;  %s5390_s29 = sld [smem:[#allocation3_spill]] }
 0x34e   : > { %v988_v32 = vsel %vm811_vm2, %v767_v7, 0  ;;  %v4263_v7 = vld [vmem:[%s5350_s10] ss:$0 sm:$0xff] }
 0x34f   : > { %997 = vmatpush.bf16.msra.mxu0 %v988_v32 }
 0x353   : > { %s718_s0 = scalar_lea.vmem %s5390_s29, %s4464_s2  ;;  %1155 = vmatpush.bf16.msrb.mxu0 %v4075_v8  ;;  %s5397_s29 = smov 72  }
 0x354   : > { %v725_v4 = vld [vmem:[%s718_s0] sm:$0xff] }
 0x355   : > { %v1167_v6 = vpack.c.bf16 %v725_v4, %v725_v4 }
 0x357   : > { %3401 = vmatmul.msk.bf16.vlgmr.msrb.gmra.mxu1 %vm748_vm0, %v1167_v6  ;;  %1156 = vmatpush.bf16.msrb.mxu0 %v4074_v9 }
 0x377   : > { %957 = vadd.xlane.f32.xlu1 %v956_v23 }
 0x3a7   : > { %v1029_v24 = vpop.xlane.xlu1 %1028 }
 0x3a8   : > { %v1030_v26 = vsub.f32 %v1024_v19, %v1029_v24  ;;  %v4260_v19 = vld [vmem:[%s5391_s26] ss:$0 sm:$0xff] }
 0x3aa   : > { %v1031_v27 = vmul.f32 1.442695, %v1030_v26 }
 0x3ac   : > { %4280 = vpow2.f32 %v1031_v27  ;;  %v4262_v27 = vld [vmem:[%s5352_s12] ss:$0 sm:$0xff] }
 0x3b2   : > { %v4281_v28 = vpop.eup %4280 }
 0x3b3   : > { %v1033_v29 = vsel %vm776_vm1, %v4281_v28, 0.0  ;;  %v1036_v31 = vpack.c.bf16 %v4281_v28, %v4281_v28 }
 0x3b4   : > { %1034 = vadd.xlane.f32.xlu2 %v1033_v29 }
 0x3bf   : > { %v1038_v25 = vpop.permute.xlu1 %1037 }
 0x3c0   : > { %v1043_v30 = vsel %vm811_vm2, %v1038_v25, 0 }
 0x3c1   : > { %1052 = vmatpush.bf16.msra.mxu3 %v1043_v30 }
 0x3c4   : > { %3382 = vmatmul.msk.bf16.vlgmr.msra.gmra.mxu3 %vm776_vm1, %v1036_v31 }
 0x3d4   : > { %v1195_v28 = vpop.f32.mrf.mxu1 }
 0x3d5   : > { %v1196_v29 = vadd.f32 %v4262_v27, %v1195_v28 }
 0x3d7   : > { %v4589_v25 = vpack.c.bf16 %v1196_v29, %v1196_v29 }
 0x3d9   : > { %1237 = vrot.lane.b32.xlu0 %v4589_v25, %s4320_s25  ;;  %v1211_v31 = vsel %vm776_vm1, %v4589_v25, 0  ;;  %s5394_s25 = smov 120  }
 0x3da   : > { %1220 = vmatpush.bf16.xpose.msrb.mxu3 %v1211_v31 }
 0x3dc   : > { %v1197_v30 = vpop.f32.mrf.mxu1 }
 0x3e1   : > { %1359 = vrot.lane.b32.xlu0 %v4589_v25, %s5392_s24 }
 0x3e9   : > { %1436 = vrot.lane.b32.xlu0 %v4589_v25, %s5393_s6 }
 0x3ea   : > { %v958_v33 = vpop.xlane.xlu1 %957 }
 0x3eb   : > { %4282 = vrcp.f32 %v958_v33 }
 0x3f1   : > { %v4283_v34 = vpop.eup %4282 }
 0x3f2   : > { %v982_v35 = vmul.f32 %v4283_v34, %v977_v13 }
 0x3f4   : > { %v983_v36 = vpack.c.bf16 %v982_v35, %v982_v35 }
 0x3f6   : > { %3380 = vmatmul.msk.bf16.vlgmr.msra.gmra.mxu0 %vm776_vm1, %v983_v36 }
 0x427   : > { %v1035_v39 = vpop.xlane.xlu2 %1034 }
 0x428   : > { %4284 = vrcp.f32 %v1035_v39 }
 0x429   : > { %4286 = vrcp.f32 %v4329_v55 }
 0x42e   : > { %v4285_v40 = vpop.eup %4284 }
 0x42f   : > { %v4287_v56 = vpop.eup %4286 }
 0x430   : > { %v1092_v57 = vmul.f32 32.0, %v4287_v56  ;;  %vm1096_vm3 = vweird.f32 %v4287_v56 }
 0x432   : > { %v1093_v58 = vsub.f32 1.0, %v1092_v57 }
 0x434   : > { %v1094_v59 = vmul.f32 %v4287_v56, %v1093_v58 }
 0x436   : > { %v1095_v60 = vadd.f32 %v4287_v56, %v1094_v59 }
 0x438   : > { %v4553_v61 = vsel %vm1096_vm3, %v4287_v56, %v1095_v60 }
 0x447   : > { %v1054_v41 = vpop.f32.mrf.mxu3 }
 0x448   : > { %v1059_v42 = vmul.f32 %v4285_v40, %v1054_v41 }
 0x44a   : > { %v1060_v43 = vpack.c.bf16 %v1059_v42, %v1059_v42  ;;  %v1199_v42 = vld [vmem:[%s5353_s13] sm:$0xf] }
 0x44b   : > { %v1238_v37 = vpop.permute.xlu0 %1237 }
 0x44c   : > { %3383 = vmatmul.msk.bf16.vlgmr.msrb.gmra.mxu2 %vm776_vm1, %v1060_v43  ;;  %v1243_v38 = vsel %vm811_vm2, %v1238_v37, 0  ;;  %v1342_v43 = vsel %vm811_vm2, %v1199_v42, 0 }
 0x44d   : > { %1252 = vmatpush.bf16.msra.mxu2 %v1243_v38 }
 0x44f   : > { %v1056_v44 = vpop.f32.mrf.mxu3 }
 0x451   : > { %1351 = vmatpush.bf16.msrb.mxu2 %v1342_v43 }
 0x473   : > { %v999_v45 = vpop.f32.mrf.mxu0 }
 0x474   : > { %v1003_v46 = vadd.f32 %v999_v45, %v924_v18  ;;  %v1360_v45 = vpop.permute.xlu0 %1359 }
 0x47b   : > { %v1001_v47 = vpop.f32.mrf.mxu0 }
 0x4cf   : > { %v1076_v49 = vpop.f32.mrf.mxu2 }
 0x4d0   : > { %v1080_v50 = vadd.f32 %v1076_v49, %v1003_v46 }
 0x4d2   : > { %v1084_v51 = vadd.f32 %v4259_v48, %v1080_v50  ;;  %v1365_v50 = vsel %vm776_vm1, %v1360_v45, 0 }
 0x4d4   : > { %v1085_v52 = vadd.f32 %v1084_v51, %v4470_v2 }
 0x4d6   : > { %v1088_v53 = vsel %vm748_vm0, %v1085_v52, 0.0 }
 0x4d7   : > { %v1078_v54 = vpop.f32.mrf.mxu2  ;;  %1089 = vadd.xlane.f32.xlu2 %v1088_v53 }
 0x54a   : > { %v1090_v62 = vpop.xlane.xlu2 %1089 }
 0x54b   : > { %v1098_v63 = vmul.f32 %v4553_v61, %v1090_v62 }
 0x54d   : > { %v1099_v0 = vsub.f32 %v1085_v52, %v1098_v63  ;;  %v1437_v52 = vpop.permute.xlu0 %1436 }
 0x54e   : > { %v1442_v55 = vsel %vm776_vm1, %v1437_v52, 0 }
 0x54f   : > { %v1100_v2 = vmul.f32 %v1099_v0, %v1099_v0 }
 0x551   : > { %v1101_v1 = vsel %vm748_vm0, %v1100_v2, 0.0 }
 0x552   : > { %1102 = vadd.xlane.f32.xlu2 %v1101_v1 }
 0x5c5   : > { %v1103_v10 = vpop.xlane.xlu2 %1102 }
 0x5c6   : > { %v1104_v11 = vmul.f32 %v1103_v10, %v4553_v61 }
 0x5c8   : > { %v1105_v12 = vadd.f32 1e-05, %v1104_v11 }
 0x5ca   : > { %4288 = vrsqrt.f32 %v1105_v12  ;;  %vm1112_vm5 = vweird.f32 %v1105_v12 }
 0x5d0   : > { %v4289_v13 = vpop.eup %4288 }
 0x5d1   : > { %v1107_v14 = vmul.f32 %v4289_v13, %v1105_v12  ;;  %vm1113_vm4 = vweird.f32 %v4289_v13 }
 0x5d2   : > { %vm1114_vm6 = vmor %vm1112_vm5, %vm1113_vm4 }
 0x5d3   : > { %v1108_v15 = vmul.f32 %v4289_v13, %v1107_v14 }
 0x5d5   : > { %v1109_v16 = vmul.f32 0.5, %v1108_v15 }
 0x5d7   : > { %v1110_v17 = vsub.f32 1.5, %v1109_v16 }
 0x5d9   : > { %v1111_v18 = vmul.f32 %v4289_v13, %v1110_v17 }
 0x5db   : > { %v1115_v20 = vsel %vm1114_vm6, %v4289_v13, %v1111_v18 }
 0x5dc   : > { %v1116_v22 = vmul.f32 %v1115_v20, %v1099_v0 }
 0x5de   : > { %v1120_v23 = vmul.f32 %v4260_v19, %v1116_v22 }
 0x5e0   : > { %v4581_v24 = vadd.f32 %v4261_v21, %v1120_v23 }
 0x5e2   : > { %v1130_v26 = vpack.c.bf16 %v4581_v24, %v4581_v24 }
 0x5e4   : > { %3392 = vmatmul.msk.bf16.vlgmr.msrb.gmra.mxu0 %vm748_vm0, %v1130_v26 }
 0x661   : > { %v1158_v32 = vpop.f32.mrf.mxu0 }
 0x662   : > { %v1159_v33 = vadd.f32 %v4263_v7, %v1158_v32  ;;  %v1200_v32 = vld [vmem:[%s5353_s13 + $0x4] sm:$0xf] }
 0x664   : > { %v1204_v34 = vmul.f32 0.35355338, %v1159_v33 }
 0x666   : > { %v1205_v35 = vpack.c.bf16 %v1204_v34, %v1204_v34  ;;  %v1323_v34 = vsel %vm811_vm2, %v1200_v32, 0 }
 0x667   : > { %1332 = vmatpush.bf16.msra.mxu3 %v1323_v34  ;;  %v3424_v34 = vld [vmem:[%s5357_s17 + $0x8] sm:$0xf] }
 0x668   : > { %1434 = vrot.lane.b32.xlu0 %v1205_v35, %s5393_s6  ;;  %1262 = vrot.lane.b32.xlu1 %v1205_v35, %s5394_s25 }
 0x669   : > { %3402 = vmatmul.msk.bf16.vlgmr.msrb.gmra.mxu3 %vm776_vm1, %v1205_v35  ;;  %v1160_v36 = vpop.f32.mrf.mxu0 }
 0x6da   : > { %v1263_v56 = vpop.permute.xlu1 %1262  ;;  %v1435_v6 = vpop.permute.xlu0 %1434 }
 0x6ec   : > { %v1222_v39 = vpop.f32.mrf.mxu3 }
 0x6ed   : > { %v1226_v40 = vsel %vm776_vm1, %v1222_v39, -inf }
 0x6ee   : > { %1227 = vmax.xlane.f32.xlu2 %v1226_v40 }
 0x6f4   : > { %v1224_v41 = vpop.f32.mrf.mxu3 }
 0x706   : > { %1264 = vrot.lane.b32.xlu2 %v4589_v25, %s5394_s25 }
 0x761   : > { %v1228_v44 = vpop.xlane.xlu2 %1227 }
 0x762   : > { %v1229_v46 = vsub.f32 %v1222_v39, %v1228_v44 }
 0x764   : > { %v1230_v47 = vmul.f32 1.442695, %v1229_v46  ;;  %v1201_v46 = vld [vmem:[%s5353_s13 + $0x8] sm:$0xf] }
 0x766   : > { %4290 = vpow2.f32 %v1230_v47  ;;  %v1418_v47 = vsel %vm811_vm2, %v1201_v46, 0 }
 0x767   : > { %1427 = vmatpush.bf16.msrb.mxu3 %v1418_v47  ;;  %v3498_v47 = vld [vmem:[%s5357_s17 + $0xd0] sm:$0xf0] }
 0x769   : > { %v1265_v48 = vpop.permute.xlu2 %1264 }
 0x76a   : > { %v1270_v49 = vsel %vm776_vm1, %v1265_v48, 0 }
 0x76b   : > { %1279 = vmatpush.bf16.xpose.msra.mxu0 %v1270_v49 }
 0x76c   : > { %v4291_v51 = vpop.eup %4290 }
 0x76d   : > { %v1235_v53 = vpack.c.bf16 %v4291_v51, %v4291_v51  ;;  %v1232_v54 = vsel %vm776_vm1, %v4291_v51, 0.0 }
 0x76e   : > { %1233 = vadd.xlane.f32.xlu2 %v1232_v54 }
 0x76f   : > { %3403 = vmatmul.msk.bf16.vlgmr.msra.gmra.mxu2 %vm776_vm1, %v1235_v53  ;;  %v1202_v53 = vld [vmem:[%s5353_s13 + $0xc] sm:$0xf] }
 0x770   : > { %1451 = vmatpush.bf16.xpose.msra.mxu2 %v1442_v55  ;;  %v1495_v54 = vsel %vm811_vm2, %v1202_v53, 0  ;;  %v3506_v53 = vld [vmem:[%s5357_s17 + $0xd8] sm:$0xf0] }
 0x772   : > { %3404 = vmatmul.msk.bf16.vlgmr.msra.gmra.mxu0 %vm776_vm1, %v1263_v56 }
 0x773   : > { %1374 = vmatpush.bf16.xpose.msrb.mxu0 %v1365_v50 }
 0x786   : > { %1357 = vrot.lane.b32.xlu2 %v1205_v35, %s5392_s24 }
 0x78e   : > { %1295 = vrot.lane.b32.xlu2 %v4589_v25, %s5395_s27 }
 0x7e1   : > { %v1234_v57 = vpop.xlane.xlu2 %1233 }
 0x7e2   : > { %4292 = vrcp.f32 %v1234_v57 }
 0x7e8   : > { %v4293_v63 = vpop.eup %4292 }
 0x7e9   : > { %v1358_v58 = vpop.permute.xlu2 %1357 }
 0x7ea   : > { %3408 = vmatmul.msk.bf16.vlgmr.msrb.gmra.mxu0 %vm776_vm1, %v1358_v58 }
 0x7ef   : > { %v1281_v59 = vpop.f32.mrf.mxu0 }
 0x7f0   : > { %v1285_v60 = vsel %vm776_vm1, %v1281_v59, -inf }
 0x7f1   : > { %1286 = vmax.xlane.f32.xlu1 %v1285_v60  ;;  %v1296_v62 = vpop.permute.xlu2 %1295 }
 0x7f2   : > { %v1301_v0 = vsel %vm811_vm2, %v1296_v62, 0  ;;  %v1254_v2 = vpop.f32.mrf.mxu2 }
 0x7f3   : > { %v1259_v1 = vmul.f32 %v4293_v63, %v1254_v2  ;;  %1310 = vmatpush.bf16.msra.mxu1 %v1301_v0 }
 0x7f5   : > { %v1260_v3 = vpack.c.bf16 %v1259_v1, %v1259_v1 }
 0x7f7   : > { %v1283_v4 = vpop.f32.mrf.mxu0  ;;  %3407 = vmatmul.msk.bf16.vlgmr.msrb.gmra.mxu2 %vm776_vm1, %v1260_v3 }
 0x7fa   : > { %v1256_v5 = vpop.f32.mrf.mxu2 }
 0x7fb   : > { %v4264_v5 = vld [vmem:[%s5354_s14] ss:$0 sm:$0xff] }
 0x807   : > { %3411 = vmatmul.msk.bf16.vlgmr.msra.gmra.mxu2 %vm776_vm1, %v1435_v6 }
 0x80a   : > { %1390 = vrot.lane.b32.xlu1 %v4589_v25, %s5396_s7  ;;  %s722_s7 = scalar_lea.vmem %s5363_s23, %s4464_s2 }
 0x864   : > { %v1287_v8 = vpop.xlane.xlu1 %1286 }
 0x865   : > { %v1288_v9 = vsub.f32 %v1281_v59, %v1287_v8 }
 0x867   : > { %v1289_v10 = vmul.f32 1.442695, %v1288_v9  ;;  %v1376_v11 = vpop.f32.mrf.mxu0 }
 0x868   : > { %v1380_v12 = vsel %vm776_vm1, %v1376_v11, -inf }
 0x869   : > { %4294 = vpow2.f32 %v1289_v10  ;;  %1381 = vmax.xlane.f32.xlu0 %v1380_v12 }
 0x86f   : > { %v4295_v13 = vpop.eup %4294  ;;  %v1378_v14 = vpop.f32.mrf.mxu0 }
 0x870   : > { %v1294_v15 = vpack.c.bf16 %v4295_v13, %v4295_v13  ;;  %v1291_v23 = vsel %vm776_vm1, %v4295_v13, 0.0 }
 0x872   : > { %3405 = vmatmul.msk.bf16.vlgmr.msra.gmra.mxu1 %vm776_vm1, %v1294_v15 }
 0x87a   : > { %v4631_v16 = vpop.f32.mrf.mxu2 }
 0x87c   : > { %v1391_v17 = vpop.permute.xlu1 %1390 }
 0x87d   : > { %v1396_v18 = vsel %vm811_vm2, %v1391_v17, 0  ;;  %1467 = vrot.lane.b32.xlu0 %v4589_v25, %s5397_s29 }
 0x87e   : > { %1405 = vmatpush.bf16.msrb.mxu1 %v1396_v18  ;;  %v3480_v18 = vld [vmem:[%s5357_s17 + $0x80] sm:$0xf] }
 0x882   : > { %v1355_v19 = vpop.f32.mrf.mxu2  ;;  %1504 = vmatpush.bf16.msra.mxu1 %v1495_v54  ;;  %v3432_v54 = vld [vmem:[%s5357_s17 + $0x10] sm:$0xf] }
 0x883   : > { %v4094_v19 = vld [vmem:[%s5357_s17 + $0x84] sm:$0xf] }
 0x88a   : > { %v1453_v20 = vpop.f32.mrf.mxu2 }
 0x88b   : > { %v1457_v21 = vsel %vm776_vm1, %v1453_v20, -inf }
 0x88c   : > { %1458 = vmax.xlane.f32.xlu2 %v1457_v21  ;;  %v3482_v21 = vld [vmem:[%s5357_s17 + $0xc0] sm:$0xf0] }
 0x892   : > { %v1455_v22 = vpop.f32.mrf.mxu2 }
 0x893   : > { %v3488_v22 = vld [vmem:[%s5357_s17 + $0x88] sm:$0xf] }
 0x894   : > { %1292 = vadd.xlane.f32.xlu2 %v1291_v23  ;;  %v4103_v23 = vld [vmem:[%s5357_s17 + $0xc4] sm:$0xf0] }
 0x8dc   : > { %v1382_v26 = vpop.xlane.xlu0 %1381 }
 0x8dd   : > { %v1383_v27 = vsub.f32 %v1376_v11, %v1382_v26  ;;  %v3485_v26 = vor.u32 %v4094_v19, %v3482_v21  ;;  %v4098_v19 = vld [vmem:[%s5357_s17 + $0xa4] sm:$0xf] }
 0x8df   : > { %v1384_v28 = vmul.f32 1.442695, %v1383_v27  ;;  %v3489_v27 = vor.u32 %v4103_v23, %v3488_v22  ;;  %1799 = vmatpush.bf16.msrb.mxu2 %v3485_v26  ;;  %v4107_v22 = vld [vmem:[%s5357_s17 + $0xe4] sm:$0xf0]  ;;  %v4099_v23 = vld [vmem:[%s5357_s17 + $0xac] sm:$0xf] }
 0x8e0   : > { %v3522_v26 = vld [vmem:[%s5357_s17 + $0xe8] sm:$0xf0] }
 0x8e1   : > { %4296 = vpow2.f32 %v1384_v28  ;;  %v4095_v28 = vld [vmem:[%s5357_s17 + $0x8c] sm:$0xf] }
 0x8e7   : > { %v4297_v29 = vpop.eup %4296 }
 0x8e8   : > { %v1389_v30 = vpack.c.bf16 %v4297_v29, %v4297_v29  ;;  %v1386_v31 = vsel %vm776_vm1, %v4297_v29, 0.0  ;;  %v3490_v29 = vld [vmem:[%s5357_s17 + $0xc8] sm:$0xf0] }
 0x8e9   : > { %1387 = vadd.xlane.f32.xlu2 %v1386_v31  ;;  %v3416_v31 = vld [vmem:[%s5357_s17] sm:$0xf] }
 0x8ea   : > { %3409 = vmatmul.msk.bf16.vlgmr.msrb.gmra.mxu1 %vm776_vm1, %v1389_v30  ;;  %v3493_v30 = vor.u32 %v4095_v28, %v3490_v29 }
 0x8ec   : > { %1825 = vmatpush.bf16.msrb.mxu1 %v3493_v30  ;;  %v3448_v30 = vld [vmem:[%s5357_s17 + $0x20] sm:$0xf] }
 0x8ef   : > { %v1312_v25 = vpop.f32.mrf.mxu1  ;;  %v1468_v7 = vpop.permute.xlu0 %1467 }
 0x8f0   : > { %v1473_v33 = vsel %vm811_vm2, %v1468_v7, 0  ;;  %v4078_v7 = vld [vmem:[%s5357_s17 + $0x4] sm:$0xf] }
 0x8f1   : > { %1482 = vmatpush.bf16.msra.mxu0 %v1473_v33  ;;  %v3418_v33 = vld [vmem:[%s5357_s17 + $0x40] sm:$0xf0] }
 0x8f5   : > { %1812 = vmatpush.bf16.msrb.mxu0 %v3489_v27 }
 0x8f7   : > { %v1314_v35 = vpop.f32.mrf.mxu1 }
 0x8f8   : > { %v4087_v35 = vld [vmem:[%s5357_s17 + $0x44] sm:$0xf0] }
 0x8ff   : > { %v1459_v36 = vpop.xlane.xlu2 %1458 }
 0x900   : > { %v1460_v37 = vsub.f32 %v1453_v20, %v1459_v36  ;;  %v3421_v36 = vor.u32 %v4078_v7, %v3418_v33  ;;  %v3525_v7 = vor.u32 %v4099_v23, %v3522_v26  ;;  %v3450_v33 = vld [vmem:[%s5357_s17 + $0x60] sm:$0xf0]  ;;  %v4121_v23 = vld [vmem:[%s5359_s19 + $0x58] sm:$0xff]  ;;  %v4128_v26 = vld [vmem:[%s5359_s19 + $0x90] sm:$0xff] }
 0x902   : > { %v1461_v38 = vmul.f32 1.442695, %v1460_v37  ;;  %v3425_v37 = vor.u32 %v4087_v35, %v3424_v34  ;;  %1800 = vmatpush.bf16.msrb.mxu2 %v3421_v36  ;;  %v3456_v34 = vld [vmem:[%s5357_s17 + $0x28] sm:$0xf]  ;;  %v4083_v36 = vld [vmem:[%s5357_s17 + $0x2c] sm:$0xf] }
 0x903   : > { %v4091_v35 = vld [vmem:[%s5357_s17 + $0x64] sm:$0xf0] }
 0x904   : > { %4298 = vpow2.f32 %v1461_v38  ;;  %v4079_v38 = vld [vmem:[%s5357_s17 + $0xc] sm:$0xf]  ;;  %1813 = vmatpush.bf16.msrb.mxu0 %v3425_v37 }
 0x905   : > { %v3458_v37 = vld [vmem:[%s5357_s17 + $0x68] sm:$0xf0] }
 0x907   : > { %v1293_v39 = vpop.xlane.xlu2 %1292 }
 0x908   : > { %4300 = vrcp.f32 %v1293_v39  ;;  %v3426_v39 = vld [vmem:[%s5357_s17 + $0x48] sm:$0xf0] }
 0x90a   : > { %v4299_v40 = vpop.eup %4298 }
 0x90b   : > { %v1466_v41 = vpack.c.bf16 %v4299_v40, %v4299_v40  ;;  %v1463_v42 = vsel %vm776_vm1, %v4299_v40, 0.0  ;;  %v3429_v40 = vor.u32 %v4079_v38, %v3426_v39 }
 0x90c   : > { %1464 = vadd.xlane.f32.xlu1 %v1463_v42  ;;  %v3496_v42 = vld [vmem:[%s5357_s17 + $0x90] sm:$0xf] }
 0x90d   : > { %3412 = vmatmul.msk.bf16.vlgmr.msra.gmra.mxu0 %vm776_vm1, %v1466_v41  ;;  %1826 = vmatpush.bf16.msrb.mxu1 %v3429_v40  ;;  %v3457_v40 = vor.u32 %v4091_v35, %v3456_v34  ;;  %v4165_v34 = vld [vmem:[%s5359_s19 + $0x1b8] sm:$0xff] }
 0x90e   : > { %v4301_v43 = vpop.eup %4300  ;;  %v4173_v35 = vld [vmem:[%s5359_s19 + $0x1f8] sm:$0xff] }
 0x90f   : > { %v1317_v44 = vmul.f32 %v4301_v43, %v1312_v25  ;;  %v4086_v25 = vld [vmem:[%s5357_s17 + $0x3c] sm:$0xf0]  ;;  %v4104_v43 = vld [vmem:[%s5357_s17 + $0xcc] sm:$0xf0] }
 0x910   : > { %v3417_v32 = vor.u32 %v4086_v25, %v3416_v31  ;;  %v3497_v46 = vor.u32 %v4104_v43, %v3496_v42  ;;  %v4090_v31 = vld [vmem:[%s5357_s17 + $0x5c] sm:$0xf0]  ;;  %v3528_v42 = vld [vmem:[%s5357_s17 + $0xb0] sm:$0xf] }
 0x911   : > { %v1318_v45 = vpack.c.bf16 %v1317_v44, %v1317_v44  ;;  %v4096_v44 = vld [vmem:[%s5357_s17 + $0x94] sm:$0xf]  ;;  %v3449_v38 = vor.u32 %v4090_v31, %v3448_v30  ;;  %v4108_v43 = vld [vmem:[%s5357_s17 + $0xec] sm:$0xf0]  ;;  %v4127_v30 = vld [vmem:[%s5359_s19 + $0x88] sm:$0xff] }
 0x912   : > { %v4135_v31 = vld [vmem:[%s5359_s19 + $0xc8] sm:$0xff] }
 0x913   : > { %3406 = vmatmul.msk.bf16.vlgmr.msra.gmra.mxu3 %vm776_vm1, %v1318_v45 }
 0x95c   : > { %v1388_v48 = vpop.xlane.xlu2 %1387 }
 0x95d   : > { %4302 = vrcp.f32 %v1388_v48  ;;  %v3504_v48 = vld [vmem:[%s5357_s17 + $0x98] sm:$0xf] }
 0x963   : > { %v4303_v49 = vpop.eup %4302 }
 0x967   : > { %v1407_v50 = vpop.f32.mrf.mxu1 }
 0x968   : > { %v1412_v51 = vmul.f32 %v4303_v49, %v1407_v50  ;;  %v4105_v49 = vld [vmem:[%s5357_s17 + $0xd4] sm:$0xf0]  ;;  %v3501_v50 = vor.u32 %v4096_v44, %v3498_v47  ;;  %v4100_v44 = vld [vmem:[%s5357_s17 + $0xb4] sm:$0xf] }
 0x969   : > { %v4109_v47 = vld [vmem:[%s5357_s17 + $0xf4] sm:$0xf0] }
 0x96a   : > { %v1413_v52 = vpack.c.bf16 %v1412_v51, %v1412_v51  ;;  %v3505_v51 = vor.u32 %v4105_v49, %v3504_v48  ;;  %1851 = vmatpush.bf16.msra.mxu2 %v3501_v50  ;;  %v4101_v48 = vld [vmem:[%s5357_s17 + $0xbc] sm:$0xf]  ;;  %v3529_v50 = vor.u32 %v4108_v43, %v3528_v42  ;;  %v4148_v42 = vld [vmem:[%s5359_s19 + $0x130] sm:$0xff] }
 0x96b   : > { %v3538_v49 = vld [vmem:[%s5357_s17 + $0xf8] sm:$0xf0]  ;;  %v4156_v43 = vld [vmem:[%s5359_s19 + $0x170] sm:$0xff] }
 0x96c   : > { %3410 = vmatmul.msk.bf16.vlgmr.msrb.gmra.mxu3 %vm776_vm1, %v1413_v52  ;;  %v4097_v52 = vld [vmem:[%s5357_s17 + $0x9c] sm:$0xf]  ;;  %1864 = vmatpush.bf16.msra.mxu0 %v3505_v51 }
 0x96f   : > { %v1409_v55 = vpop.f32.mrf.mxu1 }
 0x97f   : > { %v1465_v56 = vpop.xlane.xlu1 %1464 }
 0x980   : > { %4304 = vrcp.f32 %v1465_v56  ;;  %v3509_v56 = vor.u32 %v4097_v52, %v3506_v53  ;;  %v3464_v52 = vld [vmem:[%s5357_s17 + $0x30] sm:$0xf] }
 0x981   : > { %v4092_v53 = vld [vmem:[%s5357_s17 + $0x6c] sm:$0xf0] }
 0x986   : > { %v4305_v57 = vpop.eup %4304 }
 0x98a   : > { %v1484_v58 = vpop.f32.mrf.mxu0 }
 0x98b   : > { %v1489_v59 = vmul.f32 %v4305_v57, %v1484_v58  ;;  %v4088_v57 = vld [vmem:[%s5357_s17 + $0x4c] sm:$0xf0]  ;;  %v4080_v58 = vld [vmem:[%s5357_s17 + $0x14] sm:$0xf] }
 0x98d   : > { %v1490_v60 = vpack.c.bf16 %v1489_v59, %v1489_v59  ;;  %v3433_v59 = vor.u32 %v4088_v57, %v3432_v54  ;;  %v3466_v57 = vld [vmem:[%s5357_s17 + $0x70] sm:$0xf0] }
 0x98f   : > { %3413 = vmatmul.msk.bf16.vlgmr.msra.gmra.mxu1 %vm776_vm1, %v1490_v60  ;;  %v3434_v60 = vld [vmem:[%s5357_s17 + $0x50] sm:$0xf0] }
 0x990   : > { %1877 = vmatpush.bf16.msra.mxu1 %v3509_v56  ;;  %v4084_v56 = vld [vmem:[%s5357_s17 + $0x34] sm:$0xf] }
 0x992   : > { %v1486_v62 = vpop.f32.mrf.mxu0 }
 0x993   : > { %v3440_v62 = vld [vmem:[%s5357_s17 + $0x18] sm:$0xf] }
 0x996   : > { %v1334_v63 = vpop.f32.mrf.mxu3 }
 0x997   : > { %v1354_v3 = vadd.f32 %v4631_v16, %v1334_v63  ;;  %v4089_v63 = vld [vmem:[%s5357_s17 + $0x54] sm:$0xf0] }
 0x99e   : > { %v1336_v0 = vpop.f32.mrf.mxu3 }
 0x99f   : > { %v3437_v0 = vor.u32 %v4080_v58, %v3434_v60  ;;  %v3472_v58 = vld [vmem:[%s5357_s17 + $0x38] sm:$0xf]  ;;  %v4085_v60 = vld [vmem:[%s5357_s17 + $0x3c] sm:$0xf] }
 0x9a1   : > { %1852 = vmatpush.bf16.msra.mxu2 %v3437_v0  ;;  %v3469_v0 = vor.u32 %v4084_v56, %v3466_v57  ;;  %v4145_v56 = vld [vmem:[%s5359_s19 + $0x118] sm:$0xff] }
 0x9a2   : > { %v4153_v57 = vld [vmem:[%s5359_s19 + $0x158] sm:$0xff] }
 0x9ef   : > { %v1429_v2 = vpop.f32.mrf.mxu3 }
 0x9f0   : > { %v1433_v4 = vadd.f32 %v1429_v2, %v1354_v3  ;;  %v3441_v2 = vor.u32 %v4089_v63, %v3440_v62  ;;  %v3442_v3 = vld [vmem:[%s5357_s17 + $0x58] sm:$0xf0]  ;;  %v3465_v63 = vor.u32 %v4092_v53, %v3464_v52 }
 0x9f1   : > { %v3474_v62 = vld [vmem:[%s5357_s17 + $0x78] sm:$0xf0] }
 0x9f2   : > { %1865 = vmatpush.bf16.msra.mxu0 %v3441_v2  ;;  %v4161_v52 = vld [vmem:[%s5359_s19 + $0x198] sm:$0xff] }
 0x9f3   : > { %v4169_v53 = vld [vmem:[%s5359_s19 + $0x1d8] sm:$0xff] }
 0x9f7   : > { %v1431_v1 = vpop.f32.mrf.mxu3 }
 0x9f8   : > { %v4081_v1 = vld [vmem:[%s5357_s17 + $0x1c] sm:$0xf] }
 0xa0c   : > { %v1506_v6 = vpop.f32.mrf.mxu1 }
 0xa0d   : > { %v1510_v8 = vadd.f32 %v1506_v6, %v1433_v4  ;;  %v3445_v4 = vor.u32 %v4081_v1, %v3442_v3  ;;  %v3477_v1 = vor.u32 %v4085_v60, %v3474_v62  ;;  %v4133_v3 = vld [vmem:[%s5359_s19 + $0xb8] sm:$0xff]  ;;  %v4144_v60 = vld [vmem:[%s5359_s19 + $0x110] sm:$0xff] }
 0xa0e   : > { %v4152_v62 = vld [vmem:[%s5359_s19 + $0x150] sm:$0xff] }
 0xa0f   : > { %v1514_v9 = vadd.f32 %v4264_v5, %v1510_v8  ;;  %1878 = vmatpush.bf16.msra.mxu1 %v3445_v4  ;;  %v4141_v4 = vld [vmem:[%s5359_s19 + $0xf8] sm:$0xff] }
 0xa11   : > { %v1515_v10 = vadd.f32 %v1514_v9, %v4581_v24  ;;  %v4102_v24 = vld [vmem:[%s5357_s17 + $0xbc] sm:$0xf0] }
 0xa12   : > { %v3481_v20 = vor.u32 %v4102_v24, %v3480_v18  ;;  %v3512_v18 = vld [vmem:[%s5357_s17 + $0xa0] sm:$0xf] }
 0xa13   : > { %v1518_v11 = vsel %vm748_vm0, %v1515_v10, 0.0  ;;  %v4106_v24 = vld [vmem:[%s5357_s17 + $0xdc] sm:$0xf0] }
 0xa14   : > { %1519 = vadd.xlane.f32.xlu0 %v1518_v11  ;;  %v1508_v12 = vpop.f32.mrf.mxu1  ;;  %1786 = vmatpush.bf16.msra.mxu3 %v3481_v20  ;;  %v3514_v20 = vld [vmem:[%s5357_s17 + $0xe0] sm:$0xf0]  ;;  %v3513_v28 = vor.u32 %v4106_v24, %v3512_v18 }
 0xa15   : > { %v4265_v12 = vld [vmem:[%s5355_s15] ss:$0 sm:$0xff]  ;;  %v3517_v29 = vor.u32 %v4098_v19, %v3514_v20  ;;  %v4129_v20 = vld [vmem:[%s5359_s19 + $0x98] sm:$0xff] }
 0xa16   : > { %v4138_v18 = vld [vmem:[%s5359_s19 + $0xe0] sm:$0xff] }
 0xa17   : > { %v4114_v24 = vld [vmem:[%s5359_s19 + $0x20] sm:$0xff] }
 0xa18   : > { %1787 = vmatpush.bf16.msra.mxu3 %v3417_v32  ;;  %v4082_v32 = vld [vmem:[%s5357_s17 + $0x24] sm:$0xf] }
 0xa19   : > { %v3453_v39 = vor.u32 %v4082_v32, %v3450_v33  ;;  %v4122_v19 = vld [vmem:[%s5359_s19 + $0x60] sm:$0xff] }
 0xa1a   : > { %v4126_v32 = vld [vmem:[%s5359_s19 + $0x80] sm:$0xff] }
 0xa1b   : > { %v4134_v33 = vld [vmem:[%s5359_s19 + $0xc0] sm:$0xff] }
 0xa1c   : > { %1838 = vmatpush.bf16.msrb.mxu3 %v3497_v46  ;;  %v3536_v46 = vld [vmem:[%s5357_s17 + $0xb8] sm:$0xf] }
 0xa1d   : > { %v3537_v54 = vor.u32 %v4109_v47, %v3536_v46  ;;  %v4147_v46 = vld [vmem:[%s5359_s19 + $0x128] sm:$0xff] }
 0xa1e   : > { %v4155_v47 = vld [vmem:[%s5359_s19 + $0x168] sm:$0xff] }
 0xa20   : > { %1839 = vmatpush.bf16.msrb.mxu3 %v3433_v59  ;;  %v4093_v59 = vld [vmem:[%s5357_s17 + $0x74] sm:$0xf0] }
 0xa21   : > { %v3473_v2 = vor.u32 %v4093_v59, %v3472_v58  ;;  %v4159_v58 = vld [vmem:[%s5359_s19 + $0x188] sm:$0xff] }
 0xa22   : > { %v4167_v59 = vld [vmem:[%s5359_s19 + $0x1c8] sm:$0xff] }
 0xa87   : > { %v1520_v13 = vpop.xlane.xlu0 %1519 }
 0xa88   : > { %v1521_v14 = vmul.f32 %v1520_v13, %v4553_v61 }
 0xa8a   : > { %v4665_v15 = vsub.f32 %v1515_v10, %v1521_v14  ;;  %v4266_v14 = vld [vmem:[%s5356_s16] ss:$0 sm:$0xff] }
 0xa8c   : > { %v1523_v16 = vmul.f32 %v4665_v15, %v4665_v15 }
 0xa8e   : > { %v1524_v17 = vsel %vm748_vm0, %v1523_v16, 0.0 }
 0xa8f   : > { %1525 = vadd.xlane.f32.xlu2 %v1524_v17 }
 0xb02   : > { %v1526_v41 = vpop.xlane.xlu2 %1525 }
 0xb03   : > { %v1527_v45 = vmul.f32 %v1526_v41, %v4553_v61  ;;  %v3461_v41 = vor.u32 %v4083_v36, %v3458_v37  ;;  %v4110_v36 = vld [vmem:[%s5359_s19] sm:$0xff] }
 0xb04   : > { %v4118_v37 = vld [vmem:[%s5359_s19 + $0x40] sm:$0xff] }
 0xb05   : > { %v1528_v55 = vadd.f32 1e-05, %v1527_v45  ;;  %v3530_v45 = vld [vmem:[%s5357_s17 + $0xf0] sm:$0xf0] }
 0xb06   : > { %v3533_v51 = vor.u32 %v4100_v44, %v3530_v45  ;;  %v4163_v44 = vld [vmem:[%s5359_s19 + $0x1a8] sm:$0xff] }
 0xb07   : > { %4306 = vrsqrt.f32 %v1528_v55  ;;  %vm1535_vm8 = vweird.f32 %v1528_v55  ;;  %v4171_v45 = vld [vmem:[%s5359_s19 + $0x1e8] sm:$0xff] }
 0xb0d   : > { %v4307_v5 = vpop.eup %4306 }
 0xb0e   : > { %v1530_v6 = vmul.f32 %v4307_v5, %v1528_v55  ;;  %vm1536_vm7 = vweird.f32 %v4307_v5  ;;  %v3541_v55 = vor.u32 %v4101_v48, %v3538_v49  ;;  %v4162_v48 = vld [vmem:[%s5359_s19 + $0x1a0] sm:$0xff] }
 0xb0f   : > { %vm1537_vm9 = vmor %vm1535_vm8, %vm1536_vm7  ;;  %v4170_v49 = vld [vmem:[%s5359_s19 + $0x1e0] sm:$0xff] }
 0xb10   : > { %v1531_v8 = vmul.f32 %v4307_v5, %v1530_v6  ;;  %v4125_v6 = vld [vmem:[%s5359_s19 + $0x78] sm:$0xff] }
 0xb12   : > { %v1532_v9 = vmul.f32 0.5, %v1531_v8  ;;  %v4132_v8 = vld [vmem:[%s5359_s19 + $0xb0] sm:$0xff] }
 0xb14   : > { %v1533_v10 = vsub.f32 1.5, %v1532_v9  ;;  %v4140_v9 = vld [vmem:[%s5359_s19 + $0xf0] sm:$0xff] }
 0xb16   : > { %v1534_v11 = vmul.f32 %v4307_v5, %v1533_v10  ;;  %v4116_v10 = vld [vmem:[%s5359_s19 + $0x30] sm:$0xff] }
 0xb18   : > { %v1538_v13 = vsel %vm1537_vm9, %v4307_v5, %v1534_v11  ;;  %v4117_v5 = vld [vmem:[%s5359_s19 + $0x38] sm:$0xff]  ;;  %v4124_v11 = vld [vmem:[%s5359_s19 + $0x70] sm:$0xff] }
 0xb19   : > { %v1539_v16 = vmul.f32 %v1538_v13, %v4665_v15  ;;  %v3520_v15 = vld [vmem:[%s5357_s17 + $0xa8] sm:$0xf] }
 0xb1a   : > { %v3521_v25 = vor.u32 %v4107_v22, %v3520_v15  ;;  %v4139_v13 = vld [vmem:[%s5359_s19 + $0xe8] sm:$0xff]  ;;  %v4137_v15 = vld [vmem:[%s5359_s19 + $0xd8] sm:$0xff] }
 0xb1b   : > { %v1543_v17 = vmul.f32 %v4265_v12, %v1539_v16  ;;  %v4131_v12 = vld [vmem:[%s5359_s19 + $0xa8] sm:$0xff]  ;;  %v4113_v22 = vld [vmem:[%s5359_s19 + $0x18] sm:$0xff] }
 0xb1c   : > { %v4123_v16 = vld [vmem:[%s5359_s19 + $0x68] sm:$0xff] }
 0xb1d   : > { %v4789_v21 = vadd.f32 %v4266_v14, %v1543_v17  ;;  %v4115_v14 = vld [vmem:[%s5359_s19 + $0x28] sm:$0xff]  ;;  %v4130_v17 = vld [vmem:[%s5359_s19 + $0xa0] sm:$0xff] }
 0xb1f   : > { %v4802_v27 = vpack.c.bf16 %v4789_v21, %v4789_v21 }
 0xb21   : > { %3542 = vmatmul.msk.bf16.vlgmr.msra.gmra.mxu3 %vm748_vm0, %v4802_v27  ;;  %3543 = vmatmul.msk.bf16.vlgmr.msrb.gmra.mxu2 %vm748_vm0, %v4802_v27 }
 0xb22   : > { %3544 = vmatmul.msk.bf16.vlgmr.msrb.gmra.mxu0 %vm748_vm0, %v4802_v27  ;;  %3545 = vmatmul.msk.bf16.vlgmr.msrb.gmra.mxu1 %vm748_vm0, %v4802_v27 }
 0xb23   : > { %1890 = vmatpush.bf16.msra.mxu3 %v3513_v28  ;;  %1903 = vmatpush.bf16.msrb.mxu2 %v3517_v29  ;;  %v4136_v28 = vld [vmem:[%s5359_s19 + $0xd0] sm:$0xff] }
 0xb24   : > { %1916 = vmatpush.bf16.msrb.mxu0 %v3521_v25  ;;  %1929 = vmatpush.bf16.msrb.mxu1 %v3525_v7  ;;  %v4112_v29 = vld [vmem:[%s5359_s19 + $0x10] sm:$0xff]  ;;  %v4111_v25 = vld [vmem:[%s5359_s19 + $0x8] sm:$0xff] }
 0xb25   : > { %v4119_v7 = vld [vmem:[%s5359_s19 + $0x48] sm:$0xff] }
 0xb27   : > { %1891 = vmatpush.bf16.msra.mxu3 %v3449_v38  ;;  %1904 = vmatpush.bf16.msrb.mxu2 %v3453_v39  ;;  %v4149_v38 = vld [vmem:[%s5359_s19 + $0x138] sm:$0xff] }
 0xb28   : > { %1917 = vmatpush.bf16.msrb.mxu0 %v3457_v40  ;;  %1930 = vmatpush.bf16.msrb.mxu1 %v3461_v41  ;;  %v4157_v39 = vld [vmem:[%s5359_s19 + $0x178] sm:$0xff]  ;;  %v4164_v40 = vld [vmem:[%s5359_s19 + $0x1b0] sm:$0xff] }
 0xb29   : > { %v4172_v41 = vld [vmem:[%s5359_s19 + $0x1f0] sm:$0xff] }
 0xb31   : > { %3546 = vmatmul.msk.bf16.vlgmr.msrb.gmra.mxu3 %vm748_vm0, %v4802_v27  ;;  %3547 = vmatmul.msk.bf16.vlgmr.msra.gmra.mxu2 %vm748_vm0, %v4802_v27 }
 0xb32   : > { %3548 = vmatmul.msk.bf16.vlgmr.msra.gmra.mxu0 %vm748_vm0, %v4802_v27  ;;  %3549 = vmatmul.msk.bf16.vlgmr.msra.gmra.mxu1 %vm748_vm0, %v4802_v27 }
 0xb33   : > { %1942 = vmatpush.bf16.msrb.mxu3 %v3529_v50  ;;  %1955 = vmatpush.bf16.msra.mxu2 %v3533_v51  ;;  %v4146_v50 = vld [vmem:[%s5359_s19 + $0x120] sm:$0xff] }
 0xb34   : > { %1968 = vmatpush.bf16.msra.mxu0 %v3537_v54  ;;  %1981 = vmatpush.bf16.msra.mxu1 %v3541_v55  ;;  %v4154_v51 = vld [vmem:[%s5359_s19 + $0x160] sm:$0xff]  ;;  %v4160_v54 = vld [vmem:[%s5359_s19 + $0x190] sm:$0xff] }
 0xb35   : > { %v4168_v55 = vld [vmem:[%s5359_s19 + $0x1d0] sm:$0xff] }
 0xb37   : > { %1943 = vmatpush.bf16.msrb.mxu3 %v3465_v63  ;;  %1956 = vmatpush.bf16.msra.mxu2 %v3469_v0  ;;  %v4158_v63 = vld [vmem:[%s5359_s19 + $0x180] sm:$0xff] }
 0xb38   : > { %1969 = vmatpush.bf16.msra.mxu0 %v3473_v2  ;;  %1982 = vmatpush.bf16.msra.mxu1 %v3477_v1  ;;  %v4166_v0 = vld [vmem:[%s5359_s19 + $0x1c0] sm:$0xff]  ;;  %v4143_v2 = vld [vmem:[%s5359_s19 + $0x108] sm:$0xff] }
 0xb39   : > { %v4151_v1 = vld [vmem:[%s5359_s19 + $0x148] sm:$0xff] }
 0xb41   : > { %3550 = vmatmul.msk.bf16.vlgmr.msra.gmra.mxu3 %vm748_vm0, %v4802_v27  ;;  %3551 = vmatmul.msk.bf16.vlgmr.msrb.gmra.mxu2 %vm748_vm0, %v4802_v27 }
 0xb42   : > { %3552 = vmatmul.msk.bf16.vlgmr.msrb.gmra.mxu0 %vm748_vm0, %v4802_v27  ;;  %3553 = vmatmul.msk.bf16.vlgmr.msrb.gmra.mxu1 %vm748_vm0, %v4802_v27 }
 0xb43   : > { %3074 = vmatpush.bf16.msrb.mxu0 %v4133_v3  ;;  %3087 = vmatpush.bf16.msrb.mxu1 %v4141_v4  ;;  %v4142_v3 = vld [vmem:[%s5359_s19 + $0x100] sm:$0xff] }
 0xb44   : > { %3048 = vmatpush.bf16.msra.mxu3 %v4117_v5  ;;  %3061 = vmatpush.bf16.msrb.mxu2 %v4125_v6  ;;  %v4150_v4 = vld [vmem:[%s5359_s19 + $0x140] sm:$0xff] }
 0xb45   : > { %v5103_v5 = vld [vmem:[%s5358_s18] sm:$0xff] }
 0xb46   : > { %v1587_v6 = vperm.slane %v5103_v5, 2 }
 0xb47   : > { %3075 = vmatpush.bf16.msrb.mxu0 %v4132_v8  ;;  %3088 = vmatpush.bf16.msrb.mxu1 %v4140_v9  ;;  %v1588_v8 = vperm.slane %v5103_v5, 3 }
 0xb48   : > { %3049 = vmatpush.bf16.msra.mxu3 %v4116_v10  ;;  %3062 = vmatpush.bf16.msrb.mxu2 %v4124_v11 }
 0xb4b   : > { %3076 = vmatpush.bf16.msrb.mxu0 %v4131_v12  ;;  %3089 = vmatpush.bf16.msrb.mxu1 %v4139_v13  ;;  %v1585_v13 = vperm.slane %v5103_v5, 0 }
 0xb4c   : > { %3050 = vmatpush.bf16.msra.mxu3 %v4115_v14  ;;  %3063 = vmatpush.bf16.msrb.mxu2 %v4123_v16  ;;  %v1586_v14 = vperm.slane %v5103_v5, 1 }
 0xb4f   : > { %3077 = vmatpush.bf16.msrb.mxu0 %v4130_v17  ;;  %3090 = vmatpush.bf16.msrb.mxu1 %v4138_v18  ;;  %v4197_v18 = vld [vmem:[%s5359_s19 + $0x2b8] sm:$0xff] }
 0xb50   : > { %3051 = vmatpush.bf16.msra.mxu3 %v4114_v24  ;;  %3064 = vmatpush.bf16.msrb.mxu2 %v4122_v19  ;;  %v4205_v24 = vld [vmem:[%s5359_s19 + $0x2f8] sm:$0xff] }
 0xb51   : > { %3554 = vmatmul.msk.bf16.vlgmr.msrb.gmra.mxu3 %vm748_vm0, %v4802_v27  ;;  %3555 = vmatmul.msk.bf16.vlgmr.msra.gmra.mxu2 %vm748_vm0, %v4802_v27 }
 0xb52   : > { %3556 = vmatmul.msk.bf16.vlgmr.msra.gmra.mxu0 %vm748_vm0, %v4802_v27  ;;  %3557 = vmatmul.msk.bf16.vlgmr.msra.gmra.mxu1 %vm748_vm0, %v4802_v27  ;;  %v4120_v27 = vld [vmem:[%s5359_s19 + $0x50] sm:$0xff] }
 0xb53   : > { %3078 = vmatpush.bf16.msrb.mxu0 %v4129_v20  ;;  %3091 = vmatpush.bf16.msrb.mxu1 %v4137_v15 }
 0xb54   : > { %3052 = vmatpush.bf16.msra.mxu3 %v4113_v22  ;;  %3065 = vmatpush.bf16.msrb.mxu2 %v4121_v23 }
 0xb57   : > { %3079 = vmatpush.bf16.msrb.mxu0 %v4128_v26  ;;  %3092 = vmatpush.bf16.msrb.mxu1 %v4136_v28 }
 0xb58   : > { %3053 = vmatpush.bf16.msra.mxu3 %v4112_v29  ;;  %3066 = vmatpush.bf16.msrb.mxu2 %v4120_v27 }
 0xb5b   : > { %3080 = vmatpush.bf16.msrb.mxu0 %v4127_v30  ;;  %3093 = vmatpush.bf16.msrb.mxu1 %v4135_v31  ;;  %v4196_v31 = vld [vmem:[%s5359_s19 + $0x2b0] sm:$0xff] }
 0xb5c   : > { %3054 = vmatpush.bf16.msra.mxu3 %v4111_v25  ;;  %3067 = vmatpush.bf16.msrb.mxu2 %v4119_v7  ;;  %v4204_v25 = vld [vmem:[%s5359_s19 + $0x2f0] sm:$0xff] }
 0xb5f   : > { %3081 = vmatpush.bf16.msrb.mxu0 %v4126_v32  ;;  %3094 = vmatpush.bf16.msrb.mxu1 %v4134_v33  ;;  %v4181_v33 = vld [vmem:[%s5359_s19 + $0x238] sm:$0xff] }
 0xb60   : > { %3055 = vmatpush.bf16.msra.mxu3 %v4110_v36  ;;  %3068 = vmatpush.bf16.msrb.mxu2 %v4118_v37  ;;  %v4203_v36 = vld [vmem:[%s5359_s19 + $0x2e8] sm:$0xff] }
 0xb63   : > { %3126 = vmatpush.bf16.msra.mxu0 %v4165_v34  ;;  %3139 = vmatpush.bf16.msra.mxu1 %v4173_v35  ;;  %v4189_v34 = vld [vmem:[%s5359_s19 + $0x278] sm:$0xff]  ;;  %v4195_v35 = vld [vmem:[%s5359_s19 + $0x2a8] sm:$0xff] }
 0xb64   : > { %3100 = vmatpush.bf16.msrb.mxu3 %v4149_v38  ;;  %3113 = vmatpush.bf16.msra.mxu2 %v4157_v39  ;;  %v1591_v39 = vperm.slane %v5103_v5, 6 }
 0xb67   : > { %3127 = vmatpush.bf16.msra.mxu0 %v4164_v40  ;;  %3140 = vmatpush.bf16.msra.mxu1 %v4172_v41  ;;  %v1592_v40 = vperm.slane %v5103_v5, 7  ;;  %v4180_v41 = vld [vmem:[%s5359_s19 + $0x230] sm:$0xff] }
 0xb68   : > { %3101 = vmatpush.bf16.msrb.mxu3 %v4148_v42  ;;  %3114 = vmatpush.bf16.msra.mxu2 %v4156_v43  ;;  %v4188_v42 = vld [vmem:[%s5359_s19 + $0x270] sm:$0xff] }
 0xb6b   : > { %3128 = vmatpush.bf16.msra.mxu0 %v4163_v44  ;;  %3141 = vmatpush.bf16.msra.mxu1 %v4171_v45  ;;  %v4194_v45 = vld [vmem:[%s5359_s19 + $0x2a0] sm:$0xff] }
 0xb6c   : > { %3102 = vmatpush.bf16.msrb.mxu3 %v4147_v46  ;;  %3115 = vmatpush.bf16.msra.mxu2 %v4155_v47  ;;  %v4202_v46 = vld [vmem:[%s5359_s19 + $0x2e0] sm:$0xff] }
 0xb6f   : > { %3129 = vmatpush.bf16.msra.mxu0 %v4162_v48  ;;  %3142 = vmatpush.bf16.msra.mxu1 %v4170_v49  ;;  %v4179_v49 = vld [vmem:[%s5359_s19 + $0x228] sm:$0xff] }
 0xb70   : > { %3103 = vmatpush.bf16.msrb.mxu3 %v4146_v50  ;;  %3116 = vmatpush.bf16.msra.mxu2 %v4154_v51  ;;  %v4187_v50 = vld [vmem:[%s5359_s19 + $0x268] sm:$0xff]  ;;  %v1589_v51 = vperm.slane %v5103_v5, 4 }
 0xb73   : > { %3130 = vmatpush.bf16.msra.mxu0 %v4161_v52  ;;  %3143 = vmatpush.bf16.msra.mxu1 %v4169_v53  ;;  %v1590_v52 = vperm.slane %v5103_v5, 5 }
 0xb74   : > { %3104 = vmatpush.bf16.msrb.mxu3 %v4145_v56  ;;  %3117 = vmatpush.bf16.msra.mxu2 %v4153_v57  ;;  %v4201_v56 = vld [vmem:[%s5359_s19 + $0x2d8] sm:$0xff] }
 0xb77   : > { %3131 = vmatpush.bf16.msra.mxu0 %v4160_v54  ;;  %3144 = vmatpush.bf16.msra.mxu1 %v4168_v55  ;;  %v4193_v55 = vld [vmem:[%s5359_s19 + $0x298] sm:$0xff] }
 0xb78   : > { %3105 = vmatpush.bf16.msrb.mxu3 %v4144_v60  ;;  %3118 = vmatpush.bf16.msra.mxu2 %v4152_v62 }
 0xb7b   : > { %3132 = vmatpush.bf16.msra.mxu0 %v4159_v58  ;;  %3145 = vmatpush.bf16.msra.mxu1 %v4167_v59 }
 0xb7c   : > { %3106 = vmatpush.bf16.msrb.mxu3 %v4143_v2  ;;  %3119 = vmatpush.bf16.msra.mxu2 %v4151_v1  ;;  %v4186_v2 = vld [vmem:[%s5359_s19 + $0x260] sm:$0xff] }
 0xb7f   : > { %3133 = vmatpush.bf16.msra.mxu0 %v4158_v63  ;;  %3146 = vmatpush.bf16.msra.mxu1 %v4166_v0  ;;  %v4178_v0 = vld [vmem:[%s5359_s19 + $0x220] sm:$0xff] }
 0xb80   : > { %3107 = vmatpush.bf16.msrb.mxu3 %v4142_v3  ;;  %3120 = vmatpush.bf16.msra.mxu2 %v4150_v4 }
 0xb9f   : > { %v1815_v9 = vpop.f32.mrf.mxu0  ;;  %v1828_v10 = vpop.f32.mrf.mxu1 }
 0xba0   : > { %v1816_v11 = vadd.f32 %v1815_v9, %v1587_v6  ;;  %v1829_v12 = vadd.f32 %v1828_v10, %v1588_v8  ;;  %v4192_v6 = vld [vmem:[%s5359_s19 + $0x290] sm:$0xff] }
 0xba1   : > { %v4200_v8 = vld [vmem:[%s5359_s19 + $0x2d0] sm:$0xff] }
 0xba2   : > { %v1990_v16 = vmax.f32 %v1816_v11, 0.0  ;;  %v1991_v17 = vmax.f32 %v1829_v12, 0.0  ;;  %v4177_v11 = vld [vmem:[%s5359_s19 + $0x218] sm:$0xff] }
 0xba3   : > { %v4185_v12 = vld [vmem:[%s5359_s19 + $0x258] sm:$0xff] }
 0xba4   : > { %v2263_v19 = vpack.c.bf16 %v1990_v16, %v1990_v16  ;;  %v2264_v20 = vpack.c.bf16 %v1991_v17, %v1991_v17  ;;  %v1789_v15 = vpop.f32.mrf.mxu3  ;;  %v1802_v22 = vpop.f32.mrf.mxu2  ;;  %v4199_v16 = vld [vmem:[%s5359_s19 + $0x2c8] sm:$0xff] }
 0xba5   : > { %v1790_v23 = vadd.f32 %v1789_v15, %v1585_v13  ;;  %v1803_v26 = vadd.f32 %v1802_v22, %v1586_v14  ;;  %v5182_v13 = vld [vmem:[%s5358_s18 + $0x8] sm:$0xff]  ;;  %v4184_v15 = vld [vmem:[%s5359_s19 + $0x250] sm:$0xff] }
 0xba6   : > { %3082 = vmatmul.bf16.vlgmr.msrb.gmra.mxu0 %v2263_v19  ;;  %3095 = vmatmul.bf16.vlgmr.msrb.gmra.mxu1 %v2264_v20  ;;  %v4191_v14 = vld [vmem:[%s5359_s19 + $0x288] sm:$0xff]  ;;  %v1596_v19 = vperm.slane %v5182_v13, 3  ;;  %v4176_v20 = vld [vmem:[%s5359_s19 + $0x210] sm:$0xff] }
 0xba7   : > { %v1988_v28 = vmax.f32 %v1790_v23, 0.0  ;;  %v1989_v29 = vmax.f32 %v1803_v26, 0.0  ;;  %3178 = vmatpush.bf16.msrb.mxu0 %v4197_v18  ;;  %3191 = vmatpush.bf16.msrb.mxu1 %v4205_v24  ;;  %v1817_v27 = vpop.f32.mrf.mxu0  ;;  %v1830_v30 = vpop.f32.mrf.mxu1  ;;  %v1595_v24 = vperm.slane %v5182_v13, 2  ;;  %v4190_v26 = vld [vmem:[%s5359_s19 + $0x280] sm:$0xff] }
 0xba8   : > { %v4229_v30 = vld [vmem:[%s5359_s19 + $0x3b8] sm:$0xff] }
 0xba9   : > { %v2261_v7 = vpack.c.bf16 %v1988_v28, %v1988_v28  ;;  %v2262_v32 = vpack.c.bf16 %v1989_v29, %v1989_v29  ;;  %v4198_v28 = vld [vmem:[%s5359_s19 + $0x2c0] sm:$0xff] }
 0xbab   : > { %3179 = vmatpush.bf16.msrb.mxu0 %v4196_v31  ;;  %3192 = vmatpush.bf16.msrb.mxu1 %v4204_v25  ;;  %v4237_v31 = vld [vmem:[%s5359_s19 + $0x3f8] sm:$0xff]  ;;  %v4175_v25 = vld [vmem:[%s5359_s19 + $0x208] sm:$0xff] }
 0xbac   : > { %3056 = vmatmul.bf16.vlgmr.msra.gmra.mxu3 %v2261_v7  ;;  %3069 = vmatmul.bf16.vlgmr.msrb.gmra.mxu2 %v2262_v32  ;;  %v1791_v37 = vpop.f32.mrf.mxu3  ;;  %v1804_v38 = vpop.f32.mrf.mxu2  ;;  %v4183_v7 = vld [vmem:[%s5359_s19 + $0x248] sm:$0xff]  ;;  %v1593_v32 = vperm.slane %v5182_v13, 0 }
 0xbad   : > { %3152 = vmatpush.bf16.msra.mxu3 %v4181_v33  ;;  %3165 = vmatpush.bf16.msrb.mxu2 %v4189_v34  ;;  %v1594_v33 = vperm.slane %v5182_v13, 1 }
 0xbaf   : > { %3180 = vmatpush.bf16.msrb.mxu0 %v4195_v35  ;;  %3193 = vmatpush.bf16.msrb.mxu1 %v4203_v36  ;;  %v1867_v43 = vpop.f32.mrf.mxu0  ;;  %v1880_v44 = vpop.f32.mrf.mxu1 }
 0xbb0   : > { %v1868_v47 = vadd.f32 %v1867_v43, %v1591_v39  ;;  %v1881_v48 = vadd.f32 %v1880_v44, %v1592_v40  ;;  %v4228_v40 = vld [vmem:[%s5359_s19 + $0x3b0] sm:$0xff]  ;;  %v4174_v44 = vld [vmem:[%s5359_s19 + $0x200] sm:$0xff] }
 0xbb1   : > { %3153 = vmatpush.bf16.msra.mxu3 %v4180_v41  ;;  %3166 = vmatpush.bf16.msrb.mxu2 %v4188_v42  ;;  %v4236_v41 = vld [vmem:[%s5359_s19 + $0x3f0] sm:$0xff] }
 0xbb2   : > { %v1994_v53 = vmax.f32 %v1868_v47, 0.0  ;;  %v1995_v54 = vmax.f32 %v1881_v48, 0.0  ;;  %v4221_v47 = vld [vmem:[%s5359_s19 + $0x378] sm:$0xff] }
 0xbb3   : > { %3181 = vmatpush.bf16.msrb.mxu0 %v4194_v45  ;;  %3194 = vmatpush.bf16.msrb.mxu1 %v4202_v46  ;;  %v4182_v45 = vld [vmem:[%s5359_s19 + $0x240] sm:$0xff]  ;;  %v4213_v46 = vld [vmem:[%s5359_s19 + $0x338] sm:$0xff] }
 0xbb4   : > { %v2267_v57 = vpack.c.bf16 %v1994_v53, %v1994_v53  ;;  %v2268_v58 = vpack.c.bf16 %v1995_v54, %v1995_v54  ;;  %v1841_v59 = vpop.f32.mrf.mxu3  ;;  %v1854_v60 = vpop.f32.mrf.mxu2  ;;  %v4235_v53 = vld [vmem:[%s5359_s19 + $0x3e8] sm:$0xff] }
 0xbb5   : > { %3154 = vmatpush.bf16.msra.mxu3 %v4179_v49  ;;  %3167 = vmatpush.bf16.msrb.mxu2 %v4187_v50  ;;  %v1842_v62 = vadd.f32 %v1841_v59, %v1589_v51  ;;  %v1855_v63 = vadd.f32 %v1854_v60, %v1590_v52  ;;  %v4227_v52 = vld [vmem:[%s5359_s19 + $0x3a8] sm:$0xff]  ;;  %v4226_v60 = vld [vmem:[%s5359_s19 + $0x3a0] sm:$0xff] }
 0xbb6   : > { %3134 = vmatmul.bf16.vlgmr.msra.gmra.mxu0 %v2267_v57  ;;  %3147 = vmatmul.bf16.vlgmr.msra.gmra.mxu1 %v2268_v58  ;;  %v4220_v57 = vld [vmem:[%s5359_s19 + $0x370] sm:$0xff] }
 0xbb7   : > { %v1992_v1 = vmax.f32 %v1842_v62, 0.0  ;;  %v1993_v3 = vmax.f32 %v1855_v63, 0.0  ;;  %3182 = vmatpush.bf16.msrb.mxu0 %v4193_v55  ;;  %3195 = vmatpush.bf16.msrb.mxu1 %v4201_v56  ;;  %v1869_v4 = vpop.f32.mrf.mxu0  ;;  %v1882_v5 = vpop.f32.mrf.mxu1  ;;  %v4212_v56 = vld [vmem:[%s5359_s19 + $0x330] sm:$0xff]  ;;  %v4234_v62 = vld [vmem:[%s5359_s19 + $0x3e0] sm:$0xff]  ;;  %v4211_v63 = vld [vmem:[%s5359_s19 + $0x328] sm:$0xff] }
 0xbb8   : > { %v4233_v4 = vld [vmem:[%s5359_s19 + $0x3d8] sm:$0xff]  ;;  %v4210_v5 = vld [vmem:[%s5359_s19 + $0x320] sm:$0xff] }
 0xbb9   : > { %v2265_v9 = vpack.c.bf16 %v1992_v1, %v1992_v1  ;;  %v2266_v10 = vpack.c.bf16 %v1993_v3, %v1993_v3  ;;  %3155 = vmatpush.bf16.msra.mxu3 %v4178_v0  ;;  %3168 = vmatpush.bf16.msrb.mxu2 %v4186_v2  ;;  %v4219_v0 = vld [vmem:[%s5359_s19 + $0x368] sm:$0xff]  ;;  %v4225_v3 = vld [vmem:[%s5359_s19 + $0x398] sm:$0xff] }
 0xbbb   : > { %3183 = vmatpush.bf16.msrb.mxu0 %v4192_v6  ;;  %3196 = vmatpush.bf16.msrb.mxu1 %v4200_v8  ;;  %v4218_v6 = vld [vmem:[%s5359_s19 + $0x360] sm:$0xff] }
 0xbbc   : > { %3108 = vmatmul.bf16.vlgmr.msrb.gmra.mxu3 %v2265_v9  ;;  %3121 = vmatmul.bf16.vlgmr.msra.gmra.mxu2 %v2266_v10  ;;  %v1843_v17 = vpop.f32.mrf.mxu3  ;;  %v1856_v18 = vpop.f32.mrf.mxu2  ;;  %v4224_v10 = vld [vmem:[%s5359_s19 + $0x390] sm:$0xff] }
 0xbbd   : > { %3156 = vmatpush.bf16.msra.mxu3 %v4177_v11  ;;  %3169 = vmatpush.bf16.msrb.mxu2 %v4185_v12  ;;  %v4232_v11 = vld [vmem:[%s5359_s19 + $0x3d0] sm:$0xff]  ;;  %v1599_v12 = vperm.slane %v5182_v13, 6  ;;  %v4217_v17 = vld [vmem:[%s5359_s19 + $0x358] sm:$0xff] }
 0xbbf   : > { %3184 = vmatpush.bf16.msrb.mxu0 %v4191_v14  ;;  %3197 = vmatpush.bf16.msrb.mxu1 %v4199_v16  ;;  %v1919_v22 = vpop.f32.mrf.mxu0  ;;  %v1932_v23 = vpop.f32.mrf.mxu1  ;;  %v1600_v14 = vperm.slane %v5182_v13, 7  ;;  %v4209_v16 = vld [vmem:[%s5359_s19 + $0x318] sm:$0xff] }
 0xbc0   : > { %v1920_v29 = vadd.f32 %v1919_v22, %v1595_v24  ;;  %v1933_v27 = vadd.f32 %v1932_v23, %v1596_v19  ;;  %v4223_v19 = vld [vmem:[%s5359_s19 + $0x388] sm:$0xff]  ;;  %v4208_v23 = vld [vmem:[%s5359_s19 + $0x310] sm:$0xff] }
 0xbc1   : > { %3157 = vmatpush.bf16.msra.mxu3 %v4176_v20  ;;  %3170 = vmatpush.bf16.msrb.mxu2 %v4184_v15  ;;  %v4231_v20 = vld [vmem:[%s5359_s19 + $0x3c8] sm:$0xff] }
 0xbc2   : > { %v1998_v34 = vmax.f32 %v1920_v29, 0.0  ;;  %v1999_v35 = vmax.f32 %v1933_v27, 0.0  ;;  %v1598_v29 = vperm.slane %v5182_v13, 5 }
 0xbc3   : > { %3185 = vmatpush.bf16.msrb.mxu0 %v4190_v26  ;;  %3198 = vmatpush.bf16.msrb.mxu1 %v4198_v28  ;;  %v4216_v26 = vld [vmem:[%s5359_s19 + $0x350] sm:$0xff]  ;;  %v1597_v28 = vperm.slane %v5182_v13, 4  ;;  %v4207_v13 = vld [vmem:[%s5359_s19 + $0x308] sm:$0xff] }
 0xbc4   : > { %v2271_v36 = vpack.c.bf16 %v1998_v34, %v1998_v34  ;;  %v2272_v37 = vpack.c.bf16 %v1999_v35, %v1999_v35  ;;  %v1893_v38 = vpop.f32.mrf.mxu3  ;;  %v1906_v39 = vpop.f32.mrf.mxu2 }
 0xbc5   : > { %3158 = vmatpush.bf16.msra.mxu3 %v4175_v25  ;;  %3171 = vmatpush.bf16.msrb.mxu2 %v4183_v7  ;;  %v1894_v42 = vadd.f32 %v1893_v38, %v1593_v32  ;;  %v1907_v43 = vadd.f32 %v1906_v39, %v1594_v33  ;;  %v4230_v25 = vld [vmem:[%s5359_s19 + $0x3c0] sm:$0xff]  ;;  %v4215_v33 = vld [vmem:[%s5359_s19 + $0x348] sm:$0xff] }
 0xbc6   : > { %3186 = vmatmul.bf16.vlgmr.msrb.gmra.mxu0 %v2271_v36  ;;  %3199 = vmatmul.bf16.vlgmr.msrb.gmra.mxu1 %v2272_v37  ;;  %v4206_v38 = vld [vmem:[%s5359_s19 + $0x300] sm:$0xff] }
 0xbc7   : > { %3230 = vmatpush.bf16.msra.mxu0 %v4229_v30  ;;  %3243 = vmatpush.bf16.msra.mxu1 %v4237_v31  ;;  %v1996_v48 = vmax.f32 %v1894_v42, 0.0  ;;  %v1997_v49 = vmax.f32 %v1907_v43, 0.0  ;;  %v1921_v50 = vpop.f32.mrf.mxu0  ;;  %v1934_v51 = vpop.f32.mrf.mxu1  ;;  %v4222_v31 = vld [vmem:[%s5359_s19 + $0x380] sm:$0xff] }
 0xbc8   : > { %v4214_v39 = vld [vmem:[%s5359_s19 + $0x340] sm:$0xff] }
 0xbc9   : > { %v2269_v54 = vpack.c.bf16 %v1996_v48, %v1996_v48  ;;  %v2270_v55 = vpack.c.bf16 %v1997_v49, %v1997_v49  ;;  %3159 = vmatpush.bf16.msra.mxu3 %v4174_v44  ;;  %3172 = vmatpush.bf16.msrb.mxu2 %v4182_v45 }
 0xbcb   : > { %3231 = vmatpush.bf16.msra.mxu0 %v4228_v40  ;;  %3244 = vmatpush.bf16.msra.mxu1 %v4236_v41 }
 0xbcc   : > { %v1895_v58 = vpop.f32.mrf.mxu3  ;;  %v1908_v59 = vpop.f32.mrf.mxu2  ;;  %3160 = vmatmul.bf16.vlgmr.msra.gmra.mxu3 %v2269_v54  ;;  %3173 = vmatmul.bf16.vlgmr.msrb.gmra.mxu2 %v2270_v55 }
 0xbcd   : > { %3204 = vmatpush.bf16.msrb.mxu3 %v4213_v46  ;;  %3217 = vmatpush.bf16.msra.mxu2 %v4221_v47 }
 0xbcf   : > { %3232 = vmatpush.bf16.msra.mxu0 %v4227_v52  ;;  %3245 = vmatpush.bf16.msra.mxu1 %v4235_v53  ;;  %v1971_v2 = vpop.f32.mrf.mxu0  ;;  %v1984_v1 = vpop.f32.mrf.mxu1 }
 0xbd0   : > { %v1972_v15 = vadd.f32 %v1971_v2, %v1599_v12  ;;  %v1985_v22 = vadd.f32 %v1984_v1, %v1600_v14 }
 0xbd1   : > { %3205 = vmatpush.bf16.msrb.mxu3 %v4212_v56  ;;  %3218 = vmatpush.bf16.msra.mxu2 %v4220_v57  ;;  %v4267_v56 = vld [vmem:[%s5360_s20] ss:$0 sm:$0xff] }
 0xbd2   : > { %v2002_v7 = vmax.f32 %v1972_v15, 0.0  ;;  %v2003_v32 = vmax.f32 %v1985_v22, 0.0 }
 0xbd3   : > { %3233 = vmatpush.bf16.msra.mxu0 %v4226_v60  ;;  %3246 = vmatpush.bf16.msra.mxu1 %v4234_v62 }
 0xbd4   : > { %v1945_v8 = vpop.f32.mrf.mxu3  ;;  %v1958_v9 = vpop.f32.mrf.mxu2  ;;  %v2275_v36 = vpack.c.bf16 %v2002_v7, %v2002_v7  ;;  %v2276_v37 = vpack.c.bf16 %v2003_v32, %v2003_v32 }
 0xbd5   : > { %3206 = vmatpush.bf16.msrb.mxu3 %v4211_v63  ;;  %3219 = vmatpush.bf16.msra.mxu2 %v4219_v0  ;;  %v1946_v34 = vadd.f32 %v1945_v8, %v1597_v28  ;;  %v1959_v35 = vadd.f32 %v1958_v9, %v1598_v29 }
 0xbd7   : > { %3234 = vmatpush.bf16.msra.mxu0 %v4225_v3  ;;  %3247 = vmatpush.bf16.msra.mxu1 %v4233_v4  ;;  %v1973_v18 = vpop.f32.mrf.mxu0  ;;  %v1986_v24 = vpop.f32.mrf.mxu1  ;;  %v2000_v40 = vmax.f32 %v1946_v34, 0.0  ;;  %v2001_v41 = vmax.f32 %v1959_v35, 0.0 }
 0xbd9   : > { %3207 = vmatpush.bf16.msrb.mxu3 %v4210_v5  ;;  %3220 = vmatpush.bf16.msra.mxu2 %v4218_v6  ;;  %v2273_v42 = vpack.c.bf16 %v2000_v40, %v2000_v40  ;;  %v2274_v43 = vpack.c.bf16 %v2001_v41, %v2001_v41 }
 0xbdb   : > { %3235 = vmatpush.bf16.msra.mxu0 %v4224_v10  ;;  %3248 = vmatpush.bf16.msra.mxu1 %v4232_v11 }
 0xbdc   : > { %v1947_v27 = vpop.f32.mrf.mxu3  ;;  %v1960_v30 = vpop.f32.mrf.mxu2 }
 0xbdd   : > { %3208 = vmatpush.bf16.msrb.mxu3 %v4209_v16  ;;  %3221 = vmatpush.bf16.msra.mxu2 %v4217_v17 }
 0xbdf   : > { %3236 = vmatpush.bf16.msra.mxu0 %v4223_v19  ;;  %3249 = vmatpush.bf16.msra.mxu1 %v4231_v20 }
 0xbe1   : > { %3209 = vmatpush.bf16.msrb.mxu3 %v4208_v23  ;;  %3222 = vmatpush.bf16.msra.mxu2 %v4216_v26 }
 0xbe3   : > { %3237 = vmatpush.bf16.msra.mxu0 %v4222_v31  ;;  %3250 = vmatpush.bf16.msra.mxu1 %v4230_v25 }
 0xbe5   : > { %3210 = vmatpush.bf16.msrb.mxu3 %v4207_v13  ;;  %3223 = vmatpush.bf16.msra.mxu2 %v4215_v33 }
 0xbe6   : > { %3238 = vmatmul.bf16.vlgmr.msra.gmra.mxu0 %v2275_v36  ;;  %3251 = vmatmul.bf16.vlgmr.msra.gmra.mxu1 %v2276_v37 }
 0xbe9   : > { %3211 = vmatpush.bf16.msrb.mxu3 %v4206_v38  ;;  %3224 = vmatpush.bf16.msra.mxu2 %v4214_v39 }
 0xbec   : > { %3212 = vmatmul.bf16.vlgmr.msrb.gmra.mxu3 %v2273_v42  ;;  %3225 = vmatmul.bf16.vlgmr.msra.gmra.mxu2 %v2274_v43 }
 0xc23   : > { %v3083_v44 = vpop.f32.mrf.mxu0  ;;  %v3096_v45 = vpop.f32.mrf.mxu1 }
 0xc2b   : > { %v3085_v46 = vpop.f32.mrf.mxu0  ;;  %v3098_v47 = vpop.f32.mrf.mxu1 }
 0xc2c   : > { %v4268_v46 = vld [vmem:[%s5361_s21] ss:$0 sm:$0xff] }
 0xc2f   : > { %v3057_v48 = vpop.f32.mrf.mxu3  ;;  %v3070_v49 = vpop.f32.mrf.mxu2 }
 0xc30   : > { %v3058_v59 = vadd.f32 %v4267_v56, %v3057_v48 }
 0xc32   : > { %v3071_v63 = vadd.f32 %v3070_v49, %v3058_v59 }
 0xc33   : > { %v3135_v50 = vpop.f32.mrf.mxu0  ;;  %v3148_v51 = vpop.f32.mrf.mxu1 }
 0xc34   : > { %v3084_v1 = vadd.f32 %v3083_v44, %v3071_v63 }
 0xc36   : > { %v3097_v5 = vadd.f32 %v3096_v45, %v3084_v1 }
 0xc37   : > { %v3059_v52 = vpop.f32.mrf.mxu3  ;;  %v3072_v53 = vpop.f32.mrf.mxu2 }
 0xc3b   : > { %v3137_v54 = vpop.f32.mrf.mxu0  ;;  %v3150_v55 = vpop.f32.mrf.mxu1 }
 0xc3f   : > { %v3109_v57 = vpop.f32.mrf.mxu3  ;;  %v3122_v58 = vpop.f32.mrf.mxu2 }
 0xc40   : > { %v3110_v9 = vadd.f32 %v3109_v57, %v3097_v5 }
 0xc42   : > { %v3123_v10 = vadd.f32 %v3122_v58, %v3110_v9 }
 0xc43   : > { %v3187_v60 = vpop.f32.mrf.mxu0  ;;  %v3200_v62 = vpop.f32.mrf.mxu1 }
 0xc44   : > { %v3136_v14 = vadd.f32 %v3135_v50, %v3123_v10 }
 0xc46   : > { %v3149_v16 = vadd.f32 %v3148_v51, %v3136_v14 }
 0xc47   : > { %v3111_v0 = vpop.f32.mrf.mxu3  ;;  %v3124_v2 = vpop.f32.mrf.mxu2 }
 0xc4b   : > { %v3189_v3 = vpop.f32.mrf.mxu0  ;;  %v3202_v4 = vpop.f32.mrf.mxu1 }
 0xc4f   : > { %v3161_v6 = vpop.f32.mrf.mxu3  ;;  %v3174_v8 = vpop.f32.mrf.mxu2 }
 0xc50   : > { %v3162_v17 = vadd.f32 %v3161_v6, %v3149_v16 }
 0xc52   : > { %v3175_v19 = vadd.f32 %v3174_v8, %v3162_v17 }
 0xc54   : > { %v3188_v20 = vadd.f32 %v3187_v60, %v3175_v19 }
 0xc56   : > { %v3201_v23 = vadd.f32 %v3200_v62, %v3188_v20 }
 0xc57   : > { %v3163_v11 = vpop.f32.mrf.mxu3  ;;  %v3176_v12 = vpop.f32.mrf.mxu2 }
 0xc63   : > { %v3239_v18 = vpop.f32.mrf.mxu0  ;;  %v3252_v24 = vpop.f32.mrf.mxu1 }
 0xc6b   : > { %v3241_v15 = vpop.f32.mrf.mxu0  ;;  %v3254_v22 = vpop.f32.mrf.mxu1 }
 0xc6f   : > { %v3213_v26 = vpop.f32.mrf.mxu3  ;;  %v3226_v28 = vpop.f32.mrf.mxu2 }
 0xc70   : > { %v3214_v29 = vadd.f32 %v3213_v26, %v3201_v23 }
 0xc72   : > { %v3227_v27 = vadd.f32 %v3226_v28, %v3214_v29 }
 0xc74   : > { %v3240_v30 = vadd.f32 %v3239_v18, %v3227_v27 }
 0xc76   : > { %v3253_v31 = vadd.f32 %v3252_v24, %v3240_v30 }
 0xc77   : > { %v3215_v25 = vpop.f32.mrf.mxu3  ;;  %v3228_v7 = vpop.f32.mrf.mxu2 }
 0xc78   : > { %v3256_v32 = vadd.f32 %v3253_v31, %v4789_v21 }
 0xc7a   : > { %v3259_v13 = vsel %vm748_vm0, %v3256_v32, 0.0 }
 0xc7b   : > { %3260 = vadd.xlane.f32.xlu2 %v3259_v13 }
 0xcee   : > { %v3261_v33 = vpop.xlane.xlu2 %3260 }
 0xcef   : > { %v3262_v34 = vmul.f32 %v3261_v33, %v4553_v61 }
 0xcf1   : > { %v3263_v35 = vsub.f32 %v3256_v32, %v3262_v34 }
 0xcf3   : > { %v3264_v36 = vmul.f32 %v3263_v35, %v3263_v35 }
 0xcf5   : > { %v3265_v37 = vsel %vm748_vm0, %v3264_v36, 0.0 }
 0xcf6   : > { %3266 = vadd.xlane.f32.xlu2 %v3265_v37 }
 0xd69   : > { %v3267_v38 = vpop.xlane.xlu2 %3266 }
 0xd6a   : > { %v3268_v39 = vmul.f32 %v3267_v38, %v4553_v61  ;;  %v4269_v61 = vld [vmem:[%s5362_s22] ss:$0 sm:$0xff] }
 0xd6c   : > { %v3269_v40 = vadd.f32 1e-05, %v3268_v39 }
 0xd6e   : > { %4308 = vrsqrt.f32 %v3269_v40  ;;  %vm3276_vm11 = vweird.f32 %v3269_v40 }
 0xd74   : > { %v4309_v41 = vpop.eup %4308 }
 0xd75   : > { %v3271_v42 = vmul.f32 %v4309_v41, %v3269_v40  ;;  %vm3277_vm10 = vweird.f32 %v4309_v41 }
 0xd76   : > { %vm3278_vm12 = vmor %vm3276_vm11, %vm3277_vm10 }
 0xd77   : > { %v3272_v21 = vmul.f32 %v4309_v41, %v3271_v42 }
 0xd79   : > { %v3273_v43 = vmul.f32 0.5, %v3272_v21 }
 0xd7b   : > { %v3274_v44 = vsub.f32 1.5, %v3273_v43 }
 0xd7d   : > { %v3275_v45 = vmul.f32 %v4309_v41, %v3274_v44 }
 0xd7f   : > { %v3279_v47 = vsel %vm3278_vm12, %v4309_v41, %v3275_v45 }
 0xd80   : > { %v3280_v48 = vmul.f32 %v3279_v47, %v3263_v35 }
 0xd82   : > { %v3284_v49 = vmul.f32 %v4268_v46, %v3280_v48 }
 0xd84   : > { %v3288_v50 = vadd.f32 %v4269_v61, %v3284_v49 }
 0xd86   : > { %3289 = vst.msk [vmem:[%s722_s7] sm:$0xff] %vm748_vm0, %v3288_v50 }
 0xd87 PF: > { %s33_s4 = sadd.s32 1, %s4316_s4  }
 0xd88   : > { %p30_p4 = scmp.ge.s32.totalorder %s33_s4, 4  }
 0xd8a   :  { %32 = sbr.rel (!%p30_p4) target bundleno = 9 (0x9), region = 145 }

</bundles_post_ra>
